<compile_context>
chip_gen: v6e
topology: v6e:2x2x1
jax: 0.10.0
libtpu: 0.0.40
codegen_flags: <defaults>
</compile_context>

<pallas_src>
import jax
import jax.numpy as jnp
from jax.experimental import pallas as pl
from jax.experimental.pallas import tpu as pltpu

HIDDEN = 384            # self.hidden_dim
INPUT = 768             # BERT hidden size
GATES = 4 * HIDDEN      # i, f, g, o (PyTorch gate order) — f is stripped at init
G3 = 3 * HIDDEN         # i, g, o only
FEAT = 64               # fin_feature out dim
N_CLASS = 3
LANE = 128              # TPU lane width (head outputs padded to this)


# ---------------------------------------------------------------------------
# Fused kernel: bidirectional LSTM cell x2 (zero initial state) + linear head.
#   x:    [Bp, 768]            fp32
#   w0/w1:[768, 2*3H]=[768,2304] bf16   (fwd i|g|o then bwd i|g|o, f-gate stripped)
#   b0/b1:[1, 2304]            fp32   (b_ih + b_hh, f-gate stripped)
#   wfin: [768, 128]           fp32   (cols 64..127 zero-padded)
#   bfin: [1, 128]             fp32
#   wfc:  [128, 128]           fp32   (only [:64, :3] nonzero)
#   bfc:  [1, 128]             fp32
#   feat_ref: [Bp, 128]  out_ref: [Bp, 128]
# ---------------------------------------------------------------------------
def _fused_lstm_head_kernel(x_ref, w0_ref, b0_ref, w1_ref, b1_ref,
                            wfin_ref, bfin_ref, wfc_ref, bfc_ref,
                            feat_ref, out_ref):
    def bidir_cell(x_bf16, w_ref, b_ref):
        gates = jnp.dot(x_bf16, w_ref[...],
                        preferred_element_type=jnp.float32) + b_ref[...]

        def one(off):
            i = jax.nn.sigmoid(gates[:, off:off + HIDDEN])
            g = jnp.tanh(gates[:, off + HIDDEN:off + 2 * HIDDEN])
            o = jax.nn.sigmoid(gates[:, off + 2 * HIDDEN:off + 3 * HIDDEN])
            # c = i*g (f-gate * c0 == 0 dropped), h = o * tanh(c)
            return o * jnp.tanh(i * g)

        return jnp.concatenate([one(0), one(G3)], axis=-1)   # [B, 2H]

    h0 = bidir_cell(x_ref[...].astype(jnp.bfloat16), w0_ref, b0_ref)
    # dropout(p=0.5) between layers -> identity (eval mode)
    h1 = bidir_cell(h0.astype(jnp.bfloat16), w1_ref, b1_ref)

    feat = jnp.dot(h1, wfin_ref[...],
                   preferred_element_type=jnp.float32) + bfin_ref[...]
    feat_ref[...] = feat
    out_ref[...] = jnp.dot(feat, wfc_ref[...],
                           preferred_element_type=jnp.float32) + bfc_ref[...]


def lstm_attention_forward(bert_cls, p):
    """bert_cls: [B, 768] == pretrained(...).last_hidden_state[:, 0]"""
    B = bert_cls.shape[0]
    Bp = ((B + 7) // 8) * 8          # pad batch to full sublane tiles
    x = bert_cls
    if Bp != B:
        x = jnp.pad(x, ((0, Bp - B), (0, 0)))

    vmem = pl.BlockSpec(memory_space=pltpu.MemorySpace.VMEM)
    feat_pad, out_pad = pl.pallas_call(
        _fused_lstm_head_kernel,
        out_shape=(jax.ShapeDtypeStruct((Bp, LANE), jnp.float32),
                   jax.ShapeDtypeStruct((Bp, LANE), jnp.float32)),
        in_specs=[vmem] * 9,
        out_specs=(vmem, vmem),
        compiler_params=pltpu.CompilerParams(
            vmem_limit_bytes=32 * 1024 * 1024),
    )(x, p["w0"], p["b0"], p["w1"], p["b1"],
      p["w_fin"], p["b_fin"], p["w_fc"], p["b_fc"])
    # TODO(synk): on v7x a batch-split grid over the two TensorCores could halve the
    # weight-stream time; omitted here since the fused single-shot kernel is the big win.

    outputs = out_pad[:B, :N_CLASS]
    feature = feat_pad[:B, :FEAT]
    return outputs, feature


# ---------------------------------------------------------------------------
# Parameter init (deterministic, mimics PyTorch uniform(-1/sqrt(H), 1/sqrt(H))).
# weight_hh matrices multiply h0 == 0, so they are not materialized.
# f-gate columns multiply into c0 == 0, so they are stripped.
# weight_W / weight_proj / relu are unused in forward and therefore skipped.
# ---------------------------------------------------------------------------
def init_params(key):
    keys = jax.random.split(key, 16)
    it = iter(keys)
    k = 1.0 / jnp.sqrt(jnp.float32(HIDDEN))
    u = lambda shape, lim=k: jax.random.uniform(next(it), shape, jnp.float32, -lim, lim)

    def lstm_dir(d_in):
        w = u((d_in, GATES))                 # transposed PyTorch weight_ih [4H, d_in]
        b = u((1, GATES)) + u((1, GATES))    # b_ih + b_hh (both always added)
        strip_f = lambda a: jnp.concatenate([a[:, :HIDDEN], a[:, 2 * HIDDEN:]], axis=1)
        return strip_f(w), strip_f(b)        # keep i, g, o

    w0f, b0f = lstm_dir(INPUT)
    w0b, b0b = lstm_dir(INPUT)
    w1f, b1f = lstm_dir(2 * HIDDEN)
    w1b, b1b = lstm_dir(2 * HIDDEN)

    p = {
        "w0": jnp.concatenate([w0f, w0b], axis=1).astype(jnp.bfloat16),  # [768, 2304]
        "b0": jnp.concatenate([b0f, b0b], axis=1),                       # [1, 2304] f32
        "w1": jnp.concatenate([w1f, w1b], axis=1).astype(jnp.bfloat16),  # [768, 2304]
        "b1": jnp.concatenate([b1f, b1b], axis=1),                       # [1, 2304] f32
    }

    kf = 1.0 / jnp.sqrt(jnp.float32(2 * HIDDEN))
    w_fin = jax.random.uniform(next(it), (2 * HIDDEN, FEAT), jnp.float32, -kf, kf)
    b_fin = jax.random.uniform(next(it), (1, FEAT), jnp.float32, -kf, kf)
    kc = 1.0 / jnp.sqrt(jnp.float32(FEAT))
    w_fc = jax.random.uniform(next(it), (FEAT, N_CLASS), jnp.float32, -kc, kc)
    b_fc = jax.random.uniform(next(it), (1, N_CLASS), jnp.float32, -kc, kc)

    # lane-pad the head so kernel outputs are 128-lane-dense (no masked stores)
    p["w_fin"] = jnp.pad(w_fin, ((0, 0), (0, LANE - FEAT)))
    p["b_fin"] = jnp.pad(b_fin, ((0, 0), (0, LANE - FEAT)))
    p["w_fc"] = jnp.pad(w_fc, ((0, LANE - FEAT), (0, LANE - N_CLASS)))
    p["b_fc"] = jnp.pad(b_fc, ((0, 0), (0, LANE - N_CLASS)))
    return p


# Pure-JAX reference (mirrors the kernel's bf16 weight/activation casts).
def reference_forward(bert_cls, p):
    def bidir_cell(x, w, b):
        g = jnp.dot(x.astype(jnp.bfloat16), w,
                    preferred_element_type=jnp.float32) + b

        def one(off):
            i = jax.nn.sigmoid(g[:, off:off + HIDDEN])
            gg = jnp.tanh(g[:, off + HIDDEN:off + 2 * HIDDEN])
            o = jax.nn.sigmoid(g[:, off + 2 * HIDDEN:off + 3 * HIDDEN])
            return o * jnp.tanh(i * gg)

        return jnp.concatenate([one(0), one(G3)], axis=-1)

    h0 = bidir_cell(bert_cls, p["w0"], p["b0"])
    h1 = bidir_cell(h0, p["w1"], p["b1"])
    feat = h1 @ p["w_fin"] + p["b_fin"]
    out = feat @ p["w_fc"] + p["b_fc"]
    return out[:, :N_CLASS], feat[:, :FEAT]


if __name__ == "__main__":
    key = jax.random.PRNGKey(0)
    kp, kx = jax.random.split(key)
    params = init_params(kp)

    B = 4
    # TODO(synk): the pretrained BertModel forward has no Pallas equivalent here;
    # we feed a synthetic [B, 768] CLS embedding standing in for last_hidden_state[:, 0].
    bert_cls = jax.random.normal(kx, (B, INPUT), dtype=jnp.float32)

    outputs, feature = lstm_attention_forward(bert_cls, params)
    jax.block_until_ready((outputs, feature))

    assert outputs.shape == (B, N_CLASS)
    assert feature.shape == (B, FEAT)

    ref_out, ref_feat = reference_forward(bert_cls, params)
    assert jnp.allclose(outputs, ref_out, atol=1e-2, rtol=1e-2)
    assert jnp.allclose(feature, ref_feat, atol=1e-2, rtol=1e-2)

    print("KERNEL_OK")
</pallas_src>

<mosaic_0001>
module attributes {stable_mosaic.version = 11 : i64} {
  func.func @_fused_lstm_head_kernel(%arg0: memref<8x768xf32, #tpu.memory_space<vmem>>, %arg1: memref<768x2304xbf16, #tpu.memory_space<vmem>>, %arg2: memref<1x2304xf32, #tpu.memory_space<vmem>>, %arg3: memref<768x2304xbf16, #tpu.memory_space<vmem>>, %arg4: memref<1x2304xf32, #tpu.memory_space<vmem>>, %arg5: memref<768x128xf32, #tpu.memory_space<vmem>>, %arg6: memref<1x128xf32, #tpu.memory_space<vmem>>, %arg7: memref<128x128xf32, #tpu.memory_space<vmem>>, %arg8: memref<1x128xf32, #tpu.memory_space<vmem>>, %arg9: memref<8x128xf32, #tpu.memory_space<vmem>>, %arg10: memref<8x128xf32, #tpu.memory_space<vmem>>) attributes {dimension_semantics = [], scalar_prefetch = 0 : i64, scratch_operands = 0 : i64, tpu.core_type = #tpu.core_type<tc>} {
    %c0 = arith.constant 0 : index
    %c0_0 = arith.constant 0 : index
    %0 = vector.load %arg0[%c0, %c0_0] : memref<8x768xf32, #tpu.memory_space<vmem>>, vector<8x768xf32>
    %1 = arith.truncf %0 : vector<8x768xf32> to vector<8x768xbf16>
    %c0_1 = arith.constant 0 : index
    %c0_2 = arith.constant 0 : index
    %2 = vector.load %arg1[%c0_1, %c0_2] : memref<768x2304xbf16, #tpu.memory_space<vmem>>, vector<768x2304xbf16>
    %cst = arith.constant dense<0.000000e+00> : vector<8x2304xf32>
    %3 = tpu.matmul %1, %2, %cst {dimension_numbers = #tpu.dot_dimension_numbers<[1], [0], [0], [1], [0, 0, 1, 1], [], []>} : vector<8x768xbf16>, vector<768x2304xbf16>, vector<8x2304xf32> -> vector<8x2304xf32>
    %c0_3 = arith.constant 0 : index
    %c0_4 = arith.constant 0 : index
    %4 = vector.load %arg2[%c0_3, %c0_4] : memref<1x2304xf32, #tpu.memory_space<vmem>>, vector<1x2304xf32>
    %5 = vector.broadcast %4 : vector<1x2304xf32> to vector<8x2304xf32>
    %6 = arith.addf %3, %5 : vector<8x2304xf32>
    %7 = vector.extract_strided_slice %6 {offsets = [0, 0], sizes = [8, 384], strides = [1, 1]} : vector<8x2304xf32> to vector<8x384xf32>
    %8 = arith.negf %7 : vector<8x384xf32>
    %9 = math.exp %8 : vector<8x384xf32>
    %cst_5 = arith.constant 1.000000e+00 : f32
    %10 = vector.broadcast %cst_5 : f32 to vector<8x384xf32>
    %11 = arith.addf %10, %9 : vector<8x384xf32>
    %12 = arith.divf %10, %11 : vector<8x384xf32>
    %13 = vector.extract_strided_slice %6 {offsets = [0, 384], sizes = [8, 384], strides = [1, 1]} : vector<8x2304xf32> to vector<8x384xf32>
    %14 = math.tanh %13 : vector<8x384xf32>
    %15 = vector.extract_strided_slice %6 {offsets = [0, 768], sizes = [8, 384], strides = [1, 1]} : vector<8x2304xf32> to vector<8x384xf32>
    %16 = arith.negf %15 : vector<8x384xf32>
    %17 = math.exp %16 : vector<8x384xf32>
    %cst_6 = arith.constant 1.000000e+00 : f32
    %18 = vector.broadcast %cst_6 : f32 to vector<8x384xf32>
    %19 = arith.addf %18, %17 : vector<8x384xf32>
    %20 = arith.divf %18, %19 : vector<8x384xf32>
    %21 = arith.mulf %12, %14 : vector<8x384xf32>
    %22 = math.tanh %21 : vector<8x384xf32>
    %23 = arith.mulf %20, %22 : vector<8x384xf32>
    %24 = vector.extract_strided_slice %6 {offsets = [0, 1152], sizes = [8, 384], strides = [1, 1]} : vector<8x2304xf32> to vector<8x384xf32>
    %25 = arith.negf %24 : vector<8x384xf32>
    %26 = math.exp %25 : vector<8x384xf32>
    %cst_7 = arith.constant 1.000000e+00 : f32
    %27 = vector.broadcast %cst_7 : f32 to vector<8x384xf32>
    %28 = arith.addf %27, %26 : vector<8x384xf32>
    %29 = arith.divf %27, %28 : vector<8x384xf32>
    %30 = vector.extract_strided_slice %6 {offsets = [0, 1536], sizes = [8, 384], strides = [1, 1]} : vector<8x2304xf32> to vector<8x384xf32>
    %31 = math.tanh %30 : vector<8x384xf32>
    %32 = vector.extract_strided_slice %6 {offsets = [0, 1920], sizes = [8, 384], strides = [1, 1]} : vector<8x2304xf32> to vector<8x384xf32>
    %33 = arith.negf %32 : vector<8x384xf32>
    %34 = math.exp %33 : vector<8x384xf32>
    %cst_8 = arith.constant 1.000000e+00 : f32
    %35 = vector.broadcast %cst_8 : f32 to vector<8x384xf32>
    %36 = arith.addf %35, %34 : vector<8x384xf32>
    %37 = arith.divf %35, %36 : vector<8x384xf32>
    %38 = arith.mulf %29, %31 : vector<8x384xf32>
    %39 = math.tanh %38 : vector<8x384xf32>
    %40 = arith.mulf %37, %39 : vector<8x384xf32>
    %41 = tpu.concatenate %23, %40 in 1 : vector<8x384xf32>, vector<8x384xf32> -> vector<8x768xf32>
    %42 = arith.truncf %41 : vector<8x768xf32> to vector<8x768xbf16>
    %c0_9 = arith.constant 0 : index
    %c0_10 = arith.constant 0 : index
    %43 = vector.load %arg3[%c0_9, %c0_10] : memref<768x2304xbf16, #tpu.memory_space<vmem>>, vector<768x2304xbf16>
    %cst_11 = arith.constant dense<0.000000e+00> : vector<8x2304xf32>
    %44 = tpu.matmul %42, %43, %cst_11 {dimension_numbers = #tpu.dot_dimension_numbers<[1], [0], [0], [1], [0, 0, 1, 1], [], []>} : vector<8x768xbf16>, vector<768x2304xbf16>, vector<8x2304xf32> -> vector<8x2304xf32>
    %c0_12 = arith.constant 0 : index
    %c0_13 = arith.constant 0 : index
    %45 = vector.load %arg4[%c0_12, %c0_13] : memref<1x2304xf32, #tpu.memory_space<vmem>>, vector<1x2304xf32>
    %46 = vector.broadcast %45 : vector<1x2304xf32> to vector<8x2304xf32>
    %47 = arith.addf %44, %46 : vector<8x2304xf32>
    %48 = vector.extract_strided_slice %47 {offsets = [0, 0], sizes = [8, 384], strides = [1, 1]} : vector<8x2304xf32> to vector<8x384xf32>
    %49 = arith.negf %48 : vector<8x384xf32>
    %50 = math.exp %49 : vector<8x384xf32>
    %cst_14 = arith.constant 1.000000e+00 : f32
    %51 = vector.broadcast %cst_14 : f32 to vector<8x384xf32>
    %52 = arith.addf %51, %50 : vector<8x384xf32>
    %53 = arith.divf %51, %52 : vector<8x384xf32>
    %54 = vector.extract_strided_slice %47 {offsets = [0, 384], sizes = [8, 384], strides = [1, 1]} : vector<8x2304xf32> to vector<8x384xf32>
    %55 = math.tanh %54 : vector<8x384xf32>
    %56 = vector.extract_strided_slice %47 {offsets = [0, 768], sizes = [8, 384], strides = [1, 1]} : vector<8x2304xf32> to vector<8x384xf32>
    %57 = arith.negf %56 : vector<8x384xf32>
    %58 = math.exp %57 : vector<8x384xf32>
    %cst_15 = arith.constant 1.000000e+00 : f32
    %59 = vector.broadcast %cst_15 : f32 to vector<8x384xf32>
    %60 = arith.addf %59, %58 : vector<8x384xf32>
    %61 = arith.divf %59, %60 : vector<8x384xf32>
    %62 = arith.mulf %53, %55 : vector<8x384xf32>
    %63 = math.tanh %62 : vector<8x384xf32>
    %64 = arith.mulf %61, %63 : vector<8x384xf32>
    %65 = vector.extract_strided_slice %47 {offsets = [0, 1152], sizes = [8, 384], strides = [1, 1]} : vector<8x2304xf32> to vector<8x384xf32>
    %66 = arith.negf %65 : vector<8x384xf32>
    %67 = math.exp %66 : vector<8x384xf32>
    %cst_16 = arith.constant 1.000000e+00 : f32
    %68 = vector.broadcast %cst_16 : f32 to vector<8x384xf32>
    %69 = arith.addf %68, %67 : vector<8x384xf32>
    %70 = arith.divf %68, %69 : vector<8x384xf32>
    %71 = vector.extract_strided_slice %47 {offsets = [0, 1536], sizes = [8, 384], strides = [1, 1]} : vector<8x2304xf32> to vector<8x384xf32>
    %72 = math.tanh %71 : vector<8x384xf32>
    %73 = vector.extract_strided_slice %47 {offsets = [0, 1920], sizes = [8, 384], strides = [1, 1]} : vector<8x2304xf32> to vector<8x384xf32>
    %74 = arith.negf %73 : vector<8x384xf32>
    %75 = math.exp %74 : vector<8x384xf32>
    %cst_17 = arith.constant 1.000000e+00 : f32
    %76 = vector.broadcast %cst_17 : f32 to vector<8x384xf32>
    %77 = arith.addf %76, %75 : vector<8x384xf32>
    %78 = arith.divf %76, %77 : vector<8x384xf32>
    %79 = arith.mulf %70, %72 : vector<8x384xf32>
    %80 = math.tanh %79 : vector<8x384xf32>
    %81 = arith.mulf %78, %80 : vector<8x384xf32>
    %82 = tpu.concatenate %64, %81 in 1 : vector<8x384xf32>, vector<8x384xf32> -> vector<8x768xf32>
    %c0_18 = arith.constant 0 : index
    %c0_19 = arith.constant 0 : index
    %83 = vector.load %arg5[%c0_18, %c0_19] : memref<768x128xf32, #tpu.memory_space<vmem>>, vector<768x128xf32>
    %cst_20 = arith.constant dense<0.000000e+00> : vector<8x128xf32>
    %84 = tpu.matmul %82, %83, %cst_20 {dimension_numbers = #tpu.dot_dimension_numbers<[1], [0], [0], [1], [0, 0, 1, 1], [], []>} : vector<8x768xf32>, vector<768x128xf32>, vector<8x128xf32> -> vector<8x128xf32>
    %c0_21 = arith.constant 0 : index
    %c0_22 = arith.constant 0 : index
    %85 = vector.load %arg6[%c0_21, %c0_22] : memref<1x128xf32, #tpu.memory_space<vmem>>, vector<1x128xf32>
    %86 = vector.broadcast %85 : vector<1x128xf32> to vector<8x128xf32>
    %87 = arith.addf %84, %86 : vector<8x128xf32>
    %c0_23 = arith.constant 0 : index
    %c0_24 = arith.constant 0 : index
    %88 = vector.load %arg9[%c0_23, %c0_24] : memref<8x128xf32, #tpu.memory_space<vmem>>, vector<8x128xf32>
    tpu.vector_store %arg9[%c0_23, %c0_24], %87 {strides = array<i32>} : memref<8x128xf32, #tpu.memory_space<vmem>>, vector<8x128xf32>,
    %c0_25 = arith.constant 0 : index
    %c0_26 = arith.constant 0 : index
    %89 = vector.load %arg7[%c0_25, %c0_26] : memref<128x128xf32, #tpu.memory_space<vmem>>, vector<128x128xf32>
    %cst_27 = arith.constant dense<0.000000e+00> : vector<8x128xf32>
    %90 = tpu.matmul %87, %89, %cst_27 {dimension_numbers = #tpu.dot_dimension_numbers<[1], [0], [0], [1], [0, 0, 1, 1], [], []>} : vector<8x128xf32>, vector<128x128xf32>, vector<8x128xf32> -> vector<8x128xf32>
    %c0_28 = arith.constant 0 : index
    %c0_29 = arith.constant 0 : index
    %91 = vector.load %arg8[%c0_28, %c0_29] : memref<1x128xf32, #tpu.memory_space<vmem>>, vector<1x128xf32>
    %92 = vector.broadcast %91 : vector<1x128xf32> to vector<8x128xf32>
    %93 = arith.addf %90, %92 : vector<8x128xf32>
    %c0_30 = arith.constant 0 : index
    %c0_31 = arith.constant 0 : index
    %94 = vector.load %arg10[%c0_30, %c0_31] : memref<8x128xf32, #tpu.memory_space<vmem>>, vector<8x128xf32>
    tpu.vector_store %arg10[%c0_30, %c0_31], %93 {strides = array<i32>} : memref<8x128xf32, #tpu.memory_space<vmem>>, vector<8x128xf32>,
    return
  }
}

</mosaic_0001>

<bundles_post_ra>
// kernel: tpu_custom_call.1
= control target key start
LH: loop header
LB: loop body
LE: loop exit
PB: predicated region body
PF: predicated region fallthrough
CT: control target
= control target key end

     0   :  { %16 = vsyncpa [#allocation3], 0  ;;  %s19080_s0 = inlined_call_operand.hbm [shape: f32[8,768], index: 0, kind: input, shape index: {}]   ;;  %s19081_s1 = inlined_call_operand.hbm [shape: bf16[768,2304], index: 1, kind: input, shape index: {}]   ;;  %s19082_s2 = inlined_call_operand.hbm [shape: f32[1,2304], index: 2, kind: input, shape index: {}]   ;;  %s19083_s3 = inlined_call_operand.hbm [shape: bf16[768,2304], index: 3, kind: input, shape index: {}]   ;;  %s19084_s4 = inlined_call_operand.hbm [shape: f32[1,2304], index: 4, kind: input, shape index: {}]   ;;  %s19085_s5 = inlined_call_operand.hbm [shape: f32[768,128], index: 5, kind: input, shape index: {}]   ;;  %s19086_s6 = inlined_call_operand.hbm [shape: f32[1,128], index: 6, kind: input, shape index: {}]   ;;  %s19087_s7 = inlined_call_operand.hbm [shape: f32[128,128], index: 7, kind: input, shape index: {}]   ;;  %s19088_s8 = inlined_call_operand.hbm [shape: f32[1,128], index: 8, kind: input, shape index: {}]   ;;  %s19089_s9 = inlined_call_operand.hbm [shape: f32[8,128], index: 9, kind: output, shape index: {0}]   ;;  %s19090_s10 = inlined_call_operand.hbm [shape: f32[8,128], index: 10, kind: output, shape index: {1}]  }
   0x1   :  { %17 = vsyncpa [#allocation6], 0 }
   0x2   :  { %18 = vsyncpa [#allocation9], 0 }
   0x3   :  { %19 = vsyncpa [#allocation12], 0 }
   0x4   :  { %20 = vsyncpa [#allocation15], 0 }
   0x5   :  { %21 = vsyncpa [#allocation4], 0 }
   0x6   :  { %22 = vsyncpa [#allocation19], 0  ;;  %s18477_s13 = smov [#allocation5]  }
   0x7   :  { %s38_s14 = sshll.u32 %s18477_s13, 4  ;;  %s39_s14 = int_to_ptr.vmem [resolvable:$true] %s38_s14 }
   0x8   :  { %s18251_s15 = scalar_lea.vmem %s39_s14, 110592  ;;  %p18256_p1 = scmp.lt.s32.totalorder %s39_s14, %s39_s14 }
   0x9   :  { %p18252_p0 = scmp.ne.s32.totalorder %s39_s14, %s18251_s15  ;;  %p18257_p2 = scmp.lt.s32.totalorder %s18251_s15, %s18251_s15 }
   0xb   :  { %p18258_p3 = por %p18257_p2, %p18256_p1 }
   0xd   :  { %p18259_p4 = pnand %p18258_p3, %p18252_p0 }
   0xf   :  { %18262 = shalt.err (!%p18259_p4)
}
  0x10   :  { %s18478_s16 = smov 1152   ;;  %s18479_s17 = smov 72  }
  0x11   :  { %44 = dma.hbm_to_vmem [thread:$0]  %s19081_s1, 110592, %s39_s14, [#allocation6], %s18478_s16, %s18478_s16, %s18479_s17  }
  0x12   :  { %s18480_s20 = smov [#allocation8]   ;;  %s18481_s22 = smov [#allocation11]  }
  0x13   :  { %s60_s21 = sshll.u32 %s18480_s20, 4  ;;  %s82_s23 = sshll.u32 %s18481_s22, 4  ;;  %s61_s21 = int_to_ptr.vmem [resolvable:$true] %s60_s21  ;;  %s83_s23 = int_to_ptr.vmem [resolvable:$true] %s82_s23 }
  0x14   :  { %s18271_s24 = scalar_lea.vmem %s61_s21, 110592  ;;  %p18276_p6 = scmp.lt.s32.totalorder %s61_s21, %s61_s21 }
  0x15   :  { %p18272_p5 = scmp.ne.s32.totalorder %s61_s21, %s18271_s24  ;;  %p18277_p7 = scmp.lt.s32.totalorder %s18271_s24, %s18271_s24 }
  0x17   :  { %p18278_p8 = por %p18277_p7, %p18276_p6 }
  0x19   :  { %p18279_p9 = pnand %p18278_p8, %p18272_p5 }
  0x1b   :  { %18282 = shalt.err (!%p18279_p9)
}
  0x1c   :  { %66 = dma.hbm_to_vmem [thread:$0]  %s19083_s3, 110592, %s61_s21, [#allocation9], %s18478_s16, %s18478_s16, %s18479_s17  }
  0x1d   :  { %s18291_s27 = scalar_lea.vmem %s83_s23, 12288  ;;  %p18296_p11 = scmp.lt.s32.totalorder %s83_s23, %s83_s23 }
  0x1e   :  { %p18292_p10 = scmp.ne.s32.totalorder %s83_s23, %s18291_s27  ;;  %p18297_p12 = scmp.lt.s32.totalorder %s18291_s27, %s18291_s27 }
  0x20   :  { %p18298_p13 = por %p18297_p12, %p18296_p11 }
  0x22   :  { %p18299_p0 = pnand %p18298_p13, %p18292_p10 }
  0x24   :  { %18302 = shalt.err (!%p18299_p0)
}
  0x25   :  { %s18482_s1 = smov 128   ;;  %s18483_s28 = smov 8  }
  0x26   :  { %88 = dma.hbm_to_vmem [thread:$0]  %s19085_s5, 12288, %s83_s23, [#allocation12], %s18482_s1, %s18482_s1, %s18483_s28  }
  0x27   :  { %s18484_s11 = smov [#allocation14]   ;;  %s18485_s13 = smov [#allocation2]  }
  0x28   :  { %s104_s12 = sshll.u32 %s18484_s11, 4  ;;  %s29_s14 = sshll.u32 %s18485_s13, 4  ;;  %s105_s12 = int_to_ptr.vmem [resolvable:$true] %s104_s12  ;;  %s30_s14 = int_to_ptr.vmem [resolvable:$true] %s29_s14 }
  0x29   :  { %s18311_s3 = scalar_lea.vmem %s105_s12, 2048  ;;  %p18316_p2 = scmp.lt.s32.totalorder %s105_s12, %s105_s12 }
  0x2a   :  { %p18312_p1 = scmp.ne.s32.totalorder %s105_s12, %s18311_s3  ;;  %p18317_p3 = scmp.lt.s32.totalorder %s18311_s3, %s18311_s3 }
  0x2c   :  { %p18318_p4 = por %p18317_p3, %p18316_p2 }
  0x2e   :  { %p18319_p5 = pnand %p18318_p4, %p18312_p1 }
  0x30   :  { %18322 = shalt.err (!%p18319_p5)
}
  0x31   :  { %110 = dma.hbm_to_vmem [thread:$0]  %s19087_s7, 2048, %s105_s12, [#allocation15], %s18482_s1, %s18482_s1, %s18483_s28  }
  0x32   :  { %s18331_s17 = scalar_lea.vmem %s30_s14, 768  ;;  %p18336_p7 = scmp.lt.s32.totalorder %s30_s14, %s30_s14 }
  0x33   :  { %p18332_p6 = scmp.ne.s32.totalorder %s30_s14, %s18331_s17  ;;  %p18337_p8 = scmp.lt.s32.totalorder %s18331_s17, %s18331_s17 }
  0x35   :  { %p18338_p9 = por %p18337_p8, %p18336_p7 }
  0x37   :  { %p18339_p10 = pnand %p18338_p9, %p18332_p6 }
  0x39   :  { %18342 = shalt.err (!%p18339_p10)
}
  0x3a   :  { %32 = dma.hbm_to_vmem [thread:$0]  %s19080_s0, 768, %s30_s14, [#allocation3]  }
  0x3b   :  { %s18486_s19 = smov [#allocation7]   ;;  %s18487_s21 = smov [#allocation10]  }
  0x3c   :  { %s51_s20 = sshll.u32 %s18486_s19, 4  ;;  %s73_s22 = sshll.u32 %s18487_s21, 4  ;;  %s52_s20 = int_to_ptr.vmem [resolvable:$true] %s51_s20  ;;  %s74_s22 = int_to_ptr.vmem [resolvable:$true] %s73_s22 }
  0x3d   :  { %s18351_s23 = scalar_lea.vmem %s52_s20, 288  ;;  %p18356_p12 = scmp.lt.s32.totalorder %s52_s20, %s52_s20 }
  0x3e   :  { %p18352_p11 = scmp.ne.s32.totalorder %s52_s20, %s18351_s23  ;;  %p18357_p13 = scmp.lt.s32.totalorder %s18351_s23, %s18351_s23 }
  0x40   :  { %p18358_p0 = por %p18357_p13, %p18356_p12 }
  0x42   :  { %p18359_p1 = pnand %p18358_p0, %p18352_p11 }
  0x44   :  { %18362 = shalt.err (!%p18359_p1)
}
  0x45   :  { %54 = dma.hbm_to_vmem [thread:$0]  %s19082_s2, 288, %s52_s20, [#allocation6]  }
  0x46   :  { %s18371_s25 = scalar_lea.vmem %s74_s22, 288  ;;  %p18376_p3 = scmp.lt.s32.totalorder %s74_s22, %s74_s22 }
  0x47   :  { %p18372_p2 = scmp.ne.s32.totalorder %s74_s22, %s18371_s25  ;;  %p18377_p4 = scmp.lt.s32.totalorder %s18371_s25, %s18371_s25 }
  0x49   :  { %p18378_p5 = por %p18377_p4, %p18376_p3 }
  0x4b   :  { %p18379_p6 = pnand %p18378_p5, %p18372_p2 }
  0x4d   :  { %18382 = shalt.err (!%p18379_p6)
}
  0x4e   :  { %76 = dma.hbm_to_vmem [thread:$0]  %s19084_s4, 288, %s74_s22, [#allocation9]  }
  0x4f   :  { %s18488_s27 = smov [#allocation13]   ;;  %s18489_s28 = smov [#allocation16]  }
  0x50   :  { %s95_s1 = sshll.u32 %s18488_s27, 4  ;;  %s117_s29 = sshll.u32 %s18489_s28, 4  ;;  %s96_s1 = int_to_ptr.vmem [resolvable:$true] %s95_s1  ;;  %s118_s29 = int_to_ptr.vmem [resolvable:$true] %s117_s29 }
  0x51   :  { %s18391_s30 = scalar_lea.vmem %s96_s1, 16  ;;  %s18395_s2 = scalar_lea.vmem %s96_s1, 32 }
  0x52   :  { %p18392_p7 = scmp.ne.s32.totalorder %s96_s1, %s18391_s30  ;;  %p18396_p8 = scmp.lt.s32.totalorder %s96_s1, %s96_s1 }
  0x53   :  { %p18397_p9 = scmp.lt.s32.totalorder %s18395_s2, %s18391_s30 }
  0x55   :  { %p18398_p10 = por %p18397_p9, %p18396_p8 }
  0x57   :  { %p18399_p11 = pnand %p18398_p10, %p18392_p7 }
  0x59   :  { %18402 = shalt.err (!%p18399_p11)
}
  0x5a   :  { %98 = dma.hbm_to_vmem [thread:$0]  %s19086_s6, 16, %s96_s1, [#allocation12]  }
  0x5b   :  { %s18411_s13 = scalar_lea.vmem %s118_s29, 16  ;;  %s18415_s4 = scalar_lea.vmem %s118_s29, 32 }
  0x5c   :  { %p18412_p12 = scmp.ne.s32.totalorder %s118_s29, %s18411_s13  ;;  %p18416_p13 = scmp.lt.s32.totalorder %s118_s29, %s118_s29 }
  0x5d   :  { %p18417_p0 = scmp.lt.s32.totalorder %s18415_s4, %s18411_s13 }
  0x5f   :  { %p18418_p1 = por %p18417_p0, %p18416_p13 }
  0x61   :  { %p18419_p2 = pnand %p18418_p1, %p18412_p12 }
  0x63   :  { %18422 = shalt.err (!%p18419_p2)
}
  0x64   :  { %120 = dma.hbm_to_vmem [thread:$0]  %s19088_s8, 16, %s118_s29, [#allocation15]  }
  0x65   :  { %18463 = dma.done.wait [#allocation3], 768  }
  0x66   :  { %18464 = vsyncadd [#allocation3], 4294966528 }
  0x67   :  { %18465 = dma.done.wait [#allocation6], 110880  }
  0x68   :  { %18466 = vsyncadd [#allocation6], 4294856416 }
  0x69   :  { %18467 = dma.done.wait [#allocation9], 110880  }
  0x6a   :  { %18468 = vsyncadd [#allocation9], 4294856416 }
  0x6b   :  { %18469 = dma.done.wait [#allocation12], 12304  }
  0x6c   :  { %18470 = vsyncadd [#allocation12], 4294954992 }
  0x6d   :  { %18471 = dma.done.wait [#allocation15], 2064  }
  0x6e   :  { %18472 = vsyncadd [#allocation15], 4294965232  ;;  %v15501_v0 = vld [vmem:[#allocation5 + $0x3f4] ss:$72 sps:$4 sm:$0xff]   ;;  %v15505_v2 = vld [vmem:[#allocation5 + $0x3f0] ss:$72 sps:$4 sm:$0xff]  }
  0x6f   :  { %v15503_v1 = vld [vmem:[#allocation5 + $0xcf4] ss:$72 sps:$4 sm:$0xff]   ;;  %5440 = vmatprep.subr.bf16.mxu0 %v15501_v0  ;;  %v15506_v3 = vld [vmem:[#allocation5 + $0xcf0] ss:$72 sps:$4 sm:$0xff]   ;;  %v15507_v4 = vld [vmem:[#allocation5 + $0x364] ss:$72 sps:$4 sm:$0xff]  }
  0x70   :  { %5481 = vmatprep.subr.bf16.mxu1 %v15503_v1  ;;  %5441 = vmatpush1.bf16.msra.mxu0 %v15505_v2  ;;  %v15509_v5 = vld [vmem:[#allocation5 + $0xc64] ss:$72 sps:$4 sm:$0xff]   ;;  %v15511_v6 = vld [vmem:[#allocation5 + $0x360] ss:$72 sps:$4 sm:$0xff]   ;;  %v15513_v8 = vld [vmem:[#allocation5 + $0x2d4] ss:$72 sps:$4 sm:$0xff]  }
  0x71   :  { %5482 = vmatpush1.bf16.msra.mxu1 %v15506_v3  ;;  %5442 = vmatprep.subr.bf16.mxu0 %v15507_v4  ;;  %v15512_v7 = vld [vmem:[#allocation5 + $0xc60] ss:$72 sps:$4 sm:$0xff]   ;;  %v15515_v9 = vld [vmem:[#allocation5 + $0xbd4] ss:$72 sps:$4 sm:$0xff]   ;;  %v15517_v10 = vld [vmem:[#allocation5 + $0x2d0] ss:$72 sps:$4 sm:$0xff]  }
  0x72   :  { %5483 = vmatprep.subr.bf16.mxu1 %v15509_v5  ;;  %v15518_v11 = vld [vmem:[#allocation5 + $0xbd0] ss:$72 sps:$4 sm:$0xff]   ;;  %v15519_v12 = vld [vmem:[#allocation5 + $0x244] ss:$72 sps:$4 sm:$0xff]   ;;  %v15523_v14 = vld [vmem:[#allocation5 + $0x240] ss:$72 sps:$4 sm:$0xff]  }
  0x73   :  { %v15521_v13 = vld [vmem:[#allocation5 + $0xb44] ss:$72 sps:$4 sm:$0xff]   ;;  %v15524_v15 = vld [vmem:[#allocation5 + $0xb40] ss:$72 sps:$4 sm:$0xff]   ;;  %v15525_v16 = vld [vmem:[#allocation5 + $0x1b4] ss:$72 sps:$4 sm:$0xff]  }
  0x74   :  { %5443 = vmatpush1.bf16.msra.mxu0 %v15511_v6  ;;  %v15527_v17 = vld [vmem:[#allocation5 + $0xab4] ss:$72 sps:$4 sm:$0xff]   ;;  %v15529_v18 = vld [vmem:[#allocation5 + $0x1b0] ss:$72 sps:$4 sm:$0xff]   ;;  %v15531_v20 = vld [vmem:[#allocation5 + $0x124] ss:$72 sps:$4 sm:$0xff]  }
  0x75   :  { %5484 = vmatpush1.bf16.msra.mxu1 %v15512_v7  ;;  %5444 = vmatprep.subr.bf16.mxu0 %v15513_v8  ;;  %v15530_v19 = vld [vmem:[#allocation5 + $0xab0] ss:$72 sps:$4 sm:$0xff]   ;;  %v15533_v21 = vld [vmem:[#allocation5 + $0xa24] ss:$72 sps:$4 sm:$0xff]   ;;  %v15535_v22 = vld [vmem:[#allocation5 + $0x120] ss:$72 sps:$4 sm:$0xff]  }
  0x76   :  { %5485 = vmatprep.subr.bf16.mxu1 %v15515_v9  ;;  %v15536_v23 = vld [vmem:[#allocation5 + $0xa20] ss:$72 sps:$4 sm:$0xff]   ;;  %v15537_v24 = vld [vmem:[#allocation5 + $0x94] ss:$72 sps:$4 sm:$0xff]   ;;  %v15541_v26 = vld [vmem:[#allocation5 + $0x90] ss:$72 sps:$4 sm:$0xff]  }
  0x77   :  { %v15539_v25 = vld [vmem:[#allocation5 + $0x994] ss:$72 sps:$4 sm:$0xff]   ;;  %v15542_v27 = vld [vmem:[#allocation5 + $0x990] ss:$72 sps:$4 sm:$0xff]   ;;  %v15543_v28 = vld [vmem:[#allocation5 + $0x4] ss:$72 sps:$4 sm:$0xff]  }
  0x78   :  { %5445 = vmatpush1.bf16.msra.mxu0 %v15517_v10  ;;  %v15545_v29 = vld [vmem:[#allocation5 + $0x904] ss:$72 sps:$4 sm:$0xff]   ;;  %v15547_v30 = vld [vmem:[#allocation5] ss:$72 sps:$4 sm:$0xff]   ;;  %v15549_v32 = vld [vmem:[#allocation5 + $0x874] ss:$72 sps:$4 sm:$0xff]  }
  0x79   :  { %5486 = vmatpush1.bf16.msra.mxu1 %v15518_v11  ;;  %5446 = vmatprep.subr.bf16.mxu0 %v15519_v12  ;;  %v15548_v31 = vld [vmem:[#allocation5 + $0x900] ss:$72 sps:$4 sm:$0xff]   ;;  %v15551_v33 = vld [vmem:[#allocation5 + $0x1174] ss:$72 sps:$4 sm:$0xff]   ;;  %v15553_v34 = vld [vmem:[#allocation5 + $0x870] ss:$72 sps:$4 sm:$0xff]  }
  0x7a   :  { %5487 = vmatprep.subr.bf16.mxu1 %v15521_v13  ;;  %v15554_v35 = vld [vmem:[#allocation5 + $0x1170] ss:$72 sps:$4 sm:$0xff]   ;;  %v15555_v36 = vld [vmem:[#allocation5 + $0x7e4] ss:$72 sps:$4 sm:$0xff]   ;;  %v15559_v38 = vld [vmem:[#allocation5 + $0x7e0] ss:$72 sps:$4 sm:$0xff]  }
  0x7b   :  { %v15557_v37 = vld [vmem:[#allocation5 + $0x10e4] ss:$72 sps:$4 sm:$0xff]   ;;  %v15560_v39 = vld [vmem:[#allocation5 + $0x10e0] ss:$72 sps:$4 sm:$0xff]   ;;  %v15561_v40 = vld [vmem:[#allocation5 + $0x754] ss:$72 sps:$4 sm:$0xff]  }
  0x7c   :  { %5447 = vmatpush1.bf16.msra.mxu0 %v15523_v14  ;;  %v15563_v41 = vld [vmem:[#allocation5 + $0x1054] ss:$72 sps:$4 sm:$0xff]   ;;  %v15565_v42 = vld [vmem:[#allocation5 + $0x750] ss:$72 sps:$4 sm:$0xff]   ;;  %v15567_v44 = vld [vmem:[#allocation5 + $0x6c4] ss:$72 sps:$4 sm:$0xff]  }
  0x7d   :  { %5488 = vmatpush1.bf16.msra.mxu1 %v15524_v15  ;;  %5448 = vmatprep.subr.bf16.mxu0 %v15525_v16  ;;  %v15566_v43 = vld [vmem:[#allocation5 + $0x1050] ss:$72 sps:$4 sm:$0xff]   ;;  %v15569_v45 = vld [vmem:[#allocation5 + $0xfc4] ss:$72 sps:$4 sm:$0xff]   ;;  %v15571_v47 = vld [vmem:[#allocation5 + $0x6c0] ss:$72 sps:$4 sm:$0xff]  }
  0x7e   :  { %5489 = vmatprep.subr.bf16.mxu1 %v15527_v17  ;;  %v149_v46 = vld [vmem:[#allocation2 + $0x8] sm:$0xff]  ;;  %v151_v49 = vld [vmem:[#allocation2 + $0x18] sm:$0xff]  ;;  %v148_v4 = vld [vmem:[#allocation2] sm:$0xff]  ;;  %vm18491_vm0 = vmmov 0   ;;  %s18492_s6 = smov [#allocation17]  }
  0x7f   :  { %v18576_v48 = vpack.c.bf16 %v149_v46, %v149_v46  ;;  %v15572_v50 = vld [vmem:[#allocation5 + $0xfc0] ss:$72 sps:$4 sm:$0xff]   ;;  %v15573_v51 = vld [vmem:[#allocation5 + $0x634] ss:$72 sps:$4 sm:$0xff]   ;;  %v18578_v52 = vpack.c.bf16 %v151_v49, %v151_v49  ;;  %v15577_v54 = vld [vmem:[#allocation5 + $0x630] ss:$72 sps:$4 sm:$0xff]   ;;  %v18582_v8 = vpack.c.bf16 %v148_v4, %v148_v4 }
  0x80   :  { %5449 = vmatpush1.bf16.msra.mxu0 %v15529_v18  ;;  %v15575_v53 = vld [vmem:[#allocation5 + $0xf34] ss:$72 sps:$4 sm:$0xff]   ;;  %v15578_v55 = vld [vmem:[#allocation5 + $0xf30] ss:$72 sps:$4 sm:$0xff]   ;;  %v15579_v56 = vld [vmem:[#allocation5 + $0x5a4] ss:$72 sps:$4 sm:$0xff]  }
  0x81   :  { %5490 = vmatpush1.bf16.msra.mxu1 %v15530_v19  ;;  %5450 = vmatprep.subr.bf16.mxu0 %v15531_v20  ;;  %v15581_v57 = vld [vmem:[#allocation5 + $0xea4] ss:$72 sps:$4 sm:$0xff]   ;;  %v15583_v58 = vld [vmem:[#allocation5 + $0x5a0] ss:$72 sps:$4 sm:$0xff]   ;;  %v15585_v60 = vld [vmem:[#allocation5 + $0x514] ss:$72 sps:$4 sm:$0xff]  }
  0x82   :  { %5491 = vmatprep.subr.bf16.mxu1 %v15533_v21  ;;  %5472 = vmatprep.mubr.bf16.mxu0 %v18576_v48  ;;  %v15584_v59 = vld [vmem:[#allocation5 + $0xea0] ss:$72 sps:$4 sm:$0xff]   ;;  %v15587_v61 = vld [vmem:[#allocation5 + $0xe14] ss:$72 sps:$4 sm:$0xff]   ;;  %v15589_v62 = vld [vmem:[#allocation5 + $0x510] ss:$72 sps:$4 sm:$0xff]  }
  0x83   :  { %5513 = vmatprep.mubr.bf16.mxu1 %v18578_v52  ;;  %v15590_v63 = vld [vmem:[#allocation5 + $0xe10] ss:$72 sps:$4 sm:$0xff]   ;;  %v15591_v0 = vld [vmem:[#allocation5 + $0x484] ss:$72 sps:$4 sm:$0xff]   ;;  %v15595_v2 = vld [vmem:[#allocation5 + $0x480] ss:$72 sps:$4 sm:$0xff]  }
  0x84   :  { %5451 = vmatpush1.bf16.msra.mxu0 %v15535_v22  ;;  %v15593_v1 = vld [vmem:[#allocation5 + $0xd84] ss:$72 sps:$4 sm:$0xff]   ;;  %v15596_v3 = vld [vmem:[#allocation5 + $0xd80] ss:$72 sps:$4 sm:$0xff]   ;;  %v15599_v5 = vld [vmem:[#allocation5 + $0x15f4] ss:$72 sps:$4 sm:$0xff]  }
  0x85   :  { %5492 = vmatpush1.bf16.msra.mxu1 %v15536_v23  ;;  %5452 = vmatprep.subr.bf16.mxu0 %v15537_v24  ;;  %v150_v6 = vld [vmem:[#allocation2 + $0x10] sm:$0xff]  ;;  %v15597_v9 = vld [vmem:[#allocation5 + $0x15f0] ss:$72 sps:$4 sm:$0xff]   ;;  %v15608_v13 = vld [vmem:[#allocation5 + $0x36c] ss:$72 sps:$4 sm:$0xff]   ;;  %s13546_s8 = sshll.u32 %s18492_s6, 4  ;;  %s13547_s8 = int_to_ptr.vmem [resolvable:$true] %s13546_s8 }
  0x86   :  { %5493 = vmatprep.subr.bf16.mxu1 %v15539_v25  ;;  %v15602_v7 = vld [vmem:[#allocation5 + $0x3fc] ss:$72 sps:$4 sm:$0xff]   ;;  %v15600_v10 = vld [vmem:[#allocation5 + $0x3f8] ss:$72 sps:$4 sm:$0xff]   ;;  %v18584_v11 = vpack.c.bf16 %v150_v6, %v150_v6  ;;  %v15606_v15 = vld [vmem:[#allocation5 + $0x368] ss:$72 sps:$4 sm:$0xff]   ;;  %p18428_p4 = scmp.lt.s32.totalorder %s13547_s8, %s13547_s8 }
  0x87   :  { %v15605_v12 = vld [vmem:[#allocation5 + $0x1564] ss:$72 sps:$4 sm:$0xff]   ;;  %v15603_v14 = vld [vmem:[#allocation5 + $0x1560] ss:$72 sps:$4 sm:$0xff]   ;;  %v15611_v16 = vld [vmem:[#allocation5 + $0x14d4] ss:$72 sps:$4 sm:$0xff]  }
  0x88   :  { %5453 = vmatpush1.bf16.msra.mxu0 %v15541_v26  ;;  %v15614_v17 = vld [vmem:[#allocation5 + $0x2dc] ss:$72 sps:$4 sm:$0xff]   ;;  %v15609_v18 = vld [vmem:[#allocation5 + $0x14d0] ss:$72 sps:$4 sm:$0xff]   ;;  %v15620_v21 = vld [vmem:[#allocation5 + $0x24c] ss:$72 sps:$4 sm:$0xff]  }
  0x89   :  { %5494 = vmatpush1.bf16.msra.mxu1 %v15542_v27  ;;  %5454 = vmatprep.subr.bf16.mxu0 %v15543_v28  ;;  %v15612_v19 = vld [vmem:[#allocation5 + $0x2d8] ss:$72 sps:$4 sm:$0xff]   ;;  %v15617_v20 = vld [vmem:[#allocation5 + $0x1444] ss:$72 sps:$4 sm:$0xff]   ;;  %v15618_v23 = vld [vmem:[#allocation5 + $0x248] ss:$72 sps:$4 sm:$0xff]  }
  0x8a   :  { %5495 = vmatprep.subr.bf16.mxu1 %v15545_v29  ;;  %v15615_v22 = vld [vmem:[#allocation5 + $0x1440] ss:$72 sps:$4 sm:$0xff]   ;;  %v15623_v24 = vld [vmem:[#allocation5 + $0x13b4] ss:$72 sps:$4 sm:$0xff]   ;;  %v15621_v26 = vld [vmem:[#allocation5 + $0x13b0] ss:$72 sps:$4 sm:$0xff]  }
  0x8b   :  { %v15626_v25 = vld [vmem:[#allocation5 + $0x1bc] ss:$72 sps:$4 sm:$0xff]   ;;  %v15624_v27 = vld [vmem:[#allocation5 + $0x1b8] ss:$72 sps:$4 sm:$0xff]   ;;  %v15632_v29 = vld [vmem:[#allocation5 + $0x12c] ss:$72 sps:$4 sm:$0xff]  }
  0x8c   :  { %5455 = vmatpush1.bf16.msra.mxu0 %v15547_v30  ;;  %v15629_v28 = vld [vmem:[#allocation5 + $0x1324] ss:$72 sps:$4 sm:$0xff]   ;;  %v15627_v30 = vld [vmem:[#allocation5 + $0x1320] ss:$72 sps:$4 sm:$0xff]   ;;  %v15683_v4 = vld [vmem:[#allocation5 + $0x1714] ss:$72 sps:$4 sm:$0xff]  }
  0x8d   :  { %5496 = vmatpush1.bf16.msra.mxu1 %v15548_v31  ;;  %5456 = vmatprep.subr.bf16.mxu0 %v15549_v32  ;;  %v15630_v31 = vld [vmem:[#allocation5 + $0x128] ss:$72 sps:$4 sm:$0xff]   ;;  %v15635_v32 = vld [vmem:[#allocation5 + $0x1294] ss:$72 sps:$4 sm:$0xff]   ;;  %v15653_v46 = vld [vmem:[#allocation5 + $0x19e4] ss:$72 sps:$4 sm:$0xff]  }
  0x8e   :  { %5497 = vmatprep.subr.bf16.mxu1 %v15551_v33  ;;  %v15638_v33 = vld [vmem:[#allocation5 + $0x9c] ss:$72 sps:$4 sm:$0xff]   ;;  %v15651_v49 = vld [vmem:[#allocation5 + $0x19e0] ss:$72 sps:$4 sm:$0xff]   ;;  %v15681_v6 = vld [vmem:[#allocation5 + $0x1710] ss:$72 sps:$4 sm:$0xff]  }
  0x8f   :  { %s18423_s15 = scalar_lea.vmem %s13547_s8, 128 }
  0x90   :  { %5457 = vmatpush2.bf16.msra.mxu0 %v15553_v34  ;;  %v153_v34 = vld [vmem:[#allocation2 + $0x28] sm:$0xff]  ;;  %p18424_p3 = scmp.ne.s32.totalorder %s13547_s8, %s18423_s15  ;;  %p18429_p5 = scmp.lt.s32.totalorder %s18423_s15, %s18423_s15 }
  0x91   :  { %5498 = vmatpush2.bf16.msra.mxu1 %v15554_v35  ;;  %5458 = vmatprep.subr.bf16.mxu0 %v15555_v36  ;;  %v18589_v35 = vpack.c.bf16 %v153_v34, %v153_v34  ;;  %v15633_v36 = vld [vmem:[#allocation5 + $0x1290] ss:$72 sps:$4 sm:$0xff]  }
  0x92   :  { %5499 = vmatprep.subr.bf16.mxu1 %v15557_v37  ;;  %v15636_v37 = vld [vmem:[#allocation5 + $0x98] ss:$72 sps:$4 sm:$0xff]   ;;  %p18430_p6 = por %p18429_p5, %p18428_p4 }
  0x93   :  { %v15717_v34 = vld [vmem:[#allocation5 + $0xab8] ss:$72 sps:$4 sm:$0xff]  }
  0x94   :  { %5459 = vmatpush2.bf16.msra.mxu0 %v15559_v38  ;;  %v15641_v38 = vld [vmem:[#allocation5 + $0x1204] ss:$72 sps:$4 sm:$0xff]   ;;  %p18431_p7 = pnand %p18430_p6, %p18424_p3 }
  0x95   :  { %5500 = vmatpush2.bf16.msra.mxu1 %v15560_v39  ;;  %5460 = vmatprep.subr.bf16.mxu0 %v15561_v40  ;;  %v15644_v39 = vld [vmem:[#allocation5 + $0xc] ss:$72 sps:$4 sm:$0xff]   ;;  %v15639_v40 = vld [vmem:[#allocation5 + $0x1200] ss:$72 sps:$4 sm:$0xff]  }
  0x96   :  { %5501 = vmatprep.subr.bf16.mxu1 %v15563_v41  ;;  %v15642_v41 = vld [vmem:[#allocation5 + $0x8] ss:$72 sps:$4 sm:$0xff]  }
  0x98   :  { %5461 = vmatpush2.bf16.msra.mxu0 %v15565_v42  ;;  %v15647_v42 = vld [vmem:[#allocation5 + $0x1a74] ss:$72 sps:$4 sm:$0xff]  }
  0x99   :  { %5502 = vmatpush2.bf16.msra.mxu1 %v15566_v43  ;;  %5462 = vmatprep.subr.bf16.mxu0 %v15567_v44  ;;  %v15650_v43 = vld [vmem:[#allocation5 + $0x87c] ss:$72 sps:$4 sm:$0xff]   ;;  %v15645_v44 = vld [vmem:[#allocation5 + $0x1a70] ss:$72 sps:$4 sm:$0xff]  }
  0x9a   :  { %5503 = vmatprep.subr.bf16.mxu1 %v15569_v45  ;;  %v15648_v45 = vld [vmem:[#allocation5 + $0x878] ss:$72 sps:$4 sm:$0xff]  }
  0x9c   :  { %5463 = vmatpush2.bf16.msra.mxu0 %v15571_v47  ;;  %v15656_v47 = vld [vmem:[#allocation5 + $0x7ec] ss:$72 sps:$4 sm:$0xff]  }
  0x9d   :  { %5504 = vmatpush2.bf16.msra.mxu1 %v15572_v50  ;;  %5464 = vmatprep.subr.bf16.mxu0 %v15573_v51  ;;  %v15654_v50 = vld [vmem:[#allocation5 + $0x7e8] ss:$72 sps:$4 sm:$0xff]   ;;  %v15659_v51 = vld [vmem:[#allocation5 + $0x1954] ss:$72 sps:$4 sm:$0xff]  }
  0x9e   :  { %5505 = vmatprep.subr.bf16.mxu1 %v15575_v53  ;;  %v15662_v53 = vld [vmem:[#allocation5 + $0x75c] ss:$72 sps:$4 sm:$0xff]  }
  0xa0   :  { %5465 = vmatpush2.bf16.msra.mxu0 %v15577_v54  ;;  %v15657_v54 = vld [vmem:[#allocation5 + $0x1950] ss:$72 sps:$4 sm:$0xff]  }
  0xa1   :  { %5506 = vmatpush2.bf16.msra.mxu1 %v15578_v55  ;;  %5466 = vmatprep.subr.bf16.mxu0 %v15579_v56  ;;  %v15660_v55 = vld [vmem:[#allocation5 + $0x758] ss:$72 sps:$4 sm:$0xff]   ;;  %v15665_v56 = vld [vmem:[#allocation5 + $0x18c4] ss:$72 sps:$4 sm:$0xff]  }
  0xa2   :  { %5507 = vmatprep.subr.bf16.mxu1 %v15581_v57  ;;  %v15668_v57 = vld [vmem:[#allocation5 + $0x6cc] ss:$72 sps:$4 sm:$0xff]  }
  0xa4   :  { %5467 = vmatpush2.bf16.msra.mxu0 %v15583_v58  ;;  %v15663_v58 = vld [vmem:[#allocation5 + $0x18c0] ss:$72 sps:$4 sm:$0xff]  }
  0xa5   :  { %5508 = vmatpush2.bf16.msra.mxu1 %v15584_v59  ;;  %5468 = vmatprep.subr.bf16.mxu0 %v15585_v60  ;;  %v15666_v59 = vld [vmem:[#allocation5 + $0x6c8] ss:$72 sps:$4 sm:$0xff]   ;;  %v15671_v60 = vld [vmem:[#allocation5 + $0x1834] ss:$72 sps:$4 sm:$0xff]  }
  0xa6   :  { %5509 = vmatprep.subr.bf16.mxu1 %v15587_v61  ;;  %v15674_v61 = vld [vmem:[#allocation5 + $0x63c] ss:$72 sps:$4 sm:$0xff]  }
  0xa8   :  { %5469 = vmatpush2.bf16.msra.mxu0 %v15589_v62  ;;  %v15669_v62 = vld [vmem:[#allocation5 + $0x1830] ss:$72 sps:$4 sm:$0xff]  }
  0xa9   :  { %5510 = vmatpush2.bf16.msra.mxu1 %v15590_v63  ;;  %5470 = vmatprep.subr.bf16.mxu0 %v15591_v0  ;;  %v15672_v63 = vld [vmem:[#allocation5 + $0x638] ss:$72 sps:$4 sm:$0xff]   ;;  %v15677_v0 = vld [vmem:[#allocation5 + $0x17a4] ss:$72 sps:$4 sm:$0xff]  }
  0xaa   :  { %5511 = vmatprep.subr.bf16.mxu1 %v15593_v1  ;;  %v15680_v1 = vld [vmem:[#allocation5 + $0x5ac] ss:$72 sps:$4 sm:$0xff]  }
  0xac   :  { %5471 = vmatpush2.bf16.msra.mxu0 %v15595_v2  ;;  %v15675_v2 = vld [vmem:[#allocation5 + $0x17a0] ss:$72 sps:$4 sm:$0xff]  }
  0xad   :  { %5512 = vmatpush2.bf16.msra.mxu1 %v15596_v3  ;;  %5522 = vmatprep.subr.bf16.mxu0 %v15599_v5  ;;  %v15678_v3 = vld [vmem:[#allocation5 + $0x5a8] ss:$72 sps:$4 sm:$0xff]   ;;  %v15686_v5 = vld [vmem:[#allocation5 + $0x51c] ss:$72 sps:$4 sm:$0xff]  }
  0xae   :  { %5563 = vmatprep.subr.bf16.mxu1 %v15602_v7  ;;  %v15684_v7 = vld [vmem:[#allocation5 + $0x518] ss:$72 sps:$4 sm:$0xff]  }
  0xaf   :  { %5473 = vmatmul.mubr.bf16.vlgmr.msra.gmra.mxu0 %v18582_v8 }
  0xb0   :  { %5514 = vmatmul.mubr.bf16.vlgmr.msra.gmra.mxu1 %v18584_v11  ;;  %5523 = vmatpush1.bf16.msra.mxu0 %v15597_v9  ;;  %v15689_v9 = vld [vmem:[#allocation5 + $0x1684] ss:$72 sps:$4 sm:$0xff]  }
  0xb1   :  { %5564 = vmatpush1.bf16.msra.mxu1 %v15600_v10  ;;  %5524 = vmatprep.subr.bf16.mxu0 %v15605_v12  ;;  %v15692_v10 = vld [vmem:[#allocation5 + $0x48c] ss:$72 sps:$4 sm:$0xff]   ;;  %v15687_v12 = vld [vmem:[#allocation5 + $0x1680] ss:$72 sps:$4 sm:$0xff]  }
  0xb2   :  { %5565 = vmatprep.subr.bf16.mxu1 %v15608_v13  ;;  %5595 = vmatprep.mubr.bf16.mxu1 %v18576_v48  ;;  %v15690_v13 = vld [vmem:[#allocation5 + $0x488] ss:$72 sps:$4 sm:$0xff]  }
  0xb3   :  { %5554 = vmatprep.mubr.bf16.mxu0 %v18589_v35 }
  0xb4   :  { %5525 = vmatpush1.bf16.msra.mxu0 %v15603_v14  ;;  %v152_v14 = vld [vmem:[#allocation2 + $0x20] sm:$0xff] }
  0xb5   :  { %5566 = vmatpush1.bf16.msra.mxu1 %v15606_v15  ;;  %5526 = vmatprep.subr.bf16.mxu0 %v15611_v16  ;;  %v15695_v15 = vld [vmem:[#allocation5 + $0xcfc] ss:$72 sps:$4 sm:$0xff]  }
  0xb6   :  { %5567 = vmatprep.subr.bf16.mxu1 %v15614_v17  ;;  %v15698_v16 = vld [vmem:[#allocation5 + $0x15fc] ss:$72 sps:$4 sm:$0xff]   ;;  %v18592_v17 = vpack.c.bf16 %v152_v14, %v152_v14 }
  0xb7   :  { %v15782_v14 = vld [vmem:[#allocation5 + $0x171c] ss:$72 sps:$4 sm:$0xff]  }
  0xb8   :  { %5527 = vmatpush1.bf16.msra.mxu0 %v15609_v18  ;;  %v15693_v18 = vld [vmem:[#allocation5 + $0xcf8] ss:$72 sps:$4 sm:$0xff]  }
  0xb9   :  { %5568 = vmatpush1.bf16.msra.mxu1 %v15612_v19  ;;  %5528 = vmatprep.subr.bf16.mxu0 %v15617_v20  ;;  %v15696_v19 = vld [vmem:[#allocation5 + $0x15f8] ss:$72 sps:$4 sm:$0xff]   ;;  %v15701_v20 = vld [vmem:[#allocation5 + $0xc6c] ss:$72 sps:$4 sm:$0xff]  }
  0xba   :  { %5569 = vmatprep.subr.bf16.mxu1 %v15620_v21  ;;  %v15704_v21 = vld [vmem:[#allocation5 + $0x156c] ss:$72 sps:$4 sm:$0xff]  }
  0xbc   :  { %5529 = vmatpush1.bf16.msra.mxu0 %v15615_v22  ;;  %v15699_v22 = vld [vmem:[#allocation5 + $0xc68] ss:$72 sps:$4 sm:$0xff]  }
  0xbd   :  { %5570 = vmatpush1.bf16.msra.mxu1 %v15618_v23  ;;  %5530 = vmatprep.subr.bf16.mxu0 %v15623_v24  ;;  %v15702_v23 = vld [vmem:[#allocation5 + $0x1568] ss:$72 sps:$4 sm:$0xff]   ;;  %v15707_v24 = vld [vmem:[#allocation5 + $0xbdc] ss:$72 sps:$4 sm:$0xff]  }
  0xbe   :  { %5571 = vmatprep.subr.bf16.mxu1 %v15626_v25  ;;  %v15710_v25 = vld [vmem:[#allocation5 + $0x14dc] ss:$72 sps:$4 sm:$0xff]  }
  0xc0   :  { %5531 = vmatpush1.bf16.msra.mxu0 %v15621_v26  ;;  %v15705_v26 = vld [vmem:[#allocation5 + $0xbd8] ss:$72 sps:$4 sm:$0xff]  }
  0xc1   :  { %5572 = vmatpush1.bf16.msra.mxu1 %v15624_v27  ;;  %5532 = vmatprep.subr.bf16.mxu0 %v15629_v28  ;;  %v15708_v27 = vld [vmem:[#allocation5 + $0x14d8] ss:$72 sps:$4 sm:$0xff]   ;;  %v15713_v28 = vld [vmem:[#allocation5 + $0xb4c] ss:$72 sps:$4 sm:$0xff]  }
  0xc2   :  { %5573 = vmatprep.subr.bf16.mxu1 %v15632_v29  ;;  %v15716_v29 = vld [vmem:[#allocation5 + $0x144c] ss:$72 sps:$4 sm:$0xff]  }
  0xc4   :  { %5533 = vmatpush1.bf16.msra.mxu0 %v15627_v30  ;;  %v15711_v30 = vld [vmem:[#allocation5 + $0xb48] ss:$72 sps:$4 sm:$0xff]  }
  0xc5   :  { %5574 = vmatpush1.bf16.msra.mxu1 %v15630_v31  ;;  %5534 = vmatprep.subr.bf16.mxu0 %v15635_v32  ;;  %v15714_v31 = vld [vmem:[#allocation5 + $0x1448] ss:$72 sps:$4 sm:$0xff]   ;;  %v15719_v32 = vld [vmem:[#allocation5 + $0xabc] ss:$72 sps:$4 sm:$0xff]  }
  0xc6   :  { %5575 = vmatprep.subr.bf16.mxu1 %v15638_v33  ;;  %v15722_v33 = vld [vmem:[#allocation5 + $0x13bc] ss:$72 sps:$4 sm:$0xff]  }
  0xc8   :  { %5535 = vmatpush1.bf16.msra.mxu0 %v15633_v36  ;;  %v15720_v36 = vld [vmem:[#allocation5 + $0x13b8] ss:$72 sps:$4 sm:$0xff]  }
  0xc9   :  { %5576 = vmatpush1.bf16.msra.mxu1 %v15636_v37  ;;  %5536 = vmatprep.subr.bf16.mxu0 %v15641_v38  ;;  %v15725_v37 = vld [vmem:[#allocation5 + $0xa2c] ss:$72 sps:$4 sm:$0xff]  }
  0xca   :  { %5577 = vmatprep.subr.bf16.mxu1 %v15644_v39  ;;  %v15728_v38 = vld [vmem:[#allocation5 + $0x132c] ss:$72 sps:$4 sm:$0xff]   ;;  %v15723_v39 = vld [vmem:[#allocation5 + $0xa28] ss:$72 sps:$4 sm:$0xff]  }
  0xcc   :  { %5537 = vmatpush1.bf16.msra.mxu0 %v15639_v40  ;;  %v15726_v40 = vld [vmem:[#allocation5 + $0x1328] ss:$72 sps:$4 sm:$0xff]  }
  0xcd   :  { %5578 = vmatpush1.bf16.msra.mxu1 %v15642_v41  ;;  %5538 = vmatprep.subr.bf16.mxu0 %v15647_v42  ;;  %v15731_v41 = vld [vmem:[#allocation5 + $0x99c] ss:$72 sps:$4 sm:$0xff]  }
  0xce   :  { %5579 = vmatprep.subr.bf16.mxu1 %v15650_v43  ;;  %v15734_v42 = vld [vmem:[#allocation5 + $0x129c] ss:$72 sps:$4 sm:$0xff]   ;;  %v15729_v43 = vld [vmem:[#allocation5 + $0x998] ss:$72 sps:$4 sm:$0xff]  }
  0xd0   :  { %5539 = vmatpush2.bf16.msra.mxu0 %v15645_v44  ;;  %v15732_v44 = vld [vmem:[#allocation5 + $0x1298] ss:$72 sps:$4 sm:$0xff]  }
  0xd1   :  { %5580 = vmatpush2.bf16.msra.mxu1 %v15648_v45  ;;  %5540 = vmatprep.subr.bf16.mxu0 %v15653_v46  ;;  %v15737_v45 = vld [vmem:[#allocation5 + $0x90c] ss:$72 sps:$4 sm:$0xff]  }
  0xd2   :  { %5581 = vmatprep.subr.bf16.mxu1 %v15656_v47  ;;  %v15740_v46 = vld [vmem:[#allocation5 + $0x120c] ss:$72 sps:$4 sm:$0xff]   ;;  %v15735_v47 = vld [vmem:[#allocation5 + $0x908] ss:$72 sps:$4 sm:$0xff]  }
  0xd4   :  { %5541 = vmatpush2.bf16.msra.mxu0 %v15651_v49  ;;  %v15738_v49 = vld [vmem:[#allocation5 + $0x1208] ss:$72 sps:$4 sm:$0xff]  }
  0xd5   :  { %5582 = vmatpush2.bf16.msra.mxu1 %v15654_v50  ;;  %5542 = vmatprep.subr.bf16.mxu0 %v15659_v51  ;;  %v15743_v50 = vld [vmem:[#allocation5 + $0x117c] ss:$72 sps:$4 sm:$0xff]  }
  0xd6   :  { %5583 = vmatprep.subr.bf16.mxu1 %v15662_v53  ;;  %v15746_v51 = vld [vmem:[#allocation5 + $0x1a7c] ss:$72 sps:$4 sm:$0xff]   ;;  %v15741_v53 = vld [vmem:[#allocation5 + $0x1178] ss:$72 sps:$4 sm:$0xff]  }
  0xd8   :  { %5543 = vmatpush2.bf16.msra.mxu0 %v15657_v54  ;;  %v15744_v54 = vld [vmem:[#allocation5 + $0x1a78] ss:$72 sps:$4 sm:$0xff]  }
  0xd9   :  { %5584 = vmatpush2.bf16.msra.mxu1 %v15660_v55  ;;  %5544 = vmatprep.subr.bf16.mxu0 %v15665_v56  ;;  %v15749_v55 = vld [vmem:[#allocation5 + $0x10ec] ss:$72 sps:$4 sm:$0xff]  }
  0xda   :  { %5585 = vmatprep.subr.bf16.mxu1 %v15668_v57  ;;  %v15752_v56 = vld [vmem:[#allocation5 + $0x19ec] ss:$72 sps:$4 sm:$0xff]   ;;  %v15747_v57 = vld [vmem:[#allocation5 + $0x10e8] ss:$72 sps:$4 sm:$0xff]  }
  0xdc   :  { %5545 = vmatpush2.bf16.msra.mxu0 %v15663_v58  ;;  %v15750_v58 = vld [vmem:[#allocation5 + $0x19e8] ss:$72 sps:$4 sm:$0xff]  }
  0xdd   :  { %5586 = vmatpush2.bf16.msra.mxu1 %v15666_v59  ;;  %5546 = vmatprep.subr.bf16.mxu0 %v15671_v60  ;;  %v15755_v59 = vld [vmem:[#allocation5 + $0x105c] ss:$72 sps:$4 sm:$0xff]  }
  0xde   :  { %5587 = vmatprep.subr.bf16.mxu1 %v15674_v61  ;;  %v15758_v60 = vld [vmem:[#allocation5 + $0x195c] ss:$72 sps:$4 sm:$0xff]   ;;  %v15753_v61 = vld [vmem:[#allocation5 + $0x1058] ss:$72 sps:$4 sm:$0xff]  }
  0xe0   :  { %5547 = vmatpush2.bf16.msra.mxu0 %v15669_v62  ;;  %v15756_v62 = vld [vmem:[#allocation5 + $0x1958] ss:$72 sps:$4 sm:$0xff]  }
  0xe1   :  { %5588 = vmatpush2.bf16.msra.mxu1 %v15672_v63  ;;  %5548 = vmatprep.subr.bf16.mxu0 %v15677_v0  ;;  %v15761_v63 = vld [vmem:[#allocation5 + $0xfcc] ss:$72 sps:$4 sm:$0xff]  }
  0xe2   :  { %5589 = vmatprep.subr.bf16.mxu1 %v15680_v1  ;;  %v15764_v0 = vld [vmem:[#allocation5 + $0x18cc] ss:$72 sps:$4 sm:$0xff]   ;;  %v15759_v1 = vld [vmem:[#allocation5 + $0xfc8] ss:$72 sps:$4 sm:$0xff]  }
  0xe4   :  { %5549 = vmatpush2.bf16.msra.mxu0 %v15675_v2  ;;  %v15762_v2 = vld [vmem:[#allocation5 + $0x18c8] ss:$72 sps:$4 sm:$0xff]  }
  0xe5   :  { %5590 = vmatpush2.bf16.msra.mxu1 %v15678_v3  ;;  %5550 = vmatprep.subr.bf16.mxu0 %v15683_v4  ;;  %v15767_v3 = vld [vmem:[#allocation5 + $0xf3c] ss:$72 sps:$4 sm:$0xff]  }
  0xe6   :  { %5591 = vmatprep.subr.bf16.mxu1 %v15686_v5  ;;  %v15770_v4 = vld [vmem:[#allocation5 + $0x183c] ss:$72 sps:$4 sm:$0xff]   ;;  %v15765_v5 = vld [vmem:[#allocation5 + $0xf38] ss:$72 sps:$4 sm:$0xff]  }
  0xe8   :  { %5551 = vmatpush2.bf16.msra.mxu0 %v15681_v6  ;;  %v15768_v6 = vld [vmem:[#allocation5 + $0x1838] ss:$72 sps:$4 sm:$0xff]  }
  0xe9   :  { %5592 = vmatpush2.bf16.msra.mxu1 %v15684_v7  ;;  %5552 = vmatprep.subr.bf16.mxu0 %v15689_v9  ;;  %v15773_v7 = vld [vmem:[#allocation5 + $0xeac] ss:$72 sps:$4 sm:$0xff]  }
  0xea   :  { %5593 = vmatprep.subr.bf16.mxu1 %v15692_v10  ;;  %v15776_v9 = vld [vmem:[#allocation5 + $0x17ac] ss:$72 sps:$4 sm:$0xff]   ;;  %v15771_v10 = vld [vmem:[#allocation5 + $0xea8] ss:$72 sps:$4 sm:$0xff]  }
  0xec   :  { %5553 = vmatpush2.bf16.msra.mxu0 %v15687_v12  ;;  %v15774_v12 = vld [vmem:[#allocation5 + $0x17a8] ss:$72 sps:$4 sm:$0xff]  }
  0xed   :  { %5594 = vmatpush2.bf16.msra.mxu1 %v15690_v13  ;;  %5604 = vmatprep.subr.bf16.mxu0 %v15695_v15  ;;  %v15779_v13 = vld [vmem:[#allocation5 + $0xe1c] ss:$72 sps:$4 sm:$0xff]   ;;  %v15777_v15 = vld [vmem:[#allocation5 + $0xe18] ss:$72 sps:$4 sm:$0xff]  }
  0xee   :  { %5645 = vmatprep.subr.bf16.mxu1 %v15698_v16  ;;  %v15780_v16 = vld [vmem:[#allocation5 + $0x1718] ss:$72 sps:$4 sm:$0xff]  }
  0xef   :  { %5555 = vmatmul.mubr.bf16.vlgmr.msra.gmra.mxu0 %v18592_v17 }
  0xf0   :  { %5596 = vmatmul.mubr.bf16.vlgmr.msra.gmra.mxu1 %v18582_v8  ;;  %5605 = vmatpush1.bf16.msra.mxu0 %v15693_v18  ;;  %v15785_v18 = vld [vmem:[#allocation5 + $0xd8c] ss:$72 sps:$4 sm:$0xff]  }
  0xf1   :  { %5646 = vmatpush1.bf16.msra.mxu1 %v15696_v19  ;;  %5606 = vmatprep.subr.bf16.mxu0 %v15701_v20  ;;  %v15788_v19 = vld [vmem:[#allocation5 + $0x168c] ss:$72 sps:$4 sm:$0xff]   ;;  %v15783_v20 = vld [vmem:[#allocation5 + $0xd88] ss:$72 sps:$4 sm:$0xff]  }
  0xf2   :  { %5647 = vmatprep.subr.bf16.mxu1 %v15704_v21  ;;  %5636 = vmatprep.mubr.bf16.mxu0 %v18578_v52  ;;  %v15786_v21 = vld [vmem:[#allocation5 + $0x1688] ss:$72 sps:$4 sm:$0xff]  }
  0xf3   :  { %5677 = vmatprep.mubr.bf16.mxu1 %v18589_v35 }
  0xf4   :  { %5607 = vmatpush1.bf16.msra.mxu0 %v15699_v22  ;;  %v15791_v22 = vld [vmem:[#allocation5 + $0x404] ss:$72 sps:$4 sm:$0xff]  }
  0xf5   :  { %5648 = vmatpush1.bf16.msra.mxu1 %v15702_v23  ;;  %5608 = vmatprep.subr.bf16.mxu0 %v15707_v24  ;;  %v15794_v23 = vld [vmem:[#allocation5 + $0xd04] ss:$72 sps:$4 sm:$0xff]   ;;  %v15789_v24 = vld [vmem:[#allocation5 + $0x400] ss:$72 sps:$4 sm:$0xff]  }
  0xf6   :  { %5649 = vmatprep.subr.bf16.mxu1 %v15710_v25  ;;  %v15792_v25 = vld [vmem:[#allocation5 + $0xd00] ss:$72 sps:$4 sm:$0xff]  }
  0xf8   :  { %5609 = vmatpush1.bf16.msra.mxu0 %v15705_v26  ;;  %v15797_v26 = vld [vmem:[#allocation5 + $0x374] ss:$72 sps:$4 sm:$0xff]  }
  0xf9   :  { %5650 = vmatpush1.bf16.msra.mxu1 %v15708_v27  ;;  %5610 = vmatprep.subr.bf16.mxu0 %v15713_v28  ;;  %v15800_v27 = vld [vmem:[#allocation5 + $0xc74] ss:$72 sps:$4 sm:$0xff]   ;;  %v15795_v28 = vld [vmem:[#allocation5 + $0x370] ss:$72 sps:$4 sm:$0xff]  }
  0xfa   :  { %5651 = vmatprep.subr.bf16.mxu1 %v15716_v29  ;;  %v15798_v29 = vld [vmem:[#allocation5 + $0xc70] ss:$72 sps:$4 sm:$0xff]  }
  0xfc   :  { %5611 = vmatpush1.bf16.msra.mxu0 %v15711_v30  ;;  %v15803_v30 = vld [vmem:[#allocation5 + $0x2e4] ss:$72 sps:$4 sm:$0xff]  }
  0xfd   :  { %5652 = vmatpush1.bf16.msra.mxu1 %v15714_v31  ;;  %5612 = vmatprep.subr.bf16.mxu0 %v15719_v32  ;;  %v15806_v31 = vld [vmem:[#allocation5 + $0xbe4] ss:$72 sps:$4 sm:$0xff]   ;;  %v15801_v32 = vld [vmem:[#allocation5 + $0x2e0] ss:$72 sps:$4 sm:$0xff]  }
  0xfe   :  { %5653 = vmatprep.subr.bf16.mxu1 %v15722_v33  ;;  %v15804_v33 = vld [vmem:[#allocation5 + $0xbe0] ss:$72 sps:$4 sm:$0xff]  }
 0x100   :  { %5613 = vmatpush1.bf16.msra.mxu0 %v15717_v34  ;;  %v15809_v34 = vld [vmem:[#allocation5 + $0x254] ss:$72 sps:$4 sm:$0xff]  }
 0x101   :  { %5654 = vmatpush1.bf16.msra.mxu1 %v15720_v36  ;;  %5614 = vmatprep.subr.bf16.mxu0 %v15725_v37  ;;  %v15812_v36 = vld [vmem:[#allocation5 + $0xb54] ss:$72 sps:$4 sm:$0xff]   ;;  %v15807_v37 = vld [vmem:[#allocation5 + $0x250] ss:$72 sps:$4 sm:$0xff]  }
 0x102   :  { %5655 = vmatprep.subr.bf16.mxu1 %v15728_v38  ;;  %v15810_v38 = vld [vmem:[#allocation5 + $0xb50] ss:$72 sps:$4 sm:$0xff]  }
 0x104   :  { %5615 = vmatpush1.bf16.msra.mxu0 %v15723_v39  ;;  %v15815_v39 = vld [vmem:[#allocation5 + $0x1c4] ss:$72 sps:$4 sm:$0xff]  }
 0x105   :  { %5656 = vmatpush1.bf16.msra.mxu1 %v15726_v40  ;;  %5616 = vmatprep.subr.bf16.mxu0 %v15731_v41  ;;  %v15818_v40 = vld [vmem:[#allocation5 + $0xac4] ss:$72 sps:$4 sm:$0xff]   ;;  %v15813_v41 = vld [vmem:[#allocation5 + $0x1c0] ss:$72 sps:$4 sm:$0xff]  }
 0x106   :  { %5657 = vmatprep.subr.bf16.mxu1 %v15734_v42  ;;  %v15816_v42 = vld [vmem:[#allocation5 + $0xac0] ss:$72 sps:$4 sm:$0xff]  }
 0x108   :  { %5617 = vmatpush1.bf16.msra.mxu0 %v15729_v43  ;;  %v15821_v43 = vld [vmem:[#allocation5 + $0x134] ss:$72 sps:$4 sm:$0xff]  }
 0x109   :  { %5658 = vmatpush1.bf16.msra.mxu1 %v15732_v44  ;;  %5618 = vmatprep.subr.bf16.mxu0 %v15737_v45  ;;  %v15824_v44 = vld [vmem:[#allocation5 + $0xa34] ss:$72 sps:$4 sm:$0xff]   ;;  %v15819_v45 = vld [vmem:[#allocation5 + $0x130] ss:$72 sps:$4 sm:$0xff]  }
 0x10a   :  { %5659 = vmatprep.subr.bf16.mxu1 %v15740_v46  ;;  %v15822_v46 = vld [vmem:[#allocation5 + $0xa30] ss:$72 sps:$4 sm:$0xff]  }
 0x10c   :  { %5619 = vmatpush1.bf16.msra.mxu0 %v15735_v47  ;;  %v15827_v47 = vld [vmem:[#allocation5 + $0xa4] ss:$72 sps:$4 sm:$0xff]  }
 0x10d   :  { %5660 = vmatpush1.bf16.msra.mxu1 %v15738_v49  ;;  %5620 = vmatprep.subr.bf16.mxu0 %v15743_v50  ;;  %v15830_v49 = vld [vmem:[#allocation5 + $0x9a4] ss:$72 sps:$4 sm:$0xff]   ;;  %v15825_v50 = vld [vmem:[#allocation5 + $0xa0] ss:$72 sps:$4 sm:$0xff]  }
 0x10e   :  { %5661 = vmatprep.subr.bf16.mxu1 %v15746_v51  ;;  %v15828_v51 = vld [vmem:[#allocation5 + $0x9a0] ss:$72 sps:$4 sm:$0xff]  }
 0x110   :  { %5621 = vmatpush2.bf16.msra.mxu0 %v15741_v53  ;;  %v15833_v53 = vld [vmem:[#allocation5 + $0x14] ss:$72 sps:$4 sm:$0xff]  }
 0x111   :  { %5662 = vmatpush2.bf16.msra.mxu1 %v15744_v54  ;;  %5622 = vmatprep.subr.bf16.mxu0 %v15749_v55  ;;  %v15836_v54 = vld [vmem:[#allocation5 + $0x914] ss:$72 sps:$4 sm:$0xff]   ;;  %v15831_v55 = vld [vmem:[#allocation5 + $0x10] ss:$72 sps:$4 sm:$0xff]  }
 0x112   :  { %5663 = vmatprep.subr.bf16.mxu1 %v15752_v56  ;;  %v15834_v56 = vld [vmem:[#allocation5 + $0x910] ss:$72 sps:$4 sm:$0xff]  }
 0x114   :  { %5623 = vmatpush2.bf16.msra.mxu0 %v15747_v57  ;;  %v15839_v57 = vld [vmem:[#allocation5 + $0x884] ss:$72 sps:$4 sm:$0xff]  }
 0x115   :  { %5664 = vmatpush2.bf16.msra.mxu1 %v15750_v58  ;;  %5624 = vmatprep.subr.bf16.mxu0 %v15755_v59  ;;  %v15842_v58 = vld [vmem:[#allocation5 + $0x1184] ss:$72 sps:$4 sm:$0xff]   ;;  %v15837_v59 = vld [vmem:[#allocation5 + $0x880] ss:$72 sps:$4 sm:$0xff]  }
 0x116   :  { %5665 = vmatprep.subr.bf16.mxu1 %v15758_v60  ;;  %v15840_v60 = vld [vmem:[#allocation5 + $0x1180] ss:$72 sps:$4 sm:$0xff]  }
 0x118   :  { %5625 = vmatpush2.bf16.msra.mxu0 %v15753_v61  ;;  %v15845_v61 = vld [vmem:[#allocation5 + $0x7f4] ss:$72 sps:$4 sm:$0xff]  }
 0x119   :  { %5666 = vmatpush2.bf16.msra.mxu1 %v15756_v62  ;;  %5626 = vmatprep.subr.bf16.mxu0 %v15761_v63  ;;  %v15848_v62 = vld [vmem:[#allocation5 + $0x10f4] ss:$72 sps:$4 sm:$0xff]   ;;  %v15843_v63 = vld [vmem:[#allocation5 + $0x7f0] ss:$72 sps:$4 sm:$0xff]  }
 0x11a   :  { %5667 = vmatprep.subr.bf16.mxu1 %v15764_v0  ;;  %v15846_v0 = vld [vmem:[#allocation5 + $0x10f0] ss:$72 sps:$4 sm:$0xff]  }
 0x11c   :  { %5627 = vmatpush2.bf16.msra.mxu0 %v15759_v1  ;;  %v15851_v1 = vld [vmem:[#allocation5 + $0x764] ss:$72 sps:$4 sm:$0xff]  }
 0x11d   :  { %5668 = vmatpush2.bf16.msra.mxu1 %v15762_v2  ;;  %5628 = vmatprep.subr.bf16.mxu0 %v15767_v3  ;;  %v15854_v2 = vld [vmem:[#allocation5 + $0x1064] ss:$72 sps:$4 sm:$0xff]   ;;  %v15849_v3 = vld [vmem:[#allocation5 + $0x760] ss:$72 sps:$4 sm:$0xff]  }
 0x11e   :  { %5669 = vmatprep.subr.bf16.mxu1 %v15770_v4  ;;  %v15852_v4 = vld [vmem:[#allocation5 + $0x1060] ss:$72 sps:$4 sm:$0xff]  }
 0x120   :  { %5629 = vmatpush2.bf16.msra.mxu0 %v15765_v5  ;;  %v15857_v5 = vld [vmem:[#allocation5 + $0x6d4] ss:$72 sps:$4 sm:$0xff]  }
 0x121   :  { %5670 = vmatpush2.bf16.msra.mxu1 %v15768_v6  ;;  %5630 = vmatprep.subr.bf16.mxu0 %v15773_v7  ;;  %v15860_v6 = vld [vmem:[#allocation5 + $0xfd4] ss:$72 sps:$4 sm:$0xff]   ;;  %v15855_v7 = vld [vmem:[#allocation5 + $0x6d0] ss:$72 sps:$4 sm:$0xff]  }
 0x122   :  { %5671 = vmatprep.subr.bf16.mxu1 %v15776_v9  ;;  %v15858_v9 = vld [vmem:[#allocation5 + $0xfd0] ss:$72 sps:$4 sm:$0xff]  }
 0x124   :  { %5631 = vmatpush2.bf16.msra.mxu0 %v15771_v10  ;;  %v15863_v10 = vld [vmem:[#allocation5 + $0x644] ss:$72 sps:$4 sm:$0xff]  }
 0x125   :  { %5672 = vmatpush2.bf16.msra.mxu1 %v15774_v12  ;;  %5632 = vmatprep.subr.bf16.mxu0 %v15779_v13  ;;  %v15866_v12 = vld [vmem:[#allocation5 + $0xf44] ss:$72 sps:$4 sm:$0xff]   ;;  %v15861_v13 = vld [vmem:[#allocation5 + $0x640] ss:$72 sps:$4 sm:$0xff]  }
 0x126   :  { %5673 = vmatprep.subr.bf16.mxu1 %v15782_v14  ;;  %v15864_v14 = vld [vmem:[#allocation5 + $0xf40] ss:$72 sps:$4 sm:$0xff]  }
 0x128   :  { %5633 = vmatpush2.bf16.msra.mxu0 %v15777_v15  ;;  %v15869_v15 = vld [vmem:[#allocation5 + $0x5b4] ss:$72 sps:$4 sm:$0xff]  }
 0x129   :  { %5674 = vmatpush2.bf16.msra.mxu1 %v15780_v16  ;;  %5634 = vmatprep.subr.bf16.mxu0 %v15785_v18  ;;  %v15872_v16 = vld [vmem:[#allocation5 + $0xeb4] ss:$72 sps:$4 sm:$0xff]   ;;  %v15867_v18 = vld [vmem:[#allocation5 + $0x5b0] ss:$72 sps:$4 sm:$0xff]  }
 0x12a   :  { %5675 = vmatprep.subr.bf16.mxu1 %v15788_v19  ;;  %v15870_v19 = vld [vmem:[#allocation5 + $0xeb0] ss:$72 sps:$4 sm:$0xff]  }
 0x12c   :  { %5635 = vmatpush2.bf16.msra.mxu0 %v15783_v20  ;;  %v15875_v20 = vld [vmem:[#allocation5 + $0x524] ss:$72 sps:$4 sm:$0xff]  }
 0x12d   :  { %5676 = vmatpush2.bf16.msra.mxu1 %v15786_v21  ;;  %5686 = vmatprep.subr.bf16.mxu0 %v15791_v22  ;;  %v1030_v21 = vlaneseq  ;;  %v15878_v22 = vld [vmem:[#allocation5 + $0xe24] ss:$72 sps:$4 sm:$0xff]  }
 0x12e   :  { %5727 = vmatprep.subr.bf16.mxu1 %v15794_v23  ;;  %v15873_v23 = vld [vmem:[#allocation5 + $0x520] ss:$72 sps:$4 sm:$0xff]  }
 0x12f   :  { %5637 = vmatmul.mubr.bf16.vlgmr.msra.gmra.mxu0 %v18584_v11 }
 0x130   :  { %5678 = vmatmul.mubr.bf16.vlgmr.msra.gmra.mxu1 %v18592_v17  ;;  %5687 = vmatpush1.bf16.msra.mxu0 %v15789_v24  ;;  %v15876_v24 = vld [vmem:[#allocation5 + $0xe20] ss:$72 sps:$4 sm:$0xff]  }
 0x131   :  { %5728 = vmatpush1.bf16.msra.mxu1 %v15792_v25  ;;  %5688 = vmatprep.subr.bf16.mxu0 %v15797_v26  ;;  %v15881_v25 = vld [vmem:[#allocation5 + $0x494] ss:$72 sps:$4 sm:$0xff]   ;;  %v18602_v26 = vshrl.u32 %v1030_v21, 7  ;;  %v15935_v21 = vld [vmem:[#allocation5 + $0x1a84] ss:$72 sps:$4 sm:$0xff]  }
 0x132   :  { %5729 = vmatprep.subr.bf16.mxu1 %v15800_v27  ;;  %5718 = vmatprep.mubr.bf16.mxu0 %v18576_v48  ;;  %v15884_v27 = vld [vmem:[#allocation5 + $0xd94] ss:$72 sps:$4 sm:$0xff]  }
 0x133   :  { %5759 = vmatprep.mubr.bf16.mxu1 %v18578_v52 }
 0x134   :  { %5689 = vmatpush1.bf16.msra.mxu0 %v15795_v28  ;;  %v15879_v28 = vld [vmem:[#allocation5 + $0x490] ss:$72 sps:$4 sm:$0xff]  }
 0x135   :  { %5730 = vmatpush1.bf16.msra.mxu1 %v15798_v29  ;;  %5690 = vmatprep.subr.bf16.mxu0 %v15803_v30  ;;  %v15882_v29 = vld [vmem:[#allocation5 + $0xd90] ss:$72 sps:$4 sm:$0xff]   ;;  %v1024_v30 = vld [vmem:[#allocation7] sm:$0xff] }
 0x136   :  { %5731 = vmatprep.subr.bf16.mxu1 %v15806_v31  ;;  %v18605_v31 = vsub.s32 0, %v18602_v26 }
 0x138   :  { %5691 = vmatpush1.bf16.msra.mxu0 %v15801_v32  ;;  %v15887_v32 = vld [vmem:[#allocation5 + $0x1604] ss:$72 sps:$4 sm:$0xff]  }
 0x139   :  { %5732 = vmatpush1.bf16.msra.mxu1 %v15804_v33  ;;  %5692 = vmatprep.subr.bf16.mxu0 %v15809_v34  ;;  %v15890_v33 = vld [vmem:[#allocation5 + $0x40c] ss:$72 sps:$4 sm:$0xff]   ;;  %v18608_v34 = vsub.s32 1, %v18602_v26 }
 0x13a   :  { %5733 = vmatprep.subr.bf16.mxu1 %v15812_v36  ;;  %v15885_v36 = vld [vmem:[#allocation5 + $0x1600] ss:$72 sps:$4 sm:$0xff]  }
 0x13c   :  { %5693 = vmatpush1.bf16.msra.mxu0 %v15807_v37  ;;  %v1033_v37 = vrot.slane %v1024_v30, %v18605_v31 }
 0x13d   :  { %5734 = vmatpush1.bf16.msra.mxu1 %v15810_v38  ;;  %5694 = vmatprep.subr.bf16.mxu0 %v15815_v39  ;;  %v15888_v38 = vld [vmem:[#allocation5 + $0x408] ss:$72 sps:$4 sm:$0xff]   ;;  %v15893_v39 = vld [vmem:[#allocation5 + $0x1574] ss:$72 sps:$4 sm:$0xff]  }
 0x13e   :  { %5735 = vmatprep.subr.bf16.mxu1 %v15818_v40  ;;  %v15896_v40 = vld [vmem:[#allocation5 + $0x37c] ss:$72 sps:$4 sm:$0xff]  }
 0x140   :  { %5695 = vmatpush1.bf16.msra.mxu0 %v15813_v41  ;;  %v1037_v41 = vrot.slane %v1024_v30, %v18608_v34  ;;  %v15947_v30 = vld [vmem:[#allocation5 + $0x1964] ss:$72 sps:$4 sm:$0xff]  }
 0x141   :  { %5736 = vmatpush1.bf16.msra.mxu1 %v15816_v42  ;;  %5696 = vmatprep.subr.bf16.mxu0 %v15821_v43 }
 0x142   :  { %5737 = vmatprep.subr.bf16.mxu1 %v15824_v44  ;;  %v15891_v44 = vld [vmem:[#allocation5 + $0x1570] ss:$72 sps:$4 sm:$0xff]  }
 0x144   :  { %5697 = vmatpush1.bf16.msra.mxu0 %v15819_v45  ;;  %v15894_v45 = vld [vmem:[#allocation5 + $0x378] ss:$72 sps:$4 sm:$0xff]  }
 0x145   :  { %5738 = vmatpush1.bf16.msra.mxu1 %v15822_v46  ;;  %5698 = vmatprep.subr.bf16.mxu0 %v15827_v47  ;;  %v15899_v47 = vld [vmem:[#allocation5 + $0x14e4] ss:$72 sps:$4 sm:$0xff]  }
 0x146   :  { %5739 = vmatprep.subr.bf16.mxu1 %v15830_v49  ;;  %v15902_v49 = vld [vmem:[#allocation5 + $0x2ec] ss:$72 sps:$4 sm:$0xff]  }
 0x148   :  { %5699 = vmatpush1.bf16.msra.mxu0 %v15825_v50 }
 0x149   :  { %5740 = vmatpush1.bf16.msra.mxu1 %v15828_v51  ;;  %5700 = vmatprep.subr.bf16.mxu0 %v15833_v53 }
 0x14a   :  { %5741 = vmatprep.subr.bf16.mxu1 %v15836_v54 }
 0x14c   :  { %5701 = vmatpush1.bf16.msra.mxu0 %v15831_v55  ;;  %v15897_v55 = vld [vmem:[#allocation5 + $0x14e0] ss:$72 sps:$4 sm:$0xff]  }
 0x14d   :  { %5742 = vmatpush1.bf16.msra.mxu1 %v15834_v56  ;;  %5702 = vmatprep.subr.bf16.mxu0 %v15839_v57  ;;  %v15900_v56 = vld [vmem:[#allocation5 + $0x2e8] ss:$72 sps:$4 sm:$0xff]  }
 0x14e   :  { %5743 = vmatprep.subr.bf16.mxu1 %v15842_v58  ;;  %v15905_v58 = vld [vmem:[#allocation5 + $0x1454] ss:$72 sps:$4 sm:$0xff]  }
 0x150   :  { %5703 = vmatpush2.bf16.msra.mxu0 %v15837_v59  ;;  %v15908_v59 = vld [vmem:[#allocation5 + $0x25c] ss:$72 sps:$4 sm:$0xff]  }
 0x151   :  { %5744 = vmatpush2.bf16.msra.mxu1 %v15840_v60  ;;  %5704 = vmatprep.subr.bf16.mxu0 %v15845_v61 }
 0x152   :  { %5745 = vmatprep.subr.bf16.mxu1 %v15848_v62 }
 0x154   :  { %5705 = vmatpush2.bf16.msra.mxu0 %v15843_v63 }
 0x155   :  { %5746 = vmatpush2.bf16.msra.mxu1 %v15846_v0  ;;  %5706 = vmatprep.subr.bf16.mxu0 %v15851_v1  ;;  %v15903_v0 = vld [vmem:[#allocation5 + $0x1450] ss:$72 sps:$4 sm:$0xff]  }
 0x156   :  { %5747 = vmatprep.subr.bf16.mxu1 %v15854_v2  ;;  %v15906_v1 = vld [vmem:[#allocation5 + $0x258] ss:$72 sps:$4 sm:$0xff]   ;;  %v15911_v2 = vld [vmem:[#allocation5 + $0x13c4] ss:$72 sps:$4 sm:$0xff]  }
 0x158   :  { %5707 = vmatpush2.bf16.msra.mxu0 %v15849_v3  ;;  %v15914_v3 = vld [vmem:[#allocation5 + $0x1cc] ss:$72 sps:$4 sm:$0xff]  }
 0x159   :  { %5748 = vmatpush2.bf16.msra.mxu1 %v15852_v4  ;;  %5708 = vmatprep.subr.bf16.mxu0 %v15857_v5  ;;  %v15909_v4 = vld [vmem:[#allocation5 + $0x13c0] ss:$72 sps:$4 sm:$0xff]  }
 0x15a   :  { %5749 = vmatprep.subr.bf16.mxu1 %v15860_v6  ;;  %v15912_v5 = vld [vmem:[#allocation5 + $0x1c8] ss:$72 sps:$4 sm:$0xff]   ;;  %v15917_v6 = vld [vmem:[#allocation5 + $0x1334] ss:$72 sps:$4 sm:$0xff]  }
 0x15c   :  { %5709 = vmatpush2.bf16.msra.mxu0 %v15855_v7  ;;  %v15920_v7 = vld [vmem:[#allocation5 + $0x13c] ss:$72 sps:$4 sm:$0xff]  }
 0x15d   :  { %5750 = vmatpush2.bf16.msra.mxu1 %v15858_v9  ;;  %5710 = vmatprep.subr.bf16.mxu0 %v15863_v10  ;;  %v15915_v9 = vld [vmem:[#allocation5 + $0x1330] ss:$72 sps:$4 sm:$0xff]  }
 0x15e   :  { %5751 = vmatprep.subr.bf16.mxu1 %v15866_v12  ;;  %v15918_v10 = vld [vmem:[#allocation5 + $0x138] ss:$72 sps:$4 sm:$0xff]   ;;  %v15923_v12 = vld [vmem:[#allocation5 + $0x12a4] ss:$72 sps:$4 sm:$0xff]  }
 0x160   :  { %5711 = vmatpush2.bf16.msra.mxu0 %v15861_v13  ;;  %v15926_v13 = vld [vmem:[#allocation5 + $0xac] ss:$72 sps:$4 sm:$0xff]  }
 0x161   :  { %5752 = vmatpush2.bf16.msra.mxu1 %v15864_v14  ;;  %5712 = vmatprep.subr.bf16.mxu0 %v15869_v15  ;;  %v15921_v14 = vld [vmem:[#allocation5 + $0x12a0] ss:$72 sps:$4 sm:$0xff]  }
 0x162   :  { %5753 = vmatprep.subr.bf16.mxu1 %v15872_v16  ;;  %v15924_v15 = vld [vmem:[#allocation5 + $0xa8] ss:$72 sps:$4 sm:$0xff]   ;;  %v15929_v16 = vld [vmem:[#allocation5 + $0x1214] ss:$72 sps:$4 sm:$0xff]  }
 0x164   :  { %5713 = vmatpush2.bf16.msra.mxu0 %v15867_v18  ;;  %v15932_v18 = vld [vmem:[#allocation5 + $0x1c] ss:$72 sps:$4 sm:$0xff]  }
 0x165   :  { %5754 = vmatpush2.bf16.msra.mxu1 %v15870_v19  ;;  %5714 = vmatprep.subr.bf16.mxu0 %v15875_v20  ;;  %v15927_v19 = vld [vmem:[#allocation5 + $0x1210] ss:$72 sps:$4 sm:$0xff]  }
 0x166   :  { %5755 = vmatprep.subr.bf16.mxu1 %v15878_v22  ;;  %v15930_v20 = vld [vmem:[#allocation5 + $0x18] ss:$72 sps:$4 sm:$0xff]   ;;  %v15938_v22 = vld [vmem:[#allocation5 + $0x88c] ss:$72 sps:$4 sm:$0xff]  }
 0x168   :  { %5715 = vmatpush2.bf16.msra.mxu0 %v15873_v23  ;;  %v15933_v23 = vld [vmem:[#allocation5 + $0x1a80] ss:$72 sps:$4 sm:$0xff]  }
 0x169   :  { %5756 = vmatpush2.bf16.msra.mxu1 %v15876_v24  ;;  %5716 = vmatprep.subr.bf16.mxu0 %v15881_v25  ;;  %v15936_v24 = vld [vmem:[#allocation5 + $0x888] ss:$72 sps:$4 sm:$0xff]   ;;  %v15941_v25 = vld [vmem:[#allocation5 + $0x19f4] ss:$72 sps:$4 sm:$0xff]  }
 0x16a   :  { %5757 = vmatprep.subr.bf16.mxu1 %v15884_v27  ;;  %v15944_v27 = vld [vmem:[#allocation5 + $0x7fc] ss:$72 sps:$4 sm:$0xff]  }
 0x16c   :  { %5717 = vmatpush2.bf16.msra.mxu0 %v15879_v28  ;;  %v15939_v28 = vld [vmem:[#allocation5 + $0x19f0] ss:$72 sps:$4 sm:$0xff]  }
 0x16d   :  { %5758 = vmatpush2.bf16.msra.mxu1 %v15882_v29  ;;  %5768 = vmatprep.subr.bf16.mxu0 %v15887_v32  ;;  %v15942_v29 = vld [vmem:[#allocation5 + $0x7f8] ss:$72 sps:$4 sm:$0xff]   ;;  %v15950_v32 = vld [vmem:[#allocation5 + $0x76c] ss:$72 sps:$4 sm:$0xff]  }
 0x16e   :  { %5809 = vmatprep.subr.bf16.mxu1 %v15890_v33  ;;  %v15945_v33 = vld [vmem:[#allocation5 + $0x1960] ss:$72 sps:$4 sm:$0xff]  }
 0x16f   :  { %v5474_v42 = vpop.f32.mrf.mxu0  ;;  %5719 = vmatmul.mubr.bf16.vlgmr.msra.gmra.mxu0 %v18582_v8 }
 0x170   :  { %5760 = vmatmul.mubr.bf16.vlgmr.msra.gmra.mxu1 %v18584_v11  ;;  %v5515_v43 = vpop.f32.mrf.mxu1  ;;  %v5475_v46 = vadd.f32 %v5474_v42, %v1033_v37  ;;  %5769 = vmatpush1.bf16.msra.mxu0 %v15885_v36  ;;  %v15948_v36 = vld [vmem:[#allocation5 + $0x768] ss:$72 sps:$4 sm:$0xff]   ;;  %v15953_v37 = vld [vmem:[#allocation5 + $0x18d4] ss:$72 sps:$4 sm:$0xff]  }
 0x171   :  { %5810 = vmatpush1.bf16.msra.mxu1 %v15888_v38  ;;  %v5476_v50 = vpop.f32.mrf.mxu0  ;;  %5770 = vmatprep.subr.bf16.mxu0 %v15893_v39  ;;  %v15956_v38 = vld [vmem:[#allocation5 + $0x6dc] ss:$72 sps:$4 sm:$0xff]   ;;  %v15951_v39 = vld [vmem:[#allocation5 + $0x18d0] ss:$72 sps:$4 sm:$0xff]   ;;  %v15962_v42 = vld [vmem:[#allocation5 + $0x64c] ss:$72 sps:$4 sm:$0xff]  }
 0x172   :  { %v5517_v51 = vpop.f32.mrf.mxu1  ;;  %5811 = vmatprep.subr.bf16.mxu1 %v15896_v40  ;;  %v5477_v53 = vadd.f32 %v5476_v50, %v1037_v41  ;;  %v18614_v54 = vadd.f32 %v5515_v43, %v5475_v46  ;;  %5800 = vmatprep.mubr.bf16.mxu0 %v18589_v35  ;;  %v15954_v40 = vld [vmem:[#allocation5 + $0x6d8] ss:$72 sps:$4 sm:$0xff]   ;;  %v15959_v41 = vld [vmem:[#allocation5 + $0x1844] ss:$72 sps:$4 sm:$0xff]  }
 0x173   :  { %5841 = vmatprep.mubr.bf16.mxu1 %v18576_v48  ;;  %v5478_v57 = vpop.f32.mrf.mxu0  ;;  %v15957_v43 = vld [vmem:[#allocation5 + $0x1840] ss:$72 sps:$4 sm:$0xff]   ;;  %v15968_v46 = vld [vmem:[#allocation5 + $0x5bc] ss:$72 sps:$4 sm:$0xff]  }
 0x174   :  { %v5519_v60 = vpop.f32.mrf.mxu1  ;;  %v18618_v61 = vadd.f32 %v5517_v51, %v5477_v53  ;;  %5771 = vmatpush1.bf16.msra.mxu0 %v15891_v44  ;;  %v15960_v44 = vld [vmem:[#allocation5 + $0x648] ss:$72 sps:$4 sm:$0xff]   ;;  %v15971_v50 = vld [vmem:[#allocation5 + $0x1724] ss:$72 sps:$4 sm:$0xff]  }
 0x175   :  { %5812 = vmatpush1.bf16.msra.mxu1 %v15894_v45  ;;  %v5479_v62 = vpop.f32.mrf.mxu0  ;;  %5772 = vmatprep.subr.bf16.mxu0 %v15899_v47  ;;  %v15965_v45 = vld [vmem:[#allocation5 + $0x17b4] ss:$72 sps:$4 sm:$0xff]   ;;  %v15963_v47 = vld [vmem:[#allocation5 + $0x17b0] ss:$72 sps:$4 sm:$0xff]   ;;  %v15969_v53 = vld [vmem:[#allocation5 + $0x1720] ss:$72 sps:$4 sm:$0xff]  }
 0x176   :  { %5813 = vmatprep.subr.bf16.mxu1 %v15902_v49  ;;  %v5520_v63 = vpop.f32.mrf.mxu1  ;;  %v15966_v49 = vld [vmem:[#allocation5 + $0x5b8] ss:$72 sps:$4 sm:$0xff]   ;;  %v15974_v51 = vld [vmem:[#allocation5 + $0x52c] ss:$72 sps:$4 sm:$0xff]   ;;  %v15980_v57 = vld [vmem:[#allocation5 + $0x49c] ss:$72 sps:$4 sm:$0xff]  }
 0x177   :  { %v15983_v60 = vld [vmem:[#allocation5 + $0xd0c] ss:$72 sps:$4 sm:$0xff]   ;;  %v15981_v63 = vld [vmem:[#allocation5 + $0xd08] ss:$72 sps:$4 sm:$0xff]  }
 0x178   :  { %5773 = vmatpush1.bf16.msra.mxu0 %v15897_v55  ;;  %v15972_v55 = vld [vmem:[#allocation5 + $0x528] ss:$72 sps:$4 sm:$0xff]   ;;  %v15986_v62 = vld [vmem:[#allocation5 + $0x160c] ss:$72 sps:$4 sm:$0xff]  }
 0x179   :  { %5814 = vmatpush1.bf16.msra.mxu1 %v15900_v56  ;;  %5774 = vmatprep.subr.bf16.mxu0 %v15905_v58  ;;  %v15977_v56 = vld [vmem:[#allocation5 + $0x1694] ss:$72 sps:$4 sm:$0xff]   ;;  %v15975_v58 = vld [vmem:[#allocation5 + $0x1690] ss:$72 sps:$4 sm:$0xff]  }
 0x17a   :  { %5815 = vmatprep.subr.bf16.mxu1 %v15908_v59  ;;  %v15978_v59 = vld [vmem:[#allocation5 + $0x498] ss:$72 sps:$4 sm:$0xff]  }
 0x17c   :  { %5775 = vmatpush1.bf16.msra.mxu0 %v15903_v0  ;;  %v15984_v0 = vld [vmem:[#allocation5 + $0x1608] ss:$72 sps:$4 sm:$0xff]  }
 0x17d   :  { %5816 = vmatpush1.bf16.msra.mxu1 %v15906_v1  ;;  %5776 = vmatprep.subr.bf16.mxu0 %v15911_v2  ;;  %v15989_v1 = vld [vmem:[#allocation5 + $0xc7c] ss:$72 sps:$4 sm:$0xff]  }
 0x17e   :  { %5817 = vmatprep.subr.bf16.mxu1 %v15914_v3  ;;  %v15992_v2 = vld [vmem:[#allocation5 + $0x157c] ss:$72 sps:$4 sm:$0xff]   ;;  %v15987_v3 = vld [vmem:[#allocation5 + $0xc78] ss:$72 sps:$4 sm:$0xff]  }
 0x180   :  { %5777 = vmatpush1.bf16.msra.mxu0 %v15909_v4  ;;  %v15990_v4 = vld [vmem:[#allocation5 + $0x1578] ss:$72 sps:$4 sm:$0xff]  }
 0x181   :  { %5818 = vmatpush1.bf16.msra.mxu1 %v15912_v5  ;;  %5778 = vmatprep.subr.bf16.mxu0 %v15917_v6  ;;  %v15995_v6 = vld [vmem:[#allocation5 + $0xbec] ss:$72 sps:$4 sm:$0xff]  }
 0x182   :  { %5819 = vmatprep.subr.bf16.mxu1 %v15920_v7  ;;  %v15998_v7 = vld [vmem:[#allocation5 + $0x14ec] ss:$72 sps:$4 sm:$0xff]  }
 0x184   :  { %5779 = vmatpush1.bf16.msra.mxu0 %v15915_v9 }
 0x185   :  { %5820 = vmatpush1.bf16.msra.mxu1 %v15918_v10  ;;  %5780 = vmatprep.subr.bf16.mxu0 %v15923_v12 }
 0x186   :  { %5821 = vmatprep.subr.bf16.mxu1 %v15926_v13 }
 0x188   :  { %5781 = vmatpush1.bf16.msra.mxu0 %v15921_v14 }
 0x189   :  { %5822 = vmatpush1.bf16.msra.mxu1 %v15924_v15  ;;  %5782 = vmatprep.subr.bf16.mxu0 %v15929_v16  ;;  %v15993_v16 = vld [vmem:[#allocation5 + $0xbe8] ss:$72 sps:$4 sm:$0xff]  }
 0x18a   :  { %5823 = vmatprep.subr.bf16.mxu1 %v15932_v18  ;;  %v15996_v18 = vld [vmem:[#allocation5 + $0x14e8] ss:$72 sps:$4 sm:$0xff]  }
 0x18c   :  { %5783 = vmatpush1.bf16.msra.mxu0 %v15927_v19 }
 0x18d   :  { %5824 = vmatpush1.bf16.msra.mxu1 %v15930_v20  ;;  %5784 = vmatprep.subr.bf16.mxu0 %v15935_v21  ;;  %v16001_v20 = vld [vmem:[#allocation5 + $0xb5c] ss:$72 sps:$4 sm:$0xff]  }
 0x18e   :  { %5825 = vmatprep.subr.bf16.mxu1 %v15938_v22  ;;  %v16004_v21 = vld [vmem:[#allocation5 + $0x145c] ss:$72 sps:$4 sm:$0xff]  }
 0x190   :  { %5785 = vmatpush2.bf16.msra.mxu0 %v15933_v23  ;;  %v16002_v23 = vld [vmem:[#allocation5 + $0x1458] ss:$72 sps:$4 sm:$0xff]  }
 0x191   :  { %5826 = vmatpush2.bf16.msra.mxu1 %v15936_v24  ;;  %5786 = vmatprep.subr.bf16.mxu0 %v15941_v25  ;;  %v16007_v24 = vld [vmem:[#allocation5 + $0xacc] ss:$72 sps:$4 sm:$0xff]  }
 0x192   :  { %5827 = vmatprep.subr.bf16.mxu1 %v15944_v27  ;;  %v16010_v25 = vld [vmem:[#allocation5 + $0x13cc] ss:$72 sps:$4 sm:$0xff]   ;;  %v16005_v27 = vld [vmem:[#allocation5 + $0xac8] ss:$72 sps:$4 sm:$0xff]  }
 0x194   :  { %5787 = vmatpush2.bf16.msra.mxu0 %v15939_v28  ;;  %v16008_v28 = vld [vmem:[#allocation5 + $0x13c8] ss:$72 sps:$4 sm:$0xff]  }
 0x195   :  { %5828 = vmatpush2.bf16.msra.mxu1 %v15942_v29  ;;  %5788 = vmatprep.subr.bf16.mxu0 %v15947_v30  ;;  %v16013_v29 = vld [vmem:[#allocation5 + $0xa3c] ss:$72 sps:$4 sm:$0xff]  }
 0x196   :  { %5829 = vmatprep.subr.bf16.mxu1 %v15950_v32  ;;  %v16016_v30 = vld [vmem:[#allocation5 + $0x133c] ss:$72 sps:$4 sm:$0xff]   ;;  %v16011_v32 = vld [vmem:[#allocation5 + $0xa38] ss:$72 sps:$4 sm:$0xff]  }
 0x198   :  { %5789 = vmatpush2.bf16.msra.mxu0 %v15945_v33  ;;  %v16014_v33 = vld [vmem:[#allocation5 + $0x1338] ss:$72 sps:$4 sm:$0xff]  }
 0x199   :  { %5830 = vmatpush2.bf16.msra.mxu1 %v15948_v36  ;;  %5790 = vmatprep.subr.bf16.mxu0 %v15953_v37  ;;  %v16019_v36 = vld [vmem:[#allocation5 + $0x9ac] ss:$72 sps:$4 sm:$0xff]  }
 0x19a   :  { %5831 = vmatprep.subr.bf16.mxu1 %v15956_v38  ;;  %v16022_v37 = vld [vmem:[#allocation5 + $0x12ac] ss:$72 sps:$4 sm:$0xff]   ;;  %v16017_v38 = vld [vmem:[#allocation5 + $0x9a8] ss:$72 sps:$4 sm:$0xff]  }
 0x19c   :  { %5791 = vmatpush2.bf16.msra.mxu0 %v15951_v39  ;;  %v16020_v39 = vld [vmem:[#allocation5 + $0x12a8] ss:$72 sps:$4 sm:$0xff]  }
 0x19d   :  { %5832 = vmatpush2.bf16.msra.mxu1 %v15954_v40  ;;  %5792 = vmatprep.subr.bf16.mxu0 %v15959_v41  ;;  %v16025_v40 = vld [vmem:[#allocation5 + $0x91c] ss:$72 sps:$4 sm:$0xff]  }
 0x19e   :  { %5833 = vmatprep.subr.bf16.mxu1 %v15962_v42  ;;  %v16028_v41 = vld [vmem:[#allocation5 + $0x121c] ss:$72 sps:$4 sm:$0xff]   ;;  %v16023_v42 = vld [vmem:[#allocation5 + $0x918] ss:$72 sps:$4 sm:$0xff]  }
 0x1a0   :  { %5793 = vmatpush2.bf16.msra.mxu0 %v15957_v43  ;;  %v16026_v43 = vld [vmem:[#allocation5 + $0x1218] ss:$72 sps:$4 sm:$0xff]  }
 0x1a1   :  { %5834 = vmatpush2.bf16.msra.mxu1 %v15960_v44  ;;  %5794 = vmatprep.subr.bf16.mxu0 %v15965_v45  ;;  %v16031_v44 = vld [vmem:[#allocation5 + $0x118c] ss:$72 sps:$4 sm:$0xff]  }
 0x1a2   :  { %5835 = vmatprep.subr.bf16.mxu1 %v15968_v46  ;;  %v16034_v45 = vld [vmem:[#allocation5 + $0x1a8c] ss:$72 sps:$4 sm:$0xff]   ;;  %v16029_v46 = vld [vmem:[#allocation5 + $0x1188] ss:$72 sps:$4 sm:$0xff]  }
 0x1a4   :  { %5795 = vmatpush2.bf16.msra.mxu0 %v15963_v47  ;;  %v16032_v47 = vld [vmem:[#allocation5 + $0x1a88] ss:$72 sps:$4 sm:$0xff]  }
 0x1a5   :  { %5836 = vmatpush2.bf16.msra.mxu1 %v15966_v49  ;;  %5796 = vmatprep.subr.bf16.mxu0 %v15971_v50  ;;  %v16037_v49 = vld [vmem:[#allocation5 + $0x10fc] ss:$72 sps:$4 sm:$0xff]  }
 0x1a6   :  { %5837 = vmatprep.subr.bf16.mxu1 %v15974_v51  ;;  %v16040_v50 = vld [vmem:[#allocation5 + $0x19fc] ss:$72 sps:$4 sm:$0xff]   ;;  %v16035_v51 = vld [vmem:[#allocation5 + $0x10f8] ss:$72 sps:$4 sm:$0xff]  }
 0x1a8   :  { %5797 = vmatpush2.bf16.msra.mxu0 %v15969_v53  ;;  %v16038_v53 = vld [vmem:[#allocation5 + $0x19f8] ss:$72 sps:$4 sm:$0xff]  }
 0x1a9   :  { %5838 = vmatpush2.bf16.msra.mxu1 %v15972_v55  ;;  %5798 = vmatprep.subr.bf16.mxu0 %v15977_v56  ;;  %v16043_v55 = vld [vmem:[#allocation5 + $0x106c] ss:$72 sps:$4 sm:$0xff]  }
 0x1aa   :  { %5839 = vmatprep.subr.bf16.mxu1 %v15980_v57  ;;  %v16046_v56 = vld [vmem:[#allocation5 + $0x196c] ss:$72 sps:$4 sm:$0xff]   ;;  %v16041_v57 = vld [vmem:[#allocation5 + $0x1068] ss:$72 sps:$4 sm:$0xff]  }
 0x1ac   :  { %5799 = vmatpush2.bf16.msra.mxu0 %v15975_v58  ;;  %v16044_v58 = vld [vmem:[#allocation5 + $0x1968] ss:$72 sps:$4 sm:$0xff]  }
 0x1ad   :  { %5840 = vmatpush2.bf16.msra.mxu1 %v15978_v59  ;;  %5850 = vmatprep.subr.bf16.mxu0 %v15983_v60  ;;  %v16049_v59 = vld [vmem:[#allocation5 + $0xfdc] ss:$72 sps:$4 sm:$0xff]  }
 0x1ae   :  { %5891 = vmatprep.subr.bf16.mxu1 %v15986_v62  ;;  %v16052_v60 = vld [vmem:[#allocation5 + $0x18dc] ss:$72 sps:$4 sm:$0xff]   ;;  %v16047_v62 = vld [vmem:[#allocation5 + $0xfd8] ss:$72 sps:$4 sm:$0xff]  }
 0x1af   :  { %v5556_v5 = vpop.f32.mrf.mxu0  ;;  %5801 = vmatmul.mubr.bf16.vlgmr.msra.gmra.mxu0 %v18592_v17 }
 0x1b0   :  { %5842 = vmatmul.mubr.bf16.vlgmr.msra.gmra.mxu1 %v18582_v8  ;;  %v18622_v9 = vpop.f32.mrf.mxu1  ;;  %v18625_v10 = vadd.f32 %v5556_v5, %v18614_v54  ;;  %5851 = vmatpush1.bf16.msra.mxu0 %v15981_v63  ;;  %v16050_v63 = vld [vmem:[#allocation5 + $0x18d8] ss:$72 sps:$4 sm:$0xff]   ;;  %v16064_v5 = vld [vmem:[#allocation5 + $0x17bc] ss:$72 sps:$4 sm:$0xff]  }
 0x1b1   :  { %5892 = vmatpush1.bf16.msra.mxu1 %v15984_v0  ;;  %v5558_v12 = vpop.f32.mrf.mxu0  ;;  %5852 = vmatprep.subr.bf16.mxu0 %v15989_v1  ;;  %v16055_v0 = vld [vmem:[#allocation5 + $0xf4c] ss:$72 sps:$4 sm:$0xff]  }
 0x1b2   :  { %5893 = vmatprep.subr.bf16.mxu1 %v15992_v2  ;;  %v18627_v13 = vpop.f32.mrf.mxu1  ;;  %v18630_v14 = vadd.f32 %v5558_v12, %v18618_v61  ;;  %5882 = vmatprep.mubr.bf16.mxu0 %v18578_v52  ;;  %v15999_v61 = vld [vmem:[#allocation5 + $0xb58] ss:$72 sps:$4 sm:$0xff]   ;;  %v16058_v1 = vld [vmem:[#allocation5 + $0x184c] ss:$72 sps:$4 sm:$0xff]   ;;  %v16053_v2 = vld [vmem:[#allocation5 + $0xf48] ss:$72 sps:$4 sm:$0xff]  }
 0x1b3   :  { %5923 = vmatprep.mubr.bf16.mxu1 %v18589_v35  ;;  %v5560_v15 = vpop.f32.mrf.mxu0  ;;  %v16062_v12 = vld [vmem:[#allocation5 + $0x17b8] ss:$72 sps:$4 sm:$0xff]  }
 0x1b4   :  { %v5601_v19 = vpop.f32.mrf.mxu1  ;;  %5853 = vmatpush1.bf16.msra.mxu0 %v15987_v3  ;;  %v16056_v3 = vld [vmem:[#allocation5 + $0x1848] ss:$72 sps:$4 sm:$0xff]   ;;  %v16067_v15 = vld [vmem:[#allocation5 + $0xe2c] ss:$72 sps:$4 sm:$0xff]  }
 0x1b5   :  { %5894 = vmatpush1.bf16.msra.mxu1 %v15990_v4  ;;  %v5561_v54 = vpop.f32.mrf.mxu0  ;;  %5854 = vmatprep.subr.bf16.mxu0 %v15995_v6  ;;  %v16061_v4 = vld [vmem:[#allocation5 + $0xebc] ss:$72 sps:$4 sm:$0xff]   ;;  %v14437_v6 = vmul.f32 -1.442695, %v18625_v10  ;;  %v16068_v19 = vld [vmem:[#allocation5 + $0x1728] ss:$72 sps:$4 sm:$0xff]  }
 0x1b6   :  { %5895 = vmatprep.subr.bf16.mxu1 %v15998_v7  ;;  %v5602_v22 = vpop.f32.mrf.mxu1  ;;  %v16059_v7 = vld [vmem:[#allocation5 + $0xeb8] ss:$72 sps:$4 sm:$0xff]   ;;  %v18636_v54 = vsub.s32 2, %v18602_v26  ;;  %v16076_v10 = vld [vmem:[#allocation5 + $0x169c] ss:$72 sps:$4 sm:$0xff]  }
 0x1b7   :  { %18093 = vpow2.f32 %v14437_v6  ;;  %v18641_v22 = vld [vmem:[#allocation7] sm:$0xff] }
 0x1b8   :  { %5855 = vmatpush1.bf16.msra.mxu0 %v15993_v16  ;;  %v16070_v16 = vld [vmem:[#allocation5 + $0x172c] ss:$72 sps:$4 sm:$0xff]   ;;  %v16107_v6 = vld [vmem:[#allocation5 + $0x140] ss:$72 sps:$4 sm:$0xff]  }
 0x1b9   :  { %5896 = vmatpush1.bf16.msra.mxu1 %v15996_v18  ;;  %5856 = vmatprep.subr.bf16.mxu0 %v16001_v20  ;;  %v16065_v18 = vld [vmem:[#allocation5 + $0xe28] ss:$72 sps:$4 sm:$0xff]   ;;  %v16073_v20 = vld [vmem:[#allocation5 + $0xd9c] ss:$72 sps:$4 sm:$0xff]  }
 0x1ba   :  { %5897 = vmatprep.subr.bf16.mxu1 %v16004_v21  ;;  %v18639_v21 = vsub.s32 3, %v18602_v26 }
 0x1bc   :  { %5857 = vmatpush1.bf16.msra.mxu0 %v15999_v61  ;;  %v1041_v61 = vrot.slane %v18641_v22, %v18636_v54 }
 0x1bd   :  { %5898 = vmatpush1.bf16.msra.mxu1 %v16002_v23  ;;  %5858 = vmatprep.subr.bf16.mxu0 %v16007_v24  ;;  %v16071_v23 = vld [vmem:[#allocation5 + $0xd98] ss:$72 sps:$4 sm:$0xff]  }
 0x1be   :  { %5899 = vmatprep.subr.bf16.mxu1 %v16010_v25  ;;  %v16074_v24 = vld [vmem:[#allocation5 + $0x1698] ss:$72 sps:$4 sm:$0xff]   ;;  %v16079_v25 = vld [vmem:[#allocation5 + $0x414] ss:$72 sps:$4 sm:$0xff]  }
 0x1c0   :  { %5859 = vmatpush1.bf16.msra.mxu0 %v16005_v27  ;;  %v16082_v27 = vld [vmem:[#allocation5 + $0xd14] ss:$72 sps:$4 sm:$0xff]  }
 0x1c1   :  { %5900 = vmatpush1.bf16.msra.mxu1 %v16008_v28  ;;  %5860 = vmatprep.subr.bf16.mxu0 %v16013_v29  ;;  %v1045_v28 = vrot.slane %v18641_v22, %v18639_v21  ;;  %v16077_v29 = vld [vmem:[#allocation5 + $0x410] ss:$72 sps:$4 sm:$0xff]  }
 0x1c2   :  { %5901 = vmatprep.subr.bf16.mxu1 %v16016_v30  ;;  %v16080_v30 = vld [vmem:[#allocation5 + $0xd10] ss:$72 sps:$4 sm:$0xff]  }
 0x1c4   :  { %5861 = vmatpush1.bf16.msra.mxu0 %v16011_v32  ;;  %v16085_v32 = vld [vmem:[#allocation5 + $0x384] ss:$72 sps:$4 sm:$0xff]  }
 0x1c5   :  { %5902 = vmatpush1.bf16.msra.mxu1 %v16014_v33  ;;  %5862 = vmatprep.subr.bf16.mxu0 %v16019_v36  ;;  %v16088_v33 = vld [vmem:[#allocation5 + $0xc84] ss:$72 sps:$4 sm:$0xff]   ;;  %v5598_v36 = vadd.f32 %v18622_v9, %v1041_v61 }
 0x1c6   :  { %5903 = vmatprep.subr.bf16.mxu1 %v16022_v37  ;;  %v5600_v37 = vadd.f32 %v18627_v13, %v1045_v28  ;;  %v16121_v61 = vld [vmem:[#allocation5 + $0x24] ss:$72 sps:$4 sm:$0xff]   ;;  %v16130_v28 = vld [vmem:[#allocation5 + $0x1194] ss:$72 sps:$4 sm:$0xff]  }
 0x1c8   :  { %5863 = vmatpush1.bf16.msra.mxu0 %v16017_v38  ;;  %v16083_v38 = vld [vmem:[#allocation5 + $0x380] ss:$72 sps:$4 sm:$0xff]  }
 0x1c9   :  { %5904 = vmatpush1.bf16.msra.mxu1 %v16020_v39  ;;  %5864 = vmatprep.subr.bf16.mxu0 %v16025_v40  ;;  %v16086_v39 = vld [vmem:[#allocation5 + $0xc80] ss:$72 sps:$4 sm:$0xff]   ;;  %v18094_v40 = vpop.eup %18093 }
 0x1ca   :  { %5905 = vmatprep.subr.bf16.mxu1 %v16028_v41 }
 0x1cc   :  { %5865 = vmatpush1.bf16.msra.mxu0 %v16023_v42 }
 0x1cd   :  { %5906 = vmatpush1.bf16.msra.mxu1 %v16026_v43  ;;  %5866 = vmatprep.subr.bf16.mxu0 %v16031_v44  ;;  %v16091_v43 = vld [vmem:[#allocation5 + $0x2f4] ss:$72 sps:$4 sm:$0xff]  }
 0x1ce   :  { %5907 = vmatprep.subr.bf16.mxu1 %v16034_v45  ;;  %v16094_v44 = vld [vmem:[#allocation5 + $0xbf4] ss:$72 sps:$4 sm:$0xff]  }
 0x1d0   :  { %5867 = vmatpush2.bf16.msra.mxu0 %v16029_v46 }
 0x1d1   :  { %5908 = vmatpush2.bf16.msra.mxu1 %v16032_v47  ;;  %5868 = vmatprep.subr.bf16.mxu0 %v16037_v49  ;;  %v6556_v47 = vadd.f32 1.0, %v18094_v40  ;;  %v16137_v40 = vld [vmem:[#allocation5 + $0x770] ss:$72 sps:$4 sm:$0xff]  }
 0x1d2   :  { %5909 = vmatprep.subr.bf16.mxu1 %v16040_v50  ;;  %v16089_v50 = vld [vmem:[#allocation5 + $0x2f0] ss:$72 sps:$4 sm:$0xff]  }
 0x1d3   :  { %18095 = vrcp.f32 %v6556_v47  ;;  %v16149_v47 = vld [vmem:[#allocation5 + $0x650] ss:$72 sps:$4 sm:$0xff]  }
 0x1d4   :  { %5869 = vmatpush2.bf16.msra.mxu0 %v16035_v51  ;;  %v16092_v51 = vld [vmem:[#allocation5 + $0xbf0] ss:$72 sps:$4 sm:$0xff]  }
 0x1d5   :  { %5910 = vmatpush2.bf16.msra.mxu1 %v16038_v53  ;;  %5870 = vmatprep.subr.bf16.mxu0 %v16043_v55  ;;  %v16097_v55 = vld [vmem:[#allocation5 + $0x264] ss:$72 sps:$4 sm:$0xff]  }
 0x1d6   :  { %5911 = vmatprep.subr.bf16.mxu1 %v16046_v56  ;;  %v16100_v56 = vld [vmem:[#allocation5 + $0xb64] ss:$72 sps:$4 sm:$0xff]  }
 0x1d8   :  { %5871 = vmatpush2.bf16.msra.mxu0 %v16041_v57 }
 0x1d9   :  { %5912 = vmatpush2.bf16.msra.mxu1 %v16044_v58  ;;  %5872 = vmatprep.subr.bf16.mxu0 %v16049_v59 }
 0x1da   :  { %5913 = vmatprep.subr.bf16.mxu1 %v16052_v60 }
 0x1dc   :  { %5873 = vmatpush2.bf16.msra.mxu0 %v16047_v62  ;;  %v16095_v62 = vld [vmem:[#allocation5 + $0x260] ss:$72 sps:$4 sm:$0xff]  }
 0x1dd   :  { %5914 = vmatpush2.bf16.msra.mxu1 %v16050_v63  ;;  %5874 = vmatprep.subr.bf16.mxu0 %v16055_v0  ;;  %v16098_v63 = vld [vmem:[#allocation5 + $0xb60] ss:$72 sps:$4 sm:$0xff]   ;;  %v16103_v0 = vld [vmem:[#allocation5 + $0x1d4] ss:$72 sps:$4 sm:$0xff]  }
 0x1de   :  { %5915 = vmatprep.subr.bf16.mxu1 %v16058_v1  ;;  %v16106_v1 = vld [vmem:[#allocation5 + $0xad4] ss:$72 sps:$4 sm:$0xff]  }
 0x1e0   :  { %5875 = vmatpush2.bf16.msra.mxu0 %v16053_v2  ;;  %v16101_v2 = vld [vmem:[#allocation5 + $0x1d0] ss:$72 sps:$4 sm:$0xff]  }
 0x1e1   :  { %5916 = vmatpush2.bf16.msra.mxu1 %v16056_v3  ;;  %5876 = vmatprep.subr.bf16.mxu0 %v16061_v4  ;;  %v16104_v3 = vld [vmem:[#allocation5 + $0xad0] ss:$72 sps:$4 sm:$0xff]   ;;  %v16109_v4 = vld [vmem:[#allocation5 + $0x144] ss:$72 sps:$4 sm:$0xff]  }
 0x1e2   :  { %5917 = vmatprep.subr.bf16.mxu1 %v16064_v5  ;;  %v16112_v5 = vld [vmem:[#allocation5 + $0xa44] ss:$72 sps:$4 sm:$0xff]  }
 0x1e4   :  { %5877 = vmatpush2.bf16.msra.mxu0 %v16059_v7  ;;  %v16110_v7 = vld [vmem:[#allocation5 + $0xa40] ss:$72 sps:$4 sm:$0xff]  }
 0x1e5   :  { %5918 = vmatpush2.bf16.msra.mxu1 %v16062_v12  ;;  %5878 = vmatprep.subr.bf16.mxu0 %v16067_v15  ;;  %v16115_v12 = vld [vmem:[#allocation5 + $0xb4] ss:$72 sps:$4 sm:$0xff]  }
 0x1e6   :  { %5919 = vmatprep.subr.bf16.mxu1 %v16070_v16  ;;  %v16118_v15 = vld [vmem:[#allocation5 + $0x9b4] ss:$72 sps:$4 sm:$0xff]   ;;  %v18096_v16 = vpop.eup %18095 }
 0x1e8   :  { %5879 = vmatpush2.bf16.msra.mxu0 %v16065_v18 }
 0x1e9   :  { %5920 = vmatpush2.bf16.msra.mxu1 %v16068_v19  ;;  %5880 = vmatprep.subr.bf16.mxu0 %v16073_v20  ;;  %v16113_v19 = vld [vmem:[#allocation5 + $0xb0] ss:$72 sps:$4 sm:$0xff]  }
 0x1ea   :  { %5921 = vmatprep.subr.bf16.mxu1 %v16076_v10  ;;  %v16116_v20 = vld [vmem:[#allocation5 + $0x9b0] ss:$72 sps:$4 sm:$0xff]  }
 0x1ec   :  { %5881 = vmatpush2.bf16.msra.mxu0 %v16071_v23  ;;  %v16124_v23 = vld [vmem:[#allocation5 + $0x924] ss:$72 sps:$4 sm:$0xff]  }
 0x1ed   :  { %5922 = vmatpush2.bf16.msra.mxu1 %v16074_v24  ;;  %5932 = vmatprep.subr.bf16.mxu0 %v16079_v25  ;;  %v16119_v24 = vld [vmem:[#allocation5 + $0x20] ss:$72 sps:$4 sm:$0xff]  }
 0x1ee   :  { %5973 = vmatprep.subr.bf16.mxu1 %v16082_v27  ;;  %v16122_v25 = vld [vmem:[#allocation5 + $0x920] ss:$72 sps:$4 sm:$0xff]   ;;  %v16127_v27 = vld [vmem:[#allocation5 + $0x894] ss:$72 sps:$4 sm:$0xff]  }
 0x1ef   :  { %v5638_v41 = vpop.f32.mrf.mxu0  ;;  %5883 = vmatmul.mubr.bf16.vlgmr.msra.gmra.mxu0 %v18584_v11 }
 0x1f0   :  { %5924 = vmatmul.mubr.bf16.vlgmr.msra.gmra.mxu1 %v18592_v17  ;;  %v5679_v42 = vpop.f32.mrf.mxu1  ;;  %v5639_v45 = vadd.f32 %v5638_v41, %v5598_v36  ;;  %5933 = vmatpush1.bf16.msra.mxu0 %v16077_v29  ;;  %v16125_v29 = vld [vmem:[#allocation5 + $0x890] ss:$72 sps:$4 sm:$0xff]   ;;  %v16131_v36 = vld [vmem:[#allocation5 + $0x800] ss:$72 sps:$4 sm:$0xff]  }
 0x1f1   :  { %5974 = vmatpush1.bf16.msra.mxu1 %v16080_v30  ;;  %v5640_v9 = vpop.f32.mrf.mxu0  ;;  %5934 = vmatprep.subr.bf16.mxu0 %v16085_v32  ;;  %v16128_v30 = vld [vmem:[#allocation5 + $0x1190] ss:$72 sps:$4 sm:$0xff]   ;;  %v16133_v32 = vld [vmem:[#allocation5 + $0x804] ss:$72 sps:$4 sm:$0xff]  }
 0x1f2   :  { %v5681_v46 = vpop.f32.mrf.mxu1  ;;  %5975 = vmatprep.subr.bf16.mxu1 %v16088_v33  ;;  %v5641_v13 = vadd.f32 %v5640_v9, %v5600_v37  ;;  %v18651_v49 = vadd.f32 %v5679_v42, %v5639_v45  ;;  %5964 = vmatprep.mubr.bf16.mxu0 %v18576_v48  ;;  %v16136_v33 = vld [vmem:[#allocation5 + $0x1104] ss:$72 sps:$4 sm:$0xff]   ;;  %v16134_v37 = vld [vmem:[#allocation5 + $0x1100] ss:$72 sps:$4 sm:$0xff]   ;;  %v16140_v41 = vld [vmem:[#allocation5 + $0x1070] ss:$72 sps:$4 sm:$0xff]  }
 0x1f3   :  { %6005 = vmatprep.mubr.bf16.mxu1 %v18578_v52  ;;  %v5642_v53 = vpop.f32.mrf.mxu0  ;;  %v16145_v42 = vld [vmem:[#allocation5 + $0x6e4] ss:$72 sps:$4 sm:$0xff]   ;;  %v16146_v45 = vld [vmem:[#allocation5 + $0xfe0] ss:$72 sps:$4 sm:$0xff]   ;;  %v16151_v9 = vld [vmem:[#allocation5 + $0x654] ss:$72 sps:$4 sm:$0xff]  }
 0x1f4   :  { %v5683_v57 = vpop.f32.mrf.mxu1  ;;  %v5682_v58 = vadd.f32 %v5681_v46, %v5641_v13  ;;  %5935 = vmatpush1.bf16.msra.mxu0 %v16083_v38  ;;  %v16139_v38 = vld [vmem:[#allocation5 + $0x774] ss:$72 sps:$4 sm:$0xff]   ;;  %v16152_v13 = vld [vmem:[#allocation5 + $0xf50] ss:$72 sps:$4 sm:$0xff]   ;;  %v16155_v53 = vld [vmem:[#allocation5 + $0x5c0] ss:$72 sps:$4 sm:$0xff]  }
 0x1f5   :  { %5976 = vmatpush1.bf16.msra.mxu1 %v16086_v39  ;;  %v5643_v59 = vpop.f32.mrf.mxu0  ;;  %5936 = vmatprep.subr.bf16.mxu0 %v16091_v43  ;;  %v16142_v39 = vld [vmem:[#allocation5 + $0x1074] ss:$72 sps:$4 sm:$0xff]   ;;  %v16148_v43 = vld [vmem:[#allocation5 + $0xfe4] ss:$72 sps:$4 sm:$0xff]  }
 0x1f6   :  { %5977 = vmatprep.subr.bf16.mxu1 %v16094_v44  ;;  %v5684_v60 = vpop.f32.mrf.mxu1  ;;  %18097 = vtanh.f32 %v5682_v58  ;;  %v16143_v44 = vld [vmem:[#allocation5 + $0x6e0] ss:$72 sps:$4 sm:$0xff]   ;;  %v16154_v46 = vld [vmem:[#allocation5 + $0xf54] ss:$72 sps:$4 sm:$0xff]   ;;  %v16161_v58 = vld [vmem:[#allocation5 + $0x530] ss:$72 sps:$4 sm:$0xff]  }
 0x1f7   :  { %v16166_v57 = vld [vmem:[#allocation5 + $0xe34] ss:$72 sps:$4 sm:$0xff]   ;;  %v16164_v59 = vld [vmem:[#allocation5 + $0xe30] ss:$72 sps:$4 sm:$0xff]   ;;  %v16169_v60 = vld [vmem:[#allocation5 + $0x4a4] ss:$72 sps:$4 sm:$0xff]  }
 0x1f8   :  { %5937 = vmatpush1.bf16.msra.mxu0 %v16089_v50  ;;  %v16157_v50 = vld [vmem:[#allocation5 + $0x5c4] ss:$72 sps:$4 sm:$0xff]  }
 0x1f9   :  { %5978 = vmatpush1.bf16.msra.mxu1 %v16092_v51  ;;  %5938 = vmatprep.subr.bf16.mxu0 %v16097_v55  ;;  %v16160_v51 = vld [vmem:[#allocation5 + $0xec4] ss:$72 sps:$4 sm:$0xff]   ;;  %v16158_v55 = vld [vmem:[#allocation5 + $0xec0] ss:$72 sps:$4 sm:$0xff]  }
 0x1fa   :  { %5979 = vmatprep.subr.bf16.mxu1 %v16100_v56  ;;  %v16163_v56 = vld [vmem:[#allocation5 + $0x534] ss:$72 sps:$4 sm:$0xff]  }
 0x1fc   :  { %5939 = vmatpush1.bf16.msra.mxu0 %v16095_v62  ;;  %v16172_v62 = vld [vmem:[#allocation5 + $0xda4] ss:$72 sps:$4 sm:$0xff]  }
 0x1fd   :  { %5980 = vmatpush1.bf16.msra.mxu1 %v16098_v63  ;;  %5940 = vmatprep.subr.bf16.mxu0 %v16103_v0  ;;  %v16167_v63 = vld [vmem:[#allocation5 + $0x4a0] ss:$72 sps:$4 sm:$0xff]  }
 0x1fe   :  { %5981 = vmatprep.subr.bf16.mxu1 %v16106_v1  ;;  %v16170_v0 = vld [vmem:[#allocation5 + $0xda0] ss:$72 sps:$4 sm:$0xff]   ;;  %v18658_v1 = vsub.s32 4, %v18602_v26 }
 0x200   :  { %5941 = vmatpush1.bf16.msra.mxu0 %v16101_v2  ;;  %v16175_v2 = vld [vmem:[#allocation5 + $0x1614] ss:$72 sps:$4 sm:$0xff]  }
 0x201   :  { %5982 = vmatpush1.bf16.msra.mxu1 %v16104_v3  ;;  %5942 = vmatprep.subr.bf16.mxu0 %v16109_v4  ;;  %v16178_v3 = vld [vmem:[#allocation5 + $0x41c] ss:$72 sps:$4 sm:$0xff]   ;;  %v16173_v4 = vld [vmem:[#allocation5 + $0x1610] ss:$72 sps:$4 sm:$0xff]  }
 0x202   :  { %5983 = vmatprep.subr.bf16.mxu1 %v16112_v5  ;;  %v16176_v5 = vld [vmem:[#allocation5 + $0x418] ss:$72 sps:$4 sm:$0xff]  }
 0x203   :  { %v18098_v18 = vpop.eup %18097 }
 0x204   :  { %5943 = vmatpush1.bf16.msra.mxu0 %v16107_v6  ;;  %v18655_v10 = vmul.f32 %v18098_v18, %v18096_v16  ;;  %v18661_v6 = vsub.s32 5, %v18602_v26  ;;  %v16179_v18 = vld [vmem:[#allocation5 + $0x1580] ss:$72 sps:$4 sm:$0xff]  }
 0x205   :  { %5984 = vmatpush1.bf16.msra.mxu1 %v16110_v7  ;;  %5944 = vmatprep.subr.bf16.mxu0 %v16115_v12  ;;  %v16181_v7 = vld [vmem:[#allocation5 + $0x1584] ss:$72 sps:$4 sm:$0xff]  }
 0x206   :  { %5985 = vmatprep.subr.bf16.mxu1 %v16118_v15  ;;  %v16184_v12 = vld [vmem:[#allocation5 + $0x38c] ss:$72 sps:$4 sm:$0xff]   ;;  %v1049_v15 = vrot.slane %v18641_v22, %v18658_v1  ;;  %v1053_v16 = vrot.slane %v18641_v22, %v18661_v6  ;;  %v16185_v22 = vld [vmem:[#allocation5 + $0x14f0] ss:$72 sps:$4 sm:$0xff]  }
 0x208   :  { %5945 = vmatpush1.bf16.msra.mxu0 %v16113_v19  ;;  %v16182_v19 = vld [vmem:[#allocation5 + $0x388] ss:$72 sps:$4 sm:$0xff]  }
 0x209   :  { %5986 = vmatpush1.bf16.msra.mxu1 %v16116_v20  ;;  %5946 = vmatprep.subr.bf16.mxu0 %v16121_v61 }
 0x20a   :  { %5987 = vmatprep.subr.bf16.mxu1 %v16124_v23  ;;  %v16187_v23 = vld [vmem:[#allocation5 + $0x14f4] ss:$72 sps:$4 sm:$0xff]  }
 0x20c   :  { %5947 = vmatpush1.bf16.msra.mxu0 %v16119_v24  ;;  %v16190_v24 = vld [vmem:[#allocation5 + $0x2fc] ss:$72 sps:$4 sm:$0xff]  }
 0x20d   :  { %5988 = vmatpush1.bf16.msra.mxu1 %v16122_v25  ;;  %5948 = vmatprep.subr.bf16.mxu0 %v16127_v27 }
 0x20e   :  { %5989 = vmatprep.subr.bf16.mxu1 %v16130_v28 }
 0x210   :  { %5949 = vmatpush2.bf16.msra.mxu0 %v16125_v29 }
 0x211   :  { %5990 = vmatpush2.bf16.msra.mxu1 %v16128_v30  ;;  %5950 = vmatprep.subr.bf16.mxu0 %v16133_v32  ;;  %v16188_v32 = vld [vmem:[#allocation5 + $0x2f8] ss:$72 sps:$4 sm:$0xff]  }
 0x212   :  { %5991 = vmatprep.subr.bf16.mxu1 %v16136_v33 }
 0x214   :  { %5951 = vmatpush2.bf16.msra.mxu0 %v16131_v36  ;;  %v16193_v36 = vld [vmem:[#allocation5 + $0x1464] ss:$72 sps:$4 sm:$0xff]  }
 0x215   :  { %5992 = vmatpush2.bf16.msra.mxu1 %v16134_v37  ;;  %5952 = vmatprep.subr.bf16.mxu0 %v16139_v38  ;;  %v16196_v37 = vld [vmem:[#allocation5 + $0x26c] ss:$72 sps:$4 sm:$0xff]  }
 0x216   :  { %5993 = vmatprep.subr.bf16.mxu1 %v16142_v39 }
 0x218   :  { %5953 = vmatpush2.bf16.msra.mxu0 %v16137_v40 }
 0x219   :  { %5994 = vmatpush2.bf16.msra.mxu1 %v16140_v41  ;;  %5954 = vmatprep.subr.bf16.mxu0 %v16145_v42  ;;  %v16191_v42 = vld [vmem:[#allocation5 + $0x1460] ss:$72 sps:$4 sm:$0xff]  }
 0x21a   :  { %5995 = vmatprep.subr.bf16.mxu1 %v16148_v43  ;;  %v16194_v43 = vld [vmem:[#allocation5 + $0x268] ss:$72 sps:$4 sm:$0xff]  }
 0x21c   :  { %5955 = vmatpush2.bf16.msra.mxu0 %v16143_v44  ;;  %v16199_v44 = vld [vmem:[#allocation5 + $0x13d4] ss:$72 sps:$4 sm:$0xff]  }
 0x21d   :  { %5996 = vmatpush2.bf16.msra.mxu1 %v16146_v45  ;;  %5956 = vmatprep.subr.bf16.mxu0 %v16151_v9  ;;  %v16202_v45 = vld [vmem:[#allocation5 + $0x1dc] ss:$72 sps:$4 sm:$0xff]   ;;  %v16197_v9 = vld [vmem:[#allocation5 + $0x13d0] ss:$72 sps:$4 sm:$0xff]  }
 0x21e   :  { %5997 = vmatprep.subr.bf16.mxu1 %v16154_v46  ;;  %v16200_v46 = vld [vmem:[#allocation5 + $0x1d8] ss:$72 sps:$4 sm:$0xff]  }
 0x220   :  { %5957 = vmatpush2.bf16.msra.mxu0 %v16149_v47  ;;  %v16205_v47 = vld [vmem:[#allocation5 + $0x1344] ss:$72 sps:$4 sm:$0xff]  }
 0x221   :  { %5998 = vmatpush2.bf16.msra.mxu1 %v16152_v13  ;;  %5958 = vmatprep.subr.bf16.mxu0 %v16157_v50  ;;  %v16208_v13 = vld [vmem:[#allocation5 + $0x14c] ss:$72 sps:$4 sm:$0xff]   ;;  %v16203_v50 = vld [vmem:[#allocation5 + $0x1340] ss:$72 sps:$4 sm:$0xff]  }
 0x222   :  { %5999 = vmatprep.subr.bf16.mxu1 %v16160_v51  ;;  %v16206_v51 = vld [vmem:[#allocation5 + $0x148] ss:$72 sps:$4 sm:$0xff]  }
 0x224   :  { %5959 = vmatpush2.bf16.msra.mxu0 %v16155_v53  ;;  %v16211_v53 = vld [vmem:[#allocation5 + $0x12b4] ss:$72 sps:$4 sm:$0xff]  }
 0x225   :  { %6000 = vmatpush2.bf16.msra.mxu1 %v16158_v55  ;;  %5960 = vmatprep.subr.bf16.mxu0 %v16163_v56  ;;  %v16214_v55 = vld [vmem:[#allocation5 + $0xbc] ss:$72 sps:$4 sm:$0xff]   ;;  %v16209_v56 = vld [vmem:[#allocation5 + $0x12b0] ss:$72 sps:$4 sm:$0xff]  }
 0x226   :  { %6001 = vmatprep.subr.bf16.mxu1 %v16166_v57  ;;  %v16212_v57 = vld [vmem:[#allocation5 + $0xb8] ss:$72 sps:$4 sm:$0xff]  }
 0x228   :  { %5961 = vmatpush2.bf16.msra.mxu0 %v16161_v58  ;;  %v16217_v58 = vld [vmem:[#allocation5 + $0x1224] ss:$72 sps:$4 sm:$0xff]  }
 0x229   :  { %6002 = vmatpush2.bf16.msra.mxu1 %v16164_v59  ;;  %5962 = vmatprep.subr.bf16.mxu0 %v16169_v60  ;;  %v16220_v59 = vld [vmem:[#allocation5 + $0x2c] ss:$72 sps:$4 sm:$0xff]   ;;  %v16215_v60 = vld [vmem:[#allocation5 + $0x1220] ss:$72 sps:$4 sm:$0xff]  }
 0x22a   :  { %6003 = vmatprep.subr.bf16.mxu1 %v16172_v62  ;;  %v16218_v62 = vld [vmem:[#allocation5 + $0x28] ss:$72 sps:$4 sm:$0xff]  }
 0x22c   :  { %5963 = vmatpush2.bf16.msra.mxu0 %v16167_v63  ;;  %v16223_v63 = vld [vmem:[#allocation5 + $0x1a94] ss:$72 sps:$4 sm:$0xff]  }
 0x22d   :  { %6004 = vmatpush2.bf16.msra.mxu1 %v16170_v0  ;;  %6014 = vmatprep.subr.bf16.mxu0 %v16175_v2  ;;  %v16226_v0 = vld [vmem:[#allocation5 + $0x89c] ss:$72 sps:$4 sm:$0xff]   ;;  %v16221_v2 = vld [vmem:[#allocation5 + $0x1a90] ss:$72 sps:$4 sm:$0xff]  }
 0x22e   :  { %6055 = vmatprep.subr.bf16.mxu1 %v16178_v3  ;;  %v16224_v3 = vld [vmem:[#allocation5 + $0x898] ss:$72 sps:$4 sm:$0xff]  }
 0x22f   :  { %v5720_v20 = vpop.f32.mrf.mxu0  ;;  %5965 = vmatmul.mubr.bf16.vlgmr.msra.gmra.mxu0 %v18582_v8 }
 0x230   :  { %6006 = vmatmul.mubr.bf16.vlgmr.msra.gmra.mxu1 %v18584_v11  ;;  %v5761_v61 = vpop.f32.mrf.mxu1  ;;  %v5721_v25 = vadd.f32 %v5720_v20, %v1049_v15  ;;  %6015 = vmatpush1.bf16.msra.mxu0 %v16173_v4  ;;  %v16229_v4 = vld [vmem:[#allocation5 + $0x1a04] ss:$72 sps:$4 sm:$0xff]   ;;  %v16235_v15 = vld [vmem:[#allocation5 + $0x1974] ss:$72 sps:$4 sm:$0xff]  }
 0x231   :  { %6056 = vmatpush1.bf16.msra.mxu1 %v16176_v5  ;;  %v5722_v27 = vpop.f32.mrf.mxu0  ;;  %6016 = vmatprep.subr.bf16.mxu0 %v16181_v7  ;;  %v16232_v5 = vld [vmem:[#allocation5 + $0x80c] ss:$72 sps:$4 sm:$0xff]   ;;  %v16227_v7 = vld [vmem:[#allocation5 + $0x1a00] ss:$72 sps:$4 sm:$0xff]  }
 0x232   :  { %v5763_v28 = vpop.f32.mrf.mxu1  ;;  %6057 = vmatprep.subr.bf16.mxu1 %v16184_v12  ;;  %v5723_v29 = vadd.f32 %v5722_v27, %v1053_v16  ;;  %v18669_v30 = vadd.f32 %v5761_v61, %v5721_v25  ;;  %6046 = vmatprep.mubr.bf16.mxu0 %v18589_v35  ;;  %v16230_v12 = vld [vmem:[#allocation5 + $0x808] ss:$72 sps:$4 sm:$0xff]   ;;  %v16238_v16 = vld [vmem:[#allocation5 + $0x77c] ss:$72 sps:$4 sm:$0xff]   ;;  %v16244_v61 = vld [vmem:[#allocation5 + $0x6ec] ss:$72 sps:$4 sm:$0xff]  }
 0x233   :  { %6087 = vmatprep.mubr.bf16.mxu1 %v18576_v48  ;;  %v5724_v33 = vpop.f32.mrf.mxu0  ;;  %v16241_v20 = vld [vmem:[#allocation5 + $0x18e4] ss:$72 sps:$4 sm:$0xff]   ;;  %v16242_v25 = vld [vmem:[#allocation5 + $0x6e8] ss:$72 sps:$4 sm:$0xff]   ;;  %v16247_v27 = vld [vmem:[#allocation5 + $0x1854] ss:$72 sps:$4 sm:$0xff]  }
 0x234   :  { %v5765_v38 = vpop.f32.mrf.mxu1  ;;  %v18673_v39 = vadd.f32 %v5763_v28, %v5723_v29  ;;  %6017 = vmatpush1.bf16.msra.mxu0 %v16179_v18  ;;  %v16233_v18 = vld [vmem:[#allocation5 + $0x1970] ss:$72 sps:$4 sm:$0xff]   ;;  %v16250_v28 = vld [vmem:[#allocation5 + $0x65c] ss:$72 sps:$4 sm:$0xff]   ;;  %v14439_v29 = vmul.f32 -1.442695, %v18651_v49 }
 0x235   :  { %6058 = vmatpush1.bf16.msra.mxu1 %v16182_v19  ;;  %v5725_v40 = vpop.f32.mrf.mxu0  ;;  %6018 = vmatprep.subr.bf16.mxu0 %v16187_v23  ;;  %v16236_v19 = vld [vmem:[#allocation5 + $0x778] ss:$72 sps:$4 sm:$0xff]   ;;  %v14438_v23 = vmul.f32 -1.442695, %v18630_v14  ;;  %v16253_v33 = vld [vmem:[#allocation5 + $0x17c4] ss:$72 sps:$4 sm:$0xff]  }
 0x236   :  { %6059 = vmatprep.subr.bf16.mxu1 %v16190_v24  ;;  %v5766_v41 = vpop.f32.mrf.mxu1  ;;  %v16239_v24 = vld [vmem:[#allocation5 + $0x18e0] ss:$72 sps:$4 sm:$0xff]   ;;  %v16259_v38 = vld [vmem:[#allocation5 + $0x1734] ss:$72 sps:$4 sm:$0xff]   ;;  %v16257_v49 = vld [vmem:[#allocation5 + $0x1730] ss:$72 sps:$4 sm:$0xff]  }
 0x237   :  { %18099 = vpow2.f32 %v14438_v23  ;;  %v16251_v14 = vld [vmem:[#allocation5 + $0x17c0] ss:$72 sps:$4 sm:$0xff]   ;;  %v16262_v40 = vld [vmem:[#allocation5 + $0x53c] ss:$72 sps:$4 sm:$0xff]  }
 0x238   :  { %6019 = vmatpush1.bf16.msra.mxu0 %v16185_v22  ;;  %v16245_v22 = vld [vmem:[#allocation5 + $0x1850] ss:$72 sps:$4 sm:$0xff]   ;;  %18101 = vpow2.f32 %v14439_v29  ;;  %v16295_v23 = vld [vmem:[#allocation5 + $0xadc] ss:$72 sps:$4 sm:$0xff]   ;;  %v16304_v29 = vld [vmem:[#allocation5 + $0x134c] ss:$72 sps:$4 sm:$0xff]  }
 0x239   :  { %6060 = vmatpush1.bf16.msra.mxu1 %v16188_v32  ;;  %6020 = vmatprep.subr.bf16.mxu0 %v16193_v36  ;;  %v16248_v32 = vld [vmem:[#allocation5 + $0x658] ss:$72 sps:$4 sm:$0xff]   ;;  %v16256_v36 = vld [vmem:[#allocation5 + $0x5cc] ss:$72 sps:$4 sm:$0xff]  }
 0x23a   :  { %6061 = vmatprep.subr.bf16.mxu1 %v16196_v37  ;;  %v16254_v37 = vld [vmem:[#allocation5 + $0x5c8] ss:$72 sps:$4 sm:$0xff]   ;;  %v16260_v41 = vld [vmem:[#allocation5 + $0x538] ss:$72 sps:$4 sm:$0xff]  }
 0x23c   :  { %6021 = vmatpush1.bf16.msra.mxu0 %v16191_v42  ;;  %v16265_v42 = vld [vmem:[#allocation5 + $0x16a4] ss:$72 sps:$4 sm:$0xff]  }
 0x23d   :  { %6062 = vmatpush1.bf16.msra.mxu1 %v16194_v43  ;;  %6022 = vmatprep.subr.bf16.mxu0 %v16199_v44  ;;  %v16268_v43 = vld [vmem:[#allocation5 + $0x4ac] ss:$72 sps:$4 sm:$0xff]   ;;  %v16263_v44 = vld [vmem:[#allocation5 + $0x16a0] ss:$72 sps:$4 sm:$0xff]  }
 0x23e   :  { %6063 = vmatprep.subr.bf16.mxu1 %v16202_v45  ;;  %v16266_v45 = vld [vmem:[#allocation5 + $0x4a8] ss:$72 sps:$4 sm:$0xff]  }
 0x240   :  { %6023 = vmatpush1.bf16.msra.mxu0 %v16197_v9  ;;  %v16271_v9 = vld [vmem:[#allocation5 + $0xd1c] ss:$72 sps:$4 sm:$0xff]  }
 0x241   :  { %6064 = vmatpush1.bf16.msra.mxu1 %v16200_v46  ;;  %6024 = vmatprep.subr.bf16.mxu0 %v16205_v47  ;;  %v16274_v46 = vld [vmem:[#allocation5 + $0x161c] ss:$72 sps:$4 sm:$0xff]  }
 0x242   :  { %6065 = vmatprep.subr.bf16.mxu1 %v16208_v13  ;;  %v16269_v13 = vld [vmem:[#allocation5 + $0xd18] ss:$72 sps:$4 sm:$0xff]  }
 0x244   :  { %6025 = vmatpush1.bf16.msra.mxu0 %v16203_v50  ;;  %v18100_v47 = vpop.eup %18099  ;;  %v16272_v50 = vld [vmem:[#allocation5 + $0x1618] ss:$72 sps:$4 sm:$0xff]  }
 0x245   :  { %6066 = vmatpush1.bf16.msra.mxu1 %v16206_v51  ;;  %6026 = vmatprep.subr.bf16.mxu0 %v16211_v53  ;;  %v16277_v51 = vld [vmem:[#allocation5 + $0xc8c] ss:$72 sps:$4 sm:$0xff]   ;;  %v18102_v53 = vpop.eup %18101 }
 0x246   :  { %6067 = vmatprep.subr.bf16.mxu1 %v16214_v55  ;;  %v16280_v55 = vld [vmem:[#allocation5 + $0x158c] ss:$72 sps:$4 sm:$0xff]  }
 0x248   :  { %6027 = vmatpush1.bf16.msra.mxu0 %v16209_v56  ;;  %v6557_v56 = vadd.f32 1.0, %v18100_v47  ;;  %v16319_v47 = vld [vmem:[#allocation5 + $0x119c] ss:$72 sps:$4 sm:$0xff]  }
 0x249   :  { %6068 = vmatpush1.bf16.msra.mxu1 %v16212_v57  ;;  %6028 = vmatprep.subr.bf16.mxu0 %v16217_v58  ;;  %v16275_v57 = vld [vmem:[#allocation5 + $0xc88] ss:$72 sps:$4 sm:$0xff]  }
 0x24a   :  { %6069 = vmatprep.subr.bf16.mxu1 %v16220_v59  ;;  %v16278_v58 = vld [vmem:[#allocation5 + $0x1588] ss:$72 sps:$4 sm:$0xff]   ;;  %v6558_v59 = vadd.f32 1.0, %v18102_v53  ;;  %18103 = vrcp.f32 %v6557_v56  ;;  %v16325_v53 = vld [vmem:[#allocation5 + $0x110c] ss:$72 sps:$4 sm:$0xff]  }
 0x24b   :  { %v16323_v56 = vld [vmem:[#allocation5 + $0x1108] ss:$72 sps:$4 sm:$0xff]  }
 0x24c   :  { %6029 = vmatpush1.bf16.msra.mxu0 %v16215_v60 }
 0x24d   :  { %6070 = vmatpush1.bf16.msra.mxu1 %v16218_v62  ;;  %6030 = vmatprep.subr.bf16.mxu0 %v16223_v63  ;;  %v16283_v62 = vld [vmem:[#allocation5 + $0xbfc] ss:$72 sps:$4 sm:$0xff]  }
 0x24e   :  { %6071 = vmatprep.subr.bf16.mxu1 %v16226_v0  ;;  %v16286_v63 = vld [vmem:[#allocation5 + $0x14fc] ss:$72 sps:$4 sm:$0xff]  }
 0x250   :  { %6031 = vmatpush2.bf16.msra.mxu0 %v16221_v2 }
 0x251   :  { %6072 = vmatpush2.bf16.msra.mxu1 %v16224_v3  ;;  %6032 = vmatprep.subr.bf16.mxu0 %v16229_v4 }
 0x252   :  { %6073 = vmatprep.subr.bf16.mxu1 %v16232_v5 }
 0x254   :  { %6033 = vmatpush2.bf16.msra.mxu0 %v16227_v7 }
 0x255   :  { %6074 = vmatpush2.bf16.msra.mxu1 %v16230_v12  ;;  %6034 = vmatprep.subr.bf16.mxu0 %v16235_v15  ;;  %v16281_v12 = vld [vmem:[#allocation5 + $0xbf8] ss:$72 sps:$4 sm:$0xff]  }
 0x256   :  { %6075 = vmatprep.subr.bf16.mxu1 %v16238_v16  ;;  %v16284_v15 = vld [vmem:[#allocation5 + $0x14f8] ss:$72 sps:$4 sm:$0xff]  }
 0x258   :  { %6035 = vmatpush2.bf16.msra.mxu0 %v16233_v18  ;;  %v16289_v18 = vld [vmem:[#allocation5 + $0xb6c] ss:$72 sps:$4 sm:$0xff]  }
 0x259   :  { %6076 = vmatpush2.bf16.msra.mxu1 %v16236_v19  ;;  %6036 = vmatprep.subr.bf16.mxu0 %v16241_v20  ;;  %v16292_v19 = vld [vmem:[#allocation5 + $0x146c] ss:$72 sps:$4 sm:$0xff]  }
 0x25a   :  { %6077 = vmatprep.subr.bf16.mxu1 %v16244_v61  ;;  %v16290_v61 = vld [vmem:[#allocation5 + $0x1468] ss:$72 sps:$4 sm:$0xff]  }
 0x25c   :  { %6037 = vmatpush2.bf16.msra.mxu0 %v16239_v24  ;;  %v16298_v24 = vld [vmem:[#allocation5 + $0x13dc] ss:$72 sps:$4 sm:$0xff]  }
 0x25d   :  { %6078 = vmatpush2.bf16.msra.mxu1 %v16242_v25  ;;  %6038 = vmatprep.subr.bf16.mxu0 %v16247_v27  ;;  %v16293_v25 = vld [vmem:[#allocation5 + $0xad8] ss:$72 sps:$4 sm:$0xff]  }
 0x25e   :  { %6079 = vmatprep.subr.bf16.mxu1 %v16250_v28  ;;  %v16296_v27 = vld [vmem:[#allocation5 + $0x13d8] ss:$72 sps:$4 sm:$0xff]   ;;  %v16301_v28 = vld [vmem:[#allocation5 + $0xa4c] ss:$72 sps:$4 sm:$0xff]  }
 0x260   :  { %6039 = vmatpush2.bf16.msra.mxu0 %v16245_v22  ;;  %v18104_v22 = vpop.eup %18103 }
 0x261   :  { %6080 = vmatpush2.bf16.msra.mxu1 %v16248_v32  ;;  %6040 = vmatprep.subr.bf16.mxu0 %v16253_v33 }
 0x262   :  { %6081 = vmatprep.subr.bf16.mxu1 %v16256_v36 }
 0x264   :  { %6041 = vmatpush2.bf16.msra.mxu0 %v16251_v14  ;;  %v16299_v14 = vld [vmem:[#allocation5 + $0xa48] ss:$72 sps:$4 sm:$0xff]  }
 0x265   :  { %6082 = vmatpush2.bf16.msra.mxu1 %v16254_v37  ;;  %6042 = vmatprep.subr.bf16.mxu0 %v16259_v38  ;;  %v16302_v37 = vld [vmem:[#allocation5 + $0x1348] ss:$72 sps:$4 sm:$0xff]  }
 0x266   :  { %6083 = vmatprep.subr.bf16.mxu1 %v16262_v40  ;;  %v16307_v40 = vld [vmem:[#allocation5 + $0x9bc] ss:$72 sps:$4 sm:$0xff]  }
 0x268   :  { %6043 = vmatpush2.bf16.msra.mxu0 %v16257_v49  ;;  %v16310_v49 = vld [vmem:[#allocation5 + $0x12bc] ss:$72 sps:$4 sm:$0xff]  }
 0x269   :  { %6084 = vmatpush2.bf16.msra.mxu1 %v16260_v41  ;;  %6044 = vmatprep.subr.bf16.mxu0 %v16265_v42  ;;  %v16305_v42 = vld [vmem:[#allocation5 + $0x9b8] ss:$72 sps:$4 sm:$0xff]  }
 0x26a   :  { %6085 = vmatprep.subr.bf16.mxu1 %v16268_v43  ;;  %v16308_v43 = vld [vmem:[#allocation5 + $0x12b8] ss:$72 sps:$4 sm:$0xff]  }
 0x26c   :  { %6045 = vmatpush2.bf16.msra.mxu0 %v16263_v44  ;;  %v16313_v44 = vld [vmem:[#allocation5 + $0x92c] ss:$72 sps:$4 sm:$0xff]  }
 0x26d   :  { %6086 = vmatpush2.bf16.msra.mxu1 %v16266_v45  ;;  %6096 = vmatprep.subr.bf16.mxu0 %v16271_v9  ;;  %v16316_v45 = vld [vmem:[#allocation5 + $0x122c] ss:$72 sps:$4 sm:$0xff]   ;;  %v16311_v9 = vld [vmem:[#allocation5 + $0x928] ss:$72 sps:$4 sm:$0xff]  }
 0x26e   :  { %6137 = vmatprep.subr.bf16.mxu1 %v16274_v46  ;;  %v16314_v46 = vld [vmem:[#allocation5 + $0x1228] ss:$72 sps:$4 sm:$0xff]  }
 0x26f   :  { %v5802_v60 = vpop.f32.mrf.mxu0  ;;  %6047 = vmatmul.mubr.bf16.vlgmr.msra.gmra.mxu0 %v18592_v17 }
 0x270   :  { %6088 = vmatmul.mubr.bf16.vlgmr.msra.gmra.mxu1 %v18582_v8  ;;  %v18679_v0 = vpop.f32.mrf.mxu1  ;;  %v5803_v2 = vadd.f32 %v5802_v60, %v18669_v30  ;;  %6097 = vmatpush1.bf16.msra.mxu0 %v16269_v13  ;;  %v16322_v13 = vld [vmem:[#allocation5 + $0x1a9c] ss:$72 sps:$4 sm:$0xff]   ;;  %v16329_v60 = vld [vmem:[#allocation5 + $0x1078] ss:$72 sps:$4 sm:$0xff]  }
 0x271   :  { %6138 = vmatpush1.bf16.msra.mxu1 %v16272_v50  ;;  %v5804_v3 = vpop.f32.mrf.mxu0  ;;  %6098 = vmatprep.subr.bf16.mxu0 %v16277_v51  ;;  %v16317_v50 = vld [vmem:[#allocation5 + $0x1198] ss:$72 sps:$4 sm:$0xff]  }
 0x272   :  { %6139 = vmatprep.subr.bf16.mxu1 %v16280_v55  ;;  %v18682_v4 = vpop.f32.mrf.mxu1  ;;  %18105 = vtanh.f32 %v5803_v2  ;;  %v5805_v5 = vadd.f32 %v5804_v3, %v18673_v39  ;;  %6128 = vmatprep.mubr.bf16.mxu0 %v18578_v52  ;;  %v16287_v39 = vld [vmem:[#allocation5 + $0xb68] ss:$72 sps:$4 sm:$0xff]   ;;  %v16320_v51 = vld [vmem:[#allocation5 + $0x1a98] ss:$72 sps:$4 sm:$0xff]   ;;  %v16328_v55 = vld [vmem:[#allocation5 + $0x1a0c] ss:$72 sps:$4 sm:$0xff]  }
 0x273   :  { %6169 = vmatprep.mubr.bf16.mxu1 %v18589_v35  ;;  %18107 = vrcp.f32 %v6558_v59  ;;  %v5806_v7 = vpop.f32.mrf.mxu0  ;;  %v16334_v59 = vld [vmem:[#allocation5 + $0x197c] ss:$72 sps:$4 sm:$0xff]   ;;  %v16340_v2 = vld [vmem:[#allocation5 + $0x18ec] ss:$72 sps:$4 sm:$0xff]   ;;  %v16335_v3 = vld [vmem:[#allocation5 + $0xfe8] ss:$72 sps:$4 sm:$0xff]  }
 0x274   :  { %v5847_v30 = vpop.f32.mrf.mxu1  ;;  %18109 = vtanh.f32 %v5805_v5  ;;  %6099 = vmatpush1.bf16.msra.mxu0 %v16275_v57  ;;  %v16326_v57 = vld [vmem:[#allocation5 + $0x1a08] ss:$72 sps:$4 sm:$0xff]   ;;  %v16343_v7 = vld [vmem:[#allocation5 + $0xf5c] ss:$72 sps:$4 sm:$0xff]  }
 0x275   :  { %6140 = vmatpush1.bf16.msra.mxu1 %v16278_v58  ;;  %v5807_v16 = vpop.f32.mrf.mxu0  ;;  %6100 = vmatprep.subr.bf16.mxu0 %v16283_v62  ;;  %v16331_v58 = vld [vmem:[#allocation5 + $0x107c] ss:$72 sps:$4 sm:$0xff]   ;;  %v16332_v62 = vld [vmem:[#allocation5 + $0x1978] ss:$72 sps:$4 sm:$0xff]   ;;  %v16338_v5 = vld [vmem:[#allocation5 + $0x18e8] ss:$72 sps:$4 sm:$0xff]  }
 0x276   :  { %6141 = vmatprep.subr.bf16.mxu1 %v16286_v63  ;;  %v5848_v20 = vpop.f32.mrf.mxu1  ;;  %v16337_v63 = vld [vmem:[#allocation5 + $0xfec] ss:$72 sps:$4 sm:$0xff]   ;;  %v16344_v30 = vld [vmem:[#allocation5 + $0x1858] ss:$72 sps:$4 sm:$0xff]  }
 0x277   :  { %v16349_v16 = vld [vmem:[#allocation5 + $0xecc] ss:$72 sps:$4 sm:$0xff]   ;;  %v16350_v20 = vld [vmem:[#allocation5 + $0x17c8] ss:$72 sps:$4 sm:$0xff]  }
 0x278   :  { %6101 = vmatpush1.bf16.msra.mxu0 %v16281_v12  ;;  %v16346_v12 = vld [vmem:[#allocation5 + $0x185c] ss:$72 sps:$4 sm:$0xff]  }
 0x279   :  { %6142 = vmatpush1.bf16.msra.mxu1 %v16284_v15  ;;  %6102 = vmatprep.subr.bf16.mxu0 %v16289_v18  ;;  %v16341_v15 = vld [vmem:[#allocation5 + $0xf58] ss:$72 sps:$4 sm:$0xff]   ;;  %v16352_v18 = vld [vmem:[#allocation5 + $0x17cc] ss:$72 sps:$4 sm:$0xff]  }
 0x27a   :  { %6143 = vmatprep.subr.bf16.mxu1 %v16292_v19  ;;  %v16347_v19 = vld [vmem:[#allocation5 + $0xec8] ss:$72 sps:$4 sm:$0xff]  }
 0x27c   :  { %6103 = vmatpush1.bf16.msra.mxu0 %v16287_v39  ;;  %v16355_v39 = vld [vmem:[#allocation5 + $0xe3c] ss:$72 sps:$4 sm:$0xff]  }
 0x27d   :  { %6144 = vmatpush1.bf16.msra.mxu1 %v16290_v61  ;;  %6104 = vmatprep.subr.bf16.mxu0 %v16295_v23  ;;  %v16358_v61 = vld [vmem:[#allocation5 + $0x173c] ss:$72 sps:$4 sm:$0xff]   ;;  %v16353_v23 = vld [vmem:[#allocation5 + $0xe38] ss:$72 sps:$4 sm:$0xff]  }
 0x27e   :  { %6145 = vmatprep.subr.bf16.mxu1 %v16298_v24  ;;  %v16356_v24 = vld [vmem:[#allocation5 + $0x1738] ss:$72 sps:$4 sm:$0xff]  }
 0x27f   :  { %v18106_v32 = vpop.eup %18105 }
 0x280   :  { %v18108_v33 = vpop.eup %18107  ;;  %v18687_v36 = vmul.f32 %v18106_v32, %v18104_v22  ;;  %6105 = vmatpush1.bf16.msra.mxu0 %v16293_v25  ;;  %v18692_v25 = vsub.s32 6, %v18602_v26  ;;  %v18238_v22 = vld [vmem:[#allocation7] sm:$0xff] }
 0x281   :  { %6146 = vmatpush1.bf16.msra.mxu1 %v16296_v27  ;;  %v18110_v38 = vpop.eup %18109  ;;  %6106 = vmatprep.subr.bf16.mxu0 %v16301_v28  ;;  %v16361_v27 = vld [vmem:[#allocation5 + $0xdac] ss:$72 sps:$4 sm:$0xff]  }
 0x282   :  { %6147 = vmatprep.subr.bf16.mxu1 %v16304_v29  ;;  %v18689_v41 = vmul.f32 %v18110_v38, %v18108_v33  ;;  %v16364_v28 = vld [vmem:[#allocation5 + $0x16ac] ss:$72 sps:$4 sm:$0xff]   ;;  %v18695_v29 = vsub.s32 7, %v18602_v26  ;;  %v1057_v32 = vrot.slane %v18238_v22, %v18692_v25  ;;  %v16359_v33 = vld [vmem:[#allocation5 + $0xda8] ss:$72 sps:$4 sm:$0xff]  }
 0x283   :  { %v16370_v38 = vld [vmem:[#allocation5 + $0xd24] ss:$72 sps:$4 sm:$0xff]  }
 0x284   :  { %6107 = vmatpush1.bf16.msra.mxu0 %v16299_v14  ;;  %v16362_v14 = vld [vmem:[#allocation5 + $0x16a8] ss:$72 sps:$4 sm:$0xff]   ;;  %v5844_v26 = vadd.f32 %v18679_v0, %v1057_v32 }
 0x285   :  { %6148 = vmatpush1.bf16.msra.mxu1 %v16302_v37  ;;  %6108 = vmatprep.subr.bf16.mxu0 %v16307_v40  ;;  %v16367_v37 = vld [vmem:[#allocation5 + $0x424] ss:$72 sps:$4 sm:$0xff]   ;;  %v1061_v40 = vrot.slane %v18238_v22, %v18695_v29  ;;  %v16401_v22 = vld [vmem:[#allocation5 + $0xc0] ss:$72 sps:$4 sm:$0xff]  }
 0x286   :  { %6149 = vmatprep.subr.bf16.mxu1 %v16310_v49  ;;  %v16365_v49 = vld [vmem:[#allocation5 + $0x420] ss:$72 sps:$4 sm:$0xff]  }
 0x287   :  { %v16404_v32 = vld [vmem:[#allocation5 + $0x9c0] ss:$72 sps:$4 sm:$0xff]  }
 0x288   :  { %6109 = vmatpush1.bf16.msra.mxu0 %v16305_v42  ;;  %v16368_v42 = vld [vmem:[#allocation5 + $0xd20] ss:$72 sps:$4 sm:$0xff]  }
 0x289   :  { %6150 = vmatpush1.bf16.msra.mxu1 %v16308_v43  ;;  %6110 = vmatprep.subr.bf16.mxu0 %v16313_v44  ;;  %v16373_v43 = vld [vmem:[#allocation5 + $0x394] ss:$72 sps:$4 sm:$0xff]  }
 0x28a   :  { %6151 = vmatprep.subr.bf16.mxu1 %v16316_v45  ;;  %v16376_v44 = vld [vmem:[#allocation5 + $0xc94] ss:$72 sps:$4 sm:$0xff]   ;;  %v5846_v45 = vadd.f32 %v18682_v4, %v1061_v40  ;;  %v16377_v4 = vld [vmem:[#allocation5 + $0x300] ss:$72 sps:$4 sm:$0xff]  }
 0x28c   :  { %6111 = vmatpush1.bf16.msra.mxu0 %v16311_v9  ;;  %v16371_v9 = vld [vmem:[#allocation5 + $0x390] ss:$72 sps:$4 sm:$0xff]  }
 0x28d   :  { %6152 = vmatpush1.bf16.msra.mxu1 %v16314_v46  ;;  %6112 = vmatprep.subr.bf16.mxu0 %v16319_v47  ;;  %v16374_v46 = vld [vmem:[#allocation5 + $0xc90] ss:$72 sps:$4 sm:$0xff]  }
 0x28e   :  { %6153 = vmatprep.subr.bf16.mxu1 %v16322_v13 }
 0x290   :  { %6113 = vmatpush2.bf16.msra.mxu0 %v16317_v50  ;;  %v16379_v50 = vld [vmem:[#allocation5 + $0x304] ss:$72 sps:$4 sm:$0xff]  }
 0x291   :  { %6154 = vmatpush2.bf16.msra.mxu1 %v16320_v51  ;;  %6114 = vmatprep.subr.bf16.mxu0 %v16325_v53  ;;  %v16382_v51 = vld [vmem:[#allocation5 + $0xc04] ss:$72 sps:$4 sm:$0xff]  }
 0x292   :  { %6155 = vmatprep.subr.bf16.mxu1 %v16328_v55 }
 0x294   :  { %6115 = vmatpush2.bf16.msra.mxu0 %v16323_v56 }
 0x295   :  { %6156 = vmatpush2.bf16.msra.mxu1 %v16326_v57  ;;  %6116 = vmatprep.subr.bf16.mxu0 %v16331_v58  ;;  %v16380_v58 = vld [vmem:[#allocation5 + $0xc00] ss:$72 sps:$4 sm:$0xff]  }
 0x296   :  { %6157 = vmatprep.subr.bf16.mxu1 %v16334_v59 }
 0x298   :  { %6117 = vmatpush2.bf16.msra.mxu0 %v16329_v60  ;;  %v16385_v60 = vld [vmem:[#allocation5 + $0x274] ss:$72 sps:$4 sm:$0xff]  }
 0x299   :  { %6158 = vmatpush2.bf16.msra.mxu1 %v16332_v62  ;;  %6118 = vmatprep.subr.bf16.mxu0 %v16337_v63  ;;  %v16388_v62 = vld [vmem:[#allocation5 + $0xb74] ss:$72 sps:$4 sm:$0xff]  }
 0x29a   :  { %6159 = vmatprep.subr.bf16.mxu1 %v16340_v2 }
 0x29c   :  { %6119 = vmatpush2.bf16.msra.mxu0 %v16335_v3 }
 0x29d   :  { %6160 = vmatpush2.bf16.msra.mxu1 %v16338_v5  ;;  %6120 = vmatprep.subr.bf16.mxu0 %v16343_v7 }
 0x29e   :  { %6161 = vmatprep.subr.bf16.mxu1 %v16346_v12 }
 0x2a0   :  { %6121 = vmatpush2.bf16.msra.mxu0 %v16341_v15  ;;  %v16383_v15 = vld [vmem:[#allocation5 + $0x270] ss:$72 sps:$4 sm:$0xff]  }
 0x2a1   :  { %6162 = vmatpush2.bf16.msra.mxu1 %v16344_v30  ;;  %6122 = vmatprep.subr.bf16.mxu0 %v16349_v16  ;;  %v16386_v30 = vld [vmem:[#allocation5 + $0xb70] ss:$72 sps:$4 sm:$0xff]   ;;  %v16391_v16 = vld [vmem:[#allocation5 + $0x1e4] ss:$72 sps:$4 sm:$0xff]  }
 0x2a2   :  { %6163 = vmatprep.subr.bf16.mxu1 %v16352_v18  ;;  %v16394_v18 = vld [vmem:[#allocation5 + $0xae4] ss:$72 sps:$4 sm:$0xff]  }
 0x2a4   :  { %6123 = vmatpush2.bf16.msra.mxu0 %v16347_v19  ;;  %v16389_v19 = vld [vmem:[#allocation5 + $0x1e0] ss:$72 sps:$4 sm:$0xff]  }
 0x2a5   :  { %6164 = vmatpush2.bf16.msra.mxu1 %v16350_v20  ;;  %6124 = vmatprep.subr.bf16.mxu0 %v16355_v39  ;;  %v16392_v20 = vld [vmem:[#allocation5 + $0xae0] ss:$72 sps:$4 sm:$0xff]   ;;  %v16397_v39 = vld [vmem:[#allocation5 + $0x154] ss:$72 sps:$4 sm:$0xff]  }
 0x2a6   :  { %6165 = vmatprep.subr.bf16.mxu1 %v16358_v61  ;;  %v16400_v61 = vld [vmem:[#allocation5 + $0xa54] ss:$72 sps:$4 sm:$0xff]  }
 0x2a8   :  { %6125 = vmatpush2.bf16.msra.mxu0 %v16353_v23  ;;  %v16395_v23 = vld [vmem:[#allocation5 + $0x150] ss:$72 sps:$4 sm:$0xff]  }
 0x2a9   :  { %6166 = vmatpush2.bf16.msra.mxu1 %v16356_v24  ;;  %6126 = vmatprep.subr.bf16.mxu0 %v16361_v27  ;;  %v16398_v24 = vld [vmem:[#allocation5 + $0xa50] ss:$72 sps:$4 sm:$0xff]   ;;  %v16403_v27 = vld [vmem:[#allocation5 + $0xc4] ss:$72 sps:$4 sm:$0xff]  }
 0x2aa   :  { %6167 = vmatprep.subr.bf16.mxu1 %v16364_v28  ;;  %v16406_v28 = vld [vmem:[#allocation5 + $0x9c4] ss:$72 sps:$4 sm:$0xff]  }
 0x2ac   :  { %6127 = vmatpush2.bf16.msra.mxu0 %v16359_v33 }
 0x2ad   :  { %6168 = vmatpush2.bf16.msra.mxu1 %v16362_v14  ;;  %6178 = vmatprep.subr.bf16.mxu0 %v16367_v37  ;;  %v16409_v14 = vld [vmem:[#allocation5 + $0x34] ss:$72 sps:$4 sm:$0xff]  }
 0x2ae   :  { %6219 = vmatprep.subr.bf16.mxu1 %v16370_v38  ;;  %v16412_v37 = vld [vmem:[#allocation5 + $0x934] ss:$72 sps:$4 sm:$0xff]  }
 0x2af   :  { %v5884_v47 = vpop.f32.mrf.mxu0  ;;  %6129 = vmatmul.mubr.bf16.vlgmr.msra.gmra.mxu0 %v18584_v11 }
 0x2b0   :  { %6170 = vmatmul.mubr.bf16.vlgmr.msra.gmra.mxu1 %v18592_v17  ;;  %v5925_v13 = vpop.f32.mrf.mxu1  ;;  %v5885_v53 = vadd.f32 %v5884_v47, %v5844_v26  ;;  %6179 = vmatpush1.bf16.msra.mxu0 %v16365_v49  ;;  %v16418_v26 = vld [vmem:[#allocation5 + $0x11a4] ss:$72 sps:$4 sm:$0xff]   ;;  %v16424_v47 = vld [vmem:[#allocation5 + $0x1114] ss:$72 sps:$4 sm:$0xff]  }
 0x2b1   :  { %6220 = vmatpush1.bf16.msra.mxu1 %v16368_v42  ;;  %v5886_v0 = vpop.f32.mrf.mxu0  ;;  %6180 = vmatprep.subr.bf16.mxu0 %v16373_v43  ;;  %v16407_v42 = vld [vmem:[#allocation5 + $0x30] ss:$72 sps:$4 sm:$0xff]  }
 0x2b2   :  { %v5927_v55 = vpop.f32.mrf.mxu1  ;;  %6221 = vmatprep.subr.bf16.mxu1 %v16376_v44  ;;  %v5887_v56 = vadd.f32 %v5886_v0, %v5846_v45  ;;  %v5926_v57 = vadd.f32 %v5925_v13, %v5885_v53  ;;  %6210 = vmatprep.mubr.bf16.mxu0 %v18576_v48  ;;  %v16410_v43 = vld [vmem:[#allocation5 + $0x930] ss:$72 sps:$4 sm:$0xff]   ;;  %v16415_v44 = vld [vmem:[#allocation5 + $0x8a4] ss:$72 sps:$4 sm:$0xff]   ;;  %v16413_v45 = vld [vmem:[#allocation5 + $0x8a0] ss:$72 sps:$4 sm:$0xff]  }
 0x2b3   :  { %6251 = vmatprep.mubr.bf16.mxu1 %v18578_v52  ;;  %v5888_v59 = vpop.f32.mrf.mxu0  ;;  %v16422_v13 = vld [vmem:[#allocation5 + $0x1110] ss:$72 sps:$4 sm:$0xff]  }
 0x2b4   :  { %v5929_v63 = vpop.f32.mrf.mxu1  ;;  %v14440_v2 = vmul.f32 -1.442695, %v5926_v57  ;;  %v5928_v3 = vadd.f32 %v5927_v55, %v5887_v56  ;;  %6181 = vmatpush1.bf16.msra.mxu0 %v16371_v9  ;;  %v16416_v9 = vld [vmem:[#allocation5 + $0x11a0] ss:$72 sps:$4 sm:$0xff]   ;;  %v16436_v59 = vld [vmem:[#allocation5 + $0xff4] ss:$72 sps:$4 sm:$0xff]  }
 0x2b5   :  { %6222 = vmatpush1.bf16.msra.mxu1 %v16374_v46  ;;  %v5889_v5 = vpop.f32.mrf.mxu0  ;;  %6182 = vmatprep.subr.bf16.mxu0 %v16379_v50  ;;  %v16421_v46 = vld [vmem:[#allocation5 + $0x814] ss:$72 sps:$4 sm:$0xff]   ;;  %v16427_v50 = vld [vmem:[#allocation5 + $0x784] ss:$72 sps:$4 sm:$0xff]   ;;  %v16425_v56 = vld [vmem:[#allocation5 + $0x780] ss:$72 sps:$4 sm:$0xff]  }
 0x2b6   :  { %6223 = vmatprep.subr.bf16.mxu1 %v16382_v51  ;;  %v5930_v7 = vpop.f32.mrf.mxu1  ;;  %18111 = vpow2.f32 %v14440_v2  ;;  %v14441_v12 = vmul.f32 -1.442695, %v5928_v3  ;;  %v16430_v51 = vld [vmem:[#allocation5 + $0x1084] ss:$72 sps:$4 sm:$0xff]   ;;  %v16428_v57 = vld [vmem:[#allocation5 + $0x1080] ss:$72 sps:$4 sm:$0xff]  }
 0x2b7   :  { %v16434_v63 = vld [vmem:[#allocation5 + $0xff0] ss:$72 sps:$4 sm:$0xff]   ;;  %v16439_v2 = vld [vmem:[#allocation5 + $0x664] ss:$72 sps:$4 sm:$0xff]   ;;  %v16437_v5 = vld [vmem:[#allocation5 + $0x660] ss:$72 sps:$4 sm:$0xff]  }
 0x2b8   :  { %18113 = vpow2.f32 %v14441_v12  ;;  %6183 = vmatpush1.bf16.msra.mxu0 %v16377_v4  ;;  %v16442_v3 = vld [vmem:[#allocation5 + $0xf64] ss:$72 sps:$4 sm:$0xff]   ;;  %v16440_v7 = vld [vmem:[#allocation5 + $0xf60] ss:$72 sps:$4 sm:$0xff]   ;;  %v16445_v12 = vld [vmem:[#allocation5 + $0x5d4] ss:$72 sps:$4 sm:$0xff]  }
 0x2b9   :  { %6224 = vmatpush1.bf16.msra.mxu1 %v16380_v58  ;;  %6184 = vmatprep.subr.bf16.mxu0 %v16385_v60  ;;  %18115 = vtanh.f32 %v18655_v10  ;;  %v16419_v10 = vld [vmem:[#allocation5 + $0x810] ss:$72 sps:$4 sm:$0xff]   ;;  %v16433_v58 = vld [vmem:[#allocation5 + $0x6f4] ss:$72 sps:$4 sm:$0xff]  }
 0x2ba   :  { %6225 = vmatprep.subr.bf16.mxu1 %v16388_v62  ;;  %v16431_v62 = vld [vmem:[#allocation5 + $0x6f0] ss:$72 sps:$4 sm:$0xff]  }
 0x2bc   :  { %6185 = vmatpush1.bf16.msra.mxu0 %v16383_v15  ;;  %v16448_v15 = vld [vmem:[#allocation5 + $0xed4] ss:$72 sps:$4 sm:$0xff]  }
 0x2bd   :  { %6226 = vmatpush1.bf16.msra.mxu1 %v16386_v30  ;;  %6186 = vmatprep.subr.bf16.mxu0 %v16391_v16  ;;  %v16443_v30 = vld [vmem:[#allocation5 + $0x5d0] ss:$72 sps:$4 sm:$0xff]  }
 0x2be   :  { %6227 = vmatprep.subr.bf16.mxu1 %v16394_v18  ;;  %v16446_v16 = vld [vmem:[#allocation5 + $0xed0] ss:$72 sps:$4 sm:$0xff]   ;;  %v16451_v18 = vld [vmem:[#allocation5 + $0x544] ss:$72 sps:$4 sm:$0xff]  }
 0x2c0   :  { %6187 = vmatpush1.bf16.msra.mxu0 %v16389_v19  ;;  %v16454_v19 = vld [vmem:[#allocation5 + $0xe44] ss:$72 sps:$4 sm:$0xff]  }
 0x2c1   :  { %6228 = vmatpush1.bf16.msra.mxu1 %v16392_v20  ;;  %6188 = vmatprep.subr.bf16.mxu0 %v16397_v39  ;;  %v16449_v20 = vld [vmem:[#allocation5 + $0x540] ss:$72 sps:$4 sm:$0xff]  }
 0x2c2   :  { %6229 = vmatprep.subr.bf16.mxu1 %v16400_v61  ;;  %v16452_v39 = vld [vmem:[#allocation5 + $0xe40] ss:$72 sps:$4 sm:$0xff]   ;;  %v16457_v61 = vld [vmem:[#allocation5 + $0x4b4] ss:$72 sps:$4 sm:$0xff]  }
 0x2c3   :  { %v18112_v33 = vpop.eup %18111 }
 0x2c4   :  { %v6577_v38 = vadd.f32 1.0, %v18112_v33  ;;  %6189 = vmatpush1.bf16.msra.mxu0 %v16395_v23  ;;  %v16460_v23 = vld [vmem:[#allocation5 + $0xdb4] ss:$72 sps:$4 sm:$0xff]   ;;  %v16461_v33 = vld [vmem:[#allocation5 + $0x1620] ss:$72 sps:$4 sm:$0xff]  }
 0x2c5   :  { %6230 = vmatpush1.bf16.msra.mxu1 %v16398_v24  ;;  %v18114_v40 = vpop.eup %18113  ;;  %6190 = vmatprep.subr.bf16.mxu0 %v16403_v27  ;;  %v16455_v24 = vld [vmem:[#allocation5 + $0x4b0] ss:$72 sps:$4 sm:$0xff]  }
 0x2c6   :  { %6231 = vmatprep.subr.bf16.mxu1 %v16406_v28  ;;  %18117 = vrcp.f32 %v6577_v38  ;;  %v6578_v49 = vadd.f32 1.0, %v18114_v40  ;;  %v16458_v27 = vld [vmem:[#allocation5 + $0xdb0] ss:$72 sps:$4 sm:$0xff]   ;;  %v1025_v28 = vld [vmem:[#allocation7 + $0x8] sm:$0xff]  ;;  %v16472_v38 = vld [vmem:[#allocation5 + $0x39c] ss:$72 sps:$4 sm:$0xff]  }
 0x2c7   :  { %18119 = vtanh.f32 %v18687_v36  ;;  %v18116_v36 = vpop.eup %18115  ;;  %v1065_v40 = vrot.slane %v1025_v28, %v18605_v31 }
 0x2c8   :  { %18121 = vrcp.f32 %v6578_v49  ;;  %6191 = vmatpush1.bf16.msra.mxu0 %v16401_v22  ;;  %v16463_v22 = vld [vmem:[#allocation5 + $0x1624] ss:$72 sps:$4 sm:$0xff]   ;;  %v1069_v49 = vrot.slane %v1025_v28, %v18608_v34 }
 0x2c9   :  { %6232 = vmatpush1.bf16.msra.mxu1 %v16404_v32  ;;  %6192 = vmatprep.subr.bf16.mxu0 %v16409_v14  ;;  %v16466_v32 = vld [vmem:[#allocation5 + $0x42c] ss:$72 sps:$4 sm:$0xff]   ;;  %v16464_v14 = vld [vmem:[#allocation5 + $0x428] ss:$72 sps:$4 sm:$0xff]  }
 0x2ca   :  { %6233 = vmatprep.subr.bf16.mxu1 %v16412_v37  ;;  %v16469_v37 = vld [vmem:[#allocation5 + $0x1594] ss:$72 sps:$4 sm:$0xff]   ;;  %v16511_v28 = vld [vmem:[#allocation5 + $0x1aa4] ss:$72 sps:$4 sm:$0xff]  }
 0x2cc   :  { %6193 = vmatpush1.bf16.msra.mxu0 %v16407_v42  ;;  %v16467_v42 = vld [vmem:[#allocation5 + $0x1590] ss:$72 sps:$4 sm:$0xff]  }
 0x2cd   :  { %6234 = vmatpush1.bf16.msra.mxu1 %v16410_v43  ;;  %6194 = vmatprep.subr.bf16.mxu0 %v16415_v44  ;;  %v16470_v43 = vld [vmem:[#allocation5 + $0x398] ss:$72 sps:$4 sm:$0xff]  }
 0x2ce   :  { %6235 = vmatprep.subr.bf16.mxu1 %v16418_v26 }
 0x2d0   :  { %6195 = vmatpush2.bf16.msra.mxu0 %v16413_v45  ;;  %v16475_v45 = vld [vmem:[#allocation5 + $0x1504] ss:$72 sps:$4 sm:$0xff]  }
 0x2d1   :  { %6236 = vmatpush2.bf16.msra.mxu1 %v16416_v9  ;;  %6196 = vmatprep.subr.bf16.mxu0 %v16421_v46  ;;  %v16478_v9 = vld [vmem:[#allocation5 + $0x30c] ss:$72 sps:$4 sm:$0xff]  }
 0x2d2   :  { %6237 = vmatprep.subr.bf16.mxu1 %v16424_v47 }
 0x2d3   :  { %v18118_v53 = vpop.eup %18117 }
 0x2d4   :  { %v18120_v0 = vpop.eup %18119  ;;  %v18707_v55 = vmul.f32 %v18118_v53, %v18116_v36  ;;  %6197 = vmatpush2.bf16.msra.mxu0 %v16419_v10  ;;  %v16476_v36 = vld [vmem:[#allocation5 + $0x308] ss:$72 sps:$4 sm:$0xff]  }
 0x2d5   :  { %6238 = vmatpush2.bf16.msra.mxu1 %v16422_v13  ;;  %v18122_v4 = vpop.eup %18121  ;;  %6198 = vmatprep.subr.bf16.mxu0 %v16427_v50 }
 0x2d6   :  { %6239 = vmatprep.subr.bf16.mxu1 %v16430_v51  ;;  %v18709_v60 = vmul.f32 %v18122_v4, %v18120_v0  ;;  %v16473_v51 = vld [vmem:[#allocation5 + $0x1500] ss:$72 sps:$4 sm:$0xff]   ;;  %v16481_v0 = vld [vmem:[#allocation5 + $0x1474] ss:$72 sps:$4 sm:$0xff]  }
 0x2d8   :  { %6199 = vmatpush2.bf16.msra.mxu0 %v16425_v56  ;;  %v16484_v56 = vld [vmem:[#allocation5 + $0x27c] ss:$72 sps:$4 sm:$0xff]  }
 0x2d9   :  { %6240 = vmatpush2.bf16.msra.mxu1 %v16428_v57  ;;  %6200 = vmatprep.subr.bf16.mxu0 %v16433_v58 }
 0x2da   :  { %6241 = vmatprep.subr.bf16.mxu1 %v16436_v59 }
 0x2dc   :  { %6201 = vmatpush2.bf16.msra.mxu0 %v16431_v62  ;;  %v16479_v62 = vld [vmem:[#allocation5 + $0x1470] ss:$72 sps:$4 sm:$0xff]  }
 0x2dd   :  { %6242 = vmatpush2.bf16.msra.mxu1 %v16434_v63  ;;  %6202 = vmatprep.subr.bf16.mxu0 %v16439_v2  ;;  %v16482_v63 = vld [vmem:[#allocation5 + $0x278] ss:$72 sps:$4 sm:$0xff]   ;;  %v16487_v2 = vld [vmem:[#allocation5 + $0x13e4] ss:$72 sps:$4 sm:$0xff]  }
 0x2de   :  { %6243 = vmatprep.subr.bf16.mxu1 %v16442_v3  ;;  %v16490_v3 = vld [vmem:[#allocation5 + $0x1ec] ss:$72 sps:$4 sm:$0xff]  }
 0x2e0   :  { %6203 = vmatpush2.bf16.msra.mxu0 %v16437_v5  ;;  %v16485_v5 = vld [vmem:[#allocation5 + $0x13e0] ss:$72 sps:$4 sm:$0xff]  }
 0x2e1   :  { %6244 = vmatpush2.bf16.msra.mxu1 %v16440_v7  ;;  %6204 = vmatprep.subr.bf16.mxu0 %v16445_v12  ;;  %v16488_v7 = vld [vmem:[#allocation5 + $0x1e8] ss:$72 sps:$4 sm:$0xff]   ;;  %v16493_v12 = vld [vmem:[#allocation5 + $0x1354] ss:$72 sps:$4 sm:$0xff]  }
 0x2e2   :  { %6245 = vmatprep.subr.bf16.mxu1 %v16448_v15  ;;  %v16496_v15 = vld [vmem:[#allocation5 + $0x15c] ss:$72 sps:$4 sm:$0xff]  }
 0x2e4   :  { %6205 = vmatpush2.bf16.msra.mxu0 %v16443_v30  ;;  %v16491_v30 = vld [vmem:[#allocation5 + $0x1350] ss:$72 sps:$4 sm:$0xff]  }
 0x2e5   :  { %6246 = vmatpush2.bf16.msra.mxu1 %v16446_v16  ;;  %6206 = vmatprep.subr.bf16.mxu0 %v16451_v18  ;;  %v16494_v16 = vld [vmem:[#allocation5 + $0x158] ss:$72 sps:$4 sm:$0xff]   ;;  %v16499_v18 = vld [vmem:[#allocation5 + $0x12c4] ss:$72 sps:$4 sm:$0xff]  }
 0x2e6   :  { %6247 = vmatprep.subr.bf16.mxu1 %v16454_v19  ;;  %v16502_v19 = vld [vmem:[#allocation5 + $0xcc] ss:$72 sps:$4 sm:$0xff]  }
 0x2e8   :  { %6207 = vmatpush2.bf16.msra.mxu0 %v16449_v20  ;;  %v16497_v20 = vld [vmem:[#allocation5 + $0x12c0] ss:$72 sps:$4 sm:$0xff]  }
 0x2e9   :  { %6248 = vmatpush2.bf16.msra.mxu1 %v16452_v39  ;;  %6208 = vmatprep.subr.bf16.mxu0 %v16457_v61  ;;  %v16500_v39 = vld [vmem:[#allocation5 + $0xc8] ss:$72 sps:$4 sm:$0xff]   ;;  %v16505_v61 = vld [vmem:[#allocation5 + $0x1234] ss:$72 sps:$4 sm:$0xff]  }
 0x2ea   :  { %6249 = vmatprep.subr.bf16.mxu1 %v16460_v23  ;;  %v16508_v23 = vld [vmem:[#allocation5 + $0x3c] ss:$72 sps:$4 sm:$0xff]  }
 0x2ec   :  { %6209 = vmatpush2.bf16.msra.mxu0 %v16455_v24  ;;  %v16503_v24 = vld [vmem:[#allocation5 + $0x1230] ss:$72 sps:$4 sm:$0xff]  }
 0x2ed   :  { %6250 = vmatpush2.bf16.msra.mxu1 %v16458_v27  ;;  %6260 = vmatprep.subr.bf16.mxu0 %v16463_v22  ;;  %v16506_v27 = vld [vmem:[#allocation5 + $0x38] ss:$72 sps:$4 sm:$0xff]   ;;  %v16514_v22 = vld [vmem:[#allocation5 + $0x8ac] ss:$72 sps:$4 sm:$0xff]  }
 0x2ee   :  { %6301 = vmatprep.subr.bf16.mxu1 %v16466_v32  ;;  %v16509_v32 = vld [vmem:[#allocation5 + $0x1aa0] ss:$72 sps:$4 sm:$0xff]  }
 0x2ef   :  { %v5966_v44 = vpop.f32.mrf.mxu0  ;;  %6211 = vmatmul.mubr.bf16.vlgmr.msra.gmra.mxu0 %v18582_v8 }
 0x2f0   :  { %6252 = vmatmul.mubr.bf16.vlgmr.msra.gmra.mxu1 %v18584_v11  ;;  %v6007_v26 = vpop.f32.mrf.mxu1  ;;  %v5967_v46 = vadd.f32 %v5966_v44, %v1065_v40  ;;  %6261 = vmatpush1.bf16.msra.mxu0 %v16461_v33  ;;  %v16512_v33 = vld [vmem:[#allocation5 + $0x8a8] ss:$72 sps:$4 sm:$0xff]   ;;  %v16518_v40 = vld [vmem:[#allocation5 + $0x818] ss:$72 sps:$4 sm:$0xff]  }
 0x2f1   :  { %6302 = vmatpush1.bf16.msra.mxu1 %v16464_v14  ;;  %v5968_v47 = vpop.f32.mrf.mxu0  ;;  %6262 = vmatprep.subr.bf16.mxu0 %v16469_v37  ;;  %v16517_v14 = vld [vmem:[#allocation5 + $0x1a14] ss:$72 sps:$4 sm:$0xff]   ;;  %v16524_v44 = vld [vmem:[#allocation5 + $0x788] ss:$72 sps:$4 sm:$0xff]  }
 0x2f2   :  { %v6009_v10 = vpop.f32.mrf.mxu1  ;;  %6303 = vmatprep.subr.bf16.mxu1 %v16472_v38  ;;  %v5969_v13 = vadd.f32 %v5968_v47, %v1069_v49  ;;  %v18715_v50 = vadd.f32 %v6007_v26, %v5967_v46  ;;  %6292 = vmatprep.mubr.bf16.mxu0 %v18589_v35  ;;  %v16520_v37 = vld [vmem:[#allocation5 + $0x81c] ss:$72 sps:$4 sm:$0xff]   ;;  %v16515_v38 = vld [vmem:[#allocation5 + $0x1a10] ss:$72 sps:$4 sm:$0xff]  }
 0x2f3   :  { %6333 = vmatprep.mubr.bf16.mxu1 %v18576_v48  ;;  %v5970_v53 = vpop.f32.mrf.mxu0  ;;  %v16523_v49 = vld [vmem:[#allocation5 + $0x1984] ss:$72 sps:$4 sm:$0xff]   ;;  %v16529_v26 = vld [vmem:[#allocation5 + $0x18f4] ss:$72 sps:$4 sm:$0xff]   ;;  %v16530_v46 = vld [vmem:[#allocation5 + $0x6f8] ss:$72 sps:$4 sm:$0xff]  }
 0x2f4   :  { %v6011_v57 = vpop.f32.mrf.mxu1  ;;  %v18719_v4 = vadd.f32 %v6009_v10, %v5969_v13  ;;  %6263 = vmatpush1.bf16.msra.mxu0 %v16467_v42  ;;  %v16526_v42 = vld [vmem:[#allocation5 + $0x78c] ss:$72 sps:$4 sm:$0xff]   ;;  %v16533_v13 = vld [vmem:[#allocation5 + $0x1860] ss:$72 sps:$4 sm:$0xff]   ;;  %v16544_v53 = vld [vmem:[#allocation5 + $0x5dc] ss:$72 sps:$4 sm:$0xff]  }
 0x2f5   :  { %6304 = vmatpush1.bf16.msra.mxu1 %v16470_v43  ;;  %v5971_v58 = vpop.f32.mrf.mxu0  ;;  %6264 = vmatprep.subr.bf16.mxu0 %v16475_v45  ;;  %v16521_v43 = vld [vmem:[#allocation5 + $0x1980] ss:$72 sps:$4 sm:$0xff]   ;;  %v16532_v45 = vld [vmem:[#allocation5 + $0x6fc] ss:$72 sps:$4 sm:$0xff]   ;;  %v16538_v10 = vld [vmem:[#allocation5 + $0x66c] ss:$72 sps:$4 sm:$0xff]  }
 0x2f6   :  { %6305 = vmatprep.subr.bf16.mxu1 %v16478_v9  ;;  %v6012_v59 = vpop.f32.mrf.mxu1  ;;  %v16527_v9 = vld [vmem:[#allocation5 + $0x18f0] ss:$72 sps:$4 sm:$0xff]   ;;  %v16535_v47 = vld [vmem:[#allocation5 + $0x1864] ss:$72 sps:$4 sm:$0xff]  }
 0x2f7   :  { %v16547_v57 = vld [vmem:[#allocation5 + $0x1744] ss:$72 sps:$4 sm:$0xff]   ;;  %v16545_v59 = vld [vmem:[#allocation5 + $0x1740] ss:$72 sps:$4 sm:$0xff]  }
 0x2f8   :  { %6265 = vmatpush1.bf16.msra.mxu0 %v16473_v51  ;;  %v16536_v51 = vld [vmem:[#allocation5 + $0x668] ss:$72 sps:$4 sm:$0xff]   ;;  %v16550_v58 = vld [vmem:[#allocation5 + $0x54c] ss:$72 sps:$4 sm:$0xff]  }
 0x2f9   :  { %6306 = vmatpush1.bf16.msra.mxu1 %v16476_v36  ;;  %6266 = vmatprep.subr.bf16.mxu0 %v16481_v0  ;;  %v16541_v36 = vld [vmem:[#allocation5 + $0x17d4] ss:$72 sps:$4 sm:$0xff]   ;;  %v16539_v0 = vld [vmem:[#allocation5 + $0x17d0] ss:$72 sps:$4 sm:$0xff]  }
 0x2fa   :  { %6307 = vmatprep.subr.bf16.mxu1 %v16484_v56  ;;  %v16542_v56 = vld [vmem:[#allocation5 + $0x5d8] ss:$72 sps:$4 sm:$0xff]  }
 0x2fc   :  { %6267 = vmatpush1.bf16.msra.mxu0 %v16479_v62  ;;  %v16548_v62 = vld [vmem:[#allocation5 + $0x548] ss:$72 sps:$4 sm:$0xff]  }
 0x2fd   :  { %6308 = vmatpush1.bf16.msra.mxu1 %v16482_v63  ;;  %6268 = vmatprep.subr.bf16.mxu0 %v16487_v2  ;;  %v16553_v63 = vld [vmem:[#allocation5 + $0x16b4] ss:$72 sps:$4 sm:$0xff]  }
 0x2fe   :  { %6309 = vmatprep.subr.bf16.mxu1 %v16490_v3  ;;  %v16556_v2 = vld [vmem:[#allocation5 + $0x4bc] ss:$72 sps:$4 sm:$0xff]   ;;  %v16551_v3 = vld [vmem:[#allocation5 + $0x16b0] ss:$72 sps:$4 sm:$0xff]  }
 0x300   :  { %6269 = vmatpush1.bf16.msra.mxu0 %v16485_v5  ;;  %v16554_v5 = vld [vmem:[#allocation5 + $0x4b8] ss:$72 sps:$4 sm:$0xff]  }
 0x301   :  { %6310 = vmatpush1.bf16.msra.mxu1 %v16488_v7  ;;  %6270 = vmatprep.subr.bf16.mxu0 %v16493_v12  ;;  %v16559_v7 = vld [vmem:[#allocation5 + $0xd2c] ss:$72 sps:$4 sm:$0xff]  }
 0x302   :  { %6311 = vmatprep.subr.bf16.mxu1 %v16496_v15  ;;  %v16562_v12 = vld [vmem:[#allocation5 + $0x162c] ss:$72 sps:$4 sm:$0xff]   ;;  %v16557_v15 = vld [vmem:[#allocation5 + $0xd28] ss:$72 sps:$4 sm:$0xff]  }
 0x304   :  { %6271 = vmatpush1.bf16.msra.mxu0 %v16491_v30  ;;  %v16560_v30 = vld [vmem:[#allocation5 + $0x1628] ss:$72 sps:$4 sm:$0xff]  }
 0x305   :  { %6312 = vmatpush1.bf16.msra.mxu1 %v16494_v16  ;;  %6272 = vmatprep.subr.bf16.mxu0 %v16499_v18  ;;  %v16565_v16 = vld [vmem:[#allocation5 + $0xc9c] ss:$72 sps:$4 sm:$0xff]  }
 0x306   :  { %6313 = vmatprep.subr.bf16.mxu1 %v16502_v19  ;;  %v16568_v18 = vld [vmem:[#allocation5 + $0x159c] ss:$72 sps:$4 sm:$0xff]   ;;  %v16563_v19 = vld [vmem:[#allocation5 + $0xc98] ss:$72 sps:$4 sm:$0xff]  }
 0x308   :  { %6273 = vmatpush1.bf16.msra.mxu0 %v16497_v20  ;;  %v16566_v20 = vld [vmem:[#allocation5 + $0x1598] ss:$72 sps:$4 sm:$0xff]  }
 0x309   :  { %6314 = vmatpush1.bf16.msra.mxu1 %v16500_v39  ;;  %6274 = vmatprep.subr.bf16.mxu0 %v16505_v61  ;;  %v16571_v61 = vld [vmem:[#allocation5 + $0xc0c] ss:$72 sps:$4 sm:$0xff]  }
 0x30a   :  { %6315 = vmatprep.subr.bf16.mxu1 %v16508_v23  ;;  %v16574_v23 = vld [vmem:[#allocation5 + $0x150c] ss:$72 sps:$4 sm:$0xff]  }
 0x30c   :  { %6275 = vmatpush1.bf16.msra.mxu0 %v16503_v24 }
 0x30d   :  { %6316 = vmatpush1.bf16.msra.mxu1 %v16506_v27  ;;  %6276 = vmatprep.subr.bf16.mxu0 %v16511_v28 }
 0x30e   :  { %6317 = vmatprep.subr.bf16.mxu1 %v16514_v22 }
 0x310   :  { %6277 = vmatpush2.bf16.msra.mxu0 %v16509_v32 }
 0x311   :  { %6318 = vmatpush2.bf16.msra.mxu1 %v16512_v33  ;;  %6278 = vmatprep.subr.bf16.mxu0 %v16517_v14 }
 0x312   :  { %6319 = vmatprep.subr.bf16.mxu1 %v16520_v37  ;;  %v16569_v37 = vld [vmem:[#allocation5 + $0xc08] ss:$72 sps:$4 sm:$0xff]  }
 0x314   :  { %6279 = vmatpush2.bf16.msra.mxu0 %v16515_v38  ;;  %v16572_v38 = vld [vmem:[#allocation5 + $0x1508] ss:$72 sps:$4 sm:$0xff]  }
 0x315   :  { %6320 = vmatpush2.bf16.msra.mxu1 %v16518_v40  ;;  %6280 = vmatprep.subr.bf16.mxu0 %v16523_v49  ;;  %v16577_v49 = vld [vmem:[#allocation5 + $0xb7c] ss:$72 sps:$4 sm:$0xff]  }
 0x316   :  { %6321 = vmatprep.subr.bf16.mxu1 %v16526_v42  ;;  %v16580_v42 = vld [vmem:[#allocation5 + $0x147c] ss:$72 sps:$4 sm:$0xff]  }
 0x318   :  { %6281 = vmatpush2.bf16.msra.mxu0 %v16521_v43 }
 0x319   :  { %6322 = vmatpush2.bf16.msra.mxu1 %v16524_v44  ;;  %6282 = vmatprep.subr.bf16.mxu0 %v16529_v26  ;;  %v16578_v44 = vld [vmem:[#allocation5 + $0x1478] ss:$72 sps:$4 sm:$0xff]   ;;  %v16583_v26 = vld [vmem:[#allocation5 + $0xaec] ss:$72 sps:$4 sm:$0xff]  }
 0x31a   :  { %6323 = vmatprep.subr.bf16.mxu1 %v16532_v45  ;;  %v16586_v45 = vld [vmem:[#allocation5 + $0x13ec] ss:$72 sps:$4 sm:$0xff]  }
 0x31c   :  { %6283 = vmatpush2.bf16.msra.mxu0 %v16527_v9  ;;  %v16581_v9 = vld [vmem:[#allocation5 + $0xae8] ss:$72 sps:$4 sm:$0xff]  }
 0x31d   :  { %6324 = vmatpush2.bf16.msra.mxu1 %v16530_v46  ;;  %6284 = vmatprep.subr.bf16.mxu0 %v16535_v47  ;;  %v16584_v46 = vld [vmem:[#allocation5 + $0x13e8] ss:$72 sps:$4 sm:$0xff]   ;;  %v16589_v47 = vld [vmem:[#allocation5 + $0xa5c] ss:$72 sps:$4 sm:$0xff]  }
 0x31e   :  { %6325 = vmatprep.subr.bf16.mxu1 %v16538_v10  ;;  %v16592_v10 = vld [vmem:[#allocation5 + $0x135c] ss:$72 sps:$4 sm:$0xff]  }
 0x320   :  { %6285 = vmatpush2.bf16.msra.mxu0 %v16533_v13  ;;  %v16587_v13 = vld [vmem:[#allocation5 + $0xa58] ss:$72 sps:$4 sm:$0xff]  }
 0x321   :  { %6326 = vmatpush2.bf16.msra.mxu1 %v16536_v51  ;;  %6286 = vmatprep.subr.bf16.mxu0 %v16541_v36  ;;  %v16590_v51 = vld [vmem:[#allocation5 + $0x1358] ss:$72 sps:$4 sm:$0xff]  }
 0x322   :  { %6327 = vmatprep.subr.bf16.mxu1 %v16544_v53  ;;  %v16595_v53 = vld [vmem:[#allocation5 + $0x9cc] ss:$72 sps:$4 sm:$0xff]  }
 0x324   :  { %6287 = vmatpush2.bf16.msra.mxu0 %v16539_v0  ;;  %v16598_v0 = vld [vmem:[#allocation5 + $0x12cc] ss:$72 sps:$4 sm:$0xff]  }
 0x325   :  { %6328 = vmatpush2.bf16.msra.mxu1 %v16542_v56  ;;  %6288 = vmatprep.subr.bf16.mxu0 %v16547_v57  ;;  %v16593_v57 = vld [vmem:[#allocation5 + $0x9c8] ss:$72 sps:$4 sm:$0xff]  }
 0x326   :  { %6329 = vmatprep.subr.bf16.mxu1 %v16550_v58  ;;  %v16596_v58 = vld [vmem:[#allocation5 + $0x12c8] ss:$72 sps:$4 sm:$0xff]  }
 0x328   :  { %6289 = vmatpush2.bf16.msra.mxu0 %v16545_v59  ;;  %v16601_v59 = vld [vmem:[#allocation5 + $0x93c] ss:$72 sps:$4 sm:$0xff]  }
 0x329   :  { %6330 = vmatpush2.bf16.msra.mxu1 %v16548_v62  ;;  %6290 = vmatprep.subr.bf16.mxu0 %v16553_v63  ;;  %v16604_v62 = vld [vmem:[#allocation5 + $0x123c] ss:$72 sps:$4 sm:$0xff]   ;;  %v16599_v63 = vld [vmem:[#allocation5 + $0x938] ss:$72 sps:$4 sm:$0xff]  }
 0x32a   :  { %6331 = vmatprep.subr.bf16.mxu1 %v16556_v2  ;;  %v16602_v2 = vld [vmem:[#allocation5 + $0x1238] ss:$72 sps:$4 sm:$0xff]  }
 0x32c   :  { %6291 = vmatpush2.bf16.msra.mxu0 %v16551_v3  ;;  %v16607_v3 = vld [vmem:[#allocation5 + $0x11ac] ss:$72 sps:$4 sm:$0xff]  }
 0x32d   :  { %6332 = vmatpush2.bf16.msra.mxu1 %v16554_v5  ;;  %6342 = vmatprep.subr.bf16.mxu0 %v16559_v7  ;;  %v16610_v5 = vld [vmem:[#allocation5 + $0x1aac] ss:$72 sps:$4 sm:$0xff]   ;;  %v16608_v7 = vld [vmem:[#allocation5 + $0x1aa8] ss:$72 sps:$4 sm:$0xff]  }
 0x32e   :  { %6383 = vmatprep.subr.bf16.mxu1 %v16562_v12  ;;  %v16613_v12 = vld [vmem:[#allocation5 + $0x111c] ss:$72 sps:$4 sm:$0xff]  }
 0x32f   :  { %v6048_v39 = vpop.f32.mrf.mxu0  ;;  %6293 = vmatmul.mubr.bf16.vlgmr.msra.gmra.mxu0 %v18592_v17 }
 0x330   :  { %6334 = vmatmul.mubr.bf16.vlgmr.msra.gmra.mxu1 %v18582_v8  ;;  %v18723_v24 = vpop.f32.mrf.mxu1  ;;  %v6049_v27 = vadd.f32 %v6048_v39, %v18715_v50  ;;  %6343 = vmatpush1.bf16.msra.mxu0 %v16557_v15  ;;  %v16616_v15 = vld [vmem:[#allocation5 + $0x1a1c] ss:$72 sps:$4 sm:$0xff]   ;;  %v16622_v39 = vld [vmem:[#allocation5 + $0x198c] ss:$72 sps:$4 sm:$0xff]  }
 0x331   :  { %6384 = vmatpush1.bf16.msra.mxu1 %v16560_v30  ;;  %v6050_v28 = vpop.f32.mrf.mxu0  ;;  %6344 = vmatprep.subr.bf16.mxu0 %v16565_v16  ;;  %v16611_v16 = vld [vmem:[#allocation5 + $0x1118] ss:$72 sps:$4 sm:$0xff]  }
 0x332   :  { %6385 = vmatprep.subr.bf16.mxu1 %v16568_v18  ;;  %v18726_v22 = vpop.f32.mrf.mxu1  ;;  %v14442_v32 = vmul.f32 -1.442695, %v6049_v27  ;;  %v18729_v33 = vadd.f32 %v6050_v28, %v18719_v4  ;;  %6374 = vmatprep.mubr.bf16.mxu0 %v18578_v52  ;;  %v16575_v4 = vld [vmem:[#allocation5 + $0xb78] ss:$72 sps:$4 sm:$0xff]   ;;  %v16620_v27 = vld [vmem:[#allocation5 + $0x1988] ss:$72 sps:$4 sm:$0xff]  }
 0x333   :  { %6415 = vmatprep.mubr.bf16.mxu1 %v18589_v35  ;;  %v6052_v14 = vpop.f32.mrf.mxu0  ;;  %v16614_v18 = vld [vmem:[#allocation5 + $0x1a18] ss:$72 sps:$4 sm:$0xff]   ;;  %v16625_v28 = vld [vmem:[#allocation5 + $0xffc] ss:$72 sps:$4 sm:$0xff]  }
 0x334   :  { %v6093_v40 = vpop.f32.mrf.mxu1  ;;  %18123 = vpow2.f32 %v14442_v32  ;;  %6345 = vmatpush1.bf16.msra.mxu0 %v16563_v19  ;;  %v16628_v32 = vld [vmem:[#allocation5 + $0x18fc] ss:$72 sps:$4 sm:$0xff]   ;;  %v16623_v14 = vld [vmem:[#allocation5 + $0xff8] ss:$72 sps:$4 sm:$0xff]  }
 0x335   :  { %6386 = vmatpush1.bf16.msra.mxu1 %v16566_v20  ;;  %v6053_v50 = vpop.f32.mrf.mxu0  ;;  %6346 = vmatprep.subr.bf16.mxu0 %v16571_v61  ;;  %18125 = vtanh.f32 %v18689_v41  ;;  %v16605_v41 = vld [vmem:[#allocation5 + $0x11a8] ss:$72 sps:$4 sm:$0xff]   ;;  %v16619_v20 = vld [vmem:[#allocation5 + $0x108c] ss:$72 sps:$4 sm:$0xff]  }
 0x336   :  { %6387 = vmatprep.subr.bf16.mxu1 %v16574_v23  ;;  %v6094_v43 = vpop.f32.mrf.mxu1  ;;  %v16617_v23 = vld [vmem:[#allocation5 + $0x1088] ss:$72 sps:$4 sm:$0xff]   ;;  %v16634_v40 = vld [vmem:[#allocation5 + $0x186c] ss:$72 sps:$4 sm:$0xff]  }
 0x337   :  { %v16629_v50 = vld [vmem:[#allocation5 + $0xf68] ss:$72 sps:$4 sm:$0xff]   ;;  %v16640_v43 = vld [vmem:[#allocation5 + $0x17dc] ss:$72 sps:$4 sm:$0xff]  }
 0x338   :  { %6347 = vmatpush1.bf16.msra.mxu0 %v16569_v37  ;;  %v16626_v37 = vld [vmem:[#allocation5 + $0x18f8] ss:$72 sps:$4 sm:$0xff]  }
 0x339   :  { %6388 = vmatpush1.bf16.msra.mxu1 %v16572_v38  ;;  %6348 = vmatprep.subr.bf16.mxu0 %v16577_v49  ;;  %v16631_v38 = vld [vmem:[#allocation5 + $0xf6c] ss:$72 sps:$4 sm:$0xff]   ;;  %v16632_v49 = vld [vmem:[#allocation5 + $0x1868] ss:$72 sps:$4 sm:$0xff]  }
 0x33a   :  { %6389 = vmatprep.subr.bf16.mxu1 %v16580_v42  ;;  %v16637_v42 = vld [vmem:[#allocation5 + $0xedc] ss:$72 sps:$4 sm:$0xff]  }
 0x33c   :  { %6349 = vmatpush1.bf16.msra.mxu0 %v16575_v4  ;;  %v16635_v4 = vld [vmem:[#allocation5 + $0xed8] ss:$72 sps:$4 sm:$0xff]  }
 0x33d   :  { %6390 = vmatpush1.bf16.msra.mxu1 %v16578_v44  ;;  %6350 = vmatprep.subr.bf16.mxu0 %v16583_v26  ;;  %v16638_v44 = vld [vmem:[#allocation5 + $0x17d8] ss:$72 sps:$4 sm:$0xff]   ;;  %v16643_v26 = vld [vmem:[#allocation5 + $0xe4c] ss:$72 sps:$4 sm:$0xff]  }
 0x33e   :  { %6391 = vmatprep.subr.bf16.mxu1 %v16586_v45  ;;  %v16646_v45 = vld [vmem:[#allocation5 + $0x174c] ss:$72 sps:$4 sm:$0xff]  }
 0x340   :  { %6351 = vmatpush1.bf16.msra.mxu0 %v16581_v9  ;;  %v16641_v9 = vld [vmem:[#allocation5 + $0xe48] ss:$72 sps:$4 sm:$0xff]  }
 0x341   :  { %6392 = vmatpush1.bf16.msra.mxu1 %v16584_v46  ;;  %v18124_v36 = vpop.eup %18123  ;;  %6352 = vmatprep.subr.bf16.mxu0 %v16589_v47  ;;  %v16644_v46 = vld [vmem:[#allocation5 + $0x1748] ss:$72 sps:$4 sm:$0xff]   ;;  %v16649_v47 = vld [vmem:[#allocation5 + $0xdbc] ss:$72 sps:$4 sm:$0xff]  }
 0x342   :  { %6393 = vmatprep.subr.bf16.mxu1 %v16592_v10  ;;  %v6579_v56 = vadd.f32 1.0, %v18124_v36  ;;  %v18126_v30 = vpop.eup %18125  ;;  %v16652_v10 = vld [vmem:[#allocation5 + $0x16bc] ss:$72 sps:$4 sm:$0xff]   ;;  %v16647_v36 = vld [vmem:[#allocation5 + $0xdb8] ss:$72 sps:$4 sm:$0xff]  }
 0x344   :  { %18127 = vrcp.f32 %v6579_v56  ;;  %6353 = vmatpush1.bf16.msra.mxu0 %v16587_v13  ;;  %v18736_v13 = vld [vmem:[#allocation7 + $0x8] sm:$0xff]  ;;  %v16658_v56 = vld [vmem:[#allocation5 + $0xd34] ss:$72 sps:$4 sm:$0xff]  }
 0x345   :  { %6394 = vmatpush1.bf16.msra.mxu1 %v16590_v51  ;;  %6354 = vmatprep.subr.bf16.mxu0 %v16595_v53  ;;  %v1073_v51 = vrot.slane %v18736_v13, %v18636_v54  ;;  %v16650_v53 = vld [vmem:[#allocation5 + $0x16b8] ss:$72 sps:$4 sm:$0xff]  }
 0x346   :  { %6395 = vmatprep.subr.bf16.mxu1 %v16598_v0  ;;  %v16655_v0 = vld [vmem:[#allocation5 + $0x434] ss:$72 sps:$4 sm:$0xff]  }
 0x348   :  { %6355 = vmatpush1.bf16.msra.mxu0 %v16593_v57  ;;  %v1077_v57 = vrot.slane %v18736_v13, %v18639_v21 }
 0x349   :  { %6396 = vmatpush1.bf16.msra.mxu1 %v16596_v58  ;;  %6356 = vmatprep.subr.bf16.mxu0 %v16601_v59  ;;  %v16653_v58 = vld [vmem:[#allocation5 + $0x430] ss:$72 sps:$4 sm:$0xff]  }
 0x34a   :  { %6397 = vmatprep.subr.bf16.mxu1 %v16604_v62  ;;  %v16656_v59 = vld [vmem:[#allocation5 + $0xd30] ss:$72 sps:$4 sm:$0xff]   ;;  %v16661_v62 = vld [vmem:[#allocation5 + $0x3a4] ss:$72 sps:$4 sm:$0xff]  }
 0x34c   :  { %6357 = vmatpush1.bf16.msra.mxu0 %v16599_v63  ;;  %v16664_v63 = vld [vmem:[#allocation5 + $0xca4] ss:$72 sps:$4 sm:$0xff]  }
 0x34d   :  { %6398 = vmatpush1.bf16.msra.mxu1 %v16602_v2  ;;  %6358 = vmatprep.subr.bf16.mxu0 %v16607_v3  ;;  %v6090_v2 = vadd.f32 %v18723_v24, %v1073_v51  ;;  %v6092_v3 = vadd.f32 %v18726_v22, %v1077_v57  ;;  %v16665_v22 = vld [vmem:[#allocation5 + $0x310] ss:$72 sps:$4 sm:$0xff]   ;;  %v16700_v51 = vld [vmem:[#allocation5 + $0x944] ss:$72 sps:$4 sm:$0xff]  }
 0x34e   :  { %6399 = vmatprep.subr.bf16.mxu1 %v16610_v5  ;;  %v16659_v5 = vld [vmem:[#allocation5 + $0x3a0] ss:$72 sps:$4 sm:$0xff]   ;;  %v16701_v57 = vld [vmem:[#allocation5 + $0x8b0] ss:$72 sps:$4 sm:$0xff]  }
 0x350   :  { %6359 = vmatpush2.bf16.msra.mxu0 %v16605_v41  ;;  %v16662_v41 = vld [vmem:[#allocation5 + $0xca0] ss:$72 sps:$4 sm:$0xff]  }
 0x351   :  { %6400 = vmatpush2.bf16.msra.mxu1 %v16608_v7  ;;  %v18128_v19 = vpop.eup %18127  ;;  %6360 = vmatprep.subr.bf16.mxu0 %v16613_v12 }
 0x352   :  { %6401 = vmatprep.subr.bf16.mxu1 %v16616_v15  ;;  %v18734_v61 = vmul.f32 %v18128_v19, %v18126_v30  ;;  %v16667_v15 = vld [vmem:[#allocation5 + $0x314] ss:$72 sps:$4 sm:$0xff]  }
 0x353   :  { %v16670_v30 = vld [vmem:[#allocation5 + $0xc14] ss:$72 sps:$4 sm:$0xff]  }
 0x354   :  { %6361 = vmatpush2.bf16.msra.mxu0 %v16611_v16 }
 0x355   :  { %6402 = vmatpush2.bf16.msra.mxu1 %v16614_v18  ;;  %6362 = vmatprep.subr.bf16.mxu0 %v16619_v20 }
 0x356   :  { %6403 = vmatprep.subr.bf16.mxu1 %v16622_v39  ;;  %v16668_v39 = vld [vmem:[#allocation5 + $0xc10] ss:$72 sps:$4 sm:$0xff]  }
 0x358   :  { %6363 = vmatpush2.bf16.msra.mxu0 %v16617_v23 }
 0x359   :  { %6404 = vmatpush2.bf16.msra.mxu1 %v16620_v27  ;;  %6364 = vmatprep.subr.bf16.mxu0 %v16625_v28  ;;  %v16673_v27 = vld [vmem:[#allocation5 + $0x284] ss:$72 sps:$4 sm:$0xff]  }
 0x35a   :  { %6405 = vmatprep.subr.bf16.mxu1 %v16628_v32  ;;  %v16676_v28 = vld [vmem:[#allocation5 + $0xb84] ss:$72 sps:$4 sm:$0xff]  }
 0x35c   :  { %6365 = vmatpush2.bf16.msra.mxu0 %v16623_v14 }
 0x35d   :  { %6406 = vmatpush2.bf16.msra.mxu1 %v16626_v37  ;;  %6366 = vmatprep.subr.bf16.mxu0 %v16631_v38 }
 0x35e   :  { %6407 = vmatprep.subr.bf16.mxu1 %v16634_v40  ;;  %v16671_v40 = vld [vmem:[#allocation5 + $0x280] ss:$72 sps:$4 sm:$0xff]  }
 0x360   :  { %6367 = vmatpush2.bf16.msra.mxu0 %v16629_v50  ;;  %v16674_v50 = vld [vmem:[#allocation5 + $0xb80] ss:$72 sps:$4 sm:$0xff]  }
 0x361   :  { %6408 = vmatpush2.bf16.msra.mxu1 %v16632_v49  ;;  %6368 = vmatprep.subr.bf16.mxu0 %v16637_v42  ;;  %v16679_v49 = vld [vmem:[#allocation5 + $0x1f4] ss:$72 sps:$4 sm:$0xff]  }
 0x362   :  { %6409 = vmatprep.subr.bf16.mxu1 %v16640_v43  ;;  %v16682_v42 = vld [vmem:[#allocation5 + $0xaf4] ss:$72 sps:$4 sm:$0xff]   ;;  %v16685_v43 = vld [vmem:[#allocation5 + $0x164] ss:$72 sps:$4 sm:$0xff]  }
 0x364   :  { %6369 = vmatpush2.bf16.msra.mxu0 %v16635_v4  ;;  %v16688_v4 = vld [vmem:[#allocation5 + $0xa64] ss:$72 sps:$4 sm:$0xff]  }
 0x365   :  { %6410 = vmatpush2.bf16.msra.mxu1 %v16638_v44  ;;  %6370 = vmatprep.subr.bf16.mxu0 %v16643_v26  ;;  %v16683_v44 = vld [vmem:[#allocation5 + $0x160] ss:$72 sps:$4 sm:$0xff]  }
 0x366   :  { %6411 = vmatprep.subr.bf16.mxu1 %v16646_v45  ;;  %v16686_v26 = vld [vmem:[#allocation5 + $0xa60] ss:$72 sps:$4 sm:$0xff]   ;;  %v16691_v45 = vld [vmem:[#allocation5 + $0xd4] ss:$72 sps:$4 sm:$0xff]  }
 0x368   :  { %6371 = vmatpush2.bf16.msra.mxu0 %v16641_v9  ;;  %v16694_v9 = vld [vmem:[#allocation5 + $0x9d4] ss:$72 sps:$4 sm:$0xff]  }
 0x369   :  { %6412 = vmatpush2.bf16.msra.mxu1 %v16644_v46  ;;  %6372 = vmatprep.subr.bf16.mxu0 %v16649_v47  ;;  %v16689_v46 = vld [vmem:[#allocation5 + $0xd0] ss:$72 sps:$4 sm:$0xff]  }
 0x36a   :  { %6413 = vmatprep.subr.bf16.mxu1 %v16652_v10  ;;  %v16692_v47 = vld [vmem:[#allocation5 + $0x9d0] ss:$72 sps:$4 sm:$0xff]   ;;  %v16697_v10 = vld [vmem:[#allocation5 + $0x44] ss:$72 sps:$4 sm:$0xff]  }
 0x36c   :  { %6373 = vmatpush2.bf16.msra.mxu0 %v16647_v36  ;;  %v16695_v36 = vld [vmem:[#allocation5 + $0x40] ss:$72 sps:$4 sm:$0xff]  }
 0x36d   :  { %6414 = vmatpush2.bf16.msra.mxu1 %v16650_v53  ;;  %6424 = vmatprep.subr.bf16.mxu0 %v16655_v0  ;;  %v16698_v53 = vld [vmem:[#allocation5 + $0x940] ss:$72 sps:$4 sm:$0xff]   ;;  %v16703_v0 = vld [vmem:[#allocation5 + $0x8b4] ss:$72 sps:$4 sm:$0xff]  }
 0x36e   :  { %6465 = vmatprep.subr.bf16.mxu1 %v16658_v56  ;;  %v16706_v56 = vld [vmem:[#allocation5 + $0x11b4] ss:$72 sps:$4 sm:$0xff]  }
 0x36f   :  { %v6130_v7 = vpop.f32.mrf.mxu0  ;;  %6375 = vmatmul.mubr.bf16.vlgmr.msra.gmra.mxu0 %v18584_v11 }
 0x370   :  { %6416 = vmatmul.mubr.bf16.vlgmr.msra.gmra.mxu1 %v18592_v17  ;;  %v6171_v12 = vpop.f32.mrf.mxu1  ;;  %v6131_v16 = vadd.f32 %v6130_v7, %v6090_v2  ;;  %6425 = vmatpush1.bf16.msra.mxu0 %v16653_v58  ;;  %v16704_v58 = vld [vmem:[#allocation5 + $0x11b0] ss:$72 sps:$4 sm:$0xff]   ;;  %v16710_v2 = vld [vmem:[#allocation5 + $0x1120] ss:$72 sps:$4 sm:$0xff]  }
 0x371   :  { %6466 = vmatpush1.bf16.msra.mxu1 %v16656_v59  ;;  %v6132_v24 = vpop.f32.mrf.mxu0  ;;  %6426 = vmatprep.subr.bf16.mxu0 %v16661_v62  ;;  %v16709_v59 = vld [vmem:[#allocation5 + $0x824] ss:$72 sps:$4 sm:$0xff]   ;;  %v16716_v7 = vld [vmem:[#allocation5 + $0x1090] ss:$72 sps:$4 sm:$0xff]  }
 0x372   :  { %v6173_v18 = vpop.f32.mrf.mxu1  ;;  %6467 = vmatprep.subr.bf16.mxu1 %v16664_v63  ;;  %v6133_v19 = vadd.f32 %v6132_v24, %v6092_v3  ;;  %v18746_v20 = vadd.f32 %v6171_v12, %v6131_v16  ;;  %6456 = vmatprep.mubr.bf16.mxu0 %v18576_v48  ;;  %v16677_v48 = vld [vmem:[#allocation5 + $0x1f0] ss:$72 sps:$4 sm:$0xff]   ;;  %v16712_v62 = vld [vmem:[#allocation5 + $0x1124] ss:$72 sps:$4 sm:$0xff]   ;;  %v16707_v63 = vld [vmem:[#allocation5 + $0x820] ss:$72 sps:$4 sm:$0xff]  }
 0x373   :  { %6497 = vmatprep.mubr.bf16.mxu1 %v18578_v52  ;;  %v6134_v23 = vpop.f32.mrf.mxu0  ;;  %v16680_v52 = vld [vmem:[#allocation5 + $0xaf0] ss:$72 sps:$4 sm:$0xff]   ;;  %v16715_v3 = vld [vmem:[#allocation5 + $0x794] ss:$72 sps:$4 sm:$0xff]   ;;  %v16721_v12 = vld [vmem:[#allocation5 + $0x704] ss:$72 sps:$4 sm:$0xff]  }
 0x374   :  { %v6175_v32 = vpop.f32.mrf.mxu1  ;;  %v18750_v14 = vadd.f32 %v6173_v18, %v6133_v19  ;;  %6427 = vmatpush1.bf16.msra.mxu0 %v16659_v5  ;;  %v16718_v5 = vld [vmem:[#allocation5 + $0x1094] ss:$72 sps:$4 sm:$0xff]   ;;  %v16722_v16 = vld [vmem:[#allocation5 + $0x1000] ss:$72 sps:$4 sm:$0xff]   ;;  %v16725_v19 = vld [vmem:[#allocation5 + $0x670] ss:$72 sps:$4 sm:$0xff]  }
 0x375   :  { %6468 = vmatpush1.bf16.msra.mxu1 %v16662_v41  ;;  %v6135_v37 = vpop.f32.mrf.mxu0  ;;  %6428 = vmatprep.subr.bf16.mxu0 %v16667_v15  ;;  %v16713_v41 = vld [vmem:[#allocation5 + $0x790] ss:$72 sps:$4 sm:$0xff]   ;;  %v16724_v15 = vld [vmem:[#allocation5 + $0x1004] ss:$72 sps:$4 sm:$0xff]   ;;  %v16727_v24 = vld [vmem:[#allocation5 + $0x674] ss:$72 sps:$4 sm:$0xff]  }
 0x376   :  { %6469 = vmatprep.subr.bf16.mxu1 %v16670_v30  ;;  %v6176_v38 = vpop.f32.mrf.mxu1  ;;  %v16719_v30 = vld [vmem:[#allocation5 + $0x700] ss:$72 sps:$4 sm:$0xff]   ;;  %v16730_v18 = vld [vmem:[#allocation5 + $0xf74] ss:$72 sps:$4 sm:$0xff]   ;;  %v16736_v23 = vld [vmem:[#allocation5 + $0xee4] ss:$72 sps:$4 sm:$0xff]  }
 0x377   :  { %v16739_v32 = vld [vmem:[#allocation5 + $0x554] ss:$72 sps:$4 sm:$0xff]   ;;  %v16737_v38 = vld [vmem:[#allocation5 + $0x550] ss:$72 sps:$4 sm:$0xff]  }
 0x378   :  { %6429 = vmatpush1.bf16.msra.mxu0 %v16665_v22  ;;  %v16728_v22 = vld [vmem:[#allocation5 + $0xf70] ss:$72 sps:$4 sm:$0xff]   ;;  %v16742_v37 = vld [vmem:[#allocation5 + $0xe54] ss:$72 sps:$4 sm:$0xff]  }
 0x379   :  { %6470 = vmatpush1.bf16.msra.mxu1 %v16668_v39  ;;  %6430 = vmatprep.subr.bf16.mxu0 %v16673_v27  ;;  %v16733_v39 = vld [vmem:[#allocation5 + $0x5e4] ss:$72 sps:$4 sm:$0xff]   ;;  %v16731_v27 = vld [vmem:[#allocation5 + $0x5e0] ss:$72 sps:$4 sm:$0xff]  }
 0x37a   :  { %6471 = vmatprep.subr.bf16.mxu1 %v16676_v28  ;;  %v16734_v28 = vld [vmem:[#allocation5 + $0xee0] ss:$72 sps:$4 sm:$0xff]  }
 0x37c   :  { %6431 = vmatpush1.bf16.msra.mxu0 %v16671_v40  ;;  %v16740_v40 = vld [vmem:[#allocation5 + $0xe50] ss:$72 sps:$4 sm:$0xff]  }
 0x37d   :  { %6472 = vmatpush1.bf16.msra.mxu1 %v16674_v50  ;;  %6432 = vmatprep.subr.bf16.mxu0 %v16679_v49  ;;  %v16745_v50 = vld [vmem:[#allocation5 + $0x4c4] ss:$72 sps:$4 sm:$0xff]  }
 0x37e   :  { %6473 = vmatprep.subr.bf16.mxu1 %v16682_v42  ;;  %v16748_v49 = vld [vmem:[#allocation5 + $0xdc4] ss:$72 sps:$4 sm:$0xff]   ;;  %v16743_v42 = vld [vmem:[#allocation5 + $0x4c0] ss:$72 sps:$4 sm:$0xff]  }
 0x380   :  { %6433 = vmatpush1.bf16.msra.mxu0 %v16677_v48  ;;  %v16746_v48 = vld [vmem:[#allocation5 + $0xdc0] ss:$72 sps:$4 sm:$0xff]  }
 0x381   :  { %6474 = vmatpush1.bf16.msra.mxu1 %v16680_v52  ;;  %6434 = vmatprep.subr.bf16.mxu0 %v16685_v43  ;;  %v16751_v52 = vld [vmem:[#allocation5 + $0x1634] ss:$72 sps:$4 sm:$0xff]   ;;  %v16754_v43 = vld [vmem:[#allocation8 + $0x3f4] ss:$72 sps:$4 sm:$0xff]  }
 0x382   :  { %6475 = vmatprep.subr.bf16.mxu1 %v16688_v4  ;;  %v16749_v4 = vld [vmem:[#allocation5 + $0x1630] ss:$72 sps:$4 sm:$0xff]  }
 0x384   :  { %6435 = vmatpush1.bf16.msra.mxu0 %v16683_v44  ;;  %v16752_v44 = vld [vmem:[#allocation8 + $0x3f0] ss:$72 sps:$4 sm:$0xff]  }
 0x385   :  { %6476 = vmatpush1.bf16.msra.mxu1 %v16686_v26  ;;  %6436 = vmatprep.subr.bf16.mxu0 %v16691_v45  ;;  %v16757_v26 = vld [vmem:[#allocation5 + $0x15a4] ss:$72 sps:$4 sm:$0xff]   ;;  %v1081_v45 = vrot.slane %v18736_v13, %v18658_v1 }
 0x386   :  { %6477 = vmatprep.subr.bf16.mxu1 %v16694_v9  ;;  %v16760_v9 = vld [vmem:[#allocation8 + $0x364] ss:$72 sps:$4 sm:$0xff]  }
 0x388   :  { %6437 = vmatpush1.bf16.msra.mxu0 %v16689_v46  ;;  %v1085_v46 = vrot.slane %v18736_v13, %v18661_v6 }
 0x389   :  { %6478 = vmatpush1.bf16.msra.mxu1 %v16692_v47  ;;  %6438 = vmatprep.subr.bf16.mxu0 %v16697_v10  ;;  %v16755_v47 = vld [vmem:[#allocation5 + $0x15a0] ss:$72 sps:$4 sm:$0xff]   ;;  %v16758_v10 = vld [vmem:[#allocation8 + $0x360] ss:$72 sps:$4 sm:$0xff]  }
 0x38a   :  { %6479 = vmatprep.subr.bf16.mxu1 %v16700_v51  ;;  %v18758_v51 = vpack.c.bf16 %v18709_v60, %v18709_v60  ;;  %v16761_v60 = vld [vmem:[#allocation5 + $0x1510] ss:$72 sps:$4 sm:$0xff]  }
 0x38c   :  { %6439 = vmatpush1.bf16.msra.mxu0 %v16695_v36 }
 0x38d   :  { %6480 = vmatpush1.bf16.msra.mxu1 %v16698_v53  ;;  %6440 = vmatprep.subr.bf16.mxu0 %v16703_v0  ;;  %v16763_v0 = vld [vmem:[#allocation5 + $0x1514] ss:$72 sps:$4 sm:$0xff]  }
 0x38e   :  { %6481 = vmatprep.subr.bf16.mxu1 %v16706_v56 }
 0x390   :  { %6441 = vmatpush2.bf16.msra.mxu0 %v16701_v57 }
 0x391   :  { %6482 = vmatpush2.bf16.msra.mxu1 %v16704_v58  ;;  %6442 = vmatprep.subr.bf16.mxu0 %v16709_v59  ;;  %v16766_v58 = vld [vmem:[#allocation8 + $0x2d4] ss:$72 sps:$4 sm:$0xff]  }
 0x392   :  { %6483 = vmatprep.subr.bf16.mxu1 %v16712_v62 }
 0x394   :  { %6443 = vmatpush2.bf16.msra.mxu0 %v16707_v63  ;;  %v16764_v63 = vld [vmem:[#allocation8 + $0x2d0] ss:$72 sps:$4 sm:$0xff]  }
 0x395   :  { %6484 = vmatpush2.bf16.msra.mxu1 %v16710_v2  ;;  %6444 = vmatprep.subr.bf16.mxu0 %v16715_v3 }
 0x396   :  { %6485 = vmatprep.subr.bf16.mxu1 %v16718_v5 }
 0x398   :  { %6445 = vmatpush2.bf16.msra.mxu0 %v16713_v41  ;;  %v16772_v41 = vld [vmem:[#allocation8 + $0x244] ss:$72 sps:$4 sm:$0xff]  }
 0x399   :  { %6486 = vmatpush2.bf16.msra.mxu1 %v16716_v7  ;;  %6446 = vmatprep.subr.bf16.mxu0 %v16721_v12  ;;  %v16767_v12 = vld [vmem:[#allocation5 + $0x1480] ss:$72 sps:$4 sm:$0xff]  }
 0x39a   :  { %6487 = vmatprep.subr.bf16.mxu1 %v16724_v15  ;;  %v16770_v15 = vld [vmem:[#allocation8 + $0x240] ss:$72 sps:$4 sm:$0xff]  }
 0x39c   :  { %6447 = vmatpush2.bf16.msra.mxu0 %v16719_v30  ;;  %v16775_v30 = vld [vmem:[#allocation5 + $0x13f4] ss:$72 sps:$4 sm:$0xff]  }
 0x39d   :  { %6488 = vmatpush2.bf16.msra.mxu1 %v16722_v16  ;;  %6448 = vmatprep.subr.bf16.mxu0 %v16727_v24  ;;  %v16773_v16 = vld [vmem:[#allocation5 + $0x13f0] ss:$72 sps:$4 sm:$0xff]   ;;  %v16776_v24 = vld [vmem:[#allocation8 + $0x1b0] ss:$72 sps:$4 sm:$0xff]  }
 0x39e   :  { %6489 = vmatprep.subr.bf16.mxu1 %v16730_v18  ;;  %v16781_v18 = vld [vmem:[#allocation5 + $0x1364] ss:$72 sps:$4 sm:$0xff]  }
 0x3a0   :  { %6449 = vmatpush2.bf16.msra.mxu0 %v16725_v19  ;;  %v16784_v19 = vld [vmem:[#allocation8 + $0x124] ss:$72 sps:$4 sm:$0xff]  }
 0x3a1   :  { %6490 = vmatpush2.bf16.msra.mxu1 %v16728_v22  ;;  %6450 = vmatprep.subr.bf16.mxu0 %v16733_v39  ;;  %v16779_v22 = vld [vmem:[#allocation5 + $0x1360] ss:$72 sps:$4 sm:$0xff]   ;;  %v16782_v39 = vld [vmem:[#allocation8 + $0x120] ss:$72 sps:$4 sm:$0xff]  }
 0x3a2   :  { %6491 = vmatprep.subr.bf16.mxu1 %v16736_v23  ;;  %v16787_v23 = vld [vmem:[#allocation5 + $0x12d4] ss:$72 sps:$4 sm:$0xff]  }
 0x3a4   :  { %6451 = vmatpush2.bf16.msra.mxu0 %v16731_v27  ;;  %v16790_v27 = vld [vmem:[#allocation8 + $0x94] ss:$72 sps:$4 sm:$0xff]  }
 0x3a5   :  { %6492 = vmatpush2.bf16.msra.mxu1 %v16734_v28  ;;  %6452 = vmatprep.subr.bf16.mxu0 %v16739_v32  ;;  %v16785_v28 = vld [vmem:[#allocation5 + $0x12d0] ss:$72 sps:$4 sm:$0xff]   ;;  %v16788_v32 = vld [vmem:[#allocation8 + $0x90] ss:$72 sps:$4 sm:$0xff]  }
 0x3a6   :  { %6493 = vmatprep.subr.bf16.mxu1 %v16742_v37  ;;  %v16793_v37 = vld [vmem:[#allocation5 + $0x1244] ss:$72 sps:$4 sm:$0xff]  }
 0x3a8   :  { %6453 = vmatpush2.bf16.msra.mxu0 %v16737_v38  ;;  %v16796_v38 = vld [vmem:[#allocation8 + $0x4] ss:$72 sps:$4 sm:$0xff]  }
 0x3a9   :  { %6494 = vmatpush2.bf16.msra.mxu1 %v16740_v40  ;;  %6454 = vmatprep.subr.bf16.mxu0 %v16745_v50  ;;  %v16791_v40 = vld [vmem:[#allocation5 + $0x1240] ss:$72 sps:$4 sm:$0xff]   ;;  %v16794_v50 = vld [vmem:[#allocation8] ss:$72 sps:$4 sm:$0xff]  }
 0x3aa   :  { %6495 = vmatprep.subr.bf16.mxu1 %v16748_v49  ;;  %v16799_v49 = vld [vmem:[#allocation5 + $0x1ab4] ss:$72 sps:$4 sm:$0xff]  }
 0x3ac   :  { %6455 = vmatpush2.bf16.msra.mxu0 %v16743_v42  ;;  %v16802_v42 = vld [vmem:[#allocation8 + $0x874] ss:$72 sps:$4 sm:$0xff]  }
 0x3ad   :  { %6496 = vmatpush2.bf16.msra.mxu1 %v16746_v48  ;;  %6506 = vmatprep.subr.bf16.mxu0 %v16751_v52  ;;  %v16797_v48 = vld [vmem:[#allocation5 + $0x1ab0] ss:$72 sps:$4 sm:$0xff]   ;;  %v16800_v52 = vld [vmem:[#allocation8 + $0x870] ss:$72 sps:$4 sm:$0xff]  }
 0x3ae   :  { %11929 = vmatprep.subr.bf16.mxu1 %v16754_v43  ;;  %v16805_v43 = vld [vmem:[#allocation5 + $0x1a24] ss:$72 sps:$4 sm:$0xff]  }
 0x3af   :  { %v6212_v36 = vpop.f32.mrf.mxu0  ;;  %6457 = vmatmul.mubr.bf16.vlgmr.msra.gmra.mxu0 %v18582_v8 }
 0x3b0   :  { %6498 = vmatmul.mubr.bf16.vlgmr.msra.gmra.mxu1 %v18584_v11  ;;  %v6253_v53 = vpop.f32.mrf.mxu1  ;;  %v6213_v56 = vadd.f32 %v6212_v36, %v1081_v45  ;;  %6507 = vmatpush1.bf16.msra.mxu0 %v16749_v4  ;;  %v16769_v11 = vld [vmem:[#allocation5 + $0x1484] ss:$72 sps:$4 sm:$0xff]   ;;  %v16808_v4 = vld [vmem:[#allocation8 + $0x7e4] ss:$72 sps:$4 sm:$0xff]  }
 0x3b1   :  { %11930 = vmatpush1.bf16.msra.mxu1 %v16752_v44  ;;  %11961 = vmatprep.mubr.bf16.mxu1 %v18758_v51  ;;  %v6214_v57 = vpop.f32.mrf.mxu0  ;;  %v16803_v44 = vld [vmem:[#allocation5 + $0x1a20] ss:$72 sps:$4 sm:$0xff]   ;;  %v16811_v45 = vld [vmem:[#allocation5 + $0x1994] ss:$72 sps:$4 sm:$0xff]  }
 0x3b2   :  { %v6255_v13 = vpop.f32.mrf.mxu1  ;;  %6508 = vmatprep.subr.bf16.mxu0 %v16757_v26  ;;  %v6215_v59 = vadd.f32 %v6214_v57, %v1085_v46  ;;  %v18763_v62 = vadd.f32 %v6253_v53, %v6213_v56  ;;  %11931 = vmatprep.subr.bf16.mxu1 %v16760_v9  ;;  %v16806_v26 = vld [vmem:[#allocation8 + $0x7e0] ss:$72 sps:$4 sm:$0xff]   ;;  %v16814_v9 = vld [vmem:[#allocation8 + $0x754] ss:$72 sps:$4 sm:$0xff]   ;;  %v16820_v36 = vld [vmem:[#allocation8 + $0x6c4] ss:$72 sps:$4 sm:$0xff]  }
 0x3b3   :  { %6538 = vmatprep.mubr.bf16.mxu0 %v18589_v35  ;;  %v6216_v8 = vpop.f32.mrf.mxu0  ;;  %v16778_v35 = vld [vmem:[#allocation8 + $0x1b4] ss:$72 sps:$4 sm:$0xff]   ;;  %v16823_v56 = vld [vmem:[#allocation5 + $0x1874] ss:$72 sps:$4 sm:$0xff]   ;;  %v14443_v57 = vmul.f32 -1.442695, %v18729_v33 }
 0x3b4   :  { %v6257_v2 = vpop.f32.mrf.mxu1  ;;  %v18766_v3 = vadd.f32 %v6255_v13, %v6215_v59  ;;  %6509 = vmatpush1.bf16.msra.mxu0 %v16755_v47  ;;  %v16809_v46 = vld [vmem:[#allocation5 + $0x1990] ss:$72 sps:$4 sm:$0xff]   ;;  %v16812_v47 = vld [vmem:[#allocation8 + $0x750] ss:$72 sps:$4 sm:$0xff]   ;;  %v16835_v33 = vld [vmem:[#allocation5 + $0x1754] ss:$72 sps:$4 sm:$0xff]  }
 0x3b5   :  { %11932 = vmatpush1.bf16.msra.mxu1 %v16758_v10  ;;  %v6217_v5 = vpop.f32.mrf.mxu0  ;;  %6510 = vmatprep.subr.bf16.mxu0 %v16763_v0  ;;  %v16817_v10 = vld [vmem:[#allocation5 + $0x1904] ss:$72 sps:$4 sm:$0xff]   ;;  %v16815_v53 = vld [vmem:[#allocation5 + $0x1900] ss:$72 sps:$4 sm:$0xff]   ;;  %v16818_v0 = vld [vmem:[#allocation8 + $0x6c0] ss:$72 sps:$4 sm:$0xff]   ;;  %18129 = vpow2.f32 %v14443_v57 }
 0x3b6   :  { %11933 = vmatprep.subr.bf16.mxu1 %v16766_v58  ;;  %v6258_v7 = vpop.f32.mrf.mxu1  ;;  %v16826_v13 = vld [vmem:[#allocation8 + $0x634] ss:$72 sps:$4 sm:$0xff]   ;;  %v16824_v59 = vld [vmem:[#allocation8 + $0x630] ss:$72 sps:$4 sm:$0xff]   ;;  %v16832_v8 = vld [vmem:[#allocation8 + $0x5a4] ss:$72 sps:$4 sm:$0xff]  }
 0x3b7   :  { %v16821_v58 = vld [vmem:[#allocation5 + $0x1870] ss:$72 sps:$4 sm:$0xff]   ;;  %v16836_v7 = vld [vmem:[#allocation8 + $0x510] ss:$72 sps:$4 sm:$0xff]  }
 0x3b8   :  { %6511 = vmatpush1.bf16.msra.mxu0 %v16761_v60  ;;  %v14444_v60 = vmul.f32 -1.442695, %v18746_v20  ;;  %v16830_v2 = vld [vmem:[#allocation8 + $0x5a0] ss:$72 sps:$4 sm:$0xff]   ;;  %v16838_v5 = vld [vmem:[#allocation8 + $0x514] ss:$72 sps:$4 sm:$0xff]  }
 0x3b9   :  { %11934 = vmatpush1.bf16.msra.mxu1 %v16764_v63  ;;  %6512 = vmatprep.subr.bf16.mxu0 %v16769_v11  ;;  %v16829_v63 = vld [vmem:[#allocation5 + $0x17e4] ss:$72 sps:$4 sm:$0xff]   ;;  %v16827_v11 = vld [vmem:[#allocation5 + $0x17e0] ss:$72 sps:$4 sm:$0xff]   ;;  %v16866_v57 = vld [vmem:[#allocation8 + $0x900] ss:$72 sps:$4 sm:$0xff]  }
 0x3ba   :  { %11935 = vmatprep.subr.bf16.mxu1 %v16772_v41  ;;  %18131 = vpow2.f32 %v14444_v60  ;;  %v16833_v41 = vld [vmem:[#allocation5 + $0x1750] ss:$72 sps:$4 sm:$0xff]   ;;  %v16841_v20 = vld [vmem:[#allocation5 + $0x16c4] ss:$72 sps:$4 sm:$0xff]  }
 0x3bb   :  { %v16872_v60 = vld [vmem:[#allocation8 + $0x10e0] ss:$72 sps:$4 sm:$0xff]  }
 0x3bc   :  { %6513 = vmatpush1.bf16.msra.mxu0 %v16767_v12  ;;  %v16844_v12 = vld [vmem:[#allocation8 + $0x484] ss:$72 sps:$4 sm:$0xff]  }
 0x3bd   :  { %11936 = vmatpush1.bf16.msra.mxu1 %v16770_v15  ;;  %6514 = vmatprep.subr.bf16.mxu0 %v16775_v30  ;;  %v16839_v15 = vld [vmem:[#allocation5 + $0x16c0] ss:$72 sps:$4 sm:$0xff]   ;;  %v16842_v30 = vld [vmem:[#allocation8 + $0x480] ss:$72 sps:$4 sm:$0xff]  }
 0x3be   :  { %11937 = vmatprep.subr.bf16.mxu1 %v16778_v35  ;;  %v16847_v35 = vld [vmem:[#allocation8 + $0xcf4] ss:$72 sps:$4 sm:$0xff]  }
 0x3c0   :  { %6515 = vmatpush1.bf16.msra.mxu0 %v16773_v16 }
 0x3c1   :  { %11938 = vmatpush1.bf16.msra.mxu1 %v16776_v24  ;;  %6516 = vmatprep.subr.bf16.mxu0 %v16781_v18  ;;  %v16845_v18 = vld [vmem:[#allocation8 + $0xcf0] ss:$72 sps:$4 sm:$0xff]  }
 0x3c2   :  { %11939 = vmatprep.subr.bf16.mxu1 %v16784_v19  ;;  %v18130_v16 = vpop.eup %18129  ;;  %v18772_v19 = vpack.c.bf16 %v18707_v55, %v18707_v55  ;;  %v16853_v55 = vld [vmem:[#allocation8 + $0xbd4] ss:$72 sps:$4 sm:$0xff]  }
 0x3c4   :  { %6517 = vmatpush1.bf16.msra.mxu0 %v16779_v22  ;;  %v6604_v22 = vadd.f32 1.0, %v18130_v16  ;;  %v16884_v16 = vld [vmem:[#allocation8 + $0xea0] ss:$72 sps:$4 sm:$0xff]  }
 0x3c5   :  { %11940 = vmatpush1.bf16.msra.mxu1 %v16782_v39  ;;  %6518 = vmatprep.subr.bf16.mxu0 %v16787_v23  ;;  %v16850_v39 = vld [vmem:[#allocation8 + $0xc64] ss:$72 sps:$4 sm:$0xff]  }
 0x3c6   :  { %11941 = vmatprep.subr.bf16.mxu1 %v16790_v27  ;;  %18133 = vrcp.f32 %v6604_v22  ;;  %v16961_v22 = vld [vmem:[#allocation8 + $0x1444] ss:$72 sps:$4 sm:$0xff]  }
 0x3c7   :  { %v18132_v24 = vpop.eup %18131 }
 0x3c8   :  { %6519 = vmatpush1.bf16.msra.mxu0 %v16785_v28  ;;  %v6605_v23 = vadd.f32 1.0, %v18132_v24  ;;  %v16953_v24 = vld [vmem:[#allocation8 + $0x14d0] ss:$72 sps:$4 sm:$0xff]  }
 0x3c9   :  { %11942 = vmatpush1.bf16.msra.mxu1 %v16788_v32  ;;  %6520 = vmatprep.subr.bf16.mxu0 %v16793_v37  ;;  %v16848_v37 = vld [vmem:[#allocation8 + $0xc60] ss:$72 sps:$4 sm:$0xff]  }
 0x3ca   :  { %11943 = vmatprep.subr.bf16.mxu1 %v16796_v38 }
 0x3cc   :  { %6521 = vmatpush1.bf16.msra.mxu0 %v16791_v40 }
 0x3cd   :  { %11944 = vmatpush1.bf16.msra.mxu1 %v16794_v50  ;;  %6522 = vmatprep.subr.bf16.mxu0 %v16799_v49 }
 0x3ce   :  { %11945 = vmatprep.subr.bf16.mxu1 %v16802_v42  ;;  %v16851_v42 = vld [vmem:[#allocation8 + $0xbd0] ss:$72 sps:$4 sm:$0xff]  }
 0x3d0   :  { %6523 = vmatpush2.bf16.msra.mxu0 %v16797_v48 }
 0x3d1   :  { %11946 = vmatpush2.bf16.msra.mxu1 %v16800_v52  ;;  %6524 = vmatprep.subr.bf16.mxu0 %v16805_v43  ;;  %v16854_v43 = vld [vmem:[#allocation8 + $0xb40] ss:$72 sps:$4 sm:$0xff]  }
 0x3d2   :  { %11947 = vmatprep.subr.bf16.mxu1 %v16808_v4  ;;  %v16859_v4 = vld [vmem:[#allocation8 + $0xab4] ss:$72 sps:$4 sm:$0xff]  }
 0x3d4   :  { %6525 = vmatpush2.bf16.msra.mxu0 %v16803_v44  ;;  %v16857_v44 = vld [vmem:[#allocation8 + $0xab0] ss:$72 sps:$4 sm:$0xff]  }
 0x3d5   :  { %11948 = vmatpush2.bf16.msra.mxu1 %v16806_v26  ;;  %6526 = vmatprep.subr.bf16.mxu0 %v16811_v45  ;;  %v16862_v26 = vld [vmem:[#allocation8 + $0xa24] ss:$72 sps:$4 sm:$0xff]   ;;  %v18134_v45 = vpop.eup %18133 }
 0x3d6   :  { %11949 = vmatprep.subr.bf16.mxu1 %v16814_v9 }
 0x3d8   :  { %6527 = vmatpush2.bf16.msra.mxu0 %v16809_v46 }
 0x3d9   :  { %11950 = vmatpush2.bf16.msra.mxu1 %v16812_v47  ;;  %6528 = vmatprep.subr.bf16.mxu0 %v16817_v10  ;;  %v16860_v47 = vld [vmem:[#allocation8 + $0xa20] ss:$72 sps:$4 sm:$0xff]  }
 0x3da   :  { %11951 = vmatprep.subr.bf16.mxu1 %v16820_v36  ;;  %v16865_v36 = vld [vmem:[#allocation8 + $0x994] ss:$72 sps:$4 sm:$0xff]  }
 0x3dc   :  { %6529 = vmatpush2.bf16.msra.mxu0 %v16815_v53 }
 0x3dd   :  { %11952 = vmatpush2.bf16.msra.mxu1 %v16818_v0  ;;  %6530 = vmatprep.subr.bf16.mxu0 %v16823_v56  ;;  %v16863_v0 = vld [vmem:[#allocation8 + $0x990] ss:$72 sps:$4 sm:$0xff]   ;;  %v16868_v56 = vld [vmem:[#allocation8 + $0x904] ss:$72 sps:$4 sm:$0xff]  }
 0x3de   :  { %11953 = vmatprep.subr.bf16.mxu1 %v16826_v13  ;;  %v16871_v13 = vld [vmem:[#allocation8 + $0x1174] ss:$72 sps:$4 sm:$0xff]  }
 0x3e0   :  { %6531 = vmatpush2.bf16.msra.mxu0 %v16821_v58  ;;  %v16869_v58 = vld [vmem:[#allocation8 + $0x1170] ss:$72 sps:$4 sm:$0xff]  }
 0x3e1   :  { %11954 = vmatpush2.bf16.msra.mxu1 %v16824_v59  ;;  %6532 = vmatprep.subr.bf16.mxu0 %v16829_v63  ;;  %v16874_v59 = vld [vmem:[#allocation8 + $0x10e4] ss:$72 sps:$4 sm:$0xff]   ;;  %v16877_v63 = vld [vmem:[#allocation8 + $0x1054] ss:$72 sps:$4 sm:$0xff]  }
 0x3e2   :  { %11955 = vmatprep.subr.bf16.mxu1 %v16832_v8  ;;  %v16875_v8 = vld [vmem:[#allocation8 + $0x1050] ss:$72 sps:$4 sm:$0xff]  }
 0x3e4   :  { %6533 = vmatpush2.bf16.msra.mxu0 %v16827_v11  ;;  %v16880_v11 = vld [vmem:[#allocation8 + $0xfc4] ss:$72 sps:$4 sm:$0xff]  }
 0x3e5   :  { %11956 = vmatpush2.bf16.msra.mxu1 %v16830_v2  ;;  %6534 = vmatprep.subr.bf16.mxu0 %v16835_v33  ;;  %v16943_v2 = vld [vmem:[#allocation8 + $0x15f4] ss:$72 sps:$4 sm:$0xff]   ;;  %v16878_v33 = vld [vmem:[#allocation8 + $0xfc0] ss:$72 sps:$4 sm:$0xff]  }
 0x3e6   :  { %11957 = vmatprep.subr.bf16.mxu1 %v16838_v5  ;;  %v16941_v5 = vld [vmem:[#allocation8 + $0x15f0] ss:$72 sps:$4 sm:$0xff]  }
 0x3e8   :  { %6535 = vmatpush2.bf16.msra.mxu0 %v16833_v41  ;;  %v16883_v41 = vld [vmem:[#allocation8 + $0xf34] ss:$72 sps:$4 sm:$0xff]  }
 0x3e9   :  { %11958 = vmatpush2.bf16.msra.mxu1 %v16836_v7  ;;  %6536 = vmatprep.subr.bf16.mxu0 %v16841_v20  ;;  %v14445_v7 = vmul.f32 -1.442695, %v18750_v14  ;;  %v16949_v20 = vld [vmem:[#allocation8 + $0x1564] ss:$72 sps:$4 sm:$0xff]   ;;  %v16887_v14 = vld [vmem:[#allocation8 + $0xe10] ss:$72 sps:$4 sm:$0xff]  }
 0x3ea   :  { %11959 = vmatprep.subr.bf16.mxu1 %v16844_v12  ;;  %v16881_v12 = vld [vmem:[#allocation8 + $0xf30] ss:$72 sps:$4 sm:$0xff]  }
 0x3ec   :  { %6537 = vmatpush2.bf16.msra.mxu0 %v16839_v15  ;;  %v16947_v15 = vld [vmem:[#allocation8 + $0x1560] ss:$72 sps:$4 sm:$0xff]  }
 0x3ed   :  { %11960 = vmatpush2.bf16.msra.mxu1 %v16842_v30  ;;  %11970 = vmatprep.subr.bf16.mxu0 %v16847_v35  ;;  %v16886_v30 = vld [vmem:[#allocation8 + $0xea4] ss:$72 sps:$4 sm:$0xff]   ;;  %v16955_v35 = vld [vmem:[#allocation8 + $0x14d4] ss:$72 sps:$4 sm:$0xff]  }
 0x3ee   :  { %12011 = vmatprep.subr.bf16.mxu1 %v16943_v2  ;;  %v17003_v2 = vld [vmem:[#allocation8 + $0x1954] ss:$72 sps:$4 sm:$0xff]  }
 0x3ef   :  { %v6294_v27 = vpop.f32.mrf.mxu0  ;;  %6539 = vmatmul.mubr.bf16.vlgmr.msra.gmra.mxu0 %v18592_v17 }
 0x3f0   :  { %11962 = vmatmul.mubr.bf16.vlgmr.msra.gmra.mxu1 %v18772_v19  ;;  %v18776_v28 = vpop.f32.mrf.mxu1  ;;  %v6295_v32 = vadd.f32 %v6294_v27, %v18763_v62  ;;  %11971 = vmatpush1.bf16.msra.mxu0 %v16845_v18  ;;  %v16856_v62 = vld [vmem:[#allocation8 + $0xb44] ss:$72 sps:$4 sm:$0xff]   ;;  %v16889_v18 = vld [vmem:[#allocation8 + $0xe14] ss:$72 sps:$4 sm:$0xff]  }
 0x3f1   :  { %v6296_v38 = vpop.f32.mrf.mxu0  ;;  %11972 = vmatprep.subr.bf16.mxu0 %v16850_v39  ;;  %12012 = vmatpush1.bf16.msra.mxu1 %v16941_v5  ;;  %v16959_v39 = vld [vmem:[#allocation8 + $0x1440] ss:$72 sps:$4 sm:$0xff]   ;;  %v16967_v27 = vld [vmem:[#allocation8 + $0x13b4] ss:$72 sps:$4 sm:$0xff]   ;;  %v17001_v5 = vld [vmem:[#allocation8 + $0x1950] ss:$72 sps:$4 sm:$0xff]  }
 0x3f2   :  { %v18779_v40 = vpop.f32.mrf.mxu1  ;;  %18135 = vtanh.f32 %v6295_v32  ;;  %v6297_v50 = vadd.f32 %v6296_v38, %v18766_v3  ;;  %12013 = vmatprep.subr.bf16.mxu1 %v16949_v20  ;;  %v18240_v32 = vld [vmem:[#allocation7 + $0x8] sm:$0xff]  ;;  %v16890_v38 = vld [vmem:[#allocation8 + $0xd80] ss:$72 sps:$4 sm:$0xff]   ;;  %v17009_v20 = vld [vmem:[#allocation8 + $0x18c4] ss:$72 sps:$4 sm:$0xff]  }
 0x3f3   :  { %18137 = vrcp.f32 %v6605_v23  ;;  %v6298_v49 = vpop.f32.mrf.mxu0  ;;  %v16892_v23 = vld [vmem:[#allocation8 + $0xd84] ss:$72 sps:$4 sm:$0xff]  }
 0x3f4   :  { %v6339_v17 = vpop.f32.mrf.mxu1  ;;  %18139 = vtanh.f32 %v6297_v50  ;;  %11973 = vmatpush1.bf16.msra.mxu0 %v16848_v37  ;;  %v1089_v37 = vrot.slane %v18240_v32, %v18692_v25  ;;  %v16895_v50 = vld [vmem:[#allocation8 + $0x3fc] ss:$72 sps:$4 sm:$0xff]   ;;  %v1093_v49 = vrot.slane %v18240_v32, %v18695_v29 }
 0x3f5   :  { %v6299_v48 = vpop.f32.mrf.mxu0  ;;  %11974 = vmatprep.subr.bf16.mxu0 %v16853_v55  ;;  %12014 = vmatpush1.bf16.msra.mxu1 %v16947_v15  ;;  %18141 = vpow2.f32 %v14445_v7  ;;  %v16965_v55 = vld [vmem:[#allocation8 + $0x13b0] ss:$72 sps:$4 sm:$0xff]   ;;  %v16973_v17 = vld [vmem:[#allocation8 + $0x1324] ss:$72 sps:$4 sm:$0xff]  }
 0x3f6   :  { %v6340_v52 = vpop.f32.mrf.mxu1  ;;  %12015 = vmatprep.subr.bf16.mxu1 %v16955_v35  ;;  %v6336_v48 = vadd.f32 %v18776_v28, %v1089_v37  ;;  %v17015_v35 = vld [vmem:[#allocation8 + $0x1834] ss:$72 sps:$4 sm:$0xff]  }
 0x3f7   :  { %v6338_v52 = vadd.f32 %v18779_v40, %v1093_v49  ;;  %v16983_v40 = vld [vmem:[#allocation8 + $0x1200] ss:$72 sps:$4 sm:$0xff]   ;;  %v16898_v49 = vld [vmem:[#allocation8 + $0x36c] ss:$72 sps:$4 sm:$0xff]  }
 0x3f8   :  { %11975 = vmatpush1.bf16.msra.mxu0 %v16851_v42 }
 0x3f9   :  { %11976 = vmatprep.subr.bf16.mxu0 %v16856_v62  ;;  %12016 = vmatpush1.bf16.msra.mxu1 %v16953_v24  ;;  %v16971_v62 = vld [vmem:[#allocation8 + $0x1320] ss:$72 sps:$4 sm:$0xff]   ;;  %v17021_v24 = vld [vmem:[#allocation8 + $0x17a4] ss:$72 sps:$4 sm:$0xff]  }
 0x3fa   :  { %12017 = vmatprep.subr.bf16.mxu1 %v16961_v22  ;;  %v17027_v22 = vld [vmem:[#allocation8 + $0x1714] ss:$72 sps:$4 sm:$0xff]  }
 0x3fc   :  { %11977 = vmatpush1.bf16.msra.mxu0 %v16854_v43 }
 0x3fd   :  { %11978 = vmatprep.subr.bf16.mxu0 %v16859_v4  ;;  %12018 = vmatpush1.bf16.msra.mxu1 %v16959_v39  ;;  %v17033_v39 = vld [vmem:[#allocation8 + $0x1684] ss:$72 sps:$4 sm:$0xff]  }
 0x3fe   :  { %12019 = vmatprep.subr.bf16.mxu1 %v16967_v27  ;;  %v17031_v27 = vld [vmem:[#allocation8 + $0x1680] ss:$72 sps:$4 sm:$0xff]  }
 0x3ff   :  { %v18136_v3 = vpop.eup %18135 }
 0x400   :  { %v18138_v9 = vpop.eup %18137  ;;  %v18782_v46 = vmul.f32 %v18136_v3, %v18134_v45  ;;  %11979 = vmatpush1.bf16.msra.mxu0 %v16857_v44  ;;  %v16977_v3 = vld [vmem:[#allocation8 + $0x1290] ss:$72 sps:$4 sm:$0xff]  }
 0x401   :  { %v18140_v10 = vpop.eup %18139  ;;  %11980 = vmatprep.subr.bf16.mxu0 %v16862_v26  ;;  %12020 = vmatpush1.bf16.msra.mxu1 %v16965_v55  ;;  %v16979_v26 = vld [vmem:[#allocation8 + $0x1294] ss:$72 sps:$4 sm:$0xff]   ;;  %v16893_v55 = vld [vmem:[#allocation8 + $0x3f8] ss:$72 sps:$4 sm:$0xff]  }
 0x402   :  { %v18784_v53 = vmul.f32 %v18140_v10, %v18138_v9  ;;  %v18142_v42 = vpop.eup %18141  ;;  %12021 = vmatprep.subr.bf16.mxu1 %v16973_v17  ;;  %v16896_v17 = vld [vmem:[#allocation8 + $0x368] ss:$72 sps:$4 sm:$0xff]  }
 0x403   :  { %v6606_v43 = vadd.f32 1.0, %v18142_v42  ;;  %v16901_v42 = vld [vmem:[#allocation8 + $0x2dc] ss:$72 sps:$4 sm:$0xff]  }
 0x404   :  { %11981 = vmatpush1.bf16.msra.mxu0 %v16860_v47 }
 0x405   :  { %11982 = vmatprep.subr.bf16.mxu0 %v16865_v36  ;;  %12022 = vmatpush1.bf16.msra.mxu1 %v16971_v62  ;;  %18143 = vrcp.f32 %v6606_v43  ;;  %v16904_v62 = vld [vmem:[#allocation8 + $0x24c] ss:$72 sps:$4 sm:$0xff]   ;;  %v16905_v43 = vld [vmem:[#allocation8 + $0x1b8] ss:$72 sps:$4 sm:$0xff]  }
 0x406   :  { %12023 = vmatprep.subr.bf16.mxu1 %v16979_v26  ;;  %v16913_v26 = vld [vmem:[#allocation8 + $0x9c] ss:$72 sps:$4 sm:$0xff]  }
 0x408   :  { %11983 = vmatpush1.bf16.msra.mxu0 %v16863_v0 }
 0x409   :  { %11984 = vmatprep.subr.bf16.mxu0 %v16868_v56  ;;  %12024 = vmatpush1.bf16.msra.mxu1 %v16977_v3  ;;  %v16985_v56 = vld [vmem:[#allocation8 + $0x1204] ss:$72 sps:$4 sm:$0xff]  }
 0x40a   :  { %12025 = vmatprep.subr.bf16.mxu1 %v16985_v56  ;;  %v16914_v56 = vld [vmem:[#allocation8 + $0x8] ss:$72 sps:$4 sm:$0xff]  }
 0x40c   :  { %11985 = vmatpush1.bf16.msra.mxu0 %v16866_v57 }
 0x40d   :  { %11986 = vmatprep.subr.bf16.mxu0 %v16871_v13  ;;  %12026 = vmatpush1.bf16.msra.mxu1 %v16983_v40  ;;  %v16919_v40 = vld [vmem:[#allocation8 + $0x87c] ss:$72 sps:$4 sm:$0xff]  }
 0x410   :  { %11987 = vmatpush2.bf16.msra.mxu0 %v16869_v58 }
 0x411   :  { %11988 = vmatprep.subr.bf16.mxu0 %v16874_v59 }
 0x414   :  { %11989 = vmatpush2.bf16.msra.mxu0 %v16872_v60  ;;  %v16991_v60 = vld [vmem:[#allocation8 + $0x1a74] ss:$72 sps:$4 sm:$0xff]  }
 0x415   :  { %11990 = vmatprep.subr.bf16.mxu0 %v16877_v63  ;;  %v16989_v63 = vld [vmem:[#allocation8 + $0x1a70] ss:$72 sps:$4 sm:$0xff]   ;;  %12027 = vmatprep.subr.bf16.mxu1 %v16991_v60 }
 0x416   :  { %12028 = vmatpush2.bf16.msra.mxu1 %v16989_v63  ;;  %v16920_v60 = vld [vmem:[#allocation8 + $0x7e8] ss:$72 sps:$4 sm:$0xff]   ;;  %v16925_v63 = vld [vmem:[#allocation8 + $0x75c] ss:$72 sps:$4 sm:$0xff]  }
 0x418   :  { %11991 = vmatpush2.bf16.msra.mxu0 %v16875_v8  ;;  %v16997_v8 = vld [vmem:[#allocation8 + $0x19e4] ss:$72 sps:$4 sm:$0xff]  }
 0x419   :  { %11992 = vmatprep.subr.bf16.mxu0 %v16880_v11  ;;  %v16995_v11 = vld [vmem:[#allocation8 + $0x19e0] ss:$72 sps:$4 sm:$0xff]   ;;  %12029 = vmatprep.subr.bf16.mxu1 %v16997_v8 }
 0x41a   :  { %12030 = vmatpush2.bf16.msra.mxu1 %v16995_v11  ;;  %v16923_v8 = vld [vmem:[#allocation8 + $0x758] ss:$72 sps:$4 sm:$0xff]   ;;  %v16928_v11 = vld [vmem:[#allocation8 + $0x6cc] ss:$72 sps:$4 sm:$0xff]  }
 0x41b   :  { %12031 = vmatprep.subr.bf16.mxu1 %v17003_v2  ;;  %v16926_v2 = vld [vmem:[#allocation8 + $0x6c8] ss:$72 sps:$4 sm:$0xff]  }
 0x41c   :  { %11993 = vmatpush2.bf16.msra.mxu0 %v16878_v33  ;;  %v18144_v33 = vpop.eup %18143 }
 0x41d   :  { %11994 = vmatprep.subr.bf16.mxu0 %v16883_v41 }
 0x41e   :  { %12032 = vmatpush2.bf16.msra.mxu1 %v17001_v5  ;;  %v16929_v5 = vld [vmem:[#allocation8 + $0x638] ss:$72 sps:$4 sm:$0xff]  }
 0x41f   :  { %12033 = vmatprep.subr.bf16.mxu1 %v17009_v20  ;;  %v16932_v20 = vld [vmem:[#allocation8 + $0x5a8] ss:$72 sps:$4 sm:$0xff]  }
 0x420   :  { %11995 = vmatpush2.bf16.msra.mxu0 %v16881_v12  ;;  %v17007_v12 = vld [vmem:[#allocation8 + $0x18c0] ss:$72 sps:$4 sm:$0xff]  }
 0x421   :  { %11996 = vmatprep.subr.bf16.mxu0 %v16886_v30 }
 0x422   :  { %12034 = vmatpush2.bf16.msra.mxu1 %v17007_v12  ;;  %v16937_v12 = vld [vmem:[#allocation8 + $0x51c] ss:$72 sps:$4 sm:$0xff]  }
 0x423   :  { %12035 = vmatprep.subr.bf16.mxu1 %v17015_v35  ;;  %v16938_v35 = vld [vmem:[#allocation8 + $0x488] ss:$72 sps:$4 sm:$0xff]  }
 0x424   :  { %11997 = vmatpush2.bf16.msra.mxu0 %v16884_v16  ;;  %v17013_v16 = vld [vmem:[#allocation8 + $0x1830] ss:$72 sps:$4 sm:$0xff]  }
 0x425   :  { %11998 = vmatprep.subr.bf16.mxu0 %v16889_v18  ;;  %v17019_v18 = vld [vmem:[#allocation8 + $0x17a0] ss:$72 sps:$4 sm:$0xff]  }
 0x426   :  { %12036 = vmatpush2.bf16.msra.mxu1 %v17013_v16  ;;  %v16946_v16 = vld [vmem:[#allocation8 + $0x15fc] ss:$72 sps:$4 sm:$0xff]  }
 0x427   :  { %12037 = vmatprep.subr.bf16.mxu1 %v17021_v24  ;;  %v16944_v24 = vld [vmem:[#allocation8 + $0x15f8] ss:$72 sps:$4 sm:$0xff]  }
 0x428   :  { %11999 = vmatpush2.bf16.msra.mxu0 %v16887_v14  ;;  %v17025_v14 = vld [vmem:[#allocation8 + $0x1710] ss:$72 sps:$4 sm:$0xff]  }
 0x429   :  { %12000 = vmatprep.subr.bf16.mxu0 %v16892_v23 }
 0x42a   :  { %12038 = vmatpush2.bf16.msra.mxu1 %v17019_v18  ;;  %v16952_v18 = vld [vmem:[#allocation8 + $0x156c] ss:$72 sps:$4 sm:$0xff]  }
 0x42b   :  { %12039 = vmatprep.subr.bf16.mxu1 %v17027_v22  ;;  %v16950_v22 = vld [vmem:[#allocation8 + $0x1568] ss:$72 sps:$4 sm:$0xff]  }
 0x42c   :  { %12001 = vmatpush2.bf16.msra.mxu0 %v16890_v38 }
 0x42d   :  { %12052 = vmatprep.subr.bf16.mxu0 %v16895_v50  ;;  %v18798_v50 = vpack.c.bf16 %v18734_v61, %v18734_v61  ;;  %v16907_v61 = vld [vmem:[#allocation8 + $0x1bc] ss:$72 sps:$4 sm:$0xff]  }
 0x42e   :  { %12040 = vmatpush2.bf16.msra.mxu1 %v17025_v14  ;;  %v16958_v14 = vld [vmem:[#allocation8 + $0x14dc] ss:$72 sps:$4 sm:$0xff]  }
 0x42f   :  { %v6376_v4 = vpop.f32.mrf.mxu0  ;;  %12041 = vmatprep.subr.bf16.mxu1 %v17033_v39  ;;  %v16956_v39 = vld [vmem:[#allocation8 + $0x14d8] ss:$72 sps:$4 sm:$0xff]  }
 0x430   :  { %v6417_v44 = vpop.f32.mrf.mxu1  ;;  %v6377_v45 = vadd.f32 %v6376_v4, %v6336_v48  ;;  %v16899_v48 = vld [vmem:[#allocation8 + $0x2d8] ss:$72 sps:$4 sm:$0xff]   ;;  %v16910_v4 = vld [vmem:[#allocation8 + $0x12c] ss:$72 sps:$4 sm:$0xff]  }
 0x431   :  { %v6378_v9 = vpop.f32.mrf.mxu0 }
 0x432   :  { %v6419_v47 = vpop.f32.mrf.mxu1  ;;  %v6379_v10 = vadd.f32 %v6378_v9, %v6338_v52  ;;  %v6418_v36 = vadd.f32 %v6417_v44, %v6377_v45  ;;  %12042 = vmatpush2.bf16.msra.mxu1 %v17031_v27  ;;  %v16902_v52 = vld [vmem:[#allocation8 + $0x248] ss:$72 sps:$4 sm:$0xff]   ;;  %v16911_v9 = vld [vmem:[#allocation8 + $0x98] ss:$72 sps:$4 sm:$0xff]   ;;  %v1026_v27 = vld [vmem:[#allocation7 + $0x10] sm:$0x3] }
 0x433   :  { %v6380_v28 = vpop.f32.mrf.mxu0  ;;  %v16908_v44 = vld [vmem:[#allocation8 + $0x128] ss:$72 sps:$4 sm:$0xff]  }
 0x434   :  { %v6421_v0 = vpop.f32.mrf.mxu1  ;;  %18145 = vtanh.f32 %v6418_v36  ;;  %v6420_v57 = vadd.f32 %v6419_v47, %v6379_v10  ;;  %v16916_v36 = vld [vmem:[#allocation8 + $0xc] ss:$72 sps:$4 sm:$0xff]  }
 0x435   :  { %v6381_v13 = vpop.f32.mrf.mxu0 }
 0x436   :  { %v6422_v58 = vpop.f32.mrf.mxu1  ;;  %v14446_v59 = vmul.f32 -1.442695, %v6420_v57 }
 0x437   :  { %v16917_v58 = vld [vmem:[#allocation8 + $0x878] ss:$72 sps:$4 sm:$0xff]  }
 0x438   :  { %18147 = vpow2.f32 %v14446_v59  ;;  %v16922_v59 = vld [vmem:[#allocation8 + $0x7ec] ss:$72 sps:$4 sm:$0xff]  }
 0x439   :  { %18149 = vtanh.f32 %v18782_v46  ;;  %v17039_v46 = vld [vmem:[#allocation8 + $0xcfc] ss:$72 sps:$4 sm:$0xff]  }
 0x43a   :  { %12093 = vmatprep.subr.bf16.mxu1 %v17039_v46  ;;  %v1097_v46 = vrot.slane %v1026_v27, %v18605_v31 }
 0x441   :  { %v18146_v41 = vpop.eup %18145 }
 0x442   :  { %v18791_v7 = vmul.f32 %v18146_v41, %v18144_v33  ;;  %v16931_v33 = vld [vmem:[#allocation8 + $0x63c] ss:$72 sps:$4 sm:$0xff]   ;;  %v16934_v41 = vld [vmem:[#allocation8 + $0x5ac] ss:$72 sps:$4 sm:$0xff]  }
 0x445   :  { %v18148_v15 = vpop.eup %18147 }
 0x446   :  { %v6625_v30 = vadd.f32 1.0, %v18148_v15  ;;  %v18150_v23 = vpop.eup %18149  ;;  %v16935_v15 = vld [vmem:[#allocation8 + $0x518] ss:$72 sps:$4 sm:$0xff]  }
 0x448   :  { %18151 = vrcp.f32 %v6625_v30  ;;  %v16940_v30 = vld [vmem:[#allocation8 + $0x48c] ss:$72 sps:$4 sm:$0xff]  }
 0x455   :  { %v18152_v32 = vpop.eup %18151 }
 0x456   :  { %v6640_v37 = vmul.f32 %v18152_v32, %v18150_v23  ;;  %v16964_v23 = vld [vmem:[#allocation8 + $0x144c] ss:$72 sps:$4 sm:$0xff]   ;;  %v16962_v32 = vld [vmem:[#allocation8 + $0x1448] ss:$72 sps:$4 sm:$0xff]  }
 0x458   :  { %v18794_v38 = vpack.c.bf16 %v6640_v37, %v6640_v37  ;;  %v16970_v37 = vld [vmem:[#allocation8 + $0x13bc] ss:$72 sps:$4 sm:$0xff]  }
 0x45a   :  { %12002 = vmatprep.mubr.bf16.mxu0 %v18794_v38 }
 0x45b   :  { %12003 = vmatmul.mubr.bf16.vlgmr.msra.gmra.mxu0 %v18798_v50 }
 0x45c   :  { %12053 = vmatpush1.bf16.msra.mxu0 %v16893_v55  ;;  %12084 = vmatprep.mubr.bf16.mxu0 %v18758_v51  ;;  %v1101_v55 = vrot.slane %v1026_v27, %v18608_v34 }
 0x45d   :  { %12054 = vmatprep.subr.bf16.mxu0 %v16898_v49  ;;  %v16968_v49 = vld [vmem:[#allocation8 + $0x13b8] ss:$72 sps:$4 sm:$0xff]  }
 0x460   :  { %12055 = vmatpush1.bf16.msra.mxu0 %v16896_v17  ;;  %v16976_v17 = vld [vmem:[#allocation8 + $0x132c] ss:$72 sps:$4 sm:$0xff]  }
 0x461   :  { %12056 = vmatprep.subr.bf16.mxu0 %v16901_v42 }
 0x464   :  { %12057 = vmatpush1.bf16.msra.mxu0 %v16899_v48 }
 0x465   :  { %12058 = vmatprep.subr.bf16.mxu0 %v16904_v62  ;;  %v16974_v62 = vld [vmem:[#allocation8 + $0x1328] ss:$72 sps:$4 sm:$0xff]  }
 0x468   :  { %12059 = vmatpush1.bf16.msra.mxu0 %v16902_v52  ;;  %v16982_v52 = vld [vmem:[#allocation8 + $0x129c] ss:$72 sps:$4 sm:$0xff]  }
 0x469   :  { %12060 = vmatprep.subr.bf16.mxu0 %v16907_v61 }
 0x46c   :  { %12061 = vmatpush1.bf16.msra.mxu0 %v16905_v43 }
 0x46d   :  { %12062 = vmatprep.subr.bf16.mxu0 %v16910_v4 }
 0x46f   :  { %v18803_v45 = vpop.f32.mrf.mxu0 }
 0x470   :  { %v18805_v3 = vpop.f32.mrf.mxu1  ;;  %12063 = vmatpush1.bf16.msra.mxu0 %v16908_v44  ;;  %v6459_v42 = vadd.f32 %v18803_v45, %v1097_v46  ;;  %v16988_v45 = vld [vmem:[#allocation8 + $0x120c] ss:$72 sps:$4 sm:$0xff]   ;;  %v17037_v46 = vld [vmem:[#allocation8 + $0xcf8] ss:$72 sps:$4 sm:$0xff]  }
 0x471   :  { %v18807_v47 = vpop.f32.mrf.mxu0  ;;  %12064 = vmatprep.subr.bf16.mxu0 %v16913_v26 }
 0x472   :  { %v18809_v10 = vpop.f32.mrf.mxu1  ;;  %v6461_v48 = vadd.f32 %v18807_v47, %v1101_v55  ;;  %v6500_v61 = vadd.f32 %v18805_v3, %v6459_v42  ;;  %v16986_v3 = vld [vmem:[#allocation8 + $0x1208] ss:$72 sps:$4 sm:$0xff]   ;;  %v17045_v42 = vld [vmem:[#allocation8 + $0xc6c] ss:$72 sps:$4 sm:$0xff]  }
 0x473   :  { %v6462_v28 = vpop.f32.mrf.mxu0 }
 0x474   :  { %v6503_v0 = vpop.f32.mrf.mxu1  ;;  %12065 = vmatpush1.bf16.msra.mxu0 %v16911_v9  ;;  %v6502_v44 = vadd.f32 %v18809_v10, %v6461_v48  ;;  %v16980_v9 = vld [vmem:[#allocation8 + $0x1298] ss:$72 sps:$4 sm:$0xff]   ;;  %v16994_v10 = vld [vmem:[#allocation8 + $0x1a7c] ss:$72 sps:$4 sm:$0xff]  }
 0x475   :  { %v6463_v57 = vpop.f32.mrf.mxu0  ;;  %12066 = vmatprep.subr.bf16.mxu0 %v16916_v36  ;;  %v17048_v48 = vld [vmem:[#allocation8 + $0xc74] ss:$72 sps:$4 sm:$0xff]  }
 0x476   :  { %v6504_v13 = vpop.f32.mrf.mxu1 }
 0x478   :  { %12067 = vmatpush1.bf16.msra.mxu0 %v16914_v56 }
 0x479   :  { %12068 = vmatprep.subr.bf16.mxu0 %v16919_v40 }
 0x47c   :  { %12069 = vmatpush2.bf16.msra.mxu0 %v16917_v58 }
 0x47d   :  { %12070 = vmatprep.subr.bf16.mxu0 %v16922_v59  ;;  %v16992_v59 = vld [vmem:[#allocation8 + $0x1a78] ss:$72 sps:$4 sm:$0xff]  }
 0x480   :  { %12071 = vmatpush2.bf16.msra.mxu0 %v16920_v60  ;;  %v17000_v60 = vld [vmem:[#allocation8 + $0x19ec] ss:$72 sps:$4 sm:$0xff]  }
 0x481   :  { %12072 = vmatprep.subr.bf16.mxu0 %v16925_v63  ;;  %v16998_v63 = vld [vmem:[#allocation8 + $0x19e8] ss:$72 sps:$4 sm:$0xff]  }
 0x484   :  { %12073 = vmatpush2.bf16.msra.mxu0 %v16923_v8  ;;  %v17006_v8 = vld [vmem:[#allocation8 + $0x195c] ss:$72 sps:$4 sm:$0xff]  }
 0x485   :  { %12074 = vmatprep.subr.bf16.mxu0 %v16928_v11  ;;  %v17004_v11 = vld [vmem:[#allocation8 + $0x1958] ss:$72 sps:$4 sm:$0xff]  }
 0x488   :  { %12075 = vmatpush2.bf16.msra.mxu0 %v16926_v2 }
 0x489   :  { %12076 = vmatprep.subr.bf16.mxu0 %v16931_v33  ;;  %v17012_v33 = vld [vmem:[#allocation8 + $0x18cc] ss:$72 sps:$4 sm:$0xff]  }
 0x48c   :  { %12077 = vmatpush2.bf16.msra.mxu0 %v16929_v5 }
 0x48d   :  { %12078 = vmatprep.subr.bf16.mxu0 %v16934_v41 }
 0x490   :  { %12079 = vmatpush2.bf16.msra.mxu0 %v16932_v20 }
 0x491   :  { %12080 = vmatprep.subr.bf16.mxu0 %v16937_v12  ;;  %v17010_v12 = vld [vmem:[#allocation8 + $0x18c8] ss:$72 sps:$4 sm:$0xff]  }
 0x494   :  { %12081 = vmatpush2.bf16.msra.mxu0 %v16935_v15  ;;  %v17018_v15 = vld [vmem:[#allocation8 + $0x183c] ss:$72 sps:$4 sm:$0xff]  }
 0x495   :  { %12082 = vmatprep.subr.bf16.mxu0 %v16940_v30  ;;  %v17016_v30 = vld [vmem:[#allocation8 + $0x1838] ss:$72 sps:$4 sm:$0xff]  }
 0x498   :  { %12083 = vmatpush2.bf16.msra.mxu0 %v16938_v35  ;;  %v17024_v35 = vld [vmem:[#allocation8 + $0x17ac] ss:$72 sps:$4 sm:$0xff]  }
 0x499   :  { %12134 = vmatprep.subr.bf16.mxu0 %v16946_v16  ;;  %v17022_v16 = vld [vmem:[#allocation8 + $0x17a8] ss:$72 sps:$4 sm:$0xff]  }
 0x49b   :  { %12085 = vmatmul.mubr.bf16.vlgmr.msra.gmra.mxu0 %v18772_v19 }
 0x49c   :  { %12135 = vmatpush1.bf16.msra.mxu0 %v16944_v24  ;;  %v17030_v24 = vld [vmem:[#allocation8 + $0x171c] ss:$72 sps:$4 sm:$0xff]  }
 0x49d   :  { %12136 = vmatprep.subr.bf16.mxu0 %v16952_v18 }
 0x4a0   :  { %12137 = vmatpush1.bf16.msra.mxu0 %v16950_v22 }
 0x4a1   :  { %12138 = vmatprep.subr.bf16.mxu0 %v16958_v14  ;;  %v17036_v14 = vld [vmem:[#allocation8 + $0x168c] ss:$72 sps:$4 sm:$0xff]  }
 0x4a4   :  { %12139 = vmatpush1.bf16.msra.mxu0 %v16956_v39 }
 0x4a5   :  { %12140 = vmatprep.subr.bf16.mxu0 %v16964_v23 }
 0x4a8   :  { %12141 = vmatpush1.bf16.msra.mxu0 %v16962_v32  ;;  %v17034_v32 = vld [vmem:[#allocation8 + $0x1688] ss:$72 sps:$4 sm:$0xff]  }
 0x4a9   :  { %12142 = vmatprep.subr.bf16.mxu0 %v16970_v37 }
 0x4ac   :  { %12143 = vmatpush1.bf16.msra.mxu0 %v16968_v49  ;;  %v17042_v49 = vld [vmem:[#allocation8 + $0xd04] ss:$72 sps:$4 sm:$0xff]  }
 0x4ad   :  { %12144 = vmatprep.subr.bf16.mxu0 %v16976_v17  ;;  %v17040_v17 = vld [vmem:[#allocation8 + $0xd00] ss:$72 sps:$4 sm:$0xff]  }
 0x4af   :  { %v6540_v43 = vpop.f32.mrf.mxu0 }
 0x4b0   :  { %v18817_v4 = vpop.f32.mrf.mxu1  ;;  %v6541_v26 = vadd.f32 %v6540_v43, %v6500_v61  ;;  %12145 = vmatpush1.bf16.msra.mxu0 %v16974_v62  ;;  %v17043_v62 = vld [vmem:[#allocation8 + $0xc68] ss:$72 sps:$4 sm:$0xff]   ;;  %v17054_v43 = vld [vmem:[#allocation8 + $0xbe4] ss:$72 sps:$4 sm:$0xff]  }
 0x4b1   :  { %v6542_v36 = vpop.f32.mrf.mxu0  ;;  %12146 = vmatprep.subr.bf16.mxu0 %v16982_v52  ;;  %v17051_v52 = vld [vmem:[#allocation8 + $0xbdc] ss:$72 sps:$4 sm:$0xff]   ;;  %v17046_v61 = vld [vmem:[#allocation8 + $0xc70] ss:$72 sps:$4 sm:$0xff]  }
 0x4b2   :  { %v18820_v28 = vpop.f32.mrf.mxu1  ;;  %v14447_v47 = vmul.f32 -1.442695, %v6541_v26  ;;  %v6543_v0 = vadd.f32 %v6542_v36, %v6502_v44  ;;  %v17049_v44 = vld [vmem:[#allocation8 + $0xbd8] ss:$72 sps:$4 sm:$0xff]   ;;  %v17057_v26 = vld [vmem:[#allocation8 + $0xb4c] ss:$72 sps:$4 sm:$0xff]  }
 0x4b3   :  { %v6544_v56 = vpop.f32.mrf.mxu0  ;;  %v17060_v36 = vld [vmem:[#allocation8 + $0xb54] ss:$72 sps:$4 sm:$0xff]  }
 0x4b4   :  { %v11967_v57 = vpop.f32.mrf.mxu1  ;;  %18153 = vpow2.f32 %v14447_v47  ;;  %v14448_v40 = vmul.f32 -1.442695, %v6543_v0  ;;  %12147 = vmatpush1.bf16.msra.mxu0 %v16980_v9  ;;  %v17052_v9 = vld [vmem:[#allocation8 + $0xbe0] ss:$72 sps:$4 sm:$0xff]   ;;  %v17063_v47 = vld [vmem:[#allocation8 + $0xabc] ss:$72 sps:$4 sm:$0xff]  }
 0x4b5   :  { %v6545_v13 = vpop.f32.mrf.mxu0  ;;  %12148 = vmatprep.subr.bf16.mxu0 %v16988_v45  ;;  %v17055_v45 = vld [vmem:[#allocation8 + $0xb48] ss:$72 sps:$4 sm:$0xff]   ;;  %v17066_v56 = vld [vmem:[#allocation8 + $0xac4] ss:$72 sps:$4 sm:$0xff]   ;;  %v17061_v57 = vld [vmem:[#allocation8 + $0xab8] ss:$72 sps:$4 sm:$0xff]  }
 0x4b6   :  { %v11968_v58 = vpop.f32.mrf.mxu1  ;;  %18155 = vpow2.f32 %v14448_v40  ;;  %v17058_v0 = vld [vmem:[#allocation8 + $0xb50] ss:$72 sps:$4 sm:$0xff]   ;;  %v17069_v40 = vld [vmem:[#allocation8 + $0xa2c] ss:$72 sps:$4 sm:$0xff]  }
 0x4b7   :  { %18157 = vtanh.f32 %v18784_v53  ;;  %v17028_v53 = vld [vmem:[#allocation8 + $0x1718] ss:$72 sps:$4 sm:$0xff]   ;;  %v17072_v13 = vld [vmem:[#allocation8 + $0xa34] ss:$72 sps:$4 sm:$0xff]   ;;  %v17067_v58 = vld [vmem:[#allocation8 + $0xa28] ss:$72 sps:$4 sm:$0xff]  }
 0x4b8   :  { %12149 = vmatpush1.bf16.msra.mxu0 %v16986_v3  ;;  %v17064_v3 = vld [vmem:[#allocation8 + $0xac0] ss:$72 sps:$4 sm:$0xff]  }
 0x4b9   :  { %12150 = vmatprep.subr.bf16.mxu0 %v16994_v10  ;;  %v17075_v10 = vld [vmem:[#allocation8 + $0x99c] ss:$72 sps:$4 sm:$0xff]  }
 0x4bc   :  { %12151 = vmatpush2.bf16.msra.mxu0 %v16992_v59  ;;  %v17070_v59 = vld [vmem:[#allocation8 + $0xa30] ss:$72 sps:$4 sm:$0xff]  }
 0x4bd   :  { %12152 = vmatprep.subr.bf16.mxu0 %v17000_v60  ;;  %v17078_v60 = vld [vmem:[#allocation8 + $0x9a4] ss:$72 sps:$4 sm:$0xff]  }
 0x4c0   :  { %12153 = vmatpush2.bf16.msra.mxu0 %v16998_v63  ;;  %v17073_v63 = vld [vmem:[#allocation8 + $0x998] ss:$72 sps:$4 sm:$0xff]  }
 0x4c1   :  { %v18154_v2 = vpop.eup %18153  ;;  %12154 = vmatprep.subr.bf16.mxu0 %v17006_v8  ;;  %v17081_v8 = vld [vmem:[#allocation8 + $0x90c] ss:$72 sps:$4 sm:$0xff]  }
 0x4c2   :  { %v6626_v5 = vadd.f32 1.0, %v18154_v2  ;;  %v17084_v2 = vld [vmem:[#allocation8 + $0x914] ss:$72 sps:$4 sm:$0xff]  }
 0x4c3   :  { %v18156_v41 = vpop.eup %18155 }
 0x4c4   :  { %18159 = vrcp.f32 %v6626_v5  ;;  %v6627_v20 = vadd.f32 1.0, %v18156_v41  ;;  %12155 = vmatpush2.bf16.msra.mxu0 %v17004_v11  ;;  %v18158_v18 = vpop.eup %18157  ;;  %v17076_v11 = vld [vmem:[#allocation8 + $0x9a0] ss:$72 sps:$4 sm:$0xff]   ;;  %v17087_v5 = vld [vmem:[#allocation8 + $0x117c] ss:$72 sps:$4 sm:$0xff]  }
 0x4c5   :  { %18161 = vtanh.f32 %v18791_v7  ;;  %12156 = vmatprep.subr.bf16.mxu0 %v17012_v33  ;;  %v17079_v33 = vld [vmem:[#allocation8 + $0x908] ss:$72 sps:$4 sm:$0xff]  }
 0x4c6   :  { %18163 = vrcp.f32 %v6627_v20  ;;  %v17082_v41 = vld [vmem:[#allocation8 + $0x910] ss:$72 sps:$4 sm:$0xff]   ;;  %v17090_v20 = vld [vmem:[#allocation8 + $0x1184] ss:$72 sps:$4 sm:$0xff]  }
 0x4c8   :  { %12157 = vmatpush2.bf16.msra.mxu0 %v17010_v12  ;;  %v17085_v12 = vld [vmem:[#allocation8 + $0x1178] ss:$72 sps:$4 sm:$0xff]  }
 0x4c9   :  { %12158 = vmatprep.subr.bf16.mxu0 %v17018_v15  ;;  %v17093_v15 = vld [vmem:[#allocation8 + $0x10ec] ss:$72 sps:$4 sm:$0xff]  }
 0x4cc   :  { %12159 = vmatpush2.bf16.msra.mxu0 %v17016_v30  ;;  %v17088_v30 = vld [vmem:[#allocation8 + $0x1180] ss:$72 sps:$4 sm:$0xff]  }
 0x4cd   :  { %12160 = vmatprep.subr.bf16.mxu0 %v17024_v35  ;;  %v17096_v35 = vld [vmem:[#allocation8 + $0x10f4] ss:$72 sps:$4 sm:$0xff]  }
 0x4d0   :  { %12161 = vmatpush2.bf16.msra.mxu0 %v17022_v16  ;;  %v17091_v16 = vld [vmem:[#allocation8 + $0x10e8] ss:$72 sps:$4 sm:$0xff]  }
 0x4d1   :  { %v18160_v22 = vpop.eup %18159  ;;  %12162 = vmatprep.subr.bf16.mxu0 %v17030_v24  ;;  %v17099_v24 = vld [vmem:[#allocation8 + $0x105c] ss:$72 sps:$4 sm:$0xff]  }
 0x4d2   :  { %v18162_v39 = vpop.eup %18161  ;;  %v6641_v23 = vmul.f32 %v18160_v22, %v18158_v18  ;;  %v17094_v18 = vld [vmem:[#allocation8 + $0x10f0] ss:$72 sps:$4 sm:$0xff]  }
 0x4d3   :  { %v18164_v7 = vpop.eup %18163  ;;  %v17097_v22 = vld [vmem:[#allocation8 + $0x1058] ss:$72 sps:$4 sm:$0xff]  }
 0x4d4   :  { %v6642_v27 = vmul.f32 %v18164_v7, %v18162_v39  ;;  %12163 = vmatpush2.bf16.msra.mxu0 %v17028_v53  ;;  %v18826_v55 = vpack.c.bf16 %v6641_v23, %v6641_v23  ;;  %v17102_v53 = vld [vmem:[#allocation8 + $0x1064] ss:$72 sps:$4 sm:$0xff]   ;;  %v17100_v39 = vld [vmem:[#allocation8 + $0x1060] ss:$72 sps:$4 sm:$0xff]   ;;  %v17108_v23 = vld [vmem:[#allocation8 + $0xfd4] ss:$72 sps:$4 sm:$0xff]  }
 0x4d5   :  { %12164 = vmatprep.subr.bf16.mxu0 %v17036_v14  ;;  %v17105_v14 = vld [vmem:[#allocation8 + $0xfcc] ss:$72 sps:$4 sm:$0xff]   ;;  %v17103_v7 = vld [vmem:[#allocation8 + $0xfc8] ss:$72 sps:$4 sm:$0xff]  }
 0x4d6   :  { %v18824_v37 = vpack.c.bf16 %v6642_v27, %v6642_v27  ;;  %v17111_v27 = vld [vmem:[#allocation8 + $0xf3c] ss:$72 sps:$4 sm:$0xff]  }
 0x4d8   :  { %12165 = vmatpush2.bf16.msra.mxu0 %v17034_v32  ;;  %12043 = vmatprep.mubr.bf16.mxu1 %v18824_v37  ;;  %v17106_v32 = vld [vmem:[#allocation8 + $0xfd0] ss:$72 sps:$4 sm:$0xff]  }
 0x4d9   :  { %12166 = vmatprep.mubr.bf16.mxu0 %v18824_v37  ;;  %12044 = vmatmul.mubr.bf16.vlgmr.msra.gmra.mxu1 %v18826_v55 }
 0x4da   :  { %12094 = vmatpush1.bf16.msra.mxu1 %v17037_v46  ;;  %12125 = vmatprep.mubr.bf16.mxu1 %v18794_v38  ;;  %v17114_v46 = vld [vmem:[#allocation8 + $0xf44] ss:$72 sps:$4 sm:$0xff]  }
 0x4db   :  { %12167 = vmatmul.mubr.bf16.vlgmr.msra.gmra.mxu0 %v18826_v55  ;;  %12216 = vmatprep.subr.bf16.mxu0 %v17042_v49  ;;  %v17109_v49 = vld [vmem:[#allocation8 + $0xf38] ss:$72 sps:$4 sm:$0xff]  }
 0x4dc   :  { %12217 = vmatpush1.bf16.msra.mxu0 %v17040_v17  ;;  %12248 = vmatprep.mubr.bf16.mxu0 %v18794_v38  ;;  %v17117_v17 = vld [vmem:[#allocation8 + $0xeac] ss:$72 sps:$4 sm:$0xff]  }
 0x4dd   :  { %12095 = vmatprep.subr.bf16.mxu1 %v17045_v42  ;;  %12218 = vmatprep.subr.bf16.mxu0 %v17048_v48  ;;  %v17112_v42 = vld [vmem:[#allocation8 + $0xf40] ss:$72 sps:$4 sm:$0xff]   ;;  %v17120_v48 = vld [vmem:[#allocation8 + $0xeb4] ss:$72 sps:$4 sm:$0xff]  }
 0x4de   :  { %12096 = vmatpush1.bf16.msra.mxu1 %v17043_v62  ;;  %v17115_v62 = vld [vmem:[#allocation8 + $0xea8] ss:$72 sps:$4 sm:$0xff]  }
 0x4df   :  { %12097 = vmatprep.subr.bf16.mxu1 %v17051_v52  ;;  %v17123_v52 = vld [vmem:[#allocation8 + $0xe1c] ss:$72 sps:$4 sm:$0xff]  }
 0x4e0   :  { %12219 = vmatpush1.bf16.msra.mxu0 %v17046_v61  ;;  %v17118_v61 = vld [vmem:[#allocation8 + $0xeb0] ss:$72 sps:$4 sm:$0xff]  }
 0x4e1   :  { %12220 = vmatprep.subr.bf16.mxu0 %v17054_v43  ;;  %v17126_v43 = vld [vmem:[#allocation8 + $0xe24] ss:$72 sps:$4 sm:$0xff]  }
 0x4e2   :  { %12098 = vmatpush1.bf16.msra.mxu1 %v17049_v44  ;;  %v17121_v44 = vld [vmem:[#allocation8 + $0xe18] ss:$72 sps:$4 sm:$0xff]  }
 0x4e3   :  { %12099 = vmatprep.subr.bf16.mxu1 %v17057_v26  ;;  %v17129_v26 = vld [vmem:[#allocation8 + $0xd8c] ss:$72 sps:$4 sm:$0xff]  }
 0x4e4   :  { %12221 = vmatpush1.bf16.msra.mxu0 %v17052_v9  ;;  %v17124_v9 = vld [vmem:[#allocation8 + $0xe20] ss:$72 sps:$4 sm:$0xff]  }
 0x4e5   :  { %12222 = vmatprep.subr.bf16.mxu0 %v17060_v36  ;;  %v17132_v36 = vld [vmem:[#allocation8 + $0xd94] ss:$72 sps:$4 sm:$0xff]  }
 0x4e6   :  { %12100 = vmatpush1.bf16.msra.mxu1 %v17055_v45  ;;  %v17127_v45 = vld [vmem:[#allocation8 + $0xd88] ss:$72 sps:$4 sm:$0xff]  }
 0x4e7   :  { %12101 = vmatprep.subr.bf16.mxu1 %v17063_v47  ;;  %v18834_v47 = vld [vmem:[#allocation10] sm:$0xff] }
 0x4e8   :  { %12223 = vmatpush1.bf16.msra.mxu0 %v17058_v0  ;;  %v17135_v0 = vld [vmem:[#allocation8 + $0x404] ss:$72 sps:$4 sm:$0xff]  }
 0x4e9   :  { %12224 = vmatprep.subr.bf16.mxu0 %v17066_v56  ;;  %v17130_v56 = vld [vmem:[#allocation8 + $0xd90] ss:$72 sps:$4 sm:$0xff]  }
 0x4ea   :  { %12102 = vmatpush1.bf16.msra.mxu1 %v17061_v57  ;;  %v17138_v57 = vld [vmem:[#allocation8 + $0x40c] ss:$72 sps:$4 sm:$0xff]  }
 0x4eb   :  { %12103 = vmatprep.subr.bf16.mxu1 %v17069_v40  ;;  %v7522_v40 = vrot.slane %v18834_v47, %v18605_v31 }
 0x4ec   :  { %12225 = vmatpush1.bf16.msra.mxu0 %v17064_v3  ;;  %v17133_v3 = vld [vmem:[#allocation8 + $0x400] ss:$72 sps:$4 sm:$0xff]  }
 0x4ed   :  { %12226 = vmatprep.subr.bf16.mxu0 %v17072_v13  ;;  %v17141_v13 = vld [vmem:[#allocation8 + $0x374] ss:$72 sps:$4 sm:$0xff]  }
 0x4ee   :  { %12104 = vmatpush1.bf16.msra.mxu1 %v17067_v58  ;;  %v7526_v58 = vrot.slane %v18834_v47, %v18608_v34 }
 0x4ef   :  { %12105 = vmatprep.subr.bf16.mxu1 %v17075_v10  ;;  %v17136_v10 = vld [vmem:[#allocation8 + $0x408] ss:$72 sps:$4 sm:$0xff]  }
 0x4f0   :  { %12227 = vmatpush1.bf16.msra.mxu0 %v17070_v59  ;;  %v17144_v59 = vld [vmem:[#allocation8 + $0x37c] ss:$72 sps:$4 sm:$0xff]  }
 0x4f1   :  { %12228 = vmatprep.subr.bf16.mxu0 %v17078_v60  ;;  %v11964_v60 = vadd.f32 %v18817_v4, %v7522_v40  ;;  %v17150_v4 = vld [vmem:[#allocation8 + $0x2ec] ss:$72 sps:$4 sm:$0xff]  }
 0x4f2   :  { %12106 = vmatpush1.bf16.msra.mxu1 %v17073_v63  ;;  %v17139_v63 = vld [vmem:[#allocation8 + $0x370] ss:$72 sps:$4 sm:$0xff]   ;;  %v17198_v40 = vld [vmem:[#allocation8 + $0x76c] ss:$72 sps:$4 sm:$0xff]  }
 0x4f3   :  { %12107 = vmatprep.subr.bf16.mxu1 %v17081_v8 }
 0x4f4   :  { %12229 = vmatpush1.bf16.msra.mxu0 %v17076_v11  ;;  %v17147_v11 = vld [vmem:[#allocation8 + $0x2e4] ss:$72 sps:$4 sm:$0xff]  }
 0x4f5   :  { %12230 = vmatprep.subr.bf16.mxu0 %v17084_v2  ;;  %v11966_v2 = vadd.f32 %v18820_v28, %v7526_v58  ;;  %v17156_v28 = vld [vmem:[#allocation8 + $0x25c] ss:$72 sps:$4 sm:$0xff]   ;;  %v17196_v58 = vld [vmem:[#allocation8 + $0x768] ss:$72 sps:$4 sm:$0xff]  }
 0x4f6   :  { %12108 = vmatpush1.bf16.msra.mxu1 %v17079_v33 }
 0x4f7   :  { %12109 = vmatprep.subr.bf16.mxu1 %v17087_v5  ;;  %v17142_v5 = vld [vmem:[#allocation8 + $0x378] ss:$72 sps:$4 sm:$0xff]  }
 0x4f8   :  { %12231 = vmatpush1.bf16.msra.mxu0 %v17082_v41 }
 0x4f9   :  { %12232 = vmatprep.subr.bf16.mxu0 %v17090_v20 }
 0x4fa   :  { %12110 = vmatpush2.bf16.msra.mxu1 %v17085_v12  ;;  %v17145_v12 = vld [vmem:[#allocation8 + $0x2e0] ss:$72 sps:$4 sm:$0xff]  }
 0x4fb   :  { %12111 = vmatprep.subr.bf16.mxu1 %v17093_v15 }
 0x4fc   :  { %12233 = vmatpush2.bf16.msra.mxu0 %v17088_v30  ;;  %v17153_v30 = vld [vmem:[#allocation8 + $0x254] ss:$72 sps:$4 sm:$0xff]  }
 0x4fd   :  { %12234 = vmatprep.subr.bf16.mxu0 %v17096_v35  ;;  %v17148_v35 = vld [vmem:[#allocation8 + $0x2e8] ss:$72 sps:$4 sm:$0xff]  }
 0x4fe   :  { %12112 = vmatpush2.bf16.msra.mxu1 %v17091_v16 }
 0x4ff   :  { %12113 = vmatprep.subr.bf16.mxu1 %v17099_v24  ;;  %v17151_v24 = vld [vmem:[#allocation8 + $0x250] ss:$72 sps:$4 sm:$0xff]  }
 0x500   :  { %12235 = vmatpush2.bf16.msra.mxu0 %v17094_v18  ;;  %v17159_v18 = vld [vmem:[#allocation8 + $0x1c4] ss:$72 sps:$4 sm:$0xff]  }
 0x501   :  { %12236 = vmatprep.subr.bf16.mxu0 %v17102_v53  ;;  %v17154_v53 = vld [vmem:[#allocation8 + $0x258] ss:$72 sps:$4 sm:$0xff]  }
 0x502   :  { %12114 = vmatpush2.bf16.msra.mxu1 %v17097_v22  ;;  %v17162_v22 = vld [vmem:[#allocation8 + $0x1cc] ss:$72 sps:$4 sm:$0xff]  }
 0x503   :  { %12115 = vmatprep.subr.bf16.mxu1 %v17105_v14  ;;  %v17157_v14 = vld [vmem:[#allocation8 + $0x1c0] ss:$72 sps:$4 sm:$0xff]  }
 0x504   :  { %12237 = vmatpush2.bf16.msra.mxu0 %v17100_v39  ;;  %v17165_v39 = vld [vmem:[#allocation8 + $0x134] ss:$72 sps:$4 sm:$0xff]  }
 0x505   :  { %12238 = vmatprep.subr.bf16.mxu0 %v17108_v23  ;;  %v17160_v23 = vld [vmem:[#allocation8 + $0x1c8] ss:$72 sps:$4 sm:$0xff]  }
 0x506   :  { %12116 = vmatpush2.bf16.msra.mxu1 %v17103_v7  ;;  %v17168_v7 = vld [vmem:[#allocation8 + $0x13c] ss:$72 sps:$4 sm:$0xff]  }
 0x507   :  { %12117 = vmatprep.subr.bf16.mxu1 %v17111_v27  ;;  %v17163_v27 = vld [vmem:[#allocation8 + $0x130] ss:$72 sps:$4 sm:$0xff]  }
 0x508   :  { %12239 = vmatpush2.bf16.msra.mxu0 %v17106_v32  ;;  %v17171_v32 = vld [vmem:[#allocation8 + $0xa4] ss:$72 sps:$4 sm:$0xff]  }
 0x509   :  { %12240 = vmatprep.subr.bf16.mxu0 %v17114_v46  ;;  %v17166_v46 = vld [vmem:[#allocation8 + $0x138] ss:$72 sps:$4 sm:$0xff]  }
 0x50a   :  { %12118 = vmatpush2.bf16.msra.mxu1 %v17109_v49  ;;  %v17174_v49 = vld [vmem:[#allocation8 + $0xac] ss:$72 sps:$4 sm:$0xff]  }
 0x50b   :  { %12119 = vmatprep.subr.bf16.mxu1 %v17117_v17  ;;  %v17169_v17 = vld [vmem:[#allocation8 + $0xa0] ss:$72 sps:$4 sm:$0xff]  }
 0x50c   :  { %12241 = vmatpush2.bf16.msra.mxu0 %v17112_v42  ;;  %v17177_v42 = vld [vmem:[#allocation8 + $0x14] ss:$72 sps:$4 sm:$0xff]  }
 0x50d   :  { %12242 = vmatprep.subr.bf16.mxu0 %v17120_v48  ;;  %v17172_v48 = vld [vmem:[#allocation8 + $0xa8] ss:$72 sps:$4 sm:$0xff]  }
 0x50e   :  { %12120 = vmatpush2.bf16.msra.mxu1 %v17115_v62  ;;  %v17180_v62 = vld [vmem:[#allocation8 + $0x1c] ss:$72 sps:$4 sm:$0xff]  }
 0x50f   :  { %12121 = vmatprep.subr.bf16.mxu1 %v17123_v52  ;;  %v17175_v52 = vld [vmem:[#allocation8 + $0x10] ss:$72 sps:$4 sm:$0xff]  }
 0x510   :  { %12243 = vmatpush2.bf16.msra.mxu0 %v17118_v61  ;;  %v17183_v61 = vld [vmem:[#allocation8 + $0x884] ss:$72 sps:$4 sm:$0xff]  }
 0x511   :  { %12244 = vmatprep.subr.bf16.mxu0 %v17126_v43  ;;  %v17178_v43 = vld [vmem:[#allocation8 + $0x18] ss:$72 sps:$4 sm:$0xff]  }
 0x512   :  { %12122 = vmatpush2.bf16.msra.mxu1 %v17121_v44  ;;  %v17186_v44 = vld [vmem:[#allocation8 + $0x88c] ss:$72 sps:$4 sm:$0xff]  }
 0x513   :  { %12123 = vmatprep.subr.bf16.mxu1 %v17129_v26  ;;  %v17181_v26 = vld [vmem:[#allocation8 + $0x880] ss:$72 sps:$4 sm:$0xff]  }
 0x514   :  { %12245 = vmatpush2.bf16.msra.mxu0 %v17124_v9  ;;  %v17189_v9 = vld [vmem:[#allocation8 + $0x7f4] ss:$72 sps:$4 sm:$0xff]  }
 0x515   :  { %12246 = vmatprep.subr.bf16.mxu0 %v17132_v36  ;;  %v17184_v36 = vld [vmem:[#allocation8 + $0x888] ss:$72 sps:$4 sm:$0xff]  }
 0x516   :  { %12124 = vmatpush2.bf16.msra.mxu1 %v17127_v45  ;;  %v17192_v45 = vld [vmem:[#allocation8 + $0x7fc] ss:$72 sps:$4 sm:$0xff]  }
 0x517   :  { %12175 = vmatprep.subr.bf16.mxu1 %v17135_v0  ;;  %v17187_v0 = vld [vmem:[#allocation8 + $0x7f0] ss:$72 sps:$4 sm:$0xff]  }
 0x518   :  { %12247 = vmatpush2.bf16.msra.mxu0 %v17130_v56  ;;  %v17195_v56 = vld [vmem:[#allocation8 + $0x764] ss:$72 sps:$4 sm:$0xff]  }
 0x519   :  { %12126 = vmatmul.mubr.bf16.vlgmr.msra.gmra.mxu1 %v18798_v50  ;;  %12298 = vmatprep.subr.bf16.mxu0 %v17138_v57  ;;  %v17190_v57 = vld [vmem:[#allocation8 + $0x7f8] ss:$72 sps:$4 sm:$0xff]  }
 0x51a   :  { %12176 = vmatpush1.bf16.msra.mxu1 %v17133_v3  ;;  %12207 = vmatprep.mubr.bf16.mxu1 %v18758_v51  ;;  %v17193_v3 = vld [vmem:[#allocation8 + $0x760] ss:$72 sps:$4 sm:$0xff]  }
 0x51b   :  { %12249 = vmatmul.mubr.bf16.vlgmr.msra.gmra.mxu0 %v18798_v50  ;;  %v12004_v8 = vpop.f32.mrf.mxu0  ;;  %12177 = vmatprep.subr.bf16.mxu1 %v17141_v13  ;;  %v17201_v13 = vld [vmem:[#allocation8 + $0x6d4] ss:$72 sps:$4 sm:$0xff]  }
 0x51c   :  { %v18845_v33 = vadd.f32 %v12004_v8, %v11964_v60  ;;  %12299 = vmatpush1.bf16.msra.mxu0 %v17136_v10  ;;  %12330 = vmatprep.mubr.bf16.mxu0 %v18758_v51  ;;  %v17204_v10 = vld [vmem:[#allocation8 + $0x6dc] ss:$72 sps:$4 sm:$0xff]   ;;  %v17210_v8 = vld [vmem:[#allocation8 + $0x64c] ss:$72 sps:$4 sm:$0xff]  }
 0x51d   :  { %v12006_v41 = vpop.f32.mrf.mxu0  ;;  %12300 = vmatprep.subr.bf16.mxu0 %v17144_v59  ;;  %v17199_v59 = vld [vmem:[#allocation8 + $0x6d0] ss:$72 sps:$4 sm:$0xff]   ;;  %v17207_v60 = vld [vmem:[#allocation8 + $0x644] ss:$72 sps:$4 sm:$0xff]  }
 0x51e   :  { %v18848_v20 = vadd.f32 %v12006_v41, %v11966_v2  ;;  %12178 = vmatpush1.bf16.msra.mxu1 %v17139_v63  ;;  %v17202_v63 = vld [vmem:[#allocation8 + $0x6d8] ss:$72 sps:$4 sm:$0xff]   ;;  %v17213_v2 = vld [vmem:[#allocation8 + $0x5b4] ss:$72 sps:$4 sm:$0xff]  }
 0x51f   :  { %v12008_v15 = vpop.f32.mrf.mxu0  ;;  %12179 = vmatprep.subr.bf16.mxu1 %v17147_v11  ;;  %v17205_v11 = vld [vmem:[#allocation8 + $0x640] ss:$72 sps:$4 sm:$0xff]   ;;  %v17216_v41 = vld [vmem:[#allocation8 + $0x5bc] ss:$72 sps:$4 sm:$0xff]  }
 0x520   :  { %12301 = vmatpush1.bf16.msra.mxu0 %v17142_v5  ;;  %v17208_v5 = vld [vmem:[#allocation8 + $0x648] ss:$72 sps:$4 sm:$0xff]   ;;  %v17214_v15 = vld [vmem:[#allocation8 + $0x5b8] ss:$72 sps:$4 sm:$0xff]  }
 0x521   :  { %v12009_v16 = vpop.f32.mrf.mxu0  ;;  %12302 = vmatprep.subr.bf16.mxu0 %v17150_v4  ;;  %v17211_v4 = vld [vmem:[#allocation8 + $0x5b0] ss:$72 sps:$4 sm:$0xff]  }
 0x522   :  { %12180 = vmatpush1.bf16.msra.mxu1 %v17145_v12  ;;  %v17219_v12 = vld [vmem:[#allocation8 + $0x524] ss:$72 sps:$4 sm:$0xff]   ;;  %v17225_v16 = vld [vmem:[#allocation8 + $0x494] ss:$72 sps:$4 sm:$0xff]  }
 0x523   :  { %12181 = vmatprep.subr.bf16.mxu1 %v17153_v30  ;;  %v17222_v30 = vld [vmem:[#allocation8 + $0x52c] ss:$72 sps:$4 sm:$0xff]  }
 0x524   :  { %12303 = vmatpush1.bf16.msra.mxu0 %v17148_v35  ;;  %v17217_v35 = vld [vmem:[#allocation8 + $0x520] ss:$72 sps:$4 sm:$0xff]  }
 0x525   :  { %12304 = vmatprep.subr.bf16.mxu0 %v17156_v28  ;;  %v17220_v28 = vld [vmem:[#allocation8 + $0x528] ss:$72 sps:$4 sm:$0xff]  }
 0x526   :  { %12182 = vmatpush1.bf16.msra.mxu1 %v17151_v24  ;;  %v17228_v24 = vld [vmem:[#allocation8 + $0x49c] ss:$72 sps:$4 sm:$0xff]  }
 0x527   :  { %12183 = vmatprep.subr.bf16.mxu1 %v17159_v18  ;;  %v17223_v18 = vld [vmem:[#allocation8 + $0x490] ss:$72 sps:$4 sm:$0xff]  }
 0x528   :  { %12305 = vmatpush1.bf16.msra.mxu0 %v17154_v53  ;;  %v17231_v53 = vld [vmem:[#allocation8 + $0x1604] ss:$72 sps:$4 sm:$0xff]  }
 0x529   :  { %12306 = vmatprep.subr.bf16.mxu0 %v17162_v22  ;;  %v17226_v22 = vld [vmem:[#allocation8 + $0x498] ss:$72 sps:$4 sm:$0xff]  }
 0x52a   :  { %12184 = vmatpush1.bf16.msra.mxu1 %v17157_v14  ;;  %v17234_v14 = vld [vmem:[#allocation8 + $0x160c] ss:$72 sps:$4 sm:$0xff]  }
 0x52b   :  { %12185 = vmatprep.subr.bf16.mxu1 %v17165_v39  ;;  %v17229_v39 = vld [vmem:[#allocation8 + $0x1600] ss:$72 sps:$4 sm:$0xff]  }
 0x52c   :  { %12307 = vmatpush1.bf16.msra.mxu0 %v17160_v23  ;;  %v17237_v23 = vld [vmem:[#allocation8 + $0x1574] ss:$72 sps:$4 sm:$0xff]  }
 0x52d   :  { %12308 = vmatprep.subr.bf16.mxu0 %v17168_v7  ;;  %v17232_v7 = vld [vmem:[#allocation8 + $0x1608] ss:$72 sps:$4 sm:$0xff]  }
 0x52e   :  { %12186 = vmatpush1.bf16.msra.mxu1 %v17163_v27  ;;  %v17240_v27 = vld [vmem:[#allocation8 + $0x157c] ss:$72 sps:$4 sm:$0xff]  }
 0x52f   :  { %12187 = vmatprep.subr.bf16.mxu1 %v17171_v32  ;;  %v17235_v32 = vld [vmem:[#allocation8 + $0x1570] ss:$72 sps:$4 sm:$0xff]  }
 0x530   :  { %12309 = vmatpush1.bf16.msra.mxu0 %v17166_v46 }
 0x531   :  { %12310 = vmatprep.subr.bf16.mxu0 %v17174_v49  ;;  %v17243_v49 = vld [vmem:[#allocation8 + $0x14e4] ss:$72 sps:$4 sm:$0xff]  }
 0x532   :  { %12188 = vmatpush1.bf16.msra.mxu1 %v17169_v17  ;;  %v17238_v17 = vld [vmem:[#allocation8 + $0x1578] ss:$72 sps:$4 sm:$0xff]  }
 0x533   :  { %12189 = vmatprep.subr.bf16.mxu1 %v17177_v42 }
 0x534   :  { %12311 = vmatpush1.bf16.msra.mxu0 %v17172_v48  ;;  %v17246_v48 = vld [vmem:[#allocation8 + $0x14ec] ss:$72 sps:$4 sm:$0xff]  }
 0x535   :  { %12312 = vmatprep.subr.bf16.mxu0 %v17180_v62  ;;  %v17241_v62 = vld [vmem:[#allocation8 + $0x14e0] ss:$72 sps:$4 sm:$0xff]  }
 0x536   :  { %12190 = vmatpush1.bf16.msra.mxu1 %v17175_v52 }
 0x537   :  { %12191 = vmatprep.subr.bf16.mxu1 %v17183_v61  ;;  %v17249_v61 = vld [vmem:[#allocation8 + $0x1454] ss:$72 sps:$4 sm:$0xff]  }
 0x538   :  { %12313 = vmatpush1.bf16.msra.mxu0 %v17178_v43  ;;  %v17244_v43 = vld [vmem:[#allocation8 + $0x14e8] ss:$72 sps:$4 sm:$0xff]  }
 0x539   :  { %12314 = vmatprep.subr.bf16.mxu0 %v17186_v44 }
 0x53a   :  { %12192 = vmatpush2.bf16.msra.mxu1 %v17181_v26  ;;  %v17252_v26 = vld [vmem:[#allocation8 + $0x145c] ss:$72 sps:$4 sm:$0xff]  }
 0x53b   :  { %12193 = vmatprep.subr.bf16.mxu1 %v17189_v9  ;;  %v17247_v9 = vld [vmem:[#allocation8 + $0x1450] ss:$72 sps:$4 sm:$0xff]  }
 0x53c   :  { %12315 = vmatpush2.bf16.msra.mxu0 %v17184_v36  ;;  %v17255_v36 = vld [vmem:[#allocation8 + $0x13c4] ss:$72 sps:$4 sm:$0xff]  }
 0x53d   :  { %12316 = vmatprep.subr.bf16.mxu0 %v17192_v45  ;;  %v17250_v45 = vld [vmem:[#allocation8 + $0x1458] ss:$72 sps:$4 sm:$0xff]  }
 0x53e   :  { %12194 = vmatpush2.bf16.msra.mxu1 %v17187_v0  ;;  %v17258_v0 = vld [vmem:[#allocation8 + $0x13cc] ss:$72 sps:$4 sm:$0xff]  }
 0x53f   :  { %12195 = vmatprep.subr.bf16.mxu1 %v17195_v56  ;;  %v17253_v56 = vld [vmem:[#allocation8 + $0x13c0] ss:$72 sps:$4 sm:$0xff]  }
 0x540   :  { %12317 = vmatpush2.bf16.msra.mxu0 %v17190_v57  ;;  %v17261_v57 = vld [vmem:[#allocation8 + $0x1334] ss:$72 sps:$4 sm:$0xff]  }
 0x541   :  { %12318 = vmatprep.subr.bf16.mxu0 %v17198_v40  ;;  %v17256_v40 = vld [vmem:[#allocation8 + $0x13c8] ss:$72 sps:$4 sm:$0xff]  }
 0x542   :  { %12196 = vmatpush2.bf16.msra.mxu1 %v17193_v3  ;;  %v17264_v3 = vld [vmem:[#allocation8 + $0x133c] ss:$72 sps:$4 sm:$0xff]  }
 0x543   :  { %12197 = vmatprep.subr.bf16.mxu1 %v17201_v13  ;;  %v17259_v13 = vld [vmem:[#allocation8 + $0x1330] ss:$72 sps:$4 sm:$0xff]  }
 0x544   :  { %12319 = vmatpush2.bf16.msra.mxu0 %v17196_v58  ;;  %v17267_v58 = vld [vmem:[#allocation8 + $0x12a4] ss:$72 sps:$4 sm:$0xff]  }
 0x545   :  { %12320 = vmatprep.subr.bf16.mxu0 %v17204_v10  ;;  %v17262_v10 = vld [vmem:[#allocation8 + $0x1338] ss:$72 sps:$4 sm:$0xff]  }
 0x546   :  { %12198 = vmatpush2.bf16.msra.mxu1 %v17199_v59  ;;  %v17270_v59 = vld [vmem:[#allocation8 + $0x12ac] ss:$72 sps:$4 sm:$0xff]  }
 0x547   :  { %12199 = vmatprep.subr.bf16.mxu1 %v17207_v60  ;;  %v17265_v60 = vld [vmem:[#allocation8 + $0x12a0] ss:$72 sps:$4 sm:$0xff]  }
 0x548   :  { %12321 = vmatpush2.bf16.msra.mxu0 %v17202_v63  ;;  %v17273_v63 = vld [vmem:[#allocation8 + $0x1214] ss:$72 sps:$4 sm:$0xff]  }
 0x549   :  { %12322 = vmatprep.subr.bf16.mxu0 %v17210_v8  ;;  %v17268_v8 = vld [vmem:[#allocation8 + $0x12a8] ss:$72 sps:$4 sm:$0xff]  }
 0x54a   :  { %12200 = vmatpush2.bf16.msra.mxu1 %v17205_v11  ;;  %v17276_v11 = vld [vmem:[#allocation8 + $0x121c] ss:$72 sps:$4 sm:$0xff]  }
 0x54b   :  { %12201 = vmatprep.subr.bf16.mxu1 %v17213_v2  ;;  %v17271_v2 = vld [vmem:[#allocation8 + $0x1210] ss:$72 sps:$4 sm:$0xff]  }
 0x54c   :  { %12323 = vmatpush2.bf16.msra.mxu0 %v17208_v5  ;;  %v17279_v5 = vld [vmem:[#allocation8 + $0x1a84] ss:$72 sps:$4 sm:$0xff]  }
 0x54d   :  { %12324 = vmatprep.subr.bf16.mxu0 %v17216_v41  ;;  %v17274_v41 = vld [vmem:[#allocation8 + $0x1218] ss:$72 sps:$4 sm:$0xff]  }
 0x54e   :  { %12202 = vmatpush2.bf16.msra.mxu1 %v17211_v4  ;;  %v17282_v4 = vld [vmem:[#allocation8 + $0x1a8c] ss:$72 sps:$4 sm:$0xff]  }
 0x54f   :  { %12203 = vmatprep.subr.bf16.mxu1 %v17219_v12  ;;  %v17277_v12 = vld [vmem:[#allocation8 + $0x1a80] ss:$72 sps:$4 sm:$0xff]  }
 0x550   :  { %12325 = vmatpush2.bf16.msra.mxu0 %v17214_v15  ;;  %v17285_v15 = vld [vmem:[#allocation8 + $0x19f4] ss:$72 sps:$4 sm:$0xff]  }
 0x551   :  { %12326 = vmatprep.subr.bf16.mxu0 %v17222_v30  ;;  %v17280_v30 = vld [vmem:[#allocation8 + $0x1a88] ss:$72 sps:$4 sm:$0xff]  }
 0x552   :  { %12204 = vmatpush2.bf16.msra.mxu1 %v17217_v35  ;;  %v17288_v35 = vld [vmem:[#allocation8 + $0x19fc] ss:$72 sps:$4 sm:$0xff]  }
 0x553   :  { %12205 = vmatprep.subr.bf16.mxu1 %v17225_v16  ;;  %v17283_v16 = vld [vmem:[#allocation8 + $0x19f0] ss:$72 sps:$4 sm:$0xff]  }
 0x554   :  { %12327 = vmatpush2.bf16.msra.mxu0 %v17220_v28  ;;  %v17291_v28 = vld [vmem:[#allocation8 + $0x1964] ss:$72 sps:$4 sm:$0xff]  }
 0x555   :  { %12328 = vmatprep.subr.bf16.mxu0 %v17228_v24  ;;  %v17286_v24 = vld [vmem:[#allocation8 + $0x19f8] ss:$72 sps:$4 sm:$0xff]  }
 0x556   :  { %12206 = vmatpush2.bf16.msra.mxu1 %v17223_v18  ;;  %v17294_v18 = vld [vmem:[#allocation8 + $0x196c] ss:$72 sps:$4 sm:$0xff]  }
 0x557   :  { %12257 = vmatprep.subr.bf16.mxu1 %v17231_v53  ;;  %v17289_v53 = vld [vmem:[#allocation8 + $0x1960] ss:$72 sps:$4 sm:$0xff]  }
 0x558   :  { %12329 = vmatpush2.bf16.msra.mxu0 %v17226_v22  ;;  %v17297_v22 = vld [vmem:[#allocation8 + $0x18d4] ss:$72 sps:$4 sm:$0xff]  }
 0x559   :  { %12208 = vmatmul.mubr.bf16.vlgmr.msra.gmra.mxu1 %v18772_v19  ;;  %12380 = vmatprep.subr.bf16.mxu0 %v17234_v14  ;;  %v17292_v14 = vld [vmem:[#allocation8 + $0x1968] ss:$72 sps:$4 sm:$0xff]  }
 0x55a   :  { %12258 = vmatpush1.bf16.msra.mxu1 %v17229_v39  ;;  %12289 = vmatprep.mubr.bf16.mxu1 %v18824_v37  ;;  %v17300_v39 = vld [vmem:[#allocation8 + $0x18dc] ss:$72 sps:$4 sm:$0xff]  }
 0x55b   :  { %v18852_v46 = vpop.f32.mrf.mxu0  ;;  %12331 = vmatmul.mubr.bf16.vlgmr.msra.gmra.mxu0 %v18772_v19  ;;  %12259 = vmatprep.subr.bf16.mxu1 %v17237_v23  ;;  %v17295_v23 = vld [vmem:[#allocation8 + $0x18d0] ss:$72 sps:$4 sm:$0xff]  }
 0x55c   :  { %12381 = vmatpush1.bf16.msra.mxu0 %v17232_v7  ;;  %12412 = vmatprep.mubr.bf16.mxu0 %v18824_v37  ;;  %v17303_v7 = vld [vmem:[#allocation8 + $0x1844] ss:$72 sps:$4 sm:$0xff]  }
 0x55d   :  { %v18856_v42 = vpop.f32.mrf.mxu0  ;;  %12382 = vmatprep.subr.bf16.mxu0 %v17240_v27  ;;  %v17298_v27 = vld [vmem:[#allocation8 + $0x18d8] ss:$72 sps:$4 sm:$0xff]  }
 0x55e   :  { %12260 = vmatpush1.bf16.msra.mxu1 %v17235_v32  ;;  %v17306_v32 = vld [vmem:[#allocation8 + $0x184c] ss:$72 sps:$4 sm:$0xff]  }
 0x55f   :  { %v12090_v52 = vpop.f32.mrf.mxu0  ;;  %12261 = vmatprep.subr.bf16.mxu1 %v17243_v49  ;;  %v17301_v49 = vld [vmem:[#allocation8 + $0x1840] ss:$72 sps:$4 sm:$0xff]  }
 0x560   :  { %12383 = vmatpush1.bf16.msra.mxu0 %v17238_v17  ;;  %v17309_v17 = vld [vmem:[#allocation8 + $0x17b4] ss:$72 sps:$4 sm:$0xff]   ;;  %v17307_v52 = vld [vmem:[#allocation8 + $0x17b0] ss:$72 sps:$4 sm:$0xff]  }
 0x561   :  { %v12091_v44 = vpop.f32.mrf.mxu0  ;;  %12384 = vmatprep.subr.bf16.mxu0 %v17246_v48  ;;  %v17304_v48 = vld [vmem:[#allocation8 + $0x1848] ss:$72 sps:$4 sm:$0xff]  }
 0x562   :  { %12262 = vmatpush1.bf16.msra.mxu1 %v17241_v62  ;;  %v17312_v62 = vld [vmem:[#allocation8 + $0x17bc] ss:$72 sps:$4 sm:$0xff]   ;;  %v17318_v44 = vld [vmem:[#allocation8 + $0x172c] ss:$72 sps:$4 sm:$0xff]  }
 0x563   :  { %12263 = vmatprep.subr.bf16.mxu1 %v17249_v61  ;;  %v17315_v61 = vld [vmem:[#allocation8 + $0x1724] ss:$72 sps:$4 sm:$0xff]  }
 0x564   :  { %12385 = vmatpush1.bf16.msra.mxu0 %v17244_v43  ;;  %v17310_v43 = vld [vmem:[#allocation8 + $0x17b8] ss:$72 sps:$4 sm:$0xff]  }
 0x565   :  { %12386 = vmatprep.subr.bf16.mxu0 %v17252_v26  ;;  %v17313_v26 = vld [vmem:[#allocation8 + $0x1720] ss:$72 sps:$4 sm:$0xff]  }
 0x566   :  { %12264 = vmatpush1.bf16.msra.mxu1 %v17247_v9  ;;  %v17321_v9 = vld [vmem:[#allocation8 + $0x1694] ss:$72 sps:$4 sm:$0xff]  }
 0x567   :  { %12265 = vmatprep.subr.bf16.mxu1 %v17255_v36  ;;  %v17316_v36 = vld [vmem:[#allocation8 + $0x1728] ss:$72 sps:$4 sm:$0xff]  }
 0x568   :  { %12387 = vmatpush1.bf16.msra.mxu0 %v17250_v45  ;;  %v17324_v45 = vld [vmem:[#allocation8 + $0x169c] ss:$72 sps:$4 sm:$0xff]  }
 0x569   :  { %12388 = vmatprep.subr.bf16.mxu0 %v17258_v0  ;;  %v17319_v0 = vld [vmem:[#allocation8 + $0x1690] ss:$72 sps:$4 sm:$0xff]  }
 0x56a   :  { %12266 = vmatpush1.bf16.msra.mxu1 %v17253_v56  ;;  %v17327_v56 = vld [vmem:[#allocation8 + $0xd0c] ss:$72 sps:$4 sm:$0xff]  }
 0x56b   :  { %12267 = vmatprep.subr.bf16.mxu1 %v17261_v57  ;;  %v17322_v57 = vld [vmem:[#allocation8 + $0x1698] ss:$72 sps:$4 sm:$0xff]  }
 0x56c   :  { %12389 = vmatpush1.bf16.msra.mxu0 %v17256_v40  ;;  %v17330_v40 = vld [vmem:[#allocation8 + $0xd14] ss:$72 sps:$4 sm:$0xff]  }
 0x56d   :  { %12390 = vmatprep.subr.bf16.mxu0 %v17264_v3  ;;  %v17325_v3 = vld [vmem:[#allocation8 + $0xd08] ss:$72 sps:$4 sm:$0xff]  }
 0x56e   :  { %12268 = vmatpush1.bf16.msra.mxu1 %v17259_v13  ;;  %v17333_v13 = vld [vmem:[#allocation8 + $0xc7c] ss:$72 sps:$4 sm:$0xff]  }
 0x56f   :  { %12269 = vmatprep.subr.bf16.mxu1 %v17267_v58  ;;  %v17328_v58 = vld [vmem:[#allocation8 + $0xd10] ss:$72 sps:$4 sm:$0xff]  }
 0x570   :  { %12391 = vmatpush1.bf16.msra.mxu0 %v17262_v10 }
 0x571   :  { %12392 = vmatprep.subr.bf16.mxu0 %v17270_v59  ;;  %v17336_v59 = vld [vmem:[#allocation8 + $0xc84] ss:$72 sps:$4 sm:$0xff]  }
 0x572   :  { %12270 = vmatpush1.bf16.msra.mxu1 %v17265_v60 }
 0x573   :  { %12271 = vmatprep.subr.bf16.mxu1 %v17273_v63  ;;  %v17331_v63 = vld [vmem:[#allocation8 + $0xc78] ss:$72 sps:$4 sm:$0xff]  }
 0x574   :  { %12393 = vmatpush1.bf16.msra.mxu0 %v17268_v8 }
 0x575   :  { %12394 = vmatprep.subr.bf16.mxu0 %v17276_v11 }
 0x576   :  { %12272 = vmatpush1.bf16.msra.mxu1 %v17271_v2  ;;  %v17339_v2 = vld [vmem:[#allocation8 + $0xbec] ss:$72 sps:$4 sm:$0xff]  }
 0x577   :  { %12273 = vmatprep.subr.bf16.mxu1 %v17279_v5 }
 0x578   :  { %12395 = vmatpush1.bf16.msra.mxu0 %v17274_v41  ;;  %v17334_v41 = vld [vmem:[#allocation8 + $0xc80] ss:$72 sps:$4 sm:$0xff]  }
 0x579   :  { %12396 = vmatprep.subr.bf16.mxu0 %v17282_v4 }
 0x57a   :  { %12274 = vmatpush2.bf16.msra.mxu1 %v17277_v12  ;;  %v17342_v12 = vld [vmem:[#allocation8 + $0xbf4] ss:$72 sps:$4 sm:$0xff]  }
 0x57b   :  { %12275 = vmatprep.subr.bf16.mxu1 %v17285_v15  ;;  %v17337_v15 = vld [vmem:[#allocation8 + $0xbe8] ss:$72 sps:$4 sm:$0xff]  }
 0x57c   :  { %12397 = vmatpush2.bf16.msra.mxu0 %v17280_v30 }
 0x57d   :  { %12398 = vmatprep.subr.bf16.mxu0 %v17288_v35 }
 0x57e   :  { %12276 = vmatpush2.bf16.msra.mxu1 %v17283_v16  ;;  %v17345_v16 = vld [vmem:[#allocation8 + $0xb5c] ss:$72 sps:$4 sm:$0xff]  }
 0x57f   :  { %12277 = vmatprep.subr.bf16.mxu1 %v17291_v28  ;;  %v17340_v28 = vld [vmem:[#allocation8 + $0xbf0] ss:$72 sps:$4 sm:$0xff]  }
 0x580   :  { %12399 = vmatpush2.bf16.msra.mxu0 %v17286_v24 }
 0x581   :  { %12400 = vmatprep.subr.bf16.mxu0 %v17294_v18  ;;  %v17343_v18 = vld [vmem:[#allocation8 + $0xb58] ss:$72 sps:$4 sm:$0xff]  }
 0x582   :  { %12278 = vmatpush2.bf16.msra.mxu1 %v17289_v53  ;;  %v17351_v53 = vld [vmem:[#allocation8 + $0xacc] ss:$72 sps:$4 sm:$0xff]  }
 0x583   :  { %12279 = vmatprep.subr.bf16.mxu1 %v17297_v22  ;;  %v17346_v22 = vld [vmem:[#allocation8 + $0xb60] ss:$72 sps:$4 sm:$0xff]  }
 0x584   :  { %12401 = vmatpush2.bf16.msra.mxu0 %v17292_v14  ;;  %v17354_v14 = vld [vmem:[#allocation8 + $0xad4] ss:$72 sps:$4 sm:$0xff]  }
 0x585   :  { %12402 = vmatprep.subr.bf16.mxu0 %v17300_v39  ;;  %v17349_v39 = vld [vmem:[#allocation8 + $0xac8] ss:$72 sps:$4 sm:$0xff]  }
 0x586   :  { %12280 = vmatpush2.bf16.msra.mxu1 %v17295_v23  ;;  %v17357_v23 = vld [vmem:[#allocation8 + $0xa3c] ss:$72 sps:$4 sm:$0xff]  }
 0x587   :  { %12281 = vmatprep.subr.bf16.mxu1 %v17303_v7  ;;  %v17352_v7 = vld [vmem:[#allocation8 + $0xad0] ss:$72 sps:$4 sm:$0xff]  }
 0x588   :  { %12403 = vmatpush2.bf16.msra.mxu0 %v17298_v27  ;;  %v17360_v27 = vld [vmem:[#allocation8 + $0xa44] ss:$72 sps:$4 sm:$0xff]  }
 0x589   :  { %12404 = vmatprep.subr.bf16.mxu0 %v17306_v32  ;;  %v17355_v32 = vld [vmem:[#allocation8 + $0xa38] ss:$72 sps:$4 sm:$0xff]  }
 0x58a   :  { %12282 = vmatpush2.bf16.msra.mxu1 %v17301_v49  ;;  %v17363_v49 = vld [vmem:[#allocation8 + $0x9ac] ss:$72 sps:$4 sm:$0xff]  }
 0x58b   :  { %12283 = vmatprep.subr.bf16.mxu1 %v17309_v17  ;;  %v17358_v17 = vld [vmem:[#allocation8 + $0xa40] ss:$72 sps:$4 sm:$0xff]  }
 0x58c   :  { %12405 = vmatpush2.bf16.msra.mxu0 %v17304_v48  ;;  %v17366_v48 = vld [vmem:[#allocation8 + $0x9b4] ss:$72 sps:$4 sm:$0xff]  }
 0x58d   :  { %12406 = vmatprep.subr.bf16.mxu0 %v17312_v62  ;;  %v17361_v62 = vld [vmem:[#allocation8 + $0x9a8] ss:$72 sps:$4 sm:$0xff]  }
 0x58e   :  { %12284 = vmatpush2.bf16.msra.mxu1 %v17307_v52  ;;  %v17369_v52 = vld [vmem:[#allocation8 + $0x91c] ss:$72 sps:$4 sm:$0xff]  }
 0x58f   :  { %12285 = vmatprep.subr.bf16.mxu1 %v17315_v61  ;;  %v17364_v61 = vld [vmem:[#allocation8 + $0x9b0] ss:$72 sps:$4 sm:$0xff]  }
 0x590   :  { %12407 = vmatpush2.bf16.msra.mxu0 %v17310_v43  ;;  %v17372_v43 = vld [vmem:[#allocation8 + $0x924] ss:$72 sps:$4 sm:$0xff]  }
 0x591   :  { %12408 = vmatprep.subr.bf16.mxu0 %v17318_v44  ;;  %v17367_v44 = vld [vmem:[#allocation8 + $0x918] ss:$72 sps:$4 sm:$0xff]  }
 0x592   :  { %12286 = vmatpush2.bf16.msra.mxu1 %v17313_v26  ;;  %v17375_v26 = vld [vmem:[#allocation8 + $0x118c] ss:$72 sps:$4 sm:$0xff]  }
 0x593   :  { %12287 = vmatprep.subr.bf16.mxu1 %v17321_v9  ;;  %v17370_v9 = vld [vmem:[#allocation8 + $0x920] ss:$72 sps:$4 sm:$0xff]  }
 0x594   :  { %12409 = vmatpush2.bf16.msra.mxu0 %v17316_v36  ;;  %v17378_v36 = vld [vmem:[#allocation8 + $0x1194] ss:$72 sps:$4 sm:$0xff]  }
 0x595   :  { %12410 = vmatprep.subr.bf16.mxu0 %v17324_v45  ;;  %v17373_v45 = vld [vmem:[#allocation8 + $0x1188] ss:$72 sps:$4 sm:$0xff]  }
 0x596   :  { %12288 = vmatpush2.bf16.msra.mxu1 %v17319_v0  ;;  %v17381_v0 = vld [vmem:[#allocation8 + $0x10fc] ss:$72 sps:$4 sm:$0xff]  }
 0x597   :  { %12339 = vmatprep.subr.bf16.mxu1 %v17327_v56  ;;  %v17376_v56 = vld [vmem:[#allocation8 + $0x1190] ss:$72 sps:$4 sm:$0xff]  }
 0x598   :  { %12411 = vmatpush2.bf16.msra.mxu0 %v17322_v57  ;;  %v17384_v57 = vld [vmem:[#allocation8 + $0x1104] ss:$72 sps:$4 sm:$0xff]  }
 0x599   :  { %12290 = vmatmul.mubr.bf16.vlgmr.msra.gmra.mxu1 %v18826_v55  ;;  %v12045_v10 = vpop.f32.mrf.mxu1  ;;  %12462 = vmatprep.subr.bf16.mxu0 %v17330_v40  ;;  %v17379_v40 = vld [vmem:[#allocation8 + $0x10f8] ss:$72 sps:$4 sm:$0xff]  }
 0x59a   :  { %v18860_v60 = vadd.f32 %v12045_v10, %v18845_v33  ;;  %12340 = vmatpush1.bf16.msra.mxu1 %v17325_v3  ;;  %12371 = vmatprep.mubr.bf16.mxu1 %v18794_v38  ;;  %v17387_v3 = vld [vmem:[#allocation8 + $0x106c] ss:$72 sps:$4 sm:$0xff]   ;;  %v17385_v10 = vld [vmem:[#allocation8 + $0x1068] ss:$72 sps:$4 sm:$0xff]  }
 0x59b   :  { %v18863_v8 = vpop.f32.mrf.mxu0  ;;  %12413 = vmatmul.mubr.bf16.vlgmr.msra.gmra.mxu0 %v18826_v55  ;;  %v12047_v11 = vpop.f32.mrf.mxu1  ;;  %12341 = vmatprep.subr.bf16.mxu1 %v17333_v13  ;;  %v17382_v13 = vld [vmem:[#allocation8 + $0x1100] ss:$72 sps:$4 sm:$0xff]  }
 0x59c   :  { %v18867_v5 = vadd.f32 %v12047_v11, %v18848_v20  ;;  %12463 = vmatpush1.bf16.msra.mxu0 %v17328_v58  ;;  %12494 = vmatprep.mubr.bf16.mxu0 %v18794_v38  ;;  %v17348_v20 = vld [vmem:[#allocation8 + $0xb64] ss:$72 sps:$4 sm:$0xff]   ;;  %v17390_v58 = vld [vmem:[#allocation8 + $0x1074] ss:$72 sps:$4 sm:$0xff]  }
 0x59d   :  { %v18870_v33 = vpop.f32.mrf.mxu0  ;;  %v12049_v4 = vpop.f32.mrf.mxu1  ;;  %12464 = vmatprep.subr.bf16.mxu0 %v17336_v59  ;;  %v17393_v59 = vld [vmem:[#allocation8 + $0xfdc] ss:$72 sps:$4 sm:$0xff]  }
 0x59e   :  { %12342 = vmatpush1.bf16.msra.mxu1 %v17331_v63  ;;  %v17388_v63 = vld [vmem:[#allocation8 + $0x1070] ss:$72 sps:$4 sm:$0xff]   ;;  %v17396_v11 = vld [vmem:[#allocation8 + $0xfe4] ss:$72 sps:$4 sm:$0xff]   ;;  %v17394_v4 = vld [vmem:[#allocation8 + $0xfe0] ss:$72 sps:$4 sm:$0xff]  }
 0x59f   :  { %v12172_v30 = vpop.f32.mrf.mxu0  ;;  %v12050_v35 = vpop.f32.mrf.mxu1  ;;  %12343 = vmatprep.subr.bf16.mxu1 %v17339_v2  ;;  %v17391_v2 = vld [vmem:[#allocation8 + $0xfd8] ss:$72 sps:$4 sm:$0xff]  }
 0x5a0   :  { %12465 = vmatpush1.bf16.msra.mxu0 %v17334_v41  ;;  %v17399_v41 = vld [vmem:[#allocation8 + $0xf4c] ss:$72 sps:$4 sm:$0xff]   ;;  %v17405_v30 = vld [vmem:[#allocation8 + $0xebc] ss:$72 sps:$4 sm:$0xff]   ;;  %v15313_v35 = vmul.f32 -1.442695, %v18860_v60 }
 0x5a1   :  { %v12173_v24 = vpop.f32.mrf.mxu0  ;;  %12466 = vmatprep.subr.bf16.mxu0 %v17342_v12  ;;  %v17402_v12 = vld [vmem:[#allocation8 + $0xf54] ss:$72 sps:$4 sm:$0xff]   ;;  %v17420_v60 = vld [vmem:[#allocation8 + $0xda4] ss:$72 sps:$4 sm:$0xff]  }
 0x5a2   :  { %12344 = vmatpush1.bf16.msra.mxu1 %v17337_v15  ;;  %v17397_v15 = vld [vmem:[#allocation8 + $0xf48] ss:$72 sps:$4 sm:$0xff]   ;;  %v17403_v24 = vld [vmem:[#allocation8 + $0xeb8] ss:$72 sps:$4 sm:$0xff]   ;;  %18165 = vpow2.f32 %v15313_v35 }
 0x5a3   :  { %12345 = vmatprep.subr.bf16.mxu1 %v17345_v16  ;;  %v17400_v16 = vld [vmem:[#allocation8 + $0xf50] ss:$72 sps:$4 sm:$0xff]  }
 0x5a4   :  { %12467 = vmatpush1.bf16.msra.mxu0 %v17340_v28  ;;  %v17408_v28 = vld [vmem:[#allocation8 + $0xec4] ss:$72 sps:$4 sm:$0xff]   ;;  %v17445_v35 = vld [vmem:[#allocation8 + $0x1d0] ss:$72 sps:$4 sm:$0xff]  }
 0x5a5   :  { %12468 = vmatprep.subr.bf16.mxu0 %v17348_v20  ;;  %v17411_v20 = vld [vmem:[#allocation8 + $0xe2c] ss:$72 sps:$4 sm:$0xff]  }
 0x5a6   :  { %12346 = vmatpush1.bf16.msra.mxu1 %v17343_v18  ;;  %v17406_v18 = vld [vmem:[#allocation8 + $0xec0] ss:$72 sps:$4 sm:$0xff]  }
 0x5a7   :  { %12347 = vmatprep.subr.bf16.mxu1 %v17351_v53  ;;  %v17414_v53 = vld [vmem:[#allocation8 + $0xe34] ss:$72 sps:$4 sm:$0xff]  }
 0x5a8   :  { %12469 = vmatpush1.bf16.msra.mxu0 %v17346_v22  ;;  %v17409_v22 = vld [vmem:[#allocation8 + $0xe28] ss:$72 sps:$4 sm:$0xff]  }
 0x5a9   :  { %12470 = vmatprep.subr.bf16.mxu0 %v17354_v14  ;;  %v17417_v14 = vld [vmem:[#allocation8 + $0xd9c] ss:$72 sps:$4 sm:$0xff]  }
 0x5aa   :  { %12348 = vmatpush1.bf16.msra.mxu1 %v17349_v39  ;;  %v17412_v39 = vld [vmem:[#allocation8 + $0xe30] ss:$72 sps:$4 sm:$0xff]  }
 0x5ab   :  { %12349 = vmatprep.subr.bf16.mxu1 %v17357_v23  ;;  %v17415_v23 = vld [vmem:[#allocation8 + $0xd98] ss:$72 sps:$4 sm:$0xff]  }
 0x5ac   :  { %12471 = vmatpush1.bf16.msra.mxu0 %v17352_v7  ;;  %v17423_v7 = vld [vmem:[#allocation8 + $0x414] ss:$72 sps:$4 sm:$0xff]  }
 0x5ad   :  { %12472 = vmatprep.subr.bf16.mxu0 %v17360_v27  ;;  %v7530_v27 = vrot.slane %v18834_v47, %v18636_v54 }
 0x5ae   :  { %12350 = vmatpush1.bf16.msra.mxu1 %v17355_v32  ;;  %v17418_v32 = vld [vmem:[#allocation8 + $0xda0] ss:$72 sps:$4 sm:$0xff]  }
 0x5af   :  { %12351 = vmatprep.subr.bf16.mxu1 %v17363_v49  ;;  %v17426_v49 = vld [vmem:[#allocation8 + $0x41c] ss:$72 sps:$4 sm:$0xff]  }
 0x5b0   :  { %12473 = vmatpush1.bf16.msra.mxu0 %v17358_v17  ;;  %v7534_v17 = vrot.slane %v18834_v47, %v18639_v21  ;;  %v17427_v47 = vld [vmem:[#allocation8 + $0x380] ss:$72 sps:$4 sm:$0xff]  }
 0x5b1   :  { %12474 = vmatprep.subr.bf16.mxu0 %v17366_v48  ;;  %v17421_v48 = vld [vmem:[#allocation8 + $0x410] ss:$72 sps:$4 sm:$0xff]  }
 0x5b2   :  { %12352 = vmatpush1.bf16.msra.mxu1 %v17361_v62  ;;  %v17429_v62 = vld [vmem:[#allocation8 + $0x384] ss:$72 sps:$4 sm:$0xff]  }
 0x5b3   :  { %12353 = vmatprep.subr.bf16.mxu1 %v17369_v52  ;;  %v12087_v52 = vadd.f32 %v18852_v46, %v7530_v27  ;;  %v17435_v46 = vld [vmem:[#allocation8 + $0x2f4] ss:$72 sps:$4 sm:$0xff]   ;;  %v17460_v27 = vld [vmem:[#allocation8 + $0xb8] ss:$72 sps:$4 sm:$0xff]  }
 0x5b4   :  { %12475 = vmatpush1.bf16.msra.mxu0 %v17364_v61  ;;  %v17424_v61 = vld [vmem:[#allocation8 + $0x418] ss:$72 sps:$4 sm:$0xff]  }
 0x5b5   :  { %12476 = vmatprep.subr.bf16.mxu0 %v17372_v43  ;;  %v18166_v43 = vpop.eup %18165 }
 0x5b6   :  { %12354 = vmatpush1.bf16.msra.mxu1 %v17367_v44 }
 0x5b7   :  { %12355 = vmatprep.subr.bf16.mxu1 %v17375_v26  ;;  %v17432_v26 = vld [vmem:[#allocation8 + $0x38c] ss:$72 sps:$4 sm:$0xff]  }
 0x5b8   :  { %12477 = vmatpush1.bf16.msra.mxu0 %v17370_v9  ;;  %v12089_v9 = vadd.f32 %v18856_v42, %v7534_v17  ;;  %v17430_v42 = vld [vmem:[#allocation8 + $0x388] ss:$72 sps:$4 sm:$0xff]   ;;  %v17471_v17 = vld [vmem:[#allocation8 + $0x894] ss:$72 sps:$4 sm:$0xff]  }
 0x5b9   :  { %12478 = vmatprep.subr.bf16.mxu0 %v17378_v36 }
 0x5ba   :  { %12356 = vmatpush2.bf16.msra.mxu1 %v17373_v45 }
 0x5bb   :  { %12357 = vmatprep.subr.bf16.mxu1 %v17381_v0 }
 0x5bc   :  { %12479 = vmatpush2.bf16.msra.mxu0 %v17376_v56  ;;  %v13045_v56 = vadd.f32 1.0, %v18166_v43  ;;  %v17472_v43 = vld [vmem:[#allocation8 + $0x898] ss:$72 sps:$4 sm:$0xff]  }
 0x5bd   :  { %12480 = vmatprep.subr.bf16.mxu0 %v17384_v57 }
 0x5be   :  { %12358 = vmatpush2.bf16.msra.mxu1 %v17379_v40  ;;  %18167 = vrcp.f32 %v13045_v56  ;;  %v17484_v56 = vld [vmem:[#allocation8 + $0x778] ss:$72 sps:$4 sm:$0xff]  }
 0x5bf   :  { %12359 = vmatprep.subr.bf16.mxu1 %v17387_v3 }
 0x5c0   :  { %12481 = vmatpush2.bf16.msra.mxu0 %v17382_v13 }
 0x5c1   :  { %12482 = vmatprep.subr.bf16.mxu0 %v17390_v58  ;;  %v17438_v58 = vld [vmem:[#allocation8 + $0x2fc] ss:$72 sps:$4 sm:$0xff]  }
 0x5c2   :  { %12360 = vmatpush2.bf16.msra.mxu1 %v17385_v10 }
 0x5c3   :  { %12361 = vmatprep.subr.bf16.mxu1 %v17393_v59  ;;  %v17433_v59 = vld [vmem:[#allocation8 + $0x2f0] ss:$72 sps:$4 sm:$0xff]  }
 0x5c4   :  { %12483 = vmatpush2.bf16.msra.mxu0 %v17388_v63 }
 0x5c5   :  { %12484 = vmatprep.subr.bf16.mxu0 %v17396_v11 }
 0x5c6   :  { %12362 = vmatpush2.bf16.msra.mxu1 %v17391_v2  ;;  %v17441_v2 = vld [vmem:[#allocation8 + $0x264] ss:$72 sps:$4 sm:$0xff]  }
 0x5c7   :  { %12363 = vmatprep.subr.bf16.mxu1 %v17399_v41 }
 0x5c8   :  { %12485 = vmatpush2.bf16.msra.mxu0 %v17394_v4  ;;  %v17444_v4 = vld [vmem:[#allocation8 + $0x26c] ss:$72 sps:$4 sm:$0xff]  }
 0x5c9   :  { %12486 = vmatprep.subr.bf16.mxu0 %v17402_v12  ;;  %v17439_v12 = vld [vmem:[#allocation8 + $0x260] ss:$72 sps:$4 sm:$0xff]  }
 0x5ca   :  { %12364 = vmatpush2.bf16.msra.mxu1 %v17397_v15  ;;  %v17447_v15 = vld [vmem:[#allocation8 + $0x1d4] ss:$72 sps:$4 sm:$0xff]  }
 0x5cb   :  { %12365 = vmatprep.subr.bf16.mxu1 %v17405_v30  ;;  %v17442_v30 = vld [vmem:[#allocation8 + $0x268] ss:$72 sps:$4 sm:$0xff]  }
 0x5cc   :  { %12487 = vmatpush2.bf16.msra.mxu0 %v17400_v16  ;;  %v17453_v16 = vld [vmem:[#allocation8 + $0x144] ss:$72 sps:$4 sm:$0xff]  }
 0x5cd   :  { %12488 = vmatprep.subr.bf16.mxu0 %v17408_v28  ;;  %v17448_v28 = vld [vmem:[#allocation8 + $0x1d8] ss:$72 sps:$4 sm:$0xff]  }
 0x5ce   :  { %12366 = vmatpush2.bf16.msra.mxu1 %v17403_v24  ;;  %v17456_v24 = vld [vmem:[#allocation8 + $0x14c] ss:$72 sps:$4 sm:$0xff]  }
 0x5cf   :  { %12367 = vmatprep.subr.bf16.mxu1 %v17411_v20  ;;  %v17451_v20 = vld [vmem:[#allocation8 + $0x140] ss:$72 sps:$4 sm:$0xff]  }
 0x5d0   :  { %12489 = vmatpush2.bf16.msra.mxu0 %v17406_v18  ;;  %v17459_v18 = vld [vmem:[#allocation8 + $0xb4] ss:$72 sps:$4 sm:$0xff]  }
 0x5d1   :  { %12490 = vmatprep.subr.bf16.mxu0 %v17414_v53  ;;  %v17454_v53 = vld [vmem:[#allocation8 + $0x148] ss:$72 sps:$4 sm:$0xff]  }
 0x5d2   :  { %12368 = vmatpush2.bf16.msra.mxu1 %v17409_v22  ;;  %v18168_v22 = vpop.eup %18167 }
 0x5d3   :  { %12369 = vmatprep.subr.bf16.mxu1 %v17417_v14  ;;  %v17462_v14 = vld [vmem:[#allocation8 + $0xbc] ss:$72 sps:$4 sm:$0xff]  }
 0x5d4   :  { %12491 = vmatpush2.bf16.msra.mxu0 %v17412_v39 }
 0x5d5   :  { %12492 = vmatprep.subr.bf16.mxu0 %v17420_v60  ;;  %v17457_v60 = vld [vmem:[#allocation8 + $0xb0] ss:$72 sps:$4 sm:$0xff]  }
 0x5d6   :  { %12370 = vmatpush2.bf16.msra.mxu1 %v17415_v23 }
 0x5d7   :  { %12421 = vmatprep.subr.bf16.mxu1 %v17423_v7  ;;  %v17465_v7 = vld [vmem:[#allocation8 + $0x24] ss:$72 sps:$4 sm:$0xff]  }
 0x5d8   :  { %12493 = vmatpush2.bf16.msra.mxu0 %v17418_v32  ;;  %v17468_v32 = vld [vmem:[#allocation8 + $0x2c] ss:$72 sps:$4 sm:$0xff]  }
 0x5d9   :  { %v12127_v44 = vpop.f32.mrf.mxu1  ;;  %12372 = vmatmul.mubr.bf16.vlgmr.msra.gmra.mxu1 %v18798_v50  ;;  %12544 = vmatprep.subr.bf16.mxu0 %v17426_v49  ;;  %v17463_v49 = vld [vmem:[#allocation8 + $0x20] ss:$72 sps:$4 sm:$0xff]  }
 0x5da   :  { %v12128_v36 = vadd.f32 %v12127_v44, %v12087_v52  ;;  %12422 = vmatpush1.bf16.msra.mxu1 %v17421_v48  ;;  %12453 = vmatprep.mubr.bf16.mxu1 %v18758_v51  ;;  %v17466_v48 = vld [vmem:[#allocation8 + $0x28] ss:$72 sps:$4 sm:$0xff]   ;;  %v17480_v44 = vld [vmem:[#allocation8 + $0x80c] ss:$72 sps:$4 sm:$0xff]  }
 0x5db   :  { %v12129_v45 = vpop.f32.mrf.mxu1  ;;  %v18881_v0 = vpop.f32.mrf.mxu0  ;;  %12495 = vmatmul.mubr.bf16.vlgmr.msra.gmra.mxu0 %v18798_v50  ;;  %12423 = vmatprep.subr.bf16.mxu1 %v17429_v62  ;;  %v17474_v62 = vld [vmem:[#allocation8 + $0x89c] ss:$72 sps:$4 sm:$0xff]   ;;  %v17469_v52 = vld [vmem:[#allocation8 + $0x890] ss:$72 sps:$4 sm:$0xff]  }
 0x5dc   :  { %v18885_v57 = vadd.f32 %v18863_v8, %v12128_v36  ;;  %v12130_v40 = vadd.f32 %v12129_v45, %v12089_v9  ;;  %12545 = vmatpush1.bf16.msra.mxu0 %v17424_v61  ;;  %12576 = vmatprep.mubr.bf16.mxu0 %v18758_v51  ;;  %v17436_v8 = vld [vmem:[#allocation8 + $0x2f8] ss:$72 sps:$4 sm:$0xff]   ;;  %v17477_v61 = vld [vmem:[#allocation8 + $0x804] ss:$72 sps:$4 sm:$0xff]   ;;  %v17483_v9 = vld [vmem:[#allocation8 + $0x774] ss:$72 sps:$4 sm:$0xff]  }
 0x5dd   :  { %v12131_v3 = vpop.f32.mrf.mxu1  ;;  %v18888_v13 = vpop.f32.mrf.mxu0  ;;  %12546 = vmatprep.subr.bf16.mxu0 %v17432_v26  ;;  %v17475_v26 = vld [vmem:[#allocation8 + $0x800] ss:$72 sps:$4 sm:$0xff]   ;;  %v17481_v45 = vld [vmem:[#allocation8 + $0x770] ss:$72 sps:$4 sm:$0xff]  }
 0x5de   :  { %v12171_v10 = vadd.f32 %v18870_v33, %v12130_v40  ;;  %12424 = vmatpush1.bf16.msra.mxu1 %v17427_v47  ;;  %v17450_v33 = vld [vmem:[#allocation8 + $0x1dc] ss:$72 sps:$4 sm:$0xff]   ;;  %v17478_v36 = vld [vmem:[#allocation8 + $0x808] ss:$72 sps:$4 sm:$0xff]   ;;  %v17492_v40 = vld [vmem:[#allocation8 + $0x6ec] ss:$72 sps:$4 sm:$0xff]  }
 0x5df   :  { %v12132_v63 = vpop.f32.mrf.mxu1  ;;  %v12254_v11 = vpop.f32.mrf.mxu0  ;;  %12425 = vmatprep.subr.bf16.mxu1 %v17435_v46  ;;  %v17486_v47 = vld [vmem:[#allocation8 + $0x77c] ss:$72 sps:$4 sm:$0xff]  }
 0x5e0   :  { %12547 = vmatpush1.bf16.msra.mxu0 %v17430_v42  ;;  %18169 = vtanh.f32 %v12171_v10  ;;  %v17489_v46 = vld [vmem:[#allocation8 + $0x6e4] ss:$72 sps:$4 sm:$0xff]   ;;  %v17487_v42 = vld [vmem:[#allocation8 + $0x6e0] ss:$72 sps:$4 sm:$0xff]   ;;  %v17495_v3 = vld [vmem:[#allocation8 + $0x654] ss:$72 sps:$4 sm:$0xff]  }
 0x5e1   :  { %v12255_v41 = vpop.f32.mrf.mxu0  ;;  %12548 = vmatprep.subr.bf16.mxu0 %v17438_v58  ;;  %v17490_v58 = vld [vmem:[#allocation8 + $0x6e8] ss:$72 sps:$4 sm:$0xff]   ;;  %v17498_v10 = vld [vmem:[#allocation8 + $0x65c] ss:$72 sps:$4 sm:$0xff]   ;;  %v17496_v11 = vld [vmem:[#allocation8 + $0x658] ss:$72 sps:$4 sm:$0xff]  }
 0x5e2   :  { %12426 = vmatpush1.bf16.msra.mxu1 %v17433_v59  ;;  %v17493_v59 = vld [vmem:[#allocation8 + $0x650] ss:$72 sps:$4 sm:$0xff]   ;;  %v17501_v63 = vld [vmem:[#allocation8 + $0x5c4] ss:$72 sps:$4 sm:$0xff]   ;;  %v17507_v41 = vld [vmem:[#allocation8 + $0x534] ss:$72 sps:$4 sm:$0xff]  }
 0x5e3   :  { %12427 = vmatprep.subr.bf16.mxu1 %v17441_v2  ;;  %v17504_v2 = vld [vmem:[#allocation8 + $0x5cc] ss:$72 sps:$4 sm:$0xff]  }
 0x5e4   :  { %12549 = vmatpush1.bf16.msra.mxu0 %v17436_v8  ;;  %v17499_v8 = vld [vmem:[#allocation8 + $0x5c0] ss:$72 sps:$4 sm:$0xff]  }
 0x5e5   :  { %12550 = vmatprep.subr.bf16.mxu0 %v17444_v4  ;;  %v17502_v4 = vld [vmem:[#allocation8 + $0x5c8] ss:$72 sps:$4 sm:$0xff]  }
 0x5e6   :  { %12428 = vmatpush1.bf16.msra.mxu1 %v17439_v12  ;;  %v17510_v12 = vld [vmem:[#allocation8 + $0x53c] ss:$72 sps:$4 sm:$0xff]  }
 0x5e7   :  { %12429 = vmatprep.subr.bf16.mxu1 %v17447_v15  ;;  %v17505_v15 = vld [vmem:[#allocation8 + $0x530] ss:$72 sps:$4 sm:$0xff]  }
 0x5e8   :  { %12551 = vmatpush1.bf16.msra.mxu0 %v17442_v30  ;;  %v17513_v30 = vld [vmem:[#allocation8 + $0x4a4] ss:$72 sps:$4 sm:$0xff]  }
 0x5e9   :  { %12552 = vmatprep.subr.bf16.mxu0 %v17450_v33  ;;  %v17508_v33 = vld [vmem:[#allocation8 + $0x538] ss:$72 sps:$4 sm:$0xff]  }
 0x5ea   :  { %12430 = vmatpush1.bf16.msra.mxu1 %v17445_v35  ;;  %v17516_v35 = vld [vmem:[#allocation8 + $0x4ac] ss:$72 sps:$4 sm:$0xff]  }
 0x5eb   :  { %12431 = vmatprep.subr.bf16.mxu1 %v17453_v16  ;;  %v17511_v16 = vld [vmem:[#allocation8 + $0x4a0] ss:$72 sps:$4 sm:$0xff]  }
 0x5ec   :  { %12553 = vmatpush1.bf16.msra.mxu0 %v17448_v28  ;;  %v17519_v28 = vld [vmem:[#allocation8 + $0x1614] ss:$72 sps:$4 sm:$0xff]  }
 0x5ed   :  { %12554 = vmatprep.subr.bf16.mxu0 %v17456_v24  ;;  %v18170_v39 = vpop.eup %18169  ;;  %v17514_v24 = vld [vmem:[#allocation8 + $0x4a8] ss:$72 sps:$4 sm:$0xff]  }
 0x5ee   :  { %12432 = vmatpush1.bf16.msra.mxu1 %v17451_v20  ;;  %v18891_v23 = vmul.f32 %v18170_v39, %v18168_v22  ;;  %v17522_v20 = vld [vmem:[#allocation8 + $0x161c] ss:$72 sps:$4 sm:$0xff]   ;;  %v17517_v22 = vld [vmem:[#allocation8 + $0x1610] ss:$72 sps:$4 sm:$0xff]  }
 0x5ef   :  { %12433 = vmatprep.subr.bf16.mxu1 %v17459_v18  ;;  %v18893_v18 = vld [vmem:[#allocation10] sm:$0xff] }
 0x5f0   :  { %12555 = vmatpush1.bf16.msra.mxu0 %v17454_v53  ;;  %v7538_v53 = vrot.slane %v18893_v18, %v18658_v1  ;;  %v7542_v39 = vrot.slane %v18893_v18, %v18661_v6 }
 0x5f1   :  { %12556 = vmatprep.subr.bf16.mxu0 %v17462_v14  ;;  %v17525_v14 = vld [vmem:[#allocation8 + $0x1584] ss:$72 sps:$4 sm:$0xff]  }
 0x5f2   :  { %12434 = vmatpush1.bf16.msra.mxu1 %v17457_v60  ;;  %v17520_v60 = vld [vmem:[#allocation8 + $0x1618] ss:$72 sps:$4 sm:$0xff]  }
 0x5f3   :  { %12435 = vmatprep.subr.bf16.mxu1 %v17465_v7 }
 0x5f4   :  { %12557 = vmatpush1.bf16.msra.mxu0 %v17460_v27  ;;  %v17528_v27 = vld [vmem:[#allocation8 + $0x158c] ss:$72 sps:$4 sm:$0xff]  }
 0x5f5   :  { %12558 = vmatprep.subr.bf16.mxu0 %v17468_v32 }
 0x5f6   :  { %12436 = vmatpush1.bf16.msra.mxu1 %v17463_v49  ;;  %v17523_v49 = vld [vmem:[#allocation8 + $0x1580] ss:$72 sps:$4 sm:$0xff]  }
 0x5f7   :  { %12437 = vmatprep.subr.bf16.mxu1 %v17471_v17 }
 0x5f8   :  { %12559 = vmatpush1.bf16.msra.mxu0 %v17466_v48 }
 0x5f9   :  { %12560 = vmatprep.subr.bf16.mxu0 %v17474_v62  ;;  %v17531_v62 = vld [vmem:[#allocation8 + $0x14f4] ss:$72 sps:$4 sm:$0xff]  }
 0x5fa   :  { %12438 = vmatpush2.bf16.msra.mxu1 %v17469_v52 }
 0x5fb   :  { %12439 = vmatprep.subr.bf16.mxu1 %v17477_v61  ;;  %v17526_v61 = vld [vmem:[#allocation8 + $0x1588] ss:$72 sps:$4 sm:$0xff]  }
 0x5fc   :  { %12561 = vmatpush2.bf16.msra.mxu0 %v17472_v43 }
 0x5fd   :  { %12562 = vmatprep.subr.bf16.mxu0 %v17480_v44 }
 0x5fe   :  { %12440 = vmatpush2.bf16.msra.mxu1 %v17475_v26 }
 0x5ff   :  { %12441 = vmatprep.subr.bf16.mxu1 %v17483_v9  ;;  %v17534_v9 = vld [vmem:[#allocation8 + $0x14fc] ss:$72 sps:$4 sm:$0xff]  }
 0x600   :  { %12563 = vmatpush2.bf16.msra.mxu0 %v17478_v36  ;;  %v17529_v36 = vld [vmem:[#allocation8 + $0x14f0] ss:$72 sps:$4 sm:$0xff]  }
 0x601   :  { %12564 = vmatprep.subr.bf16.mxu0 %v17486_v47 }
 0x602   :  { %12442 = vmatpush2.bf16.msra.mxu1 %v17481_v45 }
 0x603   :  { %12443 = vmatprep.subr.bf16.mxu1 %v17489_v46 }
 0x604   :  { %12565 = vmatpush2.bf16.msra.mxu0 %v17484_v56  ;;  %v17537_v56 = vld [vmem:[#allocation8 + $0x1464] ss:$72 sps:$4 sm:$0xff]  }
 0x605   :  { %12566 = vmatprep.subr.bf16.mxu0 %v17492_v40  ;;  %v17532_v40 = vld [vmem:[#allocation8 + $0x14f8] ss:$72 sps:$4 sm:$0xff]  }
 0x606   :  { %12444 = vmatpush2.bf16.msra.mxu1 %v17487_v42 }
 0x607   :  { %12445 = vmatprep.subr.bf16.mxu1 %v17495_v3  ;;  %v17535_v3 = vld [vmem:[#allocation8 + $0x1460] ss:$72 sps:$4 sm:$0xff]  }
 0x608   :  { %12567 = vmatpush2.bf16.msra.mxu0 %v17490_v58  ;;  %v17543_v58 = vld [vmem:[#allocation8 + $0x13d4] ss:$72 sps:$4 sm:$0xff]  }
 0x609   :  { %12568 = vmatprep.subr.bf16.mxu0 %v17498_v10  ;;  %v17538_v10 = vld [vmem:[#allocation8 + $0x1468] ss:$72 sps:$4 sm:$0xff]  }
 0x60a   :  { %12446 = vmatpush2.bf16.msra.mxu1 %v17493_v59  ;;  %v17546_v59 = vld [vmem:[#allocation8 + $0x13dc] ss:$72 sps:$4 sm:$0xff]  }
 0x60b   :  { %12447 = vmatprep.subr.bf16.mxu1 %v17501_v63  ;;  %v17549_v63 = vld [vmem:[#allocation8 + $0x1344] ss:$72 sps:$4 sm:$0xff]  }
 0x60c   :  { %12569 = vmatpush2.bf16.msra.mxu0 %v17496_v11  ;;  %v17544_v11 = vld [vmem:[#allocation8 + $0x13d8] ss:$72 sps:$4 sm:$0xff]  }
 0x60d   :  { %12570 = vmatprep.subr.bf16.mxu0 %v17504_v2  ;;  %v17552_v2 = vld [vmem:[#allocation8 + $0x134c] ss:$72 sps:$4 sm:$0xff]  }
 0x60e   :  { %12448 = vmatpush2.bf16.msra.mxu1 %v17499_v8  ;;  %v17547_v8 = vld [vmem:[#allocation8 + $0x1340] ss:$72 sps:$4 sm:$0xff]  }
 0x60f   :  { %12449 = vmatprep.subr.bf16.mxu1 %v17507_v41  ;;  %v17555_v41 = vld [vmem:[#allocation8 + $0x12b4] ss:$72 sps:$4 sm:$0xff]  }
 0x610   :  { %12571 = vmatpush2.bf16.msra.mxu0 %v17502_v4  ;;  %v17550_v4 = vld [vmem:[#allocation8 + $0x1348] ss:$72 sps:$4 sm:$0xff]  }
 0x611   :  { %12572 = vmatprep.subr.bf16.mxu0 %v17510_v12  ;;  %v17558_v12 = vld [vmem:[#allocation8 + $0x12bc] ss:$72 sps:$4 sm:$0xff]  }
 0x612   :  { %12450 = vmatpush2.bf16.msra.mxu1 %v17505_v15  ;;  %v17553_v15 = vld [vmem:[#allocation8 + $0x12b0] ss:$72 sps:$4 sm:$0xff]  }
 0x613   :  { %12451 = vmatprep.subr.bf16.mxu1 %v17513_v30  ;;  %v17561_v30 = vld [vmem:[#allocation8 + $0x1224] ss:$72 sps:$4 sm:$0xff]  }
 0x614   :  { %12573 = vmatpush2.bf16.msra.mxu0 %v17508_v33  ;;  %v17556_v33 = vld [vmem:[#allocation8 + $0x12b8] ss:$72 sps:$4 sm:$0xff]  }
 0x615   :  { %12574 = vmatprep.subr.bf16.mxu0 %v17516_v35  ;;  %v17564_v35 = vld [vmem:[#allocation8 + $0x122c] ss:$72 sps:$4 sm:$0xff]  }
 0x616   :  { %12452 = vmatpush2.bf16.msra.mxu1 %v17511_v16  ;;  %v17559_v16 = vld [vmem:[#allocation8 + $0x1220] ss:$72 sps:$4 sm:$0xff]  }
 0x617   :  { %12503 = vmatprep.subr.bf16.mxu1 %v17519_v28  ;;  %v17567_v28 = vld [vmem:[#allocation8 + $0x1a94] ss:$72 sps:$4 sm:$0xff]  }
 0x618   :  { %12575 = vmatpush2.bf16.msra.mxu0 %v17514_v24  ;;  %v17562_v24 = vld [vmem:[#allocation8 + $0x1228] ss:$72 sps:$4 sm:$0xff]  }
 0x619   :  { %v12209_v7 = vpop.f32.mrf.mxu1  ;;  %12454 = vmatmul.mubr.bf16.vlgmr.msra.gmra.mxu1 %v18772_v19  ;;  %12626 = vmatprep.subr.bf16.mxu0 %v17522_v20  ;;  %v17570_v20 = vld [vmem:[#allocation8 + $0x1a9c] ss:$72 sps:$4 sm:$0xff]  }
 0x61a   :  { %v12210_v32 = vadd.f32 %v12209_v7, %v7538_v53  ;;  %12504 = vmatpush1.bf16.msra.mxu1 %v17517_v22  ;;  %12535 = vmatprep.mubr.bf16.mxu1 %v18824_v37  ;;  %v17565_v53 = vld [vmem:[#allocation8 + $0x1a90] ss:$72 sps:$4 sm:$0xff]   ;;  %v17573_v22 = vld [vmem:[#allocation8 + $0x1a04] ss:$72 sps:$4 sm:$0xff]   ;;  %v17579_v7 = vld [vmem:[#allocation8 + $0x1974] ss:$72 sps:$4 sm:$0xff]  }
 0x61b   :  { %v12211_v17 = vpop.f32.mrf.mxu1  ;;  %v18901_v48 = vpop.f32.mrf.mxu0  ;;  %12577 = vmatmul.mubr.bf16.vlgmr.msra.gmra.mxu0 %v18772_v19  ;;  %12505 = vmatprep.subr.bf16.mxu1 %v17525_v14  ;;  %v17568_v14 = vld [vmem:[#allocation8 + $0x1a98] ss:$72 sps:$4 sm:$0xff]  }
 0x61c   :  { %v12212_v52 = vadd.f32 %v12211_v17, %v7542_v39  ;;  %12627 = vmatpush1.bf16.msra.mxu0 %v17520_v60  ;;  %12658 = vmatprep.mubr.bf16.mxu0 %v18824_v37  ;;  %v18906_v43 = vadd.f32 %v18881_v0, %v12210_v32  ;;  %v17540_v0 = vld [vmem:[#allocation8 + $0x146c] ss:$72 sps:$4 sm:$0xff]   ;;  %v17571_v60 = vld [vmem:[#allocation8 + $0x1a00] ss:$72 sps:$4 sm:$0xff]   ;;  %v17582_v32 = vld [vmem:[#allocation8 + $0x197c] ss:$72 sps:$4 sm:$0xff]  }
 0x61d   :  { %v12213_v44 = vpop.f32.mrf.mxu1  ;;  %v18908_v26 = vpop.f32.mrf.mxu0  ;;  %12628 = vmatprep.subr.bf16.mxu0 %v17528_v27  ;;  %v17576_v39 = vld [vmem:[#allocation8 + $0x1a0c] ss:$72 sps:$4 sm:$0xff]   ;;  %v17574_v27 = vld [vmem:[#allocation8 + $0x1a08] ss:$72 sps:$4 sm:$0xff]  }
 0x61e   :  { %12506 = vmatpush1.bf16.msra.mxu1 %v17523_v49  ;;  %v18911_v47 = vadd.f32 %v18888_v13, %v12212_v52  ;;  %v17541_v13 = vld [vmem:[#allocation8 + $0x13d0] ss:$72 sps:$4 sm:$0xff]   ;;  %v17585_v17 = vld [vmem:[#allocation8 + $0x18e4] ss:$72 sps:$4 sm:$0xff]   ;;  %v15314_v44 = vmul.f32 -1.442695, %v18867_v5 }
 0x61f   :  { %v12214_v45 = vpop.f32.mrf.mxu1  ;;  %v12336_v46 = vpop.f32.mrf.mxu0  ;;  %12507 = vmatprep.subr.bf16.mxu1 %v17531_v62  ;;  %v17577_v49 = vld [vmem:[#allocation8 + $0x1970] ss:$72 sps:$4 sm:$0xff]   ;;  %v17588_v52 = vld [vmem:[#allocation8 + $0x18ec] ss:$72 sps:$4 sm:$0xff]   ;;  %v17595_v5 = vld [vmem:[#allocation8 + $0x17c0] ss:$72 sps:$4 sm:$0xff]  }
 0x620   :  { %12629 = vmatpush1.bf16.msra.mxu0 %v17526_v61  ;;  %v17580_v62 = vld [vmem:[#allocation8 + $0x1978] ss:$72 sps:$4 sm:$0xff]   ;;  %v15315_v45 = vmul.f32 -1.442695, %v18885_v57  ;;  %v17594_v46 = vld [vmem:[#allocation8 + $0x185c] ss:$72 sps:$4 sm:$0xff]   ;;  %18171 = vpow2.f32 %v15314_v44 }
 0x621   :  { %v12337_v42 = vpop.f32.mrf.mxu0  ;;  %12630 = vmatprep.subr.bf16.mxu0 %v17534_v9  ;;  %v17583_v61 = vld [vmem:[#allocation8 + $0x18e0] ss:$72 sps:$4 sm:$0xff]   ;;  %v17591_v9 = vld [vmem:[#allocation8 + $0x1854] ss:$72 sps:$4 sm:$0xff]  }
 0x622   :  { %12508 = vmatpush1.bf16.msra.mxu1 %v17529_v36  ;;  %v17586_v36 = vld [vmem:[#allocation8 + $0x18e8] ss:$72 sps:$4 sm:$0xff]   ;;  %v17592_v42 = vld [vmem:[#allocation8 + $0x1858] ss:$72 sps:$4 sm:$0xff]   ;;  %18173 = vpow2.f32 %v15315_v45  ;;  %v17606_v57 = vld [vmem:[#allocation8 + $0x173c] ss:$72 sps:$4 sm:$0xff]  }
 0x623   :  { %12509 = vmatprep.subr.bf16.mxu1 %v17537_v56  ;;  %v17589_v56 = vld [vmem:[#allocation8 + $0x1850] ss:$72 sps:$4 sm:$0xff]   ;;  %v17636_v44 = vld [vmem:[#allocation8 + $0xb74] ss:$72 sps:$4 sm:$0xff]  }
 0x624   :  { %12631 = vmatpush1.bf16.msra.mxu0 %v17532_v40  ;;  %v17597_v40 = vld [vmem:[#allocation8 + $0x17c4] ss:$72 sps:$4 sm:$0xff]   ;;  %v17634_v45 = vld [vmem:[#allocation8 + $0xb70] ss:$72 sps:$4 sm:$0xff]  }
 0x625   :  { %12632 = vmatprep.subr.bf16.mxu0 %v17540_v0  ;;  %v17600_v0 = vld [vmem:[#allocation8 + $0x17cc] ss:$72 sps:$4 sm:$0xff]  }
 0x626   :  { %12510 = vmatpush1.bf16.msra.mxu1 %v17535_v3  ;;  %v17603_v3 = vld [vmem:[#allocation8 + $0x1734] ss:$72 sps:$4 sm:$0xff]  }
 0x627   :  { %12511 = vmatprep.subr.bf16.mxu1 %v17543_v58  ;;  %v17598_v58 = vld [vmem:[#allocation8 + $0x17c8] ss:$72 sps:$4 sm:$0xff]  }
 0x628   :  { %12633 = vmatpush1.bf16.msra.mxu0 %v17538_v10  ;;  %v17601_v10 = vld [vmem:[#allocation8 + $0x1730] ss:$72 sps:$4 sm:$0xff]  }
 0x629   :  { %12634 = vmatprep.subr.bf16.mxu0 %v17546_v59  ;;  %v17609_v59 = vld [vmem:[#allocation8 + $0x16a4] ss:$72 sps:$4 sm:$0xff]  }
 0x62a   :  { %12512 = vmatpush1.bf16.msra.mxu1 %v17541_v13  ;;  %v17604_v13 = vld [vmem:[#allocation8 + $0x1738] ss:$72 sps:$4 sm:$0xff]  }
 0x62b   :  { %12513 = vmatprep.subr.bf16.mxu1 %v17549_v63  ;;  %v17612_v63 = vld [vmem:[#allocation8 + $0x16ac] ss:$72 sps:$4 sm:$0xff]  }
 0x62c   :  { %12635 = vmatpush1.bf16.msra.mxu0 %v17544_v11  ;;  %v17607_v11 = vld [vmem:[#allocation8 + $0x16a0] ss:$72 sps:$4 sm:$0xff]  }
 0x62d   :  { %12636 = vmatprep.subr.bf16.mxu0 %v17552_v2  ;;  %v17615_v2 = vld [vmem:[#allocation8 + $0xd1c] ss:$72 sps:$4 sm:$0xff]  }
 0x62e   :  { %12514 = vmatpush1.bf16.msra.mxu1 %v17547_v8  ;;  %v18172_v8 = vpop.eup %18171 }
 0x62f   :  { %12515 = vmatprep.subr.bf16.mxu1 %v17555_v41  ;;  %v17610_v41 = vld [vmem:[#allocation8 + $0x16a8] ss:$72 sps:$4 sm:$0xff]  }
 0x630   :  { %12637 = vmatpush1.bf16.msra.mxu0 %v17550_v4  ;;  %v17618_v4 = vld [vmem:[#allocation8 + $0xd24] ss:$72 sps:$4 sm:$0xff]  }
 0x631   :  { %12638 = vmatprep.subr.bf16.mxu0 %v17558_v12  ;;  %v18174_v12 = vpop.eup %18173 }
 0x632   :  { %12516 = vmatpush1.bf16.msra.mxu1 %v17553_v15  ;;  %v17613_v15 = vld [vmem:[#allocation8 + $0xd18] ss:$72 sps:$4 sm:$0xff]  }
 0x633   :  { %12517 = vmatprep.subr.bf16.mxu1 %v17561_v30  ;;  %v13046_v30 = vadd.f32 1.0, %v18172_v8  ;;  %v17649_v8 = vld [vmem:[#allocation8 + $0x9b8] ss:$72 sps:$4 sm:$0xff]  }
 0x634   :  { %12639 = vmatpush1.bf16.msra.mxu0 %v17556_v33  ;;  %v17621_v33 = vld [vmem:[#allocation8 + $0xc8c] ss:$72 sps:$4 sm:$0xff]  }
 0x635   :  { %12640 = vmatprep.subr.bf16.mxu0 %v17564_v35  ;;  %v17616_v35 = vld [vmem:[#allocation8 + $0xd20] ss:$72 sps:$4 sm:$0xff]   ;;  %18175 = vrcp.f32 %v13046_v30  ;;  %v17663_v30 = vld [vmem:[#allocation8 + $0x119c] ss:$72 sps:$4 sm:$0xff]  }
 0x636   :  { %12518 = vmatpush1.bf16.msra.mxu1 %v17559_v16  ;;  %v13047_v16 = vadd.f32 1.0, %v18174_v12  ;;  %v17660_v12 = vld [vmem:[#allocation8 + $0x934] ss:$72 sps:$4 sm:$0xff]  }
 0x637   :  { %12519 = vmatprep.subr.bf16.mxu1 %v17567_v28 }
 0x638   :  { %12641 = vmatpush1.bf16.msra.mxu0 %v17562_v24  ;;  %v17624_v24 = vld [vmem:[#allocation8 + $0xc94] ss:$72 sps:$4 sm:$0xff]  }
 0x639   :  { %12642 = vmatprep.subr.bf16.mxu0 %v17570_v20 }
 0x63a   :  { %12520 = vmatpush2.bf16.msra.mxu1 %v17565_v53  ;;  %v17619_v53 = vld [vmem:[#allocation8 + $0xc88] ss:$72 sps:$4 sm:$0xff]  }
 0x63b   :  { %12521 = vmatprep.subr.bf16.mxu1 %v17573_v22 }
 0x63c   :  { %12643 = vmatpush2.bf16.msra.mxu0 %v17568_v14 }
 0x63d   :  { %12644 = vmatprep.subr.bf16.mxu0 %v17576_v39  ;;  %v17627_v39 = vld [vmem:[#allocation8 + $0xbfc] ss:$72 sps:$4 sm:$0xff]  }
 0x63e   :  { %12522 = vmatpush2.bf16.msra.mxu1 %v17571_v60 }
 0x63f   :  { %12523 = vmatprep.subr.bf16.mxu1 %v17579_v7  ;;  %v17622_v7 = vld [vmem:[#allocation8 + $0xc90] ss:$72 sps:$4 sm:$0xff]  }
 0x640   :  { %12645 = vmatpush2.bf16.msra.mxu0 %v17574_v27 }
 0x641   :  { %12646 = vmatprep.subr.bf16.mxu0 %v17582_v32  ;;  %v17630_v32 = vld [vmem:[#allocation8 + $0xc04] ss:$72 sps:$4 sm:$0xff]  }
 0x642   :  { %12524 = vmatpush2.bf16.msra.mxu1 %v17577_v49  ;;  %v17625_v49 = vld [vmem:[#allocation8 + $0xbf8] ss:$72 sps:$4 sm:$0xff]  }
 0x643   :  { %12525 = vmatprep.subr.bf16.mxu1 %v17585_v17 }
 0x644   :  { %12647 = vmatpush2.bf16.msra.mxu0 %v17580_v62 }
 0x645   :  { %12648 = vmatprep.subr.bf16.mxu0 %v17588_v52  ;;  %v17633_v52 = vld [vmem:[#allocation8 + $0xb6c] ss:$72 sps:$4 sm:$0xff]  }
 0x646   :  { %12526 = vmatpush2.bf16.msra.mxu1 %v17583_v61  ;;  %v17628_v61 = vld [vmem:[#allocation8 + $0xc00] ss:$72 sps:$4 sm:$0xff]  }
 0x647   :  { %12527 = vmatprep.subr.bf16.mxu1 %v17591_v9  ;;  %v17631_v9 = vld [vmem:[#allocation8 + $0xb68] ss:$72 sps:$4 sm:$0xff]  }
 0x648   :  { %12649 = vmatpush2.bf16.msra.mxu0 %v17586_v36  ;;  %v17639_v36 = vld [vmem:[#allocation8 + $0xadc] ss:$72 sps:$4 sm:$0xff]  }
 0x649   :  { %12650 = vmatprep.subr.bf16.mxu0 %v17594_v46  ;;  %v17642_v46 = vld [vmem:[#allocation8 + $0xae4] ss:$72 sps:$4 sm:$0xff]  }
 0x64a   :  { %12528 = vmatpush2.bf16.msra.mxu1 %v17589_v56  ;;  %v17637_v56 = vld [vmem:[#allocation8 + $0xad8] ss:$72 sps:$4 sm:$0xff]  }
 0x64b   :  { %12529 = vmatprep.subr.bf16.mxu1 %v17597_v40  ;;  %v17645_v40 = vld [vmem:[#allocation8 + $0xa4c] ss:$72 sps:$4 sm:$0xff]  }
 0x64c   :  { %12651 = vmatpush2.bf16.msra.mxu0 %v17592_v42  ;;  %v18176_v42 = vpop.eup %18175 }
 0x64d   :  { %12652 = vmatprep.subr.bf16.mxu0 %v17600_v0  ;;  %v17640_v0 = vld [vmem:[#allocation8 + $0xae0] ss:$72 sps:$4 sm:$0xff]  }
 0x64e   :  { %12530 = vmatpush2.bf16.msra.mxu1 %v17595_v5 }
 0x64f   :  { %12531 = vmatprep.subr.bf16.mxu1 %v17603_v3  ;;  %v17648_v3 = vld [vmem:[#allocation8 + $0xa54] ss:$72 sps:$4 sm:$0xff]  }
 0x650   :  { %12653 = vmatpush2.bf16.msra.mxu0 %v17598_v58 }
 0x651   :  { %12654 = vmatprep.subr.bf16.mxu0 %v17606_v57 }
 0x652   :  { %12532 = vmatpush2.bf16.msra.mxu1 %v17601_v10  ;;  %v17643_v10 = vld [vmem:[#allocation8 + $0xa48] ss:$72 sps:$4 sm:$0xff]  }
 0x653   :  { %12533 = vmatprep.subr.bf16.mxu1 %v17609_v59 }
 0x654   :  { %12655 = vmatpush2.bf16.msra.mxu0 %v17604_v13  ;;  %v17651_v13 = vld [vmem:[#allocation8 + $0x9bc] ss:$72 sps:$4 sm:$0xff]  }
 0x655   :  { %12656 = vmatprep.subr.bf16.mxu0 %v17612_v63 }
 0x656   :  { %12534 = vmatpush2.bf16.msra.mxu1 %v17607_v11  ;;  %v17646_v11 = vld [vmem:[#allocation8 + $0xa50] ss:$72 sps:$4 sm:$0xff]  }
 0x657   :  { %12585 = vmatprep.subr.bf16.mxu1 %v17615_v2  ;;  %v17654_v2 = vld [vmem:[#allocation8 + $0x9c4] ss:$72 sps:$4 sm:$0xff]  }
 0x658   :  { %12657 = vmatpush2.bf16.msra.mxu0 %v17610_v41  ;;  %v17657_v41 = vld [vmem:[#allocation8 + $0x92c] ss:$72 sps:$4 sm:$0xff]  }
 0x659   :  { %v12291_v28 = vpop.f32.mrf.mxu1  ;;  %12536 = vmatmul.mubr.bf16.vlgmr.msra.gmra.mxu1 %v18826_v55  ;;  %12708 = vmatprep.subr.bf16.mxu0 %v17618_v4  ;;  %v17652_v4 = vld [vmem:[#allocation8 + $0x9c0] ss:$72 sps:$4 sm:$0xff]  }
 0x65a   :  { %v12292_v20 = vadd.f32 %v12291_v28, %v18906_v43  ;;  %12586 = vmatpush1.bf16.msra.mxu1 %v17613_v15  ;;  %12617 = vmatprep.mubr.bf16.mxu1 %v18794_v38  ;;  %v17655_v15 = vld [vmem:[#allocation8 + $0x928] ss:$72 sps:$4 sm:$0xff]   ;;  %v17669_v28 = vld [vmem:[#allocation8 + $0x110c] ss:$72 sps:$4 sm:$0xff]  }
 0x65b   :  { %v12293_v22 = vpop.f32.mrf.mxu1  ;;  %v18918_v14 = vpop.f32.mrf.mxu0  ;;  %12659 = vmatmul.mubr.bf16.vlgmr.msra.gmra.mxu0 %v18826_v55  ;;  %12587 = vmatprep.subr.bf16.mxu1 %v17621_v33  ;;  %v17658_v33 = vld [vmem:[#allocation8 + $0x930] ss:$72 sps:$4 sm:$0xff]  }
 0x65c   :  { %18177 = vtanh.f32 %v12292_v20  ;;  %v12294_v60 = vadd.f32 %v12293_v22, %v18911_v47  ;;  %12709 = vmatpush1.bf16.msra.mxu0 %v17616_v35  ;;  %12740 = vmatprep.mubr.bf16.mxu0 %v18794_v38  ;;  %v17666_v35 = vld [vmem:[#allocation8 + $0x11a4] ss:$72 sps:$4 sm:$0xff]   ;;  %v17672_v20 = vld [vmem:[#allocation8 + $0x1114] ss:$72 sps:$4 sm:$0xff]  }
 0x65d   :  { %18179 = vrcp.f32 %v13047_v16  ;;  %v12295_v43 = vpop.f32.mrf.mxu1  ;;  %v18923_v27 = vpop.f32.mrf.mxu0  ;;  %12710 = vmatprep.subr.bf16.mxu0 %v17624_v24  ;;  %v17661_v16 = vld [vmem:[#allocation8 + $0x1198] ss:$72 sps:$4 sm:$0xff]   ;;  %v17675_v22 = vld [vmem:[#allocation8 + $0x107c] ss:$72 sps:$4 sm:$0xff]  }
 0x65e   :  { %18181 = vtanh.f32 %v12294_v60  ;;  %12588 = vmatpush1.bf16.msra.mxu1 %v17619_v53  ;;  %v17664_v24 = vld [vmem:[#allocation8 + $0x11a0] ss:$72 sps:$4 sm:$0xff]   ;;  %v17678_v60 = vld [vmem:[#allocation8 + $0x1084] ss:$72 sps:$4 sm:$0xff]  }
 0x65f   :  { %v12296_v17 = vpop.f32.mrf.mxu1  ;;  %v12418_v62 = vpop.f32.mrf.mxu0  ;;  %12589 = vmatprep.subr.bf16.mxu1 %v17627_v39  ;;  %v17667_v53 = vld [vmem:[#allocation8 + $0x1108] ss:$72 sps:$4 sm:$0xff]   ;;  %v17681_v43 = vld [vmem:[#allocation8 + $0xfec] ss:$72 sps:$4 sm:$0xff]  }
 0x660   :  { %12711 = vmatpush1.bf16.msra.mxu0 %v17622_v7  ;;  %v17670_v39 = vld [vmem:[#allocation8 + $0x1110] ss:$72 sps:$4 sm:$0xff]   ;;  %v17687_v62 = vld [vmem:[#allocation8 + $0xf5c] ss:$72 sps:$4 sm:$0xff]  }
 0x661   :  { %v12419_v47 = vpop.f32.mrf.mxu0  ;;  %12712 = vmatprep.subr.bf16.mxu0 %v17630_v32  ;;  %v17673_v7 = vld [vmem:[#allocation8 + $0x1078] ss:$72 sps:$4 sm:$0xff]   ;;  %v17679_v17 = vld [vmem:[#allocation8 + $0xfe8] ss:$72 sps:$4 sm:$0xff]  }
 0x662   :  { %12590 = vmatpush1.bf16.msra.mxu1 %v17625_v49  ;;  %v17676_v32 = vld [vmem:[#allocation8 + $0x1080] ss:$72 sps:$4 sm:$0xff]   ;;  %v17684_v49 = vld [vmem:[#allocation8 + $0xff4] ss:$72 sps:$4 sm:$0xff]  }
 0x663   :  { %12591 = vmatprep.subr.bf16.mxu1 %v17633_v52  ;;  %v17682_v52 = vld [vmem:[#allocation8 + $0xff0] ss:$72 sps:$4 sm:$0xff]  }
 0x664   :  { %12713 = vmatpush1.bf16.msra.mxu0 %v17628_v61  ;;  %v17690_v61 = vld [vmem:[#allocation8 + $0xf64] ss:$72 sps:$4 sm:$0xff]   ;;  %v17685_v47 = vld [vmem:[#allocation8 + $0xf58] ss:$72 sps:$4 sm:$0xff]  }
 0x665   :  { %12714 = vmatprep.subr.bf16.mxu0 %v17636_v44  ;;  %v17693_v44 = vld [vmem:[#allocation8 + $0xecc] ss:$72 sps:$4 sm:$0xff]  }
 0x666   :  { %12592 = vmatpush1.bf16.msra.mxu1 %v17631_v9  ;;  %v17688_v9 = vld [vmem:[#allocation8 + $0xf60] ss:$72 sps:$4 sm:$0xff]  }
 0x667   :  { %12593 = vmatprep.subr.bf16.mxu1 %v17639_v36  ;;  %v17696_v36 = vld [vmem:[#allocation8 + $0xed4] ss:$72 sps:$4 sm:$0xff]  }
 0x668   :  { %12715 = vmatpush1.bf16.msra.mxu0 %v17634_v45  ;;  %v17691_v45 = vld [vmem:[#allocation8 + $0xec8] ss:$72 sps:$4 sm:$0xff]  }
 0x669   :  { %v18178_v5 = vpop.eup %18177  ;;  %12716 = vmatprep.subr.bf16.mxu0 %v17642_v46  ;;  %v17699_v46 = vld [vmem:[#allocation8 + $0xe3c] ss:$72 sps:$4 sm:$0xff]  }
 0x66a   :  { %v18180_v58 = vpop.eup %18179  ;;  %v18925_v57 = vmul.f32 %v18178_v5, %v18176_v42  ;;  %12594 = vmatpush1.bf16.msra.mxu1 %v17637_v56  ;;  %v17694_v56 = vld [vmem:[#allocation8 + $0xed0] ss:$72 sps:$4 sm:$0xff]   ;;  %v17700_v5 = vld [vmem:[#allocation8 + $0xe40] ss:$72 sps:$4 sm:$0xff]  }
 0x66b   :  { %v18182_v59 = vpop.eup %18181  ;;  %12595 = vmatprep.subr.bf16.mxu1 %v17645_v40  ;;  %v17702_v40 = vld [vmem:[#allocation8 + $0xe44] ss:$72 sps:$4 sm:$0xff]   ;;  %v17697_v42 = vld [vmem:[#allocation8 + $0xe38] ss:$72 sps:$4 sm:$0xff]  }
 0x66c   :  { %v18927_v63 = vmul.f32 %v18182_v59, %v18180_v58  ;;  %12717 = vmatpush1.bf16.msra.mxu0 %v17640_v0  ;;  %v17705_v0 = vld [vmem:[#allocation8 + $0xdac] ss:$72 sps:$4 sm:$0xff]   ;;  %v17703_v58 = vld [vmem:[#allocation8 + $0xda8] ss:$72 sps:$4 sm:$0xff]   ;;  %v7546_v59 = vrot.slane %v18893_v18, %v18692_v25 }
 0x66d   :  { %12718 = vmatprep.subr.bf16.mxu0 %v17648_v3  ;;  %v17708_v3 = vld [vmem:[#allocation8 + $0xdb4] ss:$72 sps:$4 sm:$0xff]  }
 0x66e   :  { %12596 = vmatpush1.bf16.msra.mxu1 %v17643_v10  ;;  %v17711_v10 = vld [vmem:[#allocation8 + $0x424] ss:$72 sps:$4 sm:$0xff]  }
 0x66f   :  { %12597 = vmatprep.subr.bf16.mxu1 %v17651_v13  ;;  %v17706_v13 = vld [vmem:[#allocation8 + $0xdb0] ss:$72 sps:$4 sm:$0xff]  }
 0x670   :  { %12719 = vmatpush1.bf16.msra.mxu0 %v17646_v11  ;;  %v17714_v11 = vld [vmem:[#allocation8 + $0x42c] ss:$72 sps:$4 sm:$0xff]  }
 0x671   :  { %12720 = vmatprep.subr.bf16.mxu0 %v17654_v2  ;;  %v7550_v2 = vrot.slane %v18893_v18, %v18695_v29  ;;  %v17715_v18 = vld [vmem:[#allocation8 + $0x390] ss:$72 sps:$4 sm:$0xff]  }
 0x672   :  { %12598 = vmatpush1.bf16.msra.mxu1 %v17649_v8  ;;  %v17709_v8 = vld [vmem:[#allocation8 + $0x420] ss:$72 sps:$4 sm:$0xff]  }
 0x673   :  { %12599 = vmatprep.subr.bf16.mxu1 %v17657_v41  ;;  %v17717_v41 = vld [vmem:[#allocation8 + $0x394] ss:$72 sps:$4 sm:$0xff]  }
 0x674   :  { %12721 = vmatpush1.bf16.msra.mxu0 %v17652_v4  ;;  %v12333_v4 = vadd.f32 %v18901_v48, %v7546_v59  ;;  %v17723_v48 = vld [vmem:[#allocation8 + $0x304] ss:$72 sps:$4 sm:$0xff]  }
 0x675   :  { %12722 = vmatprep.subr.bf16.mxu0 %v17660_v12  ;;  %v17712_v12 = vld [vmem:[#allocation8 + $0x428] ss:$72 sps:$4 sm:$0xff]  }
 0x676   :  { %12600 = vmatpush1.bf16.msra.mxu1 %v17655_v15 }
 0x677   :  { %12601 = vmatprep.subr.bf16.mxu1 %v17663_v30  ;;  %v17720_v30 = vld [vmem:[#allocation8 + $0x39c] ss:$72 sps:$4 sm:$0xff]  }
 0x678   :  { %12723 = vmatpush1.bf16.msra.mxu0 %v17658_v33  ;;  %v12335_v33 = vadd.f32 %v18908_v26, %v7550_v2  ;;  %v17748_v2 = vld [vmem:[#allocation8 + $0xc8] ss:$72 sps:$4 sm:$0xff]  }
 0x679   :  { %12724 = vmatprep.subr.bf16.mxu0 %v17666_v35 }
 0x67a   :  { %12602 = vmatpush2.bf16.msra.mxu1 %v17661_v16 }
 0x67b   :  { %12603 = vmatprep.subr.bf16.mxu1 %v17669_v28 }
 0x67c   :  { %12725 = vmatpush2.bf16.msra.mxu0 %v17664_v24 }
 0x67d   :  { %12726 = vmatprep.subr.bf16.mxu0 %v17672_v20 }
 0x67e   :  { %12604 = vmatpush2.bf16.msra.mxu1 %v17667_v53  ;;  %v17718_v53 = vld [vmem:[#allocation8 + $0x398] ss:$72 sps:$4 sm:$0xff]  }
 0x67f   :  { %12605 = vmatprep.subr.bf16.mxu1 %v17675_v22 }
 0x680   :  { %12727 = vmatpush2.bf16.msra.mxu0 %v17670_v39  ;;  %v17726_v39 = vld [vmem:[#allocation8 + $0x30c] ss:$72 sps:$4 sm:$0xff]  }
 0x681   :  { %12728 = vmatprep.subr.bf16.mxu0 %v17678_v60 }
 0x682   :  { %12606 = vmatpush2.bf16.msra.mxu1 %v17673_v7 }
 0x683   :  { %12607 = vmatprep.subr.bf16.mxu1 %v17681_v43  ;;  %v17721_v43 = vld [vmem:[#allocation8 + $0x300] ss:$72 sps:$4 sm:$0xff]  }
 0x684   :  { %12729 = vmatpush2.bf16.msra.mxu0 %v17676_v32 }
 0x685   :  { %12730 = vmatprep.subr.bf16.mxu0 %v17684_v49 }
 0x686   :  { %12608 = vmatpush2.bf16.msra.mxu1 %v17679_v17  ;;  %v17729_v17 = vld [vmem:[#allocation8 + $0x274] ss:$72 sps:$4 sm:$0xff]  }
 0x687   :  { %12609 = vmatprep.subr.bf16.mxu1 %v17687_v62  ;;  %v17724_v62 = vld [vmem:[#allocation8 + $0x308] ss:$72 sps:$4 sm:$0xff]  }
 0x688   :  { %12731 = vmatpush2.bf16.msra.mxu0 %v17682_v52 }
 0x689   :  { %12732 = vmatprep.subr.bf16.mxu0 %v17690_v61  ;;  %v17732_v61 = vld [vmem:[#allocation8 + $0x27c] ss:$72 sps:$4 sm:$0xff]  }
 0x68a   :  { %12610 = vmatpush2.bf16.msra.mxu1 %v17685_v47  ;;  %v17727_v47 = vld [vmem:[#allocation8 + $0x270] ss:$72 sps:$4 sm:$0xff]  }
 0x68b   :  { %12611 = vmatprep.subr.bf16.mxu1 %v17693_v44  ;;  %v17735_v44 = vld [vmem:[#allocation8 + $0x1e4] ss:$72 sps:$4 sm:$0xff]  }
 0x68c   :  { %12733 = vmatpush2.bf16.msra.mxu0 %v17688_v9  ;;  %v17738_v9 = vld [vmem:[#allocation8 + $0x1ec] ss:$72 sps:$4 sm:$0xff]  }
 0x68d   :  { %12734 = vmatprep.subr.bf16.mxu0 %v17696_v36  ;;  %v17733_v36 = vld [vmem:[#allocation8 + $0x1e0] ss:$72 sps:$4 sm:$0xff]  }
 0x68e   :  { %12612 = vmatpush2.bf16.msra.mxu1 %v17691_v45  ;;  %v17741_v45 = vld [vmem:[#allocation8 + $0x154] ss:$72 sps:$4 sm:$0xff]  }
 0x68f   :  { %12613 = vmatprep.subr.bf16.mxu1 %v17699_v46  ;;  %v17736_v46 = vld [vmem:[#allocation8 + $0x1e8] ss:$72 sps:$4 sm:$0xff]  }
 0x690   :  { %12735 = vmatpush2.bf16.msra.mxu0 %v17694_v56  ;;  %v17744_v56 = vld [vmem:[#allocation8 + $0x15c] ss:$72 sps:$4 sm:$0xff]  }
 0x691   :  { %12736 = vmatprep.subr.bf16.mxu0 %v17702_v40  ;;  %v17739_v40 = vld [vmem:[#allocation8 + $0x150] ss:$72 sps:$4 sm:$0xff]  }
 0x692   :  { %12614 = vmatpush2.bf16.msra.mxu1 %v17697_v42  ;;  %v17747_v42 = vld [vmem:[#allocation8 + $0xc4] ss:$72 sps:$4 sm:$0xff]  }
 0x693   :  { %12615 = vmatprep.subr.bf16.mxu1 %v17705_v0  ;;  %v17742_v0 = vld [vmem:[#allocation8 + $0x158] ss:$72 sps:$4 sm:$0xff]  }
 0x694   :  { %12737 = vmatpush2.bf16.msra.mxu0 %v17700_v5 }
 0x695   :  { %12738 = vmatprep.subr.bf16.mxu0 %v17708_v3  ;;  %v17750_v3 = vld [vmem:[#allocation8 + $0xcc] ss:$72 sps:$4 sm:$0xff]  }
 0x696   :  { %12616 = vmatpush2.bf16.msra.mxu1 %v17703_v58 }
 0x697   :  { %12667 = vmatprep.subr.bf16.mxu1 %v17711_v10  ;;  %v17745_v10 = vld [vmem:[#allocation8 + $0xc0] ss:$72 sps:$4 sm:$0xff]  }
 0x698   :  { %12739 = vmatpush2.bf16.msra.mxu0 %v17706_v13  ;;  %v17753_v13 = vld [vmem:[#allocation8 + $0x34] ss:$72 sps:$4 sm:$0xff]  }
 0x699   :  { %v12373_v15 = vpop.f32.mrf.mxu1  ;;  %12618 = vmatmul.mubr.bf16.vlgmr.msra.gmra.mxu1 %v18798_v50  ;;  %12790 = vmatprep.subr.bf16.mxu0 %v17714_v11 }
 0x69a   :  { %v12374_v35 = vadd.f32 %v12373_v15, %v12333_v4  ;;  %12668 = vmatpush1.bf16.msra.mxu1 %v17709_v8  ;;  %12699 = vmatprep.mubr.bf16.mxu1 %v18758_v51  ;;  %v17756_v8 = vld [vmem:[#allocation8 + $0x3c] ss:$72 sps:$4 sm:$0xff]   ;;  %v17762_v15 = vld [vmem:[#allocation8 + $0x8ac] ss:$72 sps:$4 sm:$0xff]  }
 0x69b   :  { %v12375_v16 = vpop.f32.mrf.mxu1  ;;  %v18937_v28 = vpop.f32.mrf.mxu0  ;;  %12741 = vmatmul.mubr.bf16.vlgmr.msra.gmra.mxu0 %v18798_v50  ;;  %12669 = vmatprep.subr.bf16.mxu1 %v17717_v41  ;;  %v17751_v41 = vld [vmem:[#allocation8 + $0x30] ss:$72 sps:$4 sm:$0xff]   ;;  %v17759_v4 = vld [vmem:[#allocation8 + $0x8a4] ss:$72 sps:$4 sm:$0xff]  }
 0x69c   :  { %v12415_v24 = vadd.f32 %v18918_v14, %v12374_v35  ;;  %v12376_v20 = vadd.f32 %v12375_v16, %v12335_v33  ;;  %12791 = vmatpush1.bf16.msra.mxu0 %v17712_v12  ;;  %12822 = vmatprep.mubr.bf16.mxu0 %v18758_v51  ;;  %v17754_v12 = vld [vmem:[#allocation8 + $0x38] ss:$72 sps:$4 sm:$0xff]   ;;  %v17760_v33 = vld [vmem:[#allocation8 + $0x8a8] ss:$72 sps:$4 sm:$0xff]   ;;  %v17768_v35 = vld [vmem:[#allocation8 + $0x81c] ss:$72 sps:$4 sm:$0xff]  }
 0x69d   :  { %v12377_v26 = vpop.f32.mrf.mxu1  ;;  %v18942_v22 = vpop.f32.mrf.mxu0  ;;  %12792 = vmatprep.subr.bf16.mxu0 %v17720_v30  ;;  %v17765_v30 = vld [vmem:[#allocation8 + $0x814] ss:$72 sps:$4 sm:$0xff]  }
 0x69e   :  { %v15316_v60 = vmul.f32 -1.442695, %v12415_v24  ;;  %v12417_v7 = vadd.f32 %v18923_v27, %v12376_v20  ;;  %12670 = vmatpush1.bf16.msra.mxu1 %v17715_v18  ;;  %v17730_v27 = vld [vmem:[#allocation8 + $0x278] ss:$72 sps:$4 sm:$0xff]   ;;  %v17771_v18 = vld [vmem:[#allocation8 + $0x784] ss:$72 sps:$4 sm:$0xff]  }
 0x69f   :  { %v12378_v32 = vpop.f32.mrf.mxu1  ;;  %v12500_v49 = vpop.f32.mrf.mxu0  ;;  %12671 = vmatprep.subr.bf16.mxu1 %v17723_v48  ;;  %v17766_v48 = vld [vmem:[#allocation8 + $0x818] ss:$72 sps:$4 sm:$0xff]   ;;  %v17774_v20 = vld [vmem:[#allocation8 + $0x78c] ss:$72 sps:$4 sm:$0xff]  }
 0x6a0   :  { %18183 = vpow2.f32 %v15316_v60  ;;  %v15317_v14 = vmul.f32 -1.442695, %v12417_v7  ;;  %12793 = vmatpush1.bf16.msra.mxu0 %v17718_v53  ;;  %v17769_v26 = vld [vmem:[#allocation8 + $0x780] ss:$72 sps:$4 sm:$0xff]   ;;  %v17777_v7 = vld [vmem:[#allocation8 + $0x6f4] ss:$72 sps:$4 sm:$0xff]  }
 0x6a1   :  { %v12501_v52 = vpop.f32.mrf.mxu0  ;;  %12794 = vmatprep.subr.bf16.mxu0 %v17726_v39  ;;  %v17780_v49 = vld [vmem:[#allocation8 + $0x6fc] ss:$72 sps:$4 sm:$0xff]  }
 0x6a2   :  { %18185 = vpow2.f32 %v15317_v14  ;;  %12672 = vmatpush1.bf16.msra.mxu1 %v17721_v43  ;;  %v17772_v43 = vld [vmem:[#allocation8 + $0x788] ss:$72 sps:$4 sm:$0xff]   ;;  %v17783_v14 = vld [vmem:[#allocation8 + $0x664] ss:$72 sps:$4 sm:$0xff]  }
 0x6a3   :  { %12673 = vmatprep.subr.bf16.mxu1 %v17729_v17  ;;  %18187 = vtanh.f32 %v18891_v23  ;;  %v17757_v23 = vld [vmem:[#allocation8 + $0x8a0] ss:$72 sps:$4 sm:$0xff]   ;;  %v17775_v17 = vld [vmem:[#allocation8 + $0x6f0] ss:$72 sps:$4 sm:$0xff]   ;;  %v17786_v52 = vld [vmem:[#allocation8 + $0x66c] ss:$72 sps:$4 sm:$0xff]  }
 0x6a4   :  { %12795 = vmatpush1.bf16.msra.mxu0 %v17724_v62  ;;  %v17778_v62 = vld [vmem:[#allocation8 + $0x6f8] ss:$72 sps:$4 sm:$0xff]  }
 0x6a5   :  { %12796 = vmatprep.subr.bf16.mxu0 %v17732_v61  ;;  %v17781_v61 = vld [vmem:[#allocation8 + $0x660] ss:$72 sps:$4 sm:$0xff]  }
 0x6a6   :  { %12674 = vmatpush1.bf16.msra.mxu1 %v17727_v47  ;;  %v17789_v47 = vld [vmem:[#allocation8 + $0x5d4] ss:$72 sps:$4 sm:$0xff]  }
 0x6a7   :  { %12675 = vmatprep.subr.bf16.mxu1 %v17735_v44  ;;  %v17784_v44 = vld [vmem:[#allocation8 + $0x668] ss:$72 sps:$4 sm:$0xff]  }
 0x6a8   :  { %12797 = vmatpush1.bf16.msra.mxu0 %v17730_v27  ;;  %v17792_v27 = vld [vmem:[#allocation8 + $0x5dc] ss:$72 sps:$4 sm:$0xff]  }
 0x6a9   :  { %12798 = vmatprep.subr.bf16.mxu0 %v17738_v9  ;;  %v17787_v9 = vld [vmem:[#allocation8 + $0x5d0] ss:$72 sps:$4 sm:$0xff]  }
 0x6aa   :  { %12676 = vmatpush1.bf16.msra.mxu1 %v17733_v36  ;;  %v17795_v36 = vld [vmem:[#allocation8 + $0x544] ss:$72 sps:$4 sm:$0xff]  }
 0x6ab   :  { %12677 = vmatprep.subr.bf16.mxu1 %v17741_v45  ;;  %v17790_v45 = vld [vmem:[#allocation8 + $0x5d8] ss:$72 sps:$4 sm:$0xff]  }
 0x6ac   :  { %12799 = vmatpush1.bf16.msra.mxu0 %v17736_v46  ;;  %v17798_v46 = vld [vmem:[#allocation8 + $0x54c] ss:$72 sps:$4 sm:$0xff]  }
 0x6ad   :  { %v18184_v5 = vpop.eup %18183  ;;  %12800 = vmatprep.subr.bf16.mxu0 %v17744_v56  ;;  %v17793_v56 = vld [vmem:[#allocation8 + $0x540] ss:$72 sps:$4 sm:$0xff]  }
 0x6ae   :  { %v13066_v58 = vadd.f32 1.0, %v18184_v5  ;;  %12678 = vmatpush1.bf16.msra.mxu1 %v17739_v40  ;;  %v17801_v40 = vld [vmem:[#allocation8 + $0x4b4] ss:$72 sps:$4 sm:$0xff]   ;;  %v17799_v5 = vld [vmem:[#allocation8 + $0x4b0] ss:$72 sps:$4 sm:$0xff]  }
 0x6af   :  { %v18186_v59 = vpop.eup %18185  ;;  %12679 = vmatprep.subr.bf16.mxu1 %v17747_v42  ;;  %v17796_v42 = vld [vmem:[#allocation8 + $0x548] ss:$72 sps:$4 sm:$0xff]  }
 0x6b0   :  { %18189 = vrcp.f32 %v13066_v58  ;;  %v13067_v11 = vadd.f32 1.0, %v18186_v59  ;;  %12801 = vmatpush1.bf16.msra.mxu0 %v17742_v0  ;;  %v18188_v16 = vpop.eup %18187  ;;  %v17804_v0 = vld [vmem:[#allocation8 + $0x4bc] ss:$72 sps:$4 sm:$0xff]   ;;  %v17810_v59 = vld [vmem:[#allocation8 + $0x162c] ss:$72 sps:$4 sm:$0xff]  }
 0x6b1   :  { %18191 = vtanh.f32 %v18925_v57  ;;  %12802 = vmatprep.subr.bf16.mxu0 %v17750_v3  ;;  %v17763_v57 = vld [vmem:[#allocation8 + $0x810] ss:$72 sps:$4 sm:$0xff]   ;;  %v18951_v3 = vld [vmem:[#allocation10 + $0x8] sm:$0xff] }
 0x6b2   :  { %18193 = vrcp.f32 %v13067_v11  ;;  %12680 = vmatpush1.bf16.msra.mxu1 %v17745_v10  ;;  %v17807_v58 = vld [vmem:[#allocation8 + $0x1624] ss:$72 sps:$4 sm:$0xff]   ;;  %v17802_v10 = vld [vmem:[#allocation8 + $0x4b8] ss:$72 sps:$4 sm:$0xff]  }
 0x6b3   :  { %12681 = vmatprep.subr.bf16.mxu1 %v17753_v13  ;;  %v7554_v13 = vrot.slane %v18951_v3, %v18605_v31  ;;  %v17805_v11 = vld [vmem:[#allocation8 + $0x1620] ss:$72 sps:$4 sm:$0xff]  }
 0x6b4   :  { %12803 = vmatpush1.bf16.msra.mxu0 %v17748_v2  ;;  %v17813_v2 = vld [vmem:[#allocation8 + $0x1594] ss:$72 sps:$4 sm:$0xff]  }
 0x6b5   :  { %12804 = vmatprep.subr.bf16.mxu0 %v17756_v8  ;;  %v7558_v8 = vrot.slane %v18951_v3, %v18608_v34 }
 0x6b6   :  { %12682 = vmatpush1.bf16.msra.mxu1 %v17751_v41  ;;  %v17808_v41 = vld [vmem:[#allocation8 + $0x1628] ss:$72 sps:$4 sm:$0xff]  }
 0x6b7   :  { %12683 = vmatprep.subr.bf16.mxu1 %v17759_v4 }
 0x6b8   :  { %12805 = vmatpush1.bf16.msra.mxu0 %v17754_v12  ;;  %v17816_v12 = vld [vmem:[#allocation8 + $0x159c] ss:$72 sps:$4 sm:$0xff]  }
 0x6b9   :  { %12806 = vmatprep.subr.bf16.mxu0 %v17762_v15 }
 0x6ba   :  { %12684 = vmatpush2.bf16.msra.mxu1 %v17757_v23  ;;  %v17811_v23 = vld [vmem:[#allocation8 + $0x1590] ss:$72 sps:$4 sm:$0xff]  }
 0x6bb   :  { %12685 = vmatprep.subr.bf16.mxu1 %v17765_v30 }
 0x6bc   :  { %12807 = vmatpush2.bf16.msra.mxu0 %v17760_v33 }
 0x6bd   :  { %v18190_v24 = vpop.eup %18189  ;;  %12808 = vmatprep.subr.bf16.mxu0 %v17768_v35  ;;  %v17819_v35 = vld [vmem:[#allocation8 + $0x1504] ss:$72 sps:$4 sm:$0xff]  }
 0x6be   :  { %v18192_v53 = vpop.eup %18191  ;;  %12686 = vmatpush2.bf16.msra.mxu1 %v17763_v57  ;;  %v18947_v39 = vmul.f32 %v18190_v24, %v18188_v16 }
 0x6bf   :  { %v18194_v60 = vpop.eup %18193  ;;  %12687 = vmatprep.subr.bf16.mxu1 %v17771_v18  ;;  %v17814_v18 = vld [vmem:[#allocation8 + $0x1598] ss:$72 sps:$4 sm:$0xff]  }
 0x6c0   :  { %12809 = vmatpush2.bf16.msra.mxu0 %v17766_v48  ;;  %v18949_v32 = vmul.f32 %v18194_v60, %v18192_v53  ;;  %v17817_v53 = vld [vmem:[#allocation8 + $0x1500] ss:$72 sps:$4 sm:$0xff]  }
 0x6c1   :  { %12810 = vmatprep.subr.bf16.mxu0 %v17774_v20  ;;  %v17822_v20 = vld [vmem:[#allocation8 + $0x150c] ss:$72 sps:$4 sm:$0xff]  }
 0x6c2   :  { %12688 = vmatpush2.bf16.msra.mxu1 %v17769_v26 }
 0x6c3   :  { %12689 = vmatprep.subr.bf16.mxu1 %v17777_v7 }
 0x6c4   :  { %12811 = vmatpush2.bf16.msra.mxu0 %v17772_v43  ;;  %v17825_v43 = vld [vmem:[#allocation8 + $0x1474] ss:$72 sps:$4 sm:$0xff]  }
 0x6c5   :  { %12812 = vmatprep.subr.bf16.mxu0 %v17780_v49  ;;  %v17820_v49 = vld [vmem:[#allocation8 + $0x1508] ss:$72 sps:$4 sm:$0xff]  }
 0x6c6   :  { %12690 = vmatpush2.bf16.msra.mxu1 %v17775_v17 }
 0x6c7   :  { %12691 = vmatprep.subr.bf16.mxu1 %v17783_v14  ;;  %v17823_v14 = vld [vmem:[#allocation8 + $0x1470] ss:$72 sps:$4 sm:$0xff]  }
 0x6c8   :  { %12813 = vmatpush2.bf16.msra.mxu0 %v17778_v62  ;;  %v17831_v62 = vld [vmem:[#allocation8 + $0x13e4] ss:$72 sps:$4 sm:$0xff]  }
 0x6c9   :  { %12814 = vmatprep.subr.bf16.mxu0 %v17786_v52  ;;  %v17826_v52 = vld [vmem:[#allocation8 + $0x1478] ss:$72 sps:$4 sm:$0xff]  }
 0x6ca   :  { %12692 = vmatpush2.bf16.msra.mxu1 %v17781_v61  ;;  %v17834_v61 = vld [vmem:[#allocation8 + $0x13ec] ss:$72 sps:$4 sm:$0xff]  }
 0x6cb   :  { %12693 = vmatprep.subr.bf16.mxu1 %v17789_v47  ;;  %v17837_v47 = vld [vmem:[#allocation8 + $0x1354] ss:$72 sps:$4 sm:$0xff]  }
 0x6cc   :  { %12815 = vmatpush2.bf16.msra.mxu0 %v17784_v44  ;;  %v17832_v44 = vld [vmem:[#allocation8 + $0x13e8] ss:$72 sps:$4 sm:$0xff]  }
 0x6cd   :  { %12816 = vmatprep.subr.bf16.mxu0 %v17792_v27  ;;  %v17840_v27 = vld [vmem:[#allocation8 + $0x135c] ss:$72 sps:$4 sm:$0xff]  }
 0x6ce   :  { %12694 = vmatpush2.bf16.msra.mxu1 %v17787_v9  ;;  %v17835_v9 = vld [vmem:[#allocation8 + $0x1350] ss:$72 sps:$4 sm:$0xff]  }
 0x6cf   :  { %12695 = vmatprep.subr.bf16.mxu1 %v17795_v36  ;;  %v17843_v36 = vld [vmem:[#allocation8 + $0x12c4] ss:$72 sps:$4 sm:$0xff]  }
 0x6d0   :  { %12817 = vmatpush2.bf16.msra.mxu0 %v17790_v45  ;;  %v17838_v45 = vld [vmem:[#allocation8 + $0x1358] ss:$72 sps:$4 sm:$0xff]  }
 0x6d1   :  { %12818 = vmatprep.subr.bf16.mxu0 %v17798_v46  ;;  %v17846_v46 = vld [vmem:[#allocation8 + $0x12cc] ss:$72 sps:$4 sm:$0xff]  }
 0x6d2   :  { %12696 = vmatpush2.bf16.msra.mxu1 %v17793_v56  ;;  %v17841_v56 = vld [vmem:[#allocation8 + $0x12c0] ss:$72 sps:$4 sm:$0xff]  }
 0x6d3   :  { %12697 = vmatprep.subr.bf16.mxu1 %v17801_v40  ;;  %v17849_v40 = vld [vmem:[#allocation8 + $0x1234] ss:$72 sps:$4 sm:$0xff]  }
 0x6d4   :  { %12819 = vmatpush2.bf16.msra.mxu0 %v17796_v42  ;;  %v17844_v42 = vld [vmem:[#allocation8 + $0x12c8] ss:$72 sps:$4 sm:$0xff]  }
 0x6d5   :  { %12820 = vmatprep.subr.bf16.mxu0 %v17804_v0  ;;  %v17852_v0 = vld [vmem:[#allocation8 + $0x123c] ss:$72 sps:$4 sm:$0xff]  }
 0x6d6   :  { %12698 = vmatpush2.bf16.msra.mxu1 %v17799_v5  ;;  %v17847_v5 = vld [vmem:[#allocation8 + $0x1230] ss:$72 sps:$4 sm:$0xff]  }
 0x6d7   :  { %12749 = vmatprep.subr.bf16.mxu1 %v17807_v58  ;;  %v17855_v58 = vld [vmem:[#allocation8 + $0x1aa4] ss:$72 sps:$4 sm:$0xff]  }
 0x6d8   :  { %12821 = vmatpush2.bf16.msra.mxu0 %v17802_v10  ;;  %v17850_v10 = vld [vmem:[#allocation8 + $0x1238] ss:$72 sps:$4 sm:$0xff]  }
 0x6d9   :  { %v12455_v4 = vpop.f32.mrf.mxu1  ;;  %12700 = vmatmul.mubr.bf16.vlgmr.msra.gmra.mxu1 %v18772_v19  ;;  %12872 = vmatprep.subr.bf16.mxu0 %v17810_v59  ;;  %v17858_v59 = vld [vmem:[#allocation8 + $0x1aac] ss:$72 sps:$4 sm:$0xff]  }
 0x6da   :  { %v12456_v15 = vadd.f32 %v12455_v4, %v7554_v13  ;;  %12750 = vmatpush1.bf16.msra.mxu1 %v17805_v11  ;;  %12781 = vmatprep.mubr.bf16.mxu1 %v18824_v37  ;;  %v17853_v13 = vld [vmem:[#allocation8 + $0x1aa0] ss:$72 sps:$4 sm:$0xff]   ;;  %v17861_v11 = vld [vmem:[#allocation8 + $0x1a14] ss:$72 sps:$4 sm:$0xff]   ;;  %v17867_v4 = vld [vmem:[#allocation8 + $0x1984] ss:$72 sps:$4 sm:$0xff]  }
 0x6db   :  { %v12457_v30 = vpop.f32.mrf.mxu1  ;;  %v18959_v33 = vpop.f32.mrf.mxu0  ;;  %12823 = vmatmul.mubr.bf16.vlgmr.msra.gmra.mxu0 %v18772_v19  ;;  %12751 = vmatprep.subr.bf16.mxu1 %v17813_v2  ;;  %v17856_v2 = vld [vmem:[#allocation8 + $0x1aa8] ss:$72 sps:$4 sm:$0xff]  }
 0x6dc   :  { %v12458_v57 = vadd.f32 %v12457_v30, %v7558_v8  ;;  %12873 = vmatpush1.bf16.msra.mxu0 %v17808_v41  ;;  %12904 = vmatprep.mubr.bf16.mxu0 %v18824_v37  ;;  %v18964_v16 = vadd.f32 %v18937_v28, %v12456_v15  ;;  %v17828_v28 = vld [vmem:[#allocation8 + $0x147c] ss:$72 sps:$4 sm:$0xff]   ;;  %v17859_v41 = vld [vmem:[#allocation8 + $0x1a10] ss:$72 sps:$4 sm:$0xff]   ;;  %v17870_v15 = vld [vmem:[#allocation8 + $0x198c] ss:$72 sps:$4 sm:$0xff]  }
 0x6dd   :  { %v12459_v48 = vpop.f32.mrf.mxu1  ;;  %v18966_v24 = vpop.f32.mrf.mxu0  ;;  %12874 = vmatprep.subr.bf16.mxu0 %v17816_v12  ;;  %v17864_v8 = vld [vmem:[#allocation8 + $0x1a1c] ss:$72 sps:$4 sm:$0xff]   ;;  %v17862_v12 = vld [vmem:[#allocation8 + $0x1a18] ss:$72 sps:$4 sm:$0xff]  }
 0x6de   :  { %12752 = vmatpush1.bf16.msra.mxu1 %v17811_v23  ;;  %v18969_v26 = vadd.f32 %v18942_v22, %v12458_v57  ;;  %v17829_v22 = vld [vmem:[#allocation8 + $0x13e0] ss:$72 sps:$4 sm:$0xff]   ;;  %v17873_v30 = vld [vmem:[#allocation8 + $0x18f4] ss:$72 sps:$4 sm:$0xff]   ;;  %v17879_v48 = vld [vmem:[#allocation8 + $0x1864] ss:$72 sps:$4 sm:$0xff]  }
 0x6df   :  { %v12460_v60 = vpop.f32.mrf.mxu1  ;;  %v12582_v7 = vpop.f32.mrf.mxu0  ;;  %12753 = vmatprep.subr.bf16.mxu1 %v17819_v35  ;;  %v17865_v23 = vld [vmem:[#allocation8 + $0x1980] ss:$72 sps:$4 sm:$0xff]   ;;  %v17876_v57 = vld [vmem:[#allocation8 + $0x18fc] ss:$72 sps:$4 sm:$0xff]  }
 0x6e0   :  { %12875 = vmatpush1.bf16.msra.mxu0 %v17814_v18  ;;  %v17868_v35 = vld [vmem:[#allocation8 + $0x1988] ss:$72 sps:$4 sm:$0xff]   ;;  %v17885_v7 = vld [vmem:[#allocation8 + $0x17d4] ss:$72 sps:$4 sm:$0xff]  }
 0x6e1   :  { %v12583_v17 = vpop.f32.mrf.mxu0  ;;  %12876 = vmatprep.subr.bf16.mxu0 %v17822_v20  ;;  %v17871_v18 = vld [vmem:[#allocation8 + $0x18f0] ss:$72 sps:$4 sm:$0xff]   ;;  %v17877_v60 = vld [vmem:[#allocation8 + $0x1860] ss:$72 sps:$4 sm:$0xff]  }
 0x6e2   :  { %12754 = vmatpush1.bf16.msra.mxu1 %v17817_v53  ;;  %v17874_v20 = vld [vmem:[#allocation8 + $0x18f8] ss:$72 sps:$4 sm:$0xff]   ;;  %v17882_v53 = vld [vmem:[#allocation8 + $0x186c] ss:$72 sps:$4 sm:$0xff]  }
 0x6e3   :  { %12755 = vmatprep.subr.bf16.mxu1 %v17825_v43  ;;  %v17880_v43 = vld [vmem:[#allocation8 + $0x1868] ss:$72 sps:$4 sm:$0xff]  }
 0x6e4   :  { %12877 = vmatpush1.bf16.msra.mxu0 %v17820_v49  ;;  %v17888_v49 = vld [vmem:[#allocation8 + $0x17dc] ss:$72 sps:$4 sm:$0xff]   ;;  %v17883_v17 = vld [vmem:[#allocation8 + $0x17d0] ss:$72 sps:$4 sm:$0xff]  }
 0x6e5   :  { %12878 = vmatprep.subr.bf16.mxu0 %v17828_v28  ;;  %v17891_v28 = vld [vmem:[#allocation8 + $0x1744] ss:$72 sps:$4 sm:$0xff]  }
 0x6e6   :  { %12756 = vmatpush1.bf16.msra.mxu1 %v17823_v14  ;;  %v17886_v14 = vld [vmem:[#allocation8 + $0x17d8] ss:$72 sps:$4 sm:$0xff]  }
 0x6e7   :  { %12757 = vmatprep.subr.bf16.mxu1 %v17831_v62  ;;  %v17894_v62 = vld [vmem:[#allocation8 + $0x174c] ss:$72 sps:$4 sm:$0xff]  }
 0x6e8   :  { %12879 = vmatpush1.bf16.msra.mxu0 %v17826_v52  ;;  %v17889_v52 = vld [vmem:[#allocation8 + $0x1740] ss:$72 sps:$4 sm:$0xff]  }
 0x6e9   :  { %12880 = vmatprep.subr.bf16.mxu0 %v17834_v61  ;;  %v17897_v61 = vld [vmem:[#allocation8 + $0x16b4] ss:$72 sps:$4 sm:$0xff]  }
 0x6ea   :  { %12758 = vmatpush1.bf16.msra.mxu1 %v17829_v22  ;;  %v17892_v22 = vld [vmem:[#allocation8 + $0x1748] ss:$72 sps:$4 sm:$0xff]  }
 0x6eb   :  { %12759 = vmatprep.subr.bf16.mxu1 %v17837_v47  ;;  %v17900_v47 = vld [vmem:[#allocation8 + $0x16bc] ss:$72 sps:$4 sm:$0xff]  }
 0x6ec   :  { %12881 = vmatpush1.bf16.msra.mxu0 %v17832_v44  ;;  %v17895_v44 = vld [vmem:[#allocation8 + $0x16b0] ss:$72 sps:$4 sm:$0xff]  }
 0x6ed   :  { %12882 = vmatprep.subr.bf16.mxu0 %v17840_v27  ;;  %v17903_v27 = vld [vmem:[#allocation8 + $0xd2c] ss:$72 sps:$4 sm:$0xff]  }
 0x6ee   :  { %12760 = vmatpush1.bf16.msra.mxu1 %v17835_v9  ;;  %v17898_v9 = vld [vmem:[#allocation8 + $0x16b8] ss:$72 sps:$4 sm:$0xff]  }
 0x6ef   :  { %12761 = vmatprep.subr.bf16.mxu1 %v17843_v36  ;;  %v17906_v36 = vld [vmem:[#allocation8 + $0xd34] ss:$72 sps:$4 sm:$0xff]  }
 0x6f0   :  { %12883 = vmatpush1.bf16.msra.mxu0 %v17838_v45  ;;  %v17901_v45 = vld [vmem:[#allocation8 + $0xd28] ss:$72 sps:$4 sm:$0xff]  }
 0x6f1   :  { %12884 = vmatprep.subr.bf16.mxu0 %v17846_v46  ;;  %v17909_v46 = vld [vmem:[#allocation8 + $0xc9c] ss:$72 sps:$4 sm:$0xff]  }
 0x6f2   :  { %12762 = vmatpush1.bf16.msra.mxu1 %v17841_v56  ;;  %v17904_v56 = vld [vmem:[#allocation8 + $0xd30] ss:$72 sps:$4 sm:$0xff]  }
 0x6f3   :  { %12763 = vmatprep.subr.bf16.mxu1 %v17849_v40 }
 0x6f4   :  { %12885 = vmatpush1.bf16.msra.mxu0 %v17844_v42  ;;  %v17912_v42 = vld [vmem:[#allocation8 + $0xca4] ss:$72 sps:$4 sm:$0xff]  }
 0x6f5   :  { %12886 = vmatprep.subr.bf16.mxu0 %v17852_v0 }
 0x6f6   :  { %12764 = vmatpush1.bf16.msra.mxu1 %v17847_v5  ;;  %v17907_v5 = vld [vmem:[#allocation8 + $0xc98] ss:$72 sps:$4 sm:$0xff]  }
 0x6f7   :  { %12765 = vmatprep.subr.bf16.mxu1 %v17855_v58 }
 0x6f8   :  { %12887 = vmatpush1.bf16.msra.mxu0 %v17850_v10 }
 0x6f9   :  { %12888 = vmatprep.subr.bf16.mxu0 %v17858_v59  ;;  %v17915_v59 = vld [vmem:[#allocation8 + $0xc0c] ss:$72 sps:$4 sm:$0xff]  }
 0x6fa   :  { %12766 = vmatpush2.bf16.msra.mxu1 %v17853_v13 }
 0x6fb   :  { %12767 = vmatprep.subr.bf16.mxu1 %v17861_v11 }
 0x6fc   :  { %12889 = vmatpush2.bf16.msra.mxu0 %v17856_v2  ;;  %v17910_v2 = vld [vmem:[#allocation8 + $0xca0] ss:$72 sps:$4 sm:$0xff]  }
 0x6fd   :  { %12890 = vmatprep.subr.bf16.mxu0 %v17864_v8 }
 0x6fe   :  { %12768 = vmatpush2.bf16.msra.mxu1 %v17859_v41  ;;  %v17918_v41 = vld [vmem:[#allocation8 + $0xc14] ss:$72 sps:$4 sm:$0xff]  }
 0x6ff   :  { %12769 = vmatprep.subr.bf16.mxu1 %v17867_v4  ;;  %v17913_v4 = vld [vmem:[#allocation8 + $0xc08] ss:$72 sps:$4 sm:$0xff]  }
 0x700   :  { %12891 = vmatpush2.bf16.msra.mxu0 %v17862_v12 }
 0x701   :  { %12892 = vmatprep.subr.bf16.mxu0 %v17870_v15 }
 0x702   :  { %12770 = vmatpush2.bf16.msra.mxu1 %v17865_v23  ;;  %v17921_v23 = vld [vmem:[#allocation8 + $0xb7c] ss:$72 sps:$4 sm:$0xff]  }
 0x703   :  { %12771 = vmatprep.subr.bf16.mxu1 %v17873_v30  ;;  %v17916_v30 = vld [vmem:[#allocation8 + $0xc10] ss:$72 sps:$4 sm:$0xff]  }
 0x704   :  { %12893 = vmatpush2.bf16.msra.mxu0 %v17868_v35  ;;  %v17924_v35 = vld [vmem:[#allocation8 + $0xb84] ss:$72 sps:$4 sm:$0xff]  }
 0x705   :  { %12894 = vmatprep.subr.bf16.mxu0 %v17876_v57  ;;  %v17927_v57 = vld [vmem:[#allocation8 + $0xaec] ss:$72 sps:$4 sm:$0xff]  }
 0x706   :  { %12772 = vmatpush2.bf16.msra.mxu1 %v17871_v18  ;;  %v17922_v18 = vld [vmem:[#allocation8 + $0xb80] ss:$72 sps:$4 sm:$0xff]  }
 0x707   :  { %12773 = vmatprep.subr.bf16.mxu1 %v17879_v48  ;;  %v17930_v48 = vld [vmem:[#allocation8 + $0xaf4] ss:$72 sps:$4 sm:$0xff]  }
 0x708   :  { %12895 = vmatpush2.bf16.msra.mxu0 %v17874_v20  ;;  %v17925_v20 = vld [vmem:[#allocation8 + $0xae8] ss:$72 sps:$4 sm:$0xff]  }
 0x709   :  { %12896 = vmatprep.subr.bf16.mxu0 %v17882_v53  ;;  %v17933_v53 = vld [vmem:[#allocation8 + $0xa5c] ss:$72 sps:$4 sm:$0xff]  }
 0x70a   :  { %12774 = vmatpush2.bf16.msra.mxu1 %v17877_v60  ;;  %v17928_v60 = vld [vmem:[#allocation8 + $0xaf0] ss:$72 sps:$4 sm:$0xff]  }
 0x70b   :  { %12775 = vmatprep.subr.bf16.mxu1 %v17885_v7  ;;  %v17936_v7 = vld [vmem:[#allocation8 + $0xa64] ss:$72 sps:$4 sm:$0xff]  }
 0x70c   :  { %12897 = vmatpush2.bf16.msra.mxu0 %v17880_v43  ;;  %v17931_v43 = vld [vmem:[#allocation8 + $0xa58] ss:$72 sps:$4 sm:$0xff]  }
 0x70d   :  { %12898 = vmatprep.subr.bf16.mxu0 %v17888_v49 }
 0x70e   :  { %12776 = vmatpush2.bf16.msra.mxu1 %v17883_v17  ;;  %v17939_v17 = vld [vmem:[#allocation8 + $0x9cc] ss:$72 sps:$4 sm:$0xff]  }
 0x70f   :  { %12777 = vmatprep.subr.bf16.mxu1 %v17891_v28 }
 0x710   :  { %12899 = vmatpush2.bf16.msra.mxu0 %v17886_v14  ;;  %v17934_v14 = vld [vmem:[#allocation8 + $0xa60] ss:$72 sps:$4 sm:$0xff]  }
 0x711   :  { %12900 = vmatprep.subr.bf16.mxu0 %v17894_v62  ;;  %v17942_v62 = vld [vmem:[#allocation8 + $0x9d4] ss:$72 sps:$4 sm:$0xff]  }
 0x712   :  { %12778 = vmatpush2.bf16.msra.mxu1 %v17889_v52  ;;  %v17937_v52 = vld [vmem:[#allocation8 + $0x9c8] ss:$72 sps:$4 sm:$0xff]  }
 0x713   :  { %12779 = vmatprep.subr.bf16.mxu1 %v17897_v61  ;;  %v17945_v61 = vld [vmem:[#allocation8 + $0x93c] ss:$72 sps:$4 sm:$0xff]  }
 0x714   :  { %12901 = vmatpush2.bf16.msra.mxu0 %v17892_v22  ;;  %v17940_v22 = vld [vmem:[#allocation8 + $0x9d0] ss:$72 sps:$4 sm:$0xff]  }
 0x715   :  { %12902 = vmatprep.subr.bf16.mxu0 %v17900_v47  ;;  %v17948_v47 = vld [vmem:[#allocation8 + $0x944] ss:$72 sps:$4 sm:$0xff]  }
 0x716   :  { %12780 = vmatpush2.bf16.msra.mxu1 %v17895_v44  ;;  %v17943_v44 = vld [vmem:[#allocation8 + $0x938] ss:$72 sps:$4 sm:$0xff]  }
 0x717   :  { %12831 = vmatprep.subr.bf16.mxu1 %v17903_v27  ;;  %v17951_v27 = vld [vmem:[#allocation8 + $0x11ac] ss:$72 sps:$4 sm:$0xff]  }
 0x718   :  { %12903 = vmatpush2.bf16.msra.mxu0 %v17898_v9  ;;  %v17946_v9 = vld [vmem:[#allocation8 + $0x940] ss:$72 sps:$4 sm:$0xff]  }
 0x719   :  { %v12537_v40 = vpop.f32.mrf.mxu1  ;;  %12782 = vmatmul.mubr.bf16.vlgmr.msra.gmra.mxu1 %v18826_v55  ;;  %12954 = vmatprep.subr.bf16.mxu0 %v17906_v36  ;;  %v17954_v36 = vld [vmem:[#allocation8 + $0x11b4] ss:$72 sps:$4 sm:$0xff]  }
 0x71a   :  { %v12538_v0 = vadd.f32 %v12537_v40, %v18964_v16  ;;  %12832 = vmatpush1.bf16.msra.mxu1 %v17901_v45  ;;  %12863 = vmatprep.mubr.bf16.mxu1 %v18794_v38  ;;  %v17957_v45 = vld [vmem:[#allocation8 + $0x111c] ss:$72 sps:$4 sm:$0xff]  }
 0x71b   :  { %v12539_v58 = vpop.f32.mrf.mxu1  ;;  %v18974_v10 = vpop.f32.mrf.mxu0  ;;  %12905 = vmatmul.mubr.bf16.vlgmr.msra.gmra.mxu0 %v18826_v55  ;;  %12833 = vmatprep.subr.bf16.mxu1 %v17909_v46  ;;  %v17952_v46 = vld [vmem:[#allocation8 + $0x11b0] ss:$72 sps:$4 sm:$0xff]  }
 0x71c   :  { %v15318_v13 = vmul.f32 -1.442695, %v12538_v0  ;;  %v18978_v11 = vadd.f32 %v12539_v58, %v18969_v26  ;;  %12955 = vmatpush1.bf16.msra.mxu0 %v17904_v56  ;;  %12986 = vmatprep.mubr.bf16.mxu0 %v18794_v38  ;;  %v17919_v38 = vld [vmem:[#allocation8 + $0xb78] ss:$72 sps:$4 sm:$0xff]   ;;  %v17960_v56 = vld [vmem:[#allocation8 + $0x1124] ss:$72 sps:$4 sm:$0xff]  }
 0x71d   :  { %v12541_v16 = vpop.f32.mrf.mxu1  ;;  %v18981_v8 = vpop.f32.mrf.mxu0  ;;  %12956 = vmatprep.subr.bf16.mxu0 %v17912_v42  ;;  %v17955_v42 = vld [vmem:[#allocation8 + $0x1118] ss:$72 sps:$4 sm:$0xff]  }
 0x71e   :  { %18195 = vpow2.f32 %v15318_v13  ;;  %12834 = vmatpush1.bf16.msra.mxu1 %v17907_v5  ;;  %v17963_v5 = vld [vmem:[#allocation8 + $0x108c] ss:$72 sps:$4 sm:$0xff]   ;;  %v17958_v58 = vld [vmem:[#allocation8 + $0x1120] ss:$72 sps:$4 sm:$0xff]   ;;  %v17969_v16 = vld [vmem:[#allocation8 + $0xffc] ss:$72 sps:$4 sm:$0xff]  }
 0x71f   :  { %v12542_v12 = vpop.f32.mrf.mxu1  ;;  %v12664_v15 = vpop.f32.mrf.mxu0  ;;  %12835 = vmatprep.subr.bf16.mxu1 %v17915_v59  ;;  %18197 = vtanh.f32 %v18927_v63  ;;  %v17949_v63 = vld [vmem:[#allocation8 + $0x11a8] ss:$72 sps:$4 sm:$0xff]   ;;  %v17966_v13 = vld [vmem:[#allocation8 + $0x1094] ss:$72 sps:$4 sm:$0xff]  }
 0x720   :  { %12957 = vmatpush1.bf16.msra.mxu0 %v17910_v2  ;;  %v17961_v2 = vld [vmem:[#allocation8 + $0x1088] ss:$72 sps:$4 sm:$0xff]   ;;  %v17967_v12 = vld [vmem:[#allocation8 + $0xff8] ss:$72 sps:$4 sm:$0xff]   ;;  %v17975_v15 = vld [vmem:[#allocation8 + $0xf6c] ss:$72 sps:$4 sm:$0xff]  }
 0x721   :  { %v12665_v26 = vpop.f32.mrf.mxu0  ;;  %12958 = vmatprep.subr.bf16.mxu0 %v17918_v41  ;;  %v17964_v41 = vld [vmem:[#allocation8 + $0x1090] ss:$72 sps:$4 sm:$0xff]  }
 0x722   :  { %12836 = vmatpush1.bf16.msra.mxu1 %v17913_v4  ;;  %v17972_v4 = vld [vmem:[#allocation8 + $0x1004] ss:$72 sps:$4 sm:$0xff]   ;;  %v17973_v26 = vld [vmem:[#allocation8 + $0xf68] ss:$72 sps:$4 sm:$0xff]  }
 0x723   :  { %12837 = vmatprep.subr.bf16.mxu1 %v17921_v23  ;;  %v17970_v23 = vld [vmem:[#allocation8 + $0x1000] ss:$72 sps:$4 sm:$0xff]  }
 0x724   :  { %12959 = vmatpush1.bf16.msra.mxu0 %v17916_v30  ;;  %v17978_v30 = vld [vmem:[#allocation8 + $0xf74] ss:$72 sps:$4 sm:$0xff]  }
 0x725   :  { %12960 = vmatprep.subr.bf16.mxu0 %v17924_v35  ;;  %v17981_v35 = vld [vmem:[#allocation8 + $0xedc] ss:$72 sps:$4 sm:$0xff]  }
 0x726   :  { %12838 = vmatpush1.bf16.msra.mxu1 %v17919_v38  ;;  %v17976_v38 = vld [vmem:[#allocation8 + $0xf70] ss:$72 sps:$4 sm:$0xff]  }
 0x727   :  { %12839 = vmatprep.subr.bf16.mxu1 %v17927_v57  ;;  %v17984_v57 = vld [vmem:[#allocation8 + $0xee4] ss:$72 sps:$4 sm:$0xff]  }
 0x728   :  { %12961 = vmatpush1.bf16.msra.mxu0 %v17922_v18  ;;  %v17979_v18 = vld [vmem:[#allocation8 + $0xed8] ss:$72 sps:$4 sm:$0xff]  }
 0x729   :  { %12962 = vmatprep.subr.bf16.mxu0 %v17930_v48  ;;  %v17987_v48 = vld [vmem:[#allocation8 + $0xe4c] ss:$72 sps:$4 sm:$0xff]  }
 0x72a   :  { %12840 = vmatpush1.bf16.msra.mxu1 %v17925_v20  ;;  %v17982_v20 = vld [vmem:[#allocation8 + $0xee0] ss:$72 sps:$4 sm:$0xff]  }
 0x72b   :  { %v18196_v49 = vpop.eup %18195  ;;  %12841 = vmatprep.subr.bf16.mxu1 %v17933_v53  ;;  %v17990_v53 = vld [vmem:[#allocation8 + $0xe54] ss:$72 sps:$4 sm:$0xff]  }
 0x72c   :  { %v13068_v28 = vadd.f32 1.0, %v18196_v49  ;;  %12963 = vmatpush1.bf16.msra.mxu0 %v17928_v60  ;;  %v18198_v40 = vpop.eup %18197  ;;  %v17985_v60 = vld [vmem:[#allocation8 + $0xe48] ss:$72 sps:$4 sm:$0xff]   ;;  %v17996_v49 = vld [vmem:[#allocation8 + $0xdc4] ss:$72 sps:$4 sm:$0xff]  }
 0x72d   :  { %12964 = vmatprep.subr.bf16.mxu0 %v17936_v7  ;;  %v17993_v7 = vld [vmem:[#allocation8 + $0xdbc] ss:$72 sps:$4 sm:$0xff]  }
 0x72e   :  { %18199 = vrcp.f32 %v13068_v28  ;;  %12842 = vmatpush1.bf16.msra.mxu1 %v17931_v43  ;;  %v17988_v43 = vld [vmem:[#allocation8 + $0xe50] ss:$72 sps:$4 sm:$0xff]   ;;  %v17999_v28 = vld [vmem:[#allocation8 + $0x434] ss:$72 sps:$4 sm:$0xff]  }
 0x72f   :  { %12843 = vmatprep.subr.bf16.mxu1 %v17939_v17  ;;  %v17991_v17 = vld [vmem:[#allocation8 + $0xdb8] ss:$72 sps:$4 sm:$0xff]  }
 0x730   :  { %12965 = vmatpush1.bf16.msra.mxu0 %v17934_v14  ;;  %v7562_v14 = vrot.slane %v18951_v3, %v18636_v54 }
 0x731   :  { %12966 = vmatprep.subr.bf16.mxu0 %v17942_v62  ;;  %v17994_v62 = vld [vmem:[#allocation8 + $0xdc0] ss:$72 sps:$4 sm:$0xff]  }
 0x732   :  { %12844 = vmatpush1.bf16.msra.mxu1 %v17937_v52  ;;  %v7566_v52 = vrot.slane %v18951_v3, %v18639_v21  ;;  %v18000_v21 = vld [vmem:[#allocation8 + $0x3a0] ss:$72 sps:$4 sm:$0xff]  }
 0x733   :  { %12845 = vmatprep.subr.bf16.mxu1 %v17945_v61  ;;  %v17997_v61 = vld [vmem:[#allocation8 + $0x430] ss:$72 sps:$4 sm:$0xff]  }
 0x734   :  { %12967 = vmatpush1.bf16.msra.mxu0 %v17940_v22  ;;  %v13163_v22 = vld [vmem:[#allocation11 + $0xf8] sm:$0xff]  ;;  %v12581_v54 = vadd.f32 %v18966_v24, %v7566_v52  ;;  %v13161_v24 = vld [vmem:[#allocation11 + $0xe8] sm:$0xff]  ;;  %v13136_v52 = vld [vmem:[#allocation11 + $0x20] sm:$0xff] }
 0x735   :  { %12968 = vmatprep.subr.bf16.mxu0 %v17948_v47  ;;  %v18002_v47 = vld [vmem:[#allocation8 + $0x3a4] ss:$72 sps:$4 sm:$0xff]  }
 0x736   :  { %12846 = vmatpush1.bf16.msra.mxu1 %v17943_v44  ;;  %v12579_v44 = vadd.f32 %v18959_v33, %v7562_v14  ;;  %v13146_v33 = vld [vmem:[#allocation11 + $0x70] sm:$0xff]  ;;  %v18015_v14 = vld [vmem:[#allocation8 + $0xd0] ss:$72 sps:$4 sm:$0xff]  }
 0x737   :  { %12847 = vmatprep.subr.bf16.mxu1 %v17951_v27 }
 0x738   :  { %12969 = vmatpush1.bf16.msra.mxu0 %v17946_v9  ;;  %v13147_v9 = vld [vmem:[#allocation11 + $0x78] sm:$0xff] }
 0x739   :  { %12970 = vmatprep.subr.bf16.mxu0 %v17954_v36 }
 0x73a   :  { %12848 = vmatpush2.bf16.msra.mxu1 %v17949_v63  ;;  %v13162_v63 = vld [vmem:[#allocation11 + $0xf0] sm:$0xff] }
 0x73b   :  { %v18200_v0 = vpop.eup %18199  ;;  %12849 = vmatprep.subr.bf16.mxu1 %v17957_v45 }
 0x73c   :  { %12971 = vmatpush2.bf16.msra.mxu0 %v17952_v46  ;;  %v18984_v59 = vmul.f32 %v18200_v0, %v18198_v40 }
 0x73d   :  { %12972 = vmatprep.subr.bf16.mxu0 %v17960_v56  ;;  %v18005_v56 = vld [vmem:[#allocation8 + $0x314] ss:$72 sps:$4 sm:$0xff]  }
 0x73e   :  { %12850 = vmatpush2.bf16.msra.mxu1 %v17955_v42 }
 0x73f   :  { %12851 = vmatprep.subr.bf16.mxu1 %v17963_v5  ;;  %v13145_v5 = vld [vmem:[#allocation11 + $0x68] sm:$0xff] }
 0x740   :  { %12973 = vmatpush2.bf16.msra.mxu0 %v17958_v58 }
 0x741   :  { %12974 = vmatprep.subr.bf16.mxu0 %v17966_v13  ;;  %v13160_v13 = vld [vmem:[#allocation11 + $0xe0] sm:$0xff] }
 0x742   :  { %12852 = vmatpush2.bf16.msra.mxu1 %v17961_v2 }
 0x743   :  { %12853 = vmatprep.subr.bf16.mxu1 %v17969_v16  ;;  %v13144_v16 = vld [vmem:[#allocation11 + $0x60] sm:$0xff] }
 0x744   :  { %12975 = vmatpush2.bf16.msra.mxu0 %v17964_v41  ;;  %v18008_v41 = vld [vmem:[#allocation8 + $0x284] ss:$72 sps:$4 sm:$0xff]  }
 0x745   :  { %12976 = vmatprep.subr.bf16.mxu0 %v17972_v4 }
 0x746   :  { %12854 = vmatpush2.bf16.msra.mxu1 %v17967_v12  ;;  %v13143_v12 = vld [vmem:[#allocation11 + $0x58] sm:$0xff] }
 0x747   :  { %12855 = vmatprep.subr.bf16.mxu1 %v17975_v15  ;;  %v18006_v15 = vld [vmem:[#allocation8 + $0x280] ss:$72 sps:$4 sm:$0xff]  }
 0x748   :  { %12977 = vmatpush2.bf16.msra.mxu0 %v17970_v23  ;;  %v13142_v23 = vld [vmem:[#allocation11 + $0x50] sm:$0xff] }
 0x749   :  { %12978 = vmatprep.subr.bf16.mxu0 %v17978_v30  ;;  %v18011_v30 = vld [vmem:[#allocation8 + $0x1f4] ss:$72 sps:$4 sm:$0xff]  }
 0x74a   :  { %12856 = vmatpush2.bf16.msra.mxu1 %v17973_v26  ;;  %v13157_v26 = vld [vmem:[#allocation11 + $0xc8] sm:$0xff] }
 0x74b   :  { %12857 = vmatprep.subr.bf16.mxu1 %v17981_v35  ;;  %v13141_v35 = vld [vmem:[#allocation11 + $0x48] sm:$0xff] }
 0x74c   :  { %12979 = vmatpush2.bf16.msra.mxu0 %v17976_v38  ;;  %v18009_v38 = vld [vmem:[#allocation8 + $0x1f0] ss:$72 sps:$4 sm:$0xff]  }
 0x74d   :  { %12980 = vmatprep.subr.bf16.mxu0 %v17984_v57  ;;  %v13156_v57 = vld [vmem:[#allocation11 + $0xc0] sm:$0xff] }
 0x74e   :  { %12858 = vmatpush2.bf16.msra.mxu1 %v17979_v18  ;;  %v13140_v18 = vld [vmem:[#allocation11 + $0x40] sm:$0xff] }
 0x74f   :  { %12859 = vmatprep.subr.bf16.mxu1 %v17987_v48  ;;  %v18014_v48 = vld [vmem:[#allocation8 + $0x164] ss:$72 sps:$4 sm:$0xff]  }
 0x750   :  { %12981 = vmatpush2.bf16.msra.mxu0 %v17982_v20  ;;  %v13155_v20 = vld [vmem:[#allocation11 + $0xb8] sm:$0xff] }
 0x751   :  { %12982 = vmatprep.subr.bf16.mxu0 %v17990_v53  ;;  %v13139_v53 = vld [vmem:[#allocation11 + $0x38] sm:$0xff] }
 0x752   :  { %12860 = vmatpush2.bf16.msra.mxu1 %v17985_v60  ;;  %v18012_v60 = vld [vmem:[#allocation8 + $0x160] ss:$72 sps:$4 sm:$0xff]  }
 0x753   :  { %12861 = vmatprep.subr.bf16.mxu1 %v17993_v7  ;;  %v13154_v7 = vld [vmem:[#allocation11 + $0xb0] sm:$0xff] }
 0x754   :  { %12983 = vmatpush2.bf16.msra.mxu0 %v17988_v43  ;;  %v13138_v43 = vld [vmem:[#allocation11 + $0x30] sm:$0xff] }
 0x755   :  { %12984 = vmatprep.subr.bf16.mxu0 %v17996_v49  ;;  %v18017_v49 = vld [vmem:[#allocation8 + $0xd4] ss:$72 sps:$4 sm:$0xff]  }
 0x756   :  { %12862 = vmatpush2.bf16.msra.mxu1 %v17991_v17  ;;  %v13153_v17 = vld [vmem:[#allocation11 + $0xa8] sm:$0xff] }
 0x757   :  { %12913 = vmatprep.subr.bf16.mxu1 %v17999_v28  ;;  %v13137_v28 = vld [vmem:[#allocation11 + $0x28] sm:$0xff] }
 0x758   :  { %12985 = vmatpush2.bf16.msra.mxu0 %v17994_v62  ;;  %v13152_v62 = vld [vmem:[#allocation11 + $0xa0] sm:$0xff] }
 0x759   :  { %v12619_v27 = vpop.f32.mrf.mxu1  ;;  %12864 = vmatmul.mubr.bf16.vlgmr.msra.gmra.mxu1 %v18798_v50  ;;  %15327 = vmatprep.subr.mxu0 %v13163_v22  ;;  %v13151_v22 = vld [vmem:[#allocation11 + $0x98] sm:$0xff] }
 0x75a   :  { %v12620_v36 = vadd.f32 %v12619_v27, %v12579_v44  ;;  %12914 = vmatpush1.bf16.msra.mxu1 %v17997_v61  ;;  %12945 = vmatprep.mubr.bf16.mxu1 %v18758_v51  ;;  %v18020_v61 = vld [vmem:[#allocation8 + $0x44] ss:$72 sps:$4 sm:$0xff]   ;;  %v18018_v44 = vld [vmem:[#allocation8 + $0x40] ss:$72 sps:$4 sm:$0xff]  }
 0x75b   :  { %v12621_v45 = vpop.f32.mrf.mxu1  ;;  %v18994_v46 = vpop.f32.mrf.mxu0  ;;  %12987 = vmatmul.mubr.bf16.vlgmr.msra.gmra.mxu0 %v18798_v50  ;;  %12915 = vmatprep.subr.bf16.mxu1 %v18002_v47  ;;  %v18003_v50 = vld [vmem:[#allocation8 + $0x310] ss:$72 sps:$4 sm:$0xff]   ;;  %v13150_v27 = vld [vmem:[#allocation11 + $0x90] sm:$0xff] }
 0x75c   :  { %v18998_v40 = vadd.f32 %v18974_v10, %v12620_v36  ;;  %v12622_v42 = vadd.f32 %v12621_v45, %v12581_v54  ;;  %15328 = vmatpush3.msra.mxu0 %v13147_v9  ;;  %13299 = vmatprep.mubr.f32.mxu0 %v18949_v32  ;;  %v13159_v32 = vld [vmem:[#allocation11 + $0xd8] sm:$0xff]  ;;  %v13134_v9 = vld [vmem:[#allocation11 + $0x10] sm:$0xff]  ;;  %v18023_v54 = vld [vmem:[#allocation8 + $0x8b4] ss:$72 sps:$4 sm:$0xff]  }
 0x75d   :  { %v12623_v0 = vpop.f32.mrf.mxu1  ;;  %v19001_v51 = vpop.f32.mrf.mxu0  ;;  %15329 = vmatprep.subr.mxu0 %v13162_v63  ;;  %v13135_v47 = vld [vmem:[#allocation11 + $0x18] sm:$0xff]  ;;  %v13149_v36 = vld [vmem:[#allocation11 + $0x88] sm:$0xff]  ;;  %v13148_v45 = vld [vmem:[#allocation11 + $0x80] sm:$0xff] }
 0x75e   :  { %v19004_v58 = vadd.f32 %v18981_v8, %v12622_v42  ;;  %12916 = vmatpush1.bf16.msra.mxu1 %v18000_v21  ;;  %15330 = vmatpush3.msra.mxu0 %v13146_v33  ;;  %v13158_v8 = vld [vmem:[#allocation11 + $0xd0] sm:$0xff]  ;;  %v13133_v21 = vld [vmem:[#allocation11 + $0x8] sm:$0xff]  ;;  %v13132_v33 = vld [vmem:[#allocation11] sm:$0xff] }
 0x75f   :  { %v12624_v2 = vpop.f32.mrf.mxu1  ;;  %v12746_v10 = vpop.f32.mrf.mxu0  ;;  %15331 = vmatprep.subr.mxu0 %v13161_v24  ;;  %12917 = vmatprep.subr.bf16.mxu1 %v18005_v56  ;;  %v18021_v63 = vld [vmem:[#allocation8 + $0x8b0] ss:$72 sps:$4 sm:$0xff]   ;;  %v18026_v56 = vld [vmem:[#allocation8 + $0x824] ss:$72 sps:$4 sm:$0xff]   ;;  %v18024_v42 = vld [vmem:[#allocation8 + $0x820] ss:$72 sps:$4 sm:$0xff]  }
 0x760   :  { %15332 = vmatpush3.msra.mxu0 %v13145_v5  ;;  %v18029_v24 = vld [vmem:[#allocation8 + $0x794] ss:$72 sps:$4 sm:$0xff]   ;;  %v18027_v0 = vld [vmem:[#allocation8 + $0x790] ss:$72 sps:$4 sm:$0xff]   ;;  %v18032_v5 = vld [vmem:[#allocation8 + $0x704] ss:$72 sps:$4 sm:$0xff]  }
 0x761   :  { %v12747_v4 = vpop.f32.mrf.mxu0  ;;  %15333 = vmatprep.subr.mxu0 %v13160_v13  ;;  %v18035_v13 = vld [vmem:[#allocation8 + $0x674] ss:$72 sps:$4 sm:$0xff]   ;;  %v18033_v2 = vld [vmem:[#allocation8 + $0x670] ss:$72 sps:$4 sm:$0xff]   ;;  %v18038_v10 = vld [vmem:[#allocation8 + $0x5e4] ss:$72 sps:$4 sm:$0xff]  }
 0x762   :  { %12918 = vmatpush1.bf16.msra.mxu1 %v18003_v50  ;;  %15334 = vmatpush3.msra.mxu0 %v13144_v16  ;;  %v18030_v50 = vld [vmem:[#allocation8 + $0x700] ss:$72 sps:$4 sm:$0xff]  }
 0x763   :  { %15335 = vmatprep.subr.mxu0 %v13159_v32  ;;  %12919 = vmatprep.subr.bf16.mxu1 %v18008_v41  ;;  %v18036_v16 = vld [vmem:[#allocation8 + $0x5e0] ss:$72 sps:$4 sm:$0xff]   ;;  %v18041_v41 = vld [vmem:[#allocation8 + $0x554] ss:$72 sps:$4 sm:$0xff]   ;;  %v18044_v32 = vld [vmem:[#allocation8 + $0x4c4] ss:$72 sps:$4 sm:$0xff]  }
 0x764   :  { %15336 = vmatpush3.msra.mxu0 %v13143_v12  ;;  %v18042_v4 = vld [vmem:[#allocation8 + $0x4c0] ss:$72 sps:$4 sm:$0xff]   ;;  %v18047_v12 = vld [vmem:[#allocation8 + $0x1634] ss:$72 sps:$4 sm:$0xff]  }
 0x765   :  { %15337 = vmatprep.subr.mxu0 %v13158_v8  ;;  %v18045_v8 = vld [vmem:[#allocation8 + $0x1630] ss:$72 sps:$4 sm:$0xff]  }
 0x766   :  { %12920 = vmatpush1.bf16.msra.mxu1 %v18006_v15  ;;  %15338 = vmatpush3.msra.mxu0 %v13142_v23  ;;  %v7570_v15 = vrot.slane %v18951_v3, %v18658_v1  ;;  %v18050_v23 = vld [vmem:[#allocation8 + $0x15a4] ss:$72 sps:$4 sm:$0xff]  }
 0x767   :  { %15339 = vmatprep.subr.mxu0 %v13157_v26  ;;  %12921 = vmatprep.subr.bf16.mxu1 %v18011_v30  ;;  %v7574_v30 = vrot.slane %v18951_v3, %v18661_v6  ;;  %v18051_v6 = vld [vmem:[#allocation8 + $0x1510] ss:$72 sps:$4 sm:$0xff]  }
 0x768   :  { %15340 = vmatpush3.msra.mxu0 %v13141_v35 }
 0x769   :  { %15341 = vmatprep.subr.mxu0 %v13156_v57 }
 0x76a   :  { %12922 = vmatpush1.bf16.msra.mxu1 %v18009_v38  ;;  %15342 = vmatpush3.msra.mxu0 %v13140_v18  ;;  %v18048_v38 = vld [vmem:[#allocation8 + $0x15a0] ss:$72 sps:$4 sm:$0xff]  }
 0x76b   :  { %15343 = vmatprep.subr.mxu0 %v13155_v20  ;;  %12923 = vmatprep.subr.bf16.mxu1 %v18014_v48  ;;  %v18053_v48 = vld [vmem:[#allocation8 + $0x1514] ss:$72 sps:$4 sm:$0xff]  }
 0x76c   :  { %15344 = vmatpush3.msra.mxu0 %v13139_v53 }
 0x76d   :  { %15345 = vmatprep.subr.mxu0 %v13154_v7  ;;  %v18056_v7 = vld [vmem:[#allocation8 + $0x1484] ss:$72 sps:$4 sm:$0xff]  }
 0x76e   :  { %12924 = vmatpush1.bf16.msra.mxu1 %v18012_v60  ;;  %15346 = vmatpush3.msra.mxu0 %v13138_v43 }
 0x76f   :  { %15347 = vmatprep.subr.mxu0 %v13153_v17  ;;  %12925 = vmatprep.subr.bf16.mxu1 %v18017_v49  ;;  %v18054_v49 = vld [vmem:[#allocation8 + $0x1480] ss:$72 sps:$4 sm:$0xff]   ;;  %v18059_v17 = vld [vmem:[#allocation8 + $0x13f4] ss:$72 sps:$4 sm:$0xff]  }
 0x770   :  { %15348 = vmatpush3.msra.mxu0 %v13137_v28  ;;  %v18062_v28 = vld [vmem:[#allocation8 + $0x1364] ss:$72 sps:$4 sm:$0xff]  }
 0x771   :  { %15349 = vmatprep.subr.mxu0 %v13152_v62  ;;  %v18065_v62 = vld [vmem:[#allocation8 + $0x12d4] ss:$72 sps:$4 sm:$0xff]  }
 0x772   :  { %12926 = vmatpush1.bf16.msra.mxu1 %v18015_v14  ;;  %15350 = vmatpush3.msra.mxu0 %v13136_v52  ;;  %v18060_v14 = vld [vmem:[#allocation8 + $0x1360] ss:$72 sps:$4 sm:$0xff]   ;;  %v18068_v52 = vld [vmem:[#allocation8 + $0x1244] ss:$72 sps:$4 sm:$0xff]  }
 0x773   :  { %15351 = vmatprep.subr.mxu0 %v13151_v22  ;;  %12927 = vmatprep.subr.bf16.mxu1 %v18020_v61  ;;  %v18066_v61 = vld [vmem:[#allocation8 + $0x1240] ss:$72 sps:$4 sm:$0xff]   ;;  %v18071_v22 = vld [vmem:[#allocation8 + $0x1ab4] ss:$72 sps:$4 sm:$0xff]  }
 0x774   :  { %15352 = vmatpush3.msra.mxu0 %v13135_v47  ;;  %v18069_v47 = vld [vmem:[#allocation8 + $0x1ab0] ss:$72 sps:$4 sm:$0xff]  }
 0x775   :  { %15353 = vmatprep.subr.mxu0 %v13150_v27  ;;  %v18072_v27 = vld [vmem:[#allocation8 + $0x1a20] ss:$72 sps:$4 sm:$0xff]  }
 0x776   :  { %12928 = vmatpush1.bf16.msra.mxu1 %v18018_v44  ;;  %15354 = vmatpush3.msra.mxu0 %v13134_v9  ;;  %v18074_v44 = vld [vmem:[#allocation8 + $0x1a24] ss:$72 sps:$4 sm:$0xff]   ;;  %v18077_v9 = vld [vmem:[#allocation8 + $0x1994] ss:$72 sps:$4 sm:$0xff]  }
 0x777   :  { %15355 = vmatprep.subr.mxu0 %v13149_v36  ;;  %12929 = vmatprep.subr.bf16.mxu1 %v18023_v54  ;;  %v18075_v54 = vld [vmem:[#allocation8 + $0x1990] ss:$72 sps:$4 sm:$0xff]   ;;  %v18080_v36 = vld [vmem:[#allocation8 + $0x1904] ss:$72 sps:$4 sm:$0xff]  }
 0x778   :  { %15356 = vmatpush3.msra.mxu0 %v13133_v21  ;;  %v18078_v21 = vld [vmem:[#allocation8 + $0x1900] ss:$72 sps:$4 sm:$0xff]  }
 0x779   :  { %15357 = vmatprep.subr.mxu0 %v13148_v45  ;;  %v18083_v45 = vld [vmem:[#allocation8 + $0x1874] ss:$72 sps:$4 sm:$0xff]  }
 0x77a   :  { %12930 = vmatpush2.bf16.msra.mxu1 %v18021_v63  ;;  %15358 = vmatpush3.msra.mxu0 %v13132_v33  ;;  %v15319_v63 = vmul.f32 -1.442695, %v18978_v11  ;;  %v15320_v33 = vmul.f32 -1.442695, %v18998_v40  ;;  %v18090_v11 = vld [vmem:[#allocation8 + $0x16c0] ss:$72 sps:$4 sm:$0xff]  }
 0x77b   :  { %13300 = vmatmul.mubr.f32.vlgmr.msra.gmra.mxu0 %v18947_v39  ;;  %12931 = vmatprep.subr.bf16.mxu1 %v18026_v56  ;;  %v18039_v39 = vld [vmem:[#allocation8 + $0x550] ss:$72 sps:$4 sm:$0xff]  }
 0x77c   :  { %v18081_v56 = vld [vmem:[#allocation8 + $0x1870] ss:$72 sps:$4 sm:$0xff]   ;;  %18201 = vpow2.f32 %v15319_v63  ;;  %v13182_v63 = vld [vmem:[#allocation11 + $0x190] sm:$0xff] }
 0x77d   :  { %18203 = vpow2.f32 %v15320_v33  ;;  %v13181_v33 = vld [vmem:[#allocation11 + $0x188] sm:$0xff] }
 0x77e   :  { %12932 = vmatpush2.bf16.msra.mxu1 %v18024_v42  ;;  %v18086_v42 = vld [vmem:[#allocation8 + $0x17e4] ss:$72 sps:$4 sm:$0xff]  }
 0x77f   :  { %12933 = vmatprep.subr.bf16.mxu1 %v18029_v24  ;;  %v18084_v24 = vld [vmem:[#allocation8 + $0x17e0] ss:$72 sps:$4 sm:$0xff]  }
 0x782   :  { %12934 = vmatpush2.bf16.msra.mxu1 %v18027_v0  ;;  %v18089_v0 = vld [vmem:[#allocation8 + $0x1754] ss:$72 sps:$4 sm:$0xff]  }
 0x783   :  { %12935 = vmatprep.subr.bf16.mxu1 %v18032_v5  ;;  %v18087_v5 = vld [vmem:[#allocation8 + $0x1750] ss:$72 sps:$4 sm:$0xff]  }
 0x786   :  { %12936 = vmatpush2.bf16.msra.mxu1 %v18030_v50  ;;  %v18092_v50 = vld [vmem:[#allocation8 + $0x16c4] ss:$72 sps:$4 sm:$0xff]  }
 0x787   :  { %12937 = vmatprep.subr.bf16.mxu1 %v18035_v13 }
 0x789   :  { %v18202_v13 = vpop.eup %18201 }
 0x78a   :  { %12938 = vmatpush2.bf16.msra.mxu1 %v18033_v2  ;;  %v13195_v2 = vld [vmem:[#allocation11 + $0x1f8] sm:$0xff]  ;;  %v18204_v40 = vpop.eup %18203 }
 0x78b   :  { %12939 = vmatprep.subr.bf16.mxu1 %v18038_v10  ;;  %v13093_v10 = vadd.f32 1.0, %v18202_v13 }
 0x78d   :  { %18205 = vrcp.f32 %v13093_v10 }
 0x78e   :  { %12940 = vmatpush2.bf16.msra.mxu1 %v18036_v16  ;;  %v13179_v16 = vld [vmem:[#allocation11 + $0x178] sm:$0xff] }
 0x78f   :  { %12941 = vmatprep.subr.bf16.mxu1 %v18041_v41  ;;  %v13194_v41 = vld [vmem:[#allocation11 + $0x1f0] sm:$0xff] }
 0x792   :  { %12942 = vmatpush2.bf16.msra.mxu1 %v18039_v39  ;;  %v13094_v39 = vadd.f32 1.0, %v18204_v40 }
 0x793   :  { %12943 = vmatprep.subr.bf16.mxu1 %v18044_v32 }
 0x796   :  { %12944 = vmatpush2.bf16.msra.mxu1 %v18042_v4  ;;  %v13178_v4 = vld [vmem:[#allocation11 + $0x170] sm:$0xff] }
 0x797   :  { %12995 = vmatprep.subr.bf16.mxu1 %v18047_v12 }
 0x799   :  { %v12701_v26 = vpop.f32.mrf.mxu1  ;;  %12946 = vmatmul.mubr.bf16.vlgmr.msra.gmra.mxu1 %v18772_v19 }
 0x79a   :  { %v12702_v35 = vadd.f32 %v12701_v26, %v7570_v15  ;;  %12996 = vmatpush1.bf16.msra.mxu1 %v18045_v8  ;;  %13027 = vmatprep.mubr.bf16.mxu1 %v18824_v37  ;;  %v13193_v15 = vld [vmem:[#allocation11 + $0x1e8] sm:$0xff] }
 0x79b   :  { %v12703_v57 = vpop.f32.mrf.mxu1  ;;  %v19013_v18 = vpop.f32.mrf.mxu0  ;;  %12997 = vmatprep.subr.bf16.mxu1 %v18050_v23 }
 0x79c   :  { %v12704_v1 = vadd.f32 %v12703_v57, %v7574_v30  ;;  %v19016_v20 = vadd.f32 %v18994_v46, %v12702_v35  ;;  %v18057_v46 = vld [vmem:[#allocation8 + $0x13f0] ss:$72 sps:$4 sm:$0xff]  }
 0x79d   :  { %v12705_v53 = vpop.f32.mrf.mxu1  ;;  %v19018_v60 = vpop.f32.mrf.mxu0  ;;  %v13177_v30 = vld [vmem:[#allocation11 + $0x168] sm:$0xff]  ;;  %v13192_v35 = vld [vmem:[#allocation11 + $0x1e0] sm:$0xff] }
 0x79e   :  { %12998 = vmatpush1.bf16.msra.mxu1 %v18048_v38  ;;  %v19021_v19 = vadd.f32 %v19001_v51, %v12704_v1  ;;  %v18063_v51 = vld [vmem:[#allocation8 + $0x12d0] ss:$72 sps:$4 sm:$0xff]  }
 0x79f   :  { %v12706_v3 = vpop.f32.mrf.mxu1  ;;  %v12828_v37 = vpop.f32.mrf.mxu0  ;;  %12999 = vmatprep.subr.bf16.mxu1 %v18053_v48  ;;  %v13191_v48 = vld [vmem:[#allocation11 + $0x1d8] sm:$0xff] }
 0x7a0   :  { %v13175_v53 = vld [vmem:[#allocation11 + $0x158] sm:$0xff]  ;;  %v13189_v37 = vld [vmem:[#allocation11 + $0x1c8] sm:$0xff] }
 0x7a1   :  { %v12829_v43 = vpop.f32.mrf.mxu0 }
 0x7a2   :  { %13000 = vmatpush1.bf16.msra.mxu1 %v18051_v6  ;;  %v13190_v6 = vld [vmem:[#allocation11 + $0x1d0] sm:$0xff]  ;;  %v13188_v43 = vld [vmem:[#allocation11 + $0x1c0] sm:$0xff] }
 0x7a3   :  { %13001 = vmatprep.subr.bf16.mxu1 %v18056_v7  ;;  %v13173_v7 = vld [vmem:[#allocation11 + $0x148] sm:$0xff] }
 0x7a6   :  { %13002 = vmatpush1.bf16.msra.mxu1 %v18054_v49  ;;  %v13172_v49 = vld [vmem:[#allocation11 + $0x140] sm:$0xff] }
 0x7a7   :  { %13003 = vmatprep.subr.bf16.mxu1 %v18059_v17  ;;  %v13187_v17 = vld [vmem:[#allocation11 + $0x1b8] sm:$0xff] }
 0x7aa   :  { %13004 = vmatpush1.bf16.msra.mxu1 %v18057_v46  ;;  %v13171_v46 = vld [vmem:[#allocation11 + $0x138] sm:$0xff] }
 0x7ab   :  { %13005 = vmatprep.subr.bf16.mxu1 %v18062_v28  ;;  %v18206_v28 = vpop.eup %18205 }
 0x7ae   :  { %13006 = vmatpush1.bf16.msra.mxu1 %v18060_v14  ;;  %v13186_v14 = vld [vmem:[#allocation11 + $0x1b0] sm:$0xff] }
 0x7af   :  { %13007 = vmatprep.subr.bf16.mxu1 %v18065_v62 }
 0x7b2   :  { %13008 = vmatpush1.bf16.msra.mxu1 %v18063_v51  ;;  %v13170_v51 = vld [vmem:[#allocation11 + $0x130] sm:$0xff] }
 0x7b3   :  { %13009 = vmatprep.subr.bf16.mxu1 %v18068_v52 }
 0x7b6   :  { %13010 = vmatpush1.bf16.msra.mxu1 %v18066_v61 }
 0x7b7   :  { %13011 = vmatprep.subr.bf16.mxu1 %v18071_v22  ;;  %v13185_v22 = vld [vmem:[#allocation11 + $0x1a8] sm:$0xff] }
 0x7ba   :  { %13012 = vmatpush2.bf16.msra.mxu1 %v18069_v47 }
 0x7bb   :  { %13013 = vmatprep.subr.bf16.mxu1 %v18074_v44  ;;  %v13169_v44 = vld [vmem:[#allocation11 + $0x128] sm:$0xff] }
 0x7be   :  { %13014 = vmatpush2.bf16.msra.mxu1 %v18072_v27 }
 0x7bf   :  { %13015 = vmatprep.subr.bf16.mxu1 %v18077_v9  ;;  %v13184_v9 = vld [vmem:[#allocation11 + $0x1a0] sm:$0xff] }
 0x7c2   :  { %13016 = vmatpush2.bf16.msra.mxu1 %v18075_v54  ;;  %v13168_v54 = vld [vmem:[#allocation11 + $0x120] sm:$0xff] }
 0x7c3   :  { %13017 = vmatprep.subr.bf16.mxu1 %v18080_v36  ;;  %v13183_v36 = vld [vmem:[#allocation11 + $0x198] sm:$0xff] }
 0x7c6   :  { %13018 = vmatpush2.bf16.msra.mxu1 %v18078_v21  ;;  %v13167_v21 = vld [vmem:[#allocation11 + $0x118] sm:$0xff] }
 0x7c7   :  { %13019 = vmatprep.subr.bf16.mxu1 %v18083_v45  ;;  %v13166_v45 = vld [vmem:[#allocation11 + $0x110] sm:$0xff] }
 0x7ca   :  { %13020 = vmatpush2.bf16.msra.mxu1 %v18081_v56  ;;  %v13165_v56 = vld [vmem:[#allocation11 + $0x108] sm:$0xff] }
 0x7cb   :  { %13021 = vmatprep.subr.bf16.mxu1 %v18086_v42  ;;  %v13180_v42 = vld [vmem:[#allocation11 + $0x180] sm:$0xff] }
 0x7ce   :  { %13022 = vmatpush2.bf16.msra.mxu1 %v18084_v24  ;;  %v13164_v24 = vld [vmem:[#allocation11 + $0x100] sm:$0xff] }
 0x7cf   :  { %13023 = vmatprep.subr.bf16.mxu1 %v18089_v0  ;;  %v15321_v0 = vmul.f32 -1.442695, %v19004_v58 }
 0x7d2   :  { %13024 = vmatpush2.bf16.msra.mxu1 %v18087_v5  ;;  %v18242_v5 = vld [vmem:[#allocation10 + $0x8] sm:$0xff] }
 0x7d3   :  { %13025 = vmatprep.subr.bf16.mxu1 %v18092_v50  ;;  %v7578_v50 = vrot.slane %v18242_v5, %v18692_v25  ;;  %v7582_v13 = vrot.slane %v18242_v5, %v18695_v29 }
 0x7d6   :  { %13026 = vmatpush2.bf16.msra.mxu1 %v18090_v11 }
 0x7d7   :  { %15362 = vmatprep.subr.mxu1 %v13195_v2  ;;  %v12825_v2 = vadd.f32 %v19013_v18, %v7578_v50 }
 0x7d9   :  { %v12783_v32 = vpop.f32.mrf.mxu1  ;;  %13028 = vmatmul.mubr.bf16.vlgmr.msra.gmra.mxu1 %v18826_v55  ;;  %v13176_v55 = vld [vmem:[#allocation11 + $0x160] sm:$0xff] }
 0x7da   :  { %v12784_v12 = vadd.f32 %v12783_v32, %v19016_v20  ;;  %15363 = vmatpush3.msra.mxu1 %v13179_v16  ;;  %v12827_v16 = vadd.f32 %v19018_v60, %v7582_v13  ;;  %v13211_v60 = vld [vmem:[#allocation11 + $0x278] sm:$0xff] }
 0x7db   :  { %v12785_v8 = vpop.f32.mrf.mxu1  ;;  %v19027_v23 = vpop.f32.mrf.mxu0  ;;  %15364 = vmatprep.subr.mxu1 %v13194_v41 }
 0x7dc   :  { %18207 = vtanh.f32 %v12784_v12  ;;  %v12786_v26 = vadd.f32 %v12785_v8, %v19021_v19  ;;  %15365 = vmatpush3.msra.mxu1 %v13178_v4  ;;  %v13174_v19 = vld [vmem:[#allocation11 + $0x150] sm:$0xff] }
 0x7dd   :  { %18209 = vrcp.f32 %v13094_v39  ;;  %v12787_v38 = vpop.f32.mrf.mxu1  ;;  %v19030_v57 = vpop.f32.mrf.mxu0  ;;  %15366 = vmatprep.subr.mxu1 %v13193_v15 }
 0x7de   :  { %18211 = vtanh.f32 %v12786_v26  ;;  %15367 = vmatpush3.msra.mxu1 %v13177_v30  ;;  %v13227_v26 = vld [vmem:[#allocation11 + $0x2f8] sm:$0xff]  ;;  %v13225_v38 = vld [vmem:[#allocation11 + $0x2e8] sm:$0xff] }
 0x7df   :  { %v12788_v1 = vpop.f32.mrf.mxu1  ;;  %v12910_v20 = vpop.f32.mrf.mxu0  ;;  %15368 = vmatprep.subr.mxu1 %v13192_v35  ;;  %18213 = vpow2.f32 %v15321_v0  ;;  %15397 = vmatprep.subr.mxu0 %v13227_v26  ;;  %v13226_v35 = vld [vmem:[#allocation11 + $0x2f0] sm:$0xff] }
 0x7e0   :  { %15369 = vmatpush3.msra.mxu1 %v13176_v55  ;;  %15398 = vmatpush3.msra.mxu0 %v13211_v60  ;;  %v13209_v55 = vld [vmem:[#allocation11 + $0x268] sm:$0xff]  ;;  %v13223_v1 = vld [vmem:[#allocation11 + $0x2d8] sm:$0xff] }
 0x7e1   :  { %v12911_v3 = vpop.f32.mrf.mxu0  ;;  %15370 = vmatprep.subr.mxu1 %v13191_v48  ;;  %15399 = vmatprep.subr.mxu0 %v13226_v35  ;;  %v13224_v48 = vld [vmem:[#allocation11 + $0x2e0] sm:$0xff] }
 0x7e2   :  { %15371 = vmatpush3.msra.mxu1 %v13175_v53  ;;  %v13207_v53 = vld [vmem:[#allocation11 + $0x258] sm:$0xff]  ;;  %v13222_v3 = vld [vmem:[#allocation11 + $0x2d0] sm:$0xff] }
 0x7e3   :  { %15372 = vmatprep.subr.mxu1 %v13190_v6 }
 0x7e4   :  { %15373 = vmatpush3.msra.mxu1 %v13174_v19 }
 0x7e5   :  { %15374 = vmatprep.subr.mxu1 %v13189_v37  ;;  %v13206_v37 = vld [vmem:[#allocation11 + $0x250] sm:$0xff] }
 0x7e6   :  { %15375 = vmatpush3.msra.mxu1 %v13173_v7  ;;  %v13221_v7 = vld [vmem:[#allocation11 + $0x2c8] sm:$0xff] }
 0x7e7   :  { %15376 = vmatprep.subr.mxu1 %v13188_v43  ;;  %v13205_v43 = vld [vmem:[#allocation11 + $0x248] sm:$0xff] }
 0x7e8   :  { %15377 = vmatpush3.msra.mxu1 %v13172_v49 }
 0x7e9   :  { %v18208_v62 = vpop.eup %18207  ;;  %15378 = vmatprep.subr.mxu1 %v13187_v17  ;;  %v13220_v17 = vld [vmem:[#allocation11 + $0x2c0] sm:$0xff] }
 0x7ea   :  { %v18210_v52 = vpop.eup %18209  ;;  %v19032_v61 = vmul.f32 %v18208_v62, %v18206_v28  ;;  %15379 = vmatpush3.msra.mxu1 %v13171_v46  ;;  %v13204_v28 = vld [vmem:[#allocation11 + $0x240] sm:$0xff]  ;;  %v13203_v62 = vld [vmem:[#allocation11 + $0x238] sm:$0xff] }
 0x7eb   :  { %v18212_v47 = vpop.eup %18211  ;;  %15380 = vmatprep.subr.mxu1 %v13186_v14  ;;  %v13219_v14 = vld [vmem:[#allocation11 + $0x2b8] sm:$0xff] }
 0x7ec   :  { %v19034_v27 = vmul.f32 %v18212_v47, %v18210_v52  ;;  %15381 = vmatpush3.msra.mxu1 %v13170_v51  ;;  %v18214_v11 = vpop.eup %18213  ;;  %v13218_v51 = vld [vmem:[#allocation11 + $0x2b0] sm:$0xff]  ;;  %v13201_v47 = vld [vmem:[#allocation11 + $0x228] sm:$0xff] }
 0x7ed   :  { %15382 = vmatprep.subr.mxu1 %v13185_v22  ;;  %v13095_v40 = vadd.f32 1.0, %v18214_v11  ;;  %v13202_v52 = vld [vmem:[#allocation11 + $0x230] sm:$0xff]  ;;  %v13217_v22 = vld [vmem:[#allocation11 + $0x2a8] sm:$0xff] }
 0x7ee   :  { %15383 = vmatpush3.msra.mxu1 %v13169_v44  ;;  %v13216_v44 = vld [vmem:[#allocation11 + $0x2a0] sm:$0xff] }
 0x7ef   :  { %15384 = vmatprep.subr.mxu1 %v13184_v9  ;;  %18215 = vrcp.f32 %v13095_v40  ;;  %v13200_v9 = vld [vmem:[#allocation11 + $0x220] sm:$0xff]  ;;  %v18490_v40 = vmov 0.0  }
 0x7f0   :  { %15385 = vmatpush3.msra.mxu1 %v13168_v54  ;;  %v13215_v54 = vld [vmem:[#allocation11 + $0x298] sm:$0xff] }
 0x7f1   :  { %15386 = vmatprep.subr.mxu1 %v13183_v36  ;;  %v13199_v36 = vld [vmem:[#allocation11 + $0x218] sm:$0xff] }
 0x7f2   :  { %15387 = vmatpush3.msra.mxu1 %v13167_v21  ;;  %v13214_v21 = vld [vmem:[#allocation11 + $0x290] sm:$0xff] }
 0x7f3   :  { %15388 = vmatprep.subr.mxu1 %v13182_v63  ;;  %v13213_v63 = vld [vmem:[#allocation11 + $0x288] sm:$0xff] }
 0x7f4   :  { %15389 = vmatpush3.msra.mxu1 %v13166_v45  ;;  %v13197_v45 = vld [vmem:[#allocation11 + $0x208] sm:$0xff] }
 0x7f5   :  { %15390 = vmatprep.subr.mxu1 %v13181_v33  ;;  %v13212_v33 = vld [vmem:[#allocation11 + $0x280] sm:$0xff] }
 0x7f6   :  { %15391 = vmatpush3.msra.mxu1 %v13165_v56 }
 0x7f7   :  { %15392 = vmatprep.subr.mxu1 %v13180_v42  ;;  %v13196_v42 = vld [vmem:[#allocation11 + $0x200] sm:$0xff] }
 0x7f8   :  { %15393 = vmatpush3.msra.mxu1 %v13164_v24 }
 0x7f9   :  { %15449 = vmatprep.subr.mxu1 %v18490_v40 }
 0x7fc   :  { %v18216_v20 = vpop.eup %18215 }
 0x819   :  { %v12865_v10 = vpop.f32.mrf.mxu1 }
 0x81a   :  { %v12866_v41 = vadd.f32 %v12865_v10, %v12825_v2  ;;  %v13461_v2 = vld [vmem:[#allocation14 + $0x78] sm:$0xff]  ;;  %v13460_v10 = vld [vmem:[#allocation14 + $0x70] sm:$0xff] }
 0x81b   :  { %v12867_v39 = vpop.f32.mrf.mxu1  ;;  %v19041_v32 = vpop.f32.mrf.mxu0 }
 0x81c   :  { %v12907_v4 = vadd.f32 %v19027_v23, %v12866_v41  ;;  %v12868_v58 = vadd.f32 %v12867_v39, %v12827_v16  ;;  %v13210_v23 = vld [vmem:[#allocation11 + $0x270] sm:$0xff]  ;;  %v7515_v41 = vld [vmem:[#allocation10 + $0x10] sm:$0x3]  ;;  %v13458_v39 = vld [vmem:[#allocation14 + $0x60] sm:$0xff] }
 0x81d   :  { %v12869_v12 = vpop.f32.mrf.mxu1  ;;  %v19044_v15 = vpop.f32.mrf.mxu0  ;;  %15400 = vmatpush3.msra.mxu0 %v13210_v23  ;;  %v13459_v16 = vld [vmem:[#allocation14 + $0x68] sm:$0xff] }
 0x81e   :  { %18217 = vtanh.f32 %v12907_v4  ;;  %v12909_v25 = vadd.f32 %v19030_v57, %v12868_v58  ;;  %15401 = vmatprep.subr.mxu0 %v13225_v38  ;;  %v13208_v57 = vld [vmem:[#allocation11 + $0x260] sm:$0xff]  ;;  %v7586_v4 = vrot.slane %v7515_v41, %v18605_v31  ;;  %v13456_v58 = vld [vmem:[#allocation14 + $0x50] sm:$0xff]  ;;  %v7590_v12 = vrot.slane %v7515_v41, %v18608_v34  ;;  %v13451_v38 = vld [vmem:[#allocation14 + $0x28] sm:$0xff] }
 0x81f   :  { %v12870_v29 = vpop.f32.mrf.mxu1  ;;  %v12992_v18 = vpop.f32.mrf.mxu0  ;;  %15402 = vmatpush3.msra.mxu0 %v13209_v55  ;;  %v13453_v31 = vld [vmem:[#allocation14 + $0x38] sm:$0xff]  ;;  %v13452_v34 = vld [vmem:[#allocation14 + $0x30] sm:$0xff] }
 0x820   :  { %v15322_v8 = vmul.f32 -1.442695, %v12909_v25  ;;  %15403 = vmatprep.subr.mxu0 %v13224_v48  ;;  %v13455_v25 = vld [vmem:[#allocation14 + $0x48] sm:$0xff]  ;;  %v13454_v18 = vld [vmem:[#allocation14 + $0x40] sm:$0xff] }
 0x821   :  { %v12993_v30 = vpop.f32.mrf.mxu0  ;;  %15404 = vmatpush3.msra.mxu0 %v13208_v57 }
 0x822   :  { %18219 = vpow2.f32 %v15322_v8  ;;  %15405 = vmatprep.subr.mxu0 %v13223_v1 }
 0x823   :  { %15406 = vmatpush3.msra.mxu0 %v13207_v53  ;;  %18221 = vtanh.f32 %v19032_v61  ;;  %v13198_v61 = vld [vmem:[#allocation11 + $0x210] sm:$0xff] }
 0x824   :  { %15407 = vmatprep.subr.mxu0 %v13222_v3 }
 0x825   :  { %15408 = vmatpush3.msra.mxu0 %v13206_v37 }
 0x826   :  { %15409 = vmatprep.subr.mxu0 %v13221_v7 }
 0x827   :  { %15410 = vmatpush3.msra.mxu0 %v13205_v43 }
 0x828   :  { %15411 = vmatprep.subr.mxu0 %v13220_v17 }
 0x829   :  { %15412 = vmatpush3.msra.mxu0 %v13204_v28  ;;  %v13449_v28 = vld [vmem:[#allocation14 + $0x18] sm:$0xff] }
 0x82a   :  { %15413 = vmatprep.subr.mxu0 %v13219_v14  ;;  %v13448_v14 = vld [vmem:[#allocation14 + $0x10] sm:$0xff] }
 0x82b   :  { %v18218_v6 = vpop.eup %18217  ;;  %15414 = vmatpush3.msra.mxu0 %v13203_v62 }
 0x82c   :  { %v19047_v19 = vmul.f32 %v18218_v6, %v18216_v20  ;;  %15415 = vmatprep.subr.mxu0 %v13218_v51 }
 0x82d   :  { %15416 = vmatpush3.msra.mxu0 %v13202_v52 }
 0x82e   :  { %15417 = vmatprep.subr.mxu0 %v13217_v22 }
 0x82f   :  { %v18220_v49 = vpop.eup %18219  ;;  %15418 = vmatpush3.msra.mxu0 %v13201_v47 }
 0x830   :  { %v13114_v46 = vadd.f32 1.0, %v18220_v49  ;;  %15419 = vmatprep.subr.mxu0 %v13216_v44  ;;  %v18222_v56 = vpop.eup %18221  ;;  %v15325_v44 = vld [vmem:[#allocation13] ss:$0 sm:$0xff] }
 0x831   :  { %15420 = vmatpush3.msra.mxu0 %v13200_v9 }
 0x832   :  { %18223 = vrcp.f32 %v13114_v46  ;;  %15421 = vmatprep.subr.mxu0 %v13215_v54 }
 0x833   :  { %15422 = vmatpush3.msra.mxu0 %v13199_v36 }
 0x834   :  { %15423 = vmatprep.subr.mxu0 %v13214_v21 }
 0x835   :  { %15424 = vmatpush3.msra.mxu0 %v13198_v61 }
 0x836   :  { %15425 = vmatprep.subr.mxu0 %v13213_v63 }
 0x837   :  { %15426 = vmatpush3.msra.mxu0 %v13197_v45 }
 0x838   :  { %15427 = vmatprep.subr.mxu0 %v13212_v33 }
 0x839   :  { %15428 = vmatpush3.msra.mxu0 %v13196_v42 }
 0x83b   :  { %v15359_v62 = vpop.f32.mrf.mxu0 }
 0x83d   :  { %v15360_v52 = vpop.f32.mrf.mxu0 }
 0x83e   :  { %v15361_v47 = vadd.f32 %v15360_v52, %v15359_v62 }
 0x83f   :  { %v18224_v24 = vpop.eup %18223 }
 0x840   :  { %v13129_v0 = vmul.f32 %v18224_v24, %v18222_v56  ;;  %v13302_v36 = vadd.f32 %v15361_v47, %v15325_v44 }
 0x842   :  { %13369 = vmatprep.mubr.f32.mxu1 %v13129_v0 }
 0x843   :  { %13370 = vmatmul.mubr.f32.vlgmr.msra.gmra.mxu1 %v18984_v59  ;;  %v13457_v59 = vld [vmem:[#allocation14 + $0x58] sm:$0xff] }
 0x844   :  { %15450 = vmatpush3.msra.mxu1 %v13461_v2  ;;  %15481 = vmatprep.mubr.msk.f32.mxu1 %vm18491_vm0, %v18490_v40 }
 0x845   :  { %15451 = vmatprep.subr.mxu1 %v18490_v40 }
 0x846   :  { %15452 = vmatpush3.msra.mxu1 %v13460_v10 }
 0x847   :  { %15453 = vmatprep.subr.mxu1 %v18490_v40 }
 0x848   :  { %15454 = vmatpush3.msra.mxu1 %v13459_v16 }
 0x849   :  { %15455 = vmatprep.subr.mxu1 %v18490_v40 }
 0x84a   :  { %15456 = vmatpush3.msra.mxu1 %v13458_v39 }
 0x84b   :  { %15457 = vmatprep.subr.mxu1 %v18490_v40 }
 0x84c   :  { %15458 = vmatpush3.msra.mxu1 %v13457_v59 }
 0x84d   :  { %15459 = vmatprep.subr.mxu1 %v18490_v40 }
 0x84e   :  { %15460 = vmatpush3.msra.mxu1 %v13456_v58 }
 0x84f   :  { %15461 = vmatprep.subr.mxu1 %v18490_v40 }
 0x850   :  { %15462 = vmatpush3.msra.mxu1 %v13455_v25 }
 0x851   :  { %15463 = vmatprep.subr.mxu1 %v18490_v40 }
 0x852   :  { %15464 = vmatpush3.msra.mxu1 %v13454_v18 }
 0x853   :  { %15465 = vmatprep.subr.mxu1 %v18490_v40 }
 0x854   :  { %15466 = vmatpush3.msra.mxu1 %v13453_v31 }
 0x855   :  { %15467 = vmatprep.subr.mxu1 %v18490_v40 }
 0x856   :  { %15468 = vmatpush3.msra.mxu1 %v13452_v34 }
 0x857   :  { %15469 = vmatprep.subr.mxu1 %v18490_v40 }
 0x858   :  { %15470 = vmatpush3.msra.mxu1 %v13451_v38 }
 0x859   :  { %v12947_v5 = vpop.f32.mrf.mxu1  ;;  %15471 = vmatprep.subr.mxu1 %v18490_v40 }
 0x85a   :  { %v12948_v29 = vadd.f32 %v12947_v5, %v7586_v4 }
 0x85b   :  { %v12949_v50 = vpop.f32.mrf.mxu1 }
 0x85c   :  { %v12950_v8 = vadd.f32 %v12949_v50, %v7590_v12  ;;  %v12989_v30 = vadd.f32 %v19041_v32, %v12948_v29  ;;  %v13450_v32 = vld [vmem:[#allocation14 + $0x20] sm:$0xff] }
 0x85d   :  { %v12951_v11 = vpop.f32.mrf.mxu1  ;;  %15472 = vmatpush3.msra.mxu1 %v13450_v32 }
 0x85e   :  { %v12991_v35 = vadd.f32 %v19044_v15, %v12950_v8  ;;  %15473 = vmatprep.subr.mxu1 %v18490_v40 }
 0x85f   :  { %v12952_v13 = vpop.f32.mrf.mxu1  ;;  %15474 = vmatpush3.msra.mxu1 %v13449_v28 }
 0x860   :  { %15475 = vmatprep.subr.mxu1 %v18490_v40 }
 0x861   :  { %15476 = vmatpush3.msra.mxu1 %v13448_v14 }
 0x862   :  { %15477 = vmatprep.subr.mxu1 %v18490_v40 }
 0x899   :  { %v13029_v26 = vpop.f32.mrf.mxu1 }
 0x89a   :  { %v13030_v60 = vadd.f32 %v13029_v26, %v12989_v30 }
 0x89b   :  { %v13031_v23 = vpop.f32.mrf.mxu1 }
 0x89c   :  { %v15323_v55 = vmul.f32 -1.442695, %v13030_v60  ;;  %v13032_v48 = vadd.f32 %v13031_v23, %v12991_v35 }
 0x89d   :  { %v13033_v57 = vpop.f32.mrf.mxu1 }
 0x89e   :  { %18225 = vpow2.f32 %v15323_v55  ;;  %v15324_v1 = vmul.f32 -1.442695, %v13032_v48 }
 0x89f   :  { %v13034_v20 = vpop.f32.mrf.mxu1 }
 0x8a0   :  { %18227 = vpow2.f32 %v15324_v1 }
 0x8a1   :  { %18229 = vtanh.f32 %v19034_v27  ;;  %v13447_v27 = vld [vmem:[#allocation14 + $0x8] sm:$0xff] }
 0x8a2   :  { %15478 = vmatpush3.msra.mxu1 %v13447_v27 }
 0x8a3   :  { %15479 = vmatprep.subr.mxu1 %v18490_v40 }
 0x8ab   :  { %v18226_v15 = vpop.eup %18225 }
 0x8ac   :  { %v13115_v53 = vadd.f32 1.0, %v18226_v15 }
 0x8ad   :  { %v18228_v6 = vpop.eup %18227 }
 0x8ae   :  { %18231 = vrcp.f32 %v13115_v53  ;;  %v13116_v3 = vadd.f32 1.0, %v18228_v6  ;;  %v18230_v37 = vpop.eup %18229 }
 0x8af   :  { %18233 = vtanh.f32 %v19047_v19  ;;  %v13446_v19 = vld [vmem:[#allocation14] sm:$0xff] }
 0x8b0   :  { %18235 = vrcp.f32 %v13116_v3  ;;  %15480 = vmatpush3.msra.mxu1 %v13446_v19 }
 0x8bb   :  { %v18232_v7 = vpop.eup %18231 }
 0x8bc   :  { %v18234_v43 = vpop.eup %18233  ;;  %v13130_v49 = vmul.f32 %v18232_v7, %v18230_v37 }
 0x8bd   :  { %v18236_v17 = vpop.eup %18235 }
 0x8be   :  { %v13131_v46 = vmul.f32 %v18236_v17, %v18234_v43 }
 0x8c0   :  { %13439 = vmatprep.mubr.f32.mxu0 %v13131_v46 }
 0x8c1   :  { %13440 = vmatmul.mubr.f32.vlgmr.msra.gmra.mxu0 %v13130_v49 }
 0x903   :  { %v15394_v51 = vpop.f32.mrf.mxu1 }
 0x905   :  { %v15395_v22 = vpop.f32.mrf.mxu1 }
 0x906   :  { %v15396_v9 = vadd.f32 %v15395_v22, %v15394_v51 }
 0x908   :  { %v13372_v61 = vadd.f32 %v15396_v9, %v13302_v36 }
 0x981   :  { %v15429_v54 = vpop.f32.mrf.mxu0 }
 0x983   :  { %v15430_v21 = vpop.f32.mrf.mxu0 }
 0x984   :  { %v15431_v63 = vadd.f32 %v15430_v21, %v15429_v54 }
 0x986   :  { %v13442_v45 = vadd.f32 %v15431_v63, %v13372_v61 }
 0x988   :  { %13445 = vst [vmem:[#allocation17] sm:$0xff] %v13442_v45  ;;  %15482 = vmatmul.mubr.f32.vlgmr.msra.gmra.mxu1 %v13442_v45 }
 0x989   :  { %18434 = shalt.err (!%p18431_p7)
}
 0x98a   :  { %13549 = dma.vmem_to_hbm [thread:$0]  %s13547_s8, 128, %s19089_s9, [#allocation4]   ;;  %v15326_v33 = vld [vmem:[#allocation16] ss:$0 sm:$0xff] }
 0x98b   :  { %s18493_s5 = smov [#allocation18]  }
 0x98c   :  { %s13556_s18 = sshll.u32 %s18493_s5, 4  ;;  %s13557_s18 = int_to_ptr.vmem [resolvable:$true] %s13556_s18 }
 0x98d   :  { %s18443_s19 = scalar_lea.vmem %s13557_s18, 128  ;;  %p18448_p9 = scmp.lt.s32.totalorder %s13557_s18, %s13557_s18 }
 0x98e   :  { %p18444_p8 = scmp.ne.s32.totalorder %s13557_s18, %s18443_s19  ;;  %p18449_p10 = scmp.lt.s32.totalorder %s18443_s19, %s18443_s19 }
 0x990   :  { %p18450_p11 = por %p18449_p10, %p18448_p9 }
 0x992   :  { %p18451_p12 = pnand %p18450_p11, %p18444_p8 }
 0xa48   :  { %v13535_v56 = vpop.f32.mrf.mxu1 }
 0xa49   :  { %v13536_v42 = vadd.f32 %v15326_v33, %v13535_v56 }
 0xa4a   :  { %v15483_v24 = vpop.f32.mrf.mxu1 }
 0xa4b   :  { %13539 = vst [vmem:[#allocation18] sm:$0xff] %v13536_v42 }
 0xa4c   :  { %18454 = shalt.err (!%p18451_p12)
}
 0xa4d   :  { %13559 = dma.vmem_to_hbm [thread:$0]  %s13557_s18, 128, %s19090_s10, [#allocation19]  }
 0xa4e   :  { %18473 = dma.done.wait [#allocation4], 128  }
 0xa4f   :  { %18474 = vsyncadd [#allocation4], 4294967168 }
 0xa50   :  { %18475 = dma.done.wait [#allocation19], 128  }
 0xa51   :  { %18476 = vsyncadd [#allocation19], 4294967168 }
 0xa52   :  { %13566 = vsyncpa [#allocation3], 1 }
 0xa53   :  { %13567 = vsyncpa [#allocation6], 1 }
 0xa54   :  { %13568 = vsyncpa [#allocation9], 1 }
 0xa55   :  { %13569 = vsyncpa [#allocation12], 1 }
 0xa56   :  { %13570 = vsyncpa [#allocation15], 1 }
 0xa57   :  { %13571 = vsyncpa [#allocation4], 1 }
 0xa58   :  { %13572 = vsyncpa [#allocation19], 1 }

</bundles_post_ra>
